<compile_context>
chip_gen: v5e
topology: v5e:2x2
jax: 0.10.0
libtpu: 0.0.40
codegen_flags: <defaults>
</compile_context>

<pallas_src>
import functools

import jax
import jax.numpy as jnp
from jax import lax
from jax.experimental import pallas as pl
from jax.experimental.pallas import tpu as pltpu

# Fixed module hyper-parameters (from the PyTorch spec).
C_IN, C1, C2 = 4, 16, 32
K1, S1 = 8, 4          # conv1 kernel / stride
K2, S2 = 4, 2          # conv2 kernel / stride


def _pair_patches(x):
    """Host-side im2col for conv1 with adjacent output-width pairs fused.

    Returns (N, R1, 384): rows are (conv1 out row, width-pair) padded to a
    multiple of 8; features are (kernel row kh, 12 input cols, c_in).
    Built from a handful of pads / reshapes / concats (boundary-only XLA).
    """
    N, C, H, W = x.shape
    H1 = (H - K1) // S1 + 1
    W1 = (W - K1) // S1 + 1
    Q = W1 // 2                          # width pairs per conv1 output row
    KW = K1 + S1                         # 12 input columns per paired window

    xt = jnp.transpose(x, (0, 2, 3, 1))                                   # NHWC
    xt = jnp.pad(xt, ((0, 0), (0, 0), (0, 2 * S1 * (Q + 1) - W), (0, 0)))
    xb = xt.reshape(N, H, Q + 1, 2 * S1, C)
    # window q covers input cols 8q .. 8q+11  = block q (8 cols) + first 4 of block q+1
    win = jnp.concatenate([xb[:, :, :Q], xb[:, :, 1:Q + 1, :K1 - S1]], axis=3)   # (N,H,Q,12,C)
    hb = win.reshape(N, H // S1, S1, Q, KW, C)
    # output row ho covers input rows 4ho .. 4ho+7 = row-block ho + row-block ho+1
    winh = jnp.concatenate([hb[:, :H1], hb[:, 1:H1 + 1]], axis=2)                # (N,H1,8,Q,12,C)
    p = jnp.transpose(winh, (0, 1, 3, 2, 4, 5)).reshape(N, H1 * Q, K1 * KW * C)  # (N,132,384)
    rpad = (-(H1 * Q)) % 8
    if rpad:
        p = jnp.pad(p, ((0, 0), (0, rpad), (0, 0)))                              # (N,136,384)
    return p


def dqcnn_forward(params, x, *, block_batch=8, use_bf16_dots=False):
    """Fused DQCNN forward. x: (N, 4, H, W) NCHW -> (N, 32, 1, A) like PyTorch."""
    N, C, H, W = x.shape
    assert C == C_IN
    A = params["fc2_w"].shape[0]
    FC1 = params["fc1_w"].shape[0]

    H1 = (H - K1) // S1 + 1
    W1 = (W - K1) // S1 + 1
    H2 = (H1 - K2) // S2 + 1
    W2 = (W1 - K2) // S2 + 1
    # The module (no flatten) only works when conv2's output width == fc1 in_features.
    assert W2 == params["fc1_w"].shape[1] == 32
    assert H2 == 1 and H % S1 == 0 and (H - K1) % S1 == 0 and (W - K1) % S1 == 0
    assert W1 % 2 == 0                      # needed for the width-pairing trick

    Q = W1 // 2                             # 33 width pairs per conv1 row
    F1P = K1 * (K1 + S1) * C_IN             # 384 paired conv1 patch features
    F2 = K2 * K2 * C1                       # 256 conv2 patch features
    R1 = (-(-(H1 * Q) // 8)) * 8            # 136 patch rows/sample (8-aligned)
    NPAIR = K2 // S2                        # 2 pair offsets per conv2 kernel row

    cdt = jnp.bfloat16 if use_bf16_dots else jnp.float32

    # ---- host-side (boundary-only) layout prep ----
    p1 = _pair_patches(x).astype(cdt)                                     # (N, 136, 384)

    w1t = jnp.transpose(params["conv1_w"], (2, 3, 1, 0))                  # (kh, kw, cin, cout)
    w_even = jnp.pad(w1t, ((0, 0), (0, S1), (0, 0), (0, 0)))              # even-width output
    w_odd = jnp.pad(w1t, ((0, 0), (S1, 0), (0, 0), (0, 0)))               # odd-width output
    w1p = jnp.concatenate([w_even, w_odd], axis=3).reshape(F1P, 2 * C1).astype(cdt)
    b1p = jnp.concatenate([params["conv1_b"]] * 2).reshape(1, 2 * C1)

    w2m = jnp.transpose(params["conv2_w"], (2, 3, 1, 0)).reshape(F2, C2).astype(cdt)
    b2 = params["conv2_b"].reshape(1, C2)
    fw1 = params["fc1_w"].astype(cdt)                 # (256, 32) used as-is (transposed math)
    fb1 = params["fc1_b"].reshape(FC1, 1)
    fw2 = params["fc2_w"].astype(cdt)                 # (A, 256)
    fb2 = params["fc2_b"].reshape(A, 1)

    # ---- block-batch the grid ----
    B = min(block_batch, N)
    G = -(-N // B)
    NPAD = G * B
    if NPAD != N:
        p1 = jnp.pad(p1, ((0, NPAD - N), (0, 0), (0, 0)))

    def kernel(x_ref, w1_ref, b1_ref, w2_ref, b2_ref,
               fw1_ref, fb1_ref, fw2_ref, fb2_ref, o_ref, a1_ref, z_ref):
        # ---- conv1 (paired): one (136,384)@(384,32) matmul per sample.
        # Output lands packed: lane block [0:16] = even width pos, [16:32] = odd.
        for b in range(B):
            a1_ref[b] = jnp.maximum(
                jnp.dot(x_ref[b], w1_ref[...],
                        preferred_element_type=jnp.float32) + b1_ref[...],
                0.0).astype(a1_ref.dtype)

        # ---- conv2: 8 batched accumulation matmuls over (kernel row i, pair offset d).
        # Each tap is a CONTIGUOUS (B, 32, 32) slab of the packed conv1 activation;
        # no strided reads, no patch scratch, no misaligned stores.
        acc = jnp.zeros((B * W2, C2), jnp.float32)
        for i in range(K2):
            for d in range(NPAIR):
                s = i * Q + d
                tap = a1_ref[:, s:s + W2, :]                       # (B, W2, 32)
                slab = w2_ref[(i * NPAIR + d) * 2 * C1:(i * NPAIR + d + 1) * 2 * C1, :]
                acc = acc + jnp.dot(tap.reshape(B * W2, 2 * C1), slab,
                                    preferred_element_type=jnp.float32)
        z_ref[...] = jnp.maximum(acc + b2_ref[...], 0.0).astype(z_ref.dtype)

        # ---- fc1/fc2 on the width axis (module has no flatten), transposed form
        #      (W @ X^T): no in-kernel transposes, weights in native (out, in) layout.
        for b in range(B):
            zb = z_ref[b * W2:(b + 1) * W2, :]                     # (W2, C2)
            h = jnp.maximum(
                jnp.dot(fw1_ref[...], zb,
                        preferred_element_type=jnp.float32) + fb1_ref[...], 0.0)
            o_ref[b] = jnp.maximum(
                jnp.dot(fw2_ref[...], h.astype(fw2_ref.dtype),
                        preferred_element_type=jnp.float32) + fb2_ref[...], 0.0)

    flops = 2 * NPAD * (R1 * F1P * 2 * C1 + K2 * NPAIR * W2 * 2 * C1 * C2
                        + FC1 * W2 * C2 + A * FC1 * C2)
    itemsize = jnp.dtype(cdt).itemsize
    bytes_accessed = int(
        (p1.size + w1p.size + w2m.size + fw1.size + fw2.size) * itemsize
        + 4 * (b1p.size + b2.size + fb1.size + fb2.size + NPAD * A * C2))

    out_t = pl.pallas_call(
        kernel,
        out_shape=jax.ShapeDtypeStruct((NPAD, A, C2), jnp.float32),
        grid=(G,),
        in_specs=[
            pl.BlockSpec((B, R1, F1P), lambda g: (g, 0, 0)),     # lane-dense patch block
            pl.BlockSpec((F1P, 2 * C1), lambda g: (0, 0)),
            pl.BlockSpec((1, 2 * C1), lambda g: (0, 0)),
            pl.BlockSpec((F2, C2), lambda g: (0, 0)),
            pl.BlockSpec((1, C2), lambda g: (0, 0)),
            pl.BlockSpec((FC1, W2), lambda g: (0, 0)),
            pl.BlockSpec((FC1, 1), lambda g: (0, 0)),
            pl.BlockSpec((A, FC1), lambda g: (0, 0)),
            pl.BlockSpec((A, 1), lambda g: (0, 0)),
        ],
        out_specs=pl.BlockSpec((B, A, C2), lambda g: (g, 0, 0)),
        scratch_shapes=[
            pltpu.VMEM((B, R1, 2 * C1), cdt),      # packed conv1 activation
            pltpu.VMEM((B * W2, C2), cdt),         # conv2 activation
        ],
        compiler_params=pltpu.CompilerParams(
            dimension_semantics=("parallel",)),
        cost_estimate=pl.CostEstimate(
            flops=flops, transcendentals=0, bytes_accessed=bytes_accessed),
    )(p1, w1p, b1p, w2m, b2, fw1, fb1, fw2, fb2)

    out_t = out_t[:N]
    # (N, A, C2) -> (N, C2, 1, A): boundary-only transpose of a tiny tensor.
    return jnp.transpose(out_t, (0, 2, 1)).reshape(N, C2, H2, A)


def init_params(key, action_size):
    ks = jax.random.split(key, 8)

    def u(k, shape, fan_in):
        bound = 1.0 / float(fan_in) ** 0.5
        return jax.random.uniform(k, shape, jnp.float32, -bound, bound)

    return dict(
        conv1_w=u(ks[0], (16, 4, 8, 8), 4 * 8 * 8),
        conv1_b=u(ks[1], (16,), 4 * 8 * 8),
        conv2_w=u(ks[2], (32, 16, 4, 4), 16 * 4 * 4),
        conv2_b=u(ks[3], (32,), 16 * 4 * 4),
        fc1_w=u(ks[4], (256, 32), 32),
        fc1_b=u(ks[5], (256,), 32),
        fc2_w=u(ks[6], (action_size, 256), 256),
        fc2_b=u(ks[7], (action_size,), 256),
    )


# Pure-JAX reference for correctness checking (matches the PyTorch forward,
# including the ReLU on fc2 as written in the spec).
def dqcnn_reference(params, x):
    def conv(x, w, b, s):
        y = lax.conv_general_dilated(
            x, w, (s, s), "VALID",
            dimension_numbers=("NCHW", "OIHW", "NCHW"))
        return jax.nn.relu(y + b[None, :, None, None])

    x = conv(x, params["conv1_w"], params["conv1_b"], 4)
    x = conv(x, params["conv2_w"], params["conv2_b"], 2)
    x = jax.nn.relu(jnp.einsum("...i,oi->...o", x, params["fc1_w"]) + params["fc1_b"])
    y = jax.nn.relu(jnp.einsum("...i,oi->...o", x, params["fc2_w"]) + params["fc2_b"])
    return y


if __name__ == "__main__":
    action_size = 6
    key = jax.random.PRNGKey(0)
    k_x, k_p = jax.random.split(key)

    # (N, C, H, W) = (16, 4, 20, 268): width 268 so conv2's output width is 32
    # (fc1's in_features, since forward() has no flatten); H=20 -> H2=1.
    # N=16 with block_batch=8 exercises a 2-step grid (one per TensorCore on v7x).
    x = jax.random.normal(k_x, (16, 4, 20, 268), jnp.float32)
    params = init_params(k_p, action_size)

    fwd = jax.jit(functools.partial(dqcnn_forward, block_batch=8, use_bf16_dots=False))
    out = jax.block_until_ready(fwd(params, x))

    ref = dqcnn_reference(params, x)
    assert out.shape == (16, 32, 1, action_size), out.shape
    assert jnp.allclose(out, ref, rtol=1e-4, atol=1e-4), \
        float(jnp.max(jnp.abs(out - ref)))

    print("KERNEL_OK")
</pallas_src>

<mosaic_0001>
module attributes {stable_mosaic.version = 11 : i64} {
  func.func @kernel(%arg0: i32, %arg1: memref<8x136x384xf32, #tpu.memory_space<vmem>>, %arg2: memref<384x32xf32, #tpu.memory_space<vmem>>, %arg3: memref<1x32xf32, #tpu.memory_space<vmem>>, %arg4: memref<256x32xf32, #tpu.memory_space<vmem>>, %arg5: memref<1x32xf32, #tpu.memory_space<vmem>>, %arg6: memref<256x32xf32, #tpu.memory_space<vmem>>, %arg7: memref<256x1xf32, #tpu.memory_space<vmem>>, %arg8: memref<6x256xf32, #tpu.memory_space<vmem>>, %arg9: memref<6x1xf32, #tpu.memory_space<vmem>>, %arg10: memref<8x6x32xf32, #tpu.memory_space<vmem>>, %arg11: memref<8x136x32xf32, #tpu.memory_space<vmem>>, %arg12: memref<256x32xf32, #tpu.memory_space<vmem>>) attributes {dimension_semantics = [#tpu.dimension_semantics<parallel>], iteration_bounds = array<i64: 2>, scalar_prefetch = 0 : i64, scratch_operands = 2 : i64, tpu.core_type = #tpu.core_type<tc>, window_params = [{transform_indices = @transform_0, window_bounds = array<i64: 8, 136, 384>}, {pipeline_mode = #tpu.pipeline_mode<synchronous>, transform_indices = @transform_1, window_bounds = array<i64: 384, 32>}, {pipeline_mode = #tpu.pipeline_mode<synchronous>, transform_indices = @transform_2, window_bounds = array<i64: 1, 32>}, {pipeline_mode = #tpu.pipeline_mode<synchronous>, transform_indices = @transform_3, window_bounds = array<i64: 256, 32>}, {pipeline_mode = #tpu.pipeline_mode<synchronous>, transform_indices = @transform_4, window_bounds = array<i64: 1, 32>}, {pipeline_mode = #tpu.pipeline_mode<synchronous>, transform_indices = @transform_5, window_bounds = array<i64: 256, 32>}, {pipeline_mode = #tpu.pipeline_mode<synchronous>, transform_indices = @transform_6, window_bounds = array<i64: 256, 1>}, {pipeline_mode = #tpu.pipeline_mode<synchronous>, transform_indices = @transform_7, window_bounds = array<i64: 6, 256>}, {pipeline_mode = #tpu.pipeline_mode<synchronous>, transform_indices = @transform_8, window_bounds = array<i64: 6, 1>}, {transform_indices = @transform_9, window_bounds = array<i64: 8, 6, 32>}]} {
    %c0 = arith.constant 0 : index
    %c0_0 = arith.constant 0 : index
    %c0_1 = arith.constant 0 : index
    %0 = vector.load %arg1[%c0, %c0_0, %c0_1] : memref<8x136x384xf32, #tpu.memory_space<vmem>>, vector<1x136x384xf32>
    %1 = vector.shape_cast %0 : vector<1x136x384xf32> to vector<136x384xf32>
    %c0_2 = arith.constant 0 : index
    %c0_3 = arith.constant 0 : index
    %2 = vector.load %arg2[%c0_2, %c0_3] : memref<384x32xf32, #tpu.memory_space<vmem>>, vector<384x32xf32>
    %cst = arith.constant dense<0.000000e+00> : vector<136x32xf32>
    %3 = tpu.matmul %1, %2, %cst {dimension_numbers = #tpu.dot_dimension_numbers<[1], [0], [0], [1], [0, 0, 1, 1], [], []>} : vector<136x384xf32>, vector<384x32xf32>, vector<136x32xf32> -> vector<136x32xf32>
    %c0_4 = arith.constant 0 : index
    %c0_5 = arith.constant 0 : index
    %4 = vector.load %arg3[%c0_4, %c0_5] : memref<1x32xf32, #tpu.memory_space<vmem>>, vector<1x32xf32>
    %5 = vector.broadcast %4 : vector<1x32xf32> to vector<136x32xf32>
    %6 = arith.addf %3, %5 : vector<136x32xf32>
    %cst_6 = arith.constant 0.000000e+00 : f32
    %7 = vector.broadcast %cst_6 : f32 to vector<136x32xf32>
    %8 = arith.maximumf %6, %7 : vector<136x32xf32>
    %c0_7 = arith.constant 0 : index
    %c0_8 = arith.constant 0 : index
    %c0_9 = arith.constant 0 : index
    %9 = vector.load %arg11[%c0_7, %c0_8, %c0_9] : memref<8x136x32xf32, #tpu.memory_space<vmem>>, vector<1x136x32xf32>
    %10 = vector.shape_cast %9 : vector<1x136x32xf32> to vector<136x32xf32>
    %11 = vector.shape_cast %8 : vector<136x32xf32> to vector<1x136x32xf32>
    tpu.vector_store %arg11[%c0_7, %c0_8, %c0_9], %11 {strides = array<i32>} : memref<8x136x32xf32, #tpu.memory_space<vmem>>, vector<1x136x32xf32>,
    %c1 = arith.constant 1 : index
    %c0_10 = arith.constant 0 : index
    %c0_11 = arith.constant 0 : index
    %12 = vector.load %arg1[%c1, %c0_10, %c0_11] : memref<8x136x384xf32, #tpu.memory_space<vmem>>, vector<1x136x384xf32>
    %13 = vector.shape_cast %12 : vector<1x136x384xf32> to vector<136x384xf32>
    %c0_12 = arith.constant 0 : index
    %c0_13 = arith.constant 0 : index
    %14 = vector.load %arg2[%c0_12, %c0_13] : memref<384x32xf32, #tpu.memory_space<vmem>>, vector<384x32xf32>
    %cst_14 = arith.constant dense<0.000000e+00> : vector<136x32xf32>
    %15 = tpu.matmul %13, %14, %cst_14 {dimension_numbers = #tpu.dot_dimension_numbers<[1], [0], [0], [1], [0, 0, 1, 1], [], []>} : vector<136x384xf32>, vector<384x32xf32>, vector<136x32xf32> -> vector<136x32xf32>
    %c0_15 = arith.constant 0 : index
    %c0_16 = arith.constant 0 : index
    %16 = vector.load %arg3[%c0_15, %c0_16] : memref<1x32xf32, #tpu.memory_space<vmem>>, vector<1x32xf32>
    %17 = vector.broadcast %16 : vector<1x32xf32> to vector<136x32xf32>
    %18 = arith.addf %15, %17 : vector<136x32xf32>
    %cst_17 = arith.constant 0.000000e+00 : f32
    %19 = vector.broadcast %cst_17 : f32 to vector<136x32xf32>
    %20 = arith.maximumf %18, %19 : vector<136x32xf32>
    %c1_18 = arith.constant 1 : index
    %c0_19 = arith.constant 0 : index
    %c0_20 = arith.constant 0 : index
    %21 = vector.load %arg11[%c1_18, %c0_19, %c0_20] : memref<8x136x32xf32, #tpu.memory_space<vmem>>, vector<1x136x32xf32>
    %22 = vector.shape_cast %21 : vector<1x136x32xf32> to vector<136x32xf32>
    %23 = vector.shape_cast %20 : vector<136x32xf32> to vector<1x136x32xf32>
    tpu.vector_store %arg11[%c1_18, %c0_19, %c0_20], %23 {strides = array<i32>} : memref<8x136x32xf32, #tpu.memory_space<vmem>>, vector<1x136x32xf32>,
    %c2 = arith.constant 2 : index
    %c0_21 = arith.constant 0 : index
    %c0_22 = arith.constant 0 : index
    %24 = vector.load %arg1[%c2, %c0_21, %c0_22] : memref<8x136x384xf32, #tpu.memory_space<vmem>>, vector<1x136x384xf32>
    %25 = vector.shape_cast %24 : vector<1x136x384xf32> to vector<136x384xf32>
    %c0_23 = arith.constant 0 : index
    %c0_24 = arith.constant 0 : index
    %26 = vector.load %arg2[%c0_23, %c0_24] : memref<384x32xf32, #tpu.memory_space<vmem>>, vector<384x32xf32>
    %cst_25 = arith.constant dense<0.000000e+00> : vector<136x32xf32>
    %27 = tpu.matmul %25, %26, %cst_25 {dimension_numbers = #tpu.dot_dimension_numbers<[1], [0], [0], [1], [0, 0, 1, 1], [], []>} : vector<136x384xf32>, vector<384x32xf32>, vector<136x32xf32> -> vector<136x32xf32>
    %c0_26 = arith.constant 0 : index
    %c0_27 = arith.constant 0 : index
    %28 = vector.load %arg3[%c0_26, %c0_27] : memref<1x32xf32, #tpu.memory_space<vmem>>, vector<1x32xf32>
    %29 = vector.broadcast %28 : vector<1x32xf32> to vector<136x32xf32>
    %30 = arith.addf %27, %29 : vector<136x32xf32>
    %cst_28 = arith.constant 0.000000e+00 : f32
    %31 = vector.broadcast %cst_28 : f32 to vector<136x32xf32>
    %32 = arith.maximumf %30, %31 : vector<136x32xf32>
    %c2_29 = arith.constant 2 : index
    %c0_30 = arith.constant 0 : index
    %c0_31 = arith.constant 0 : index
    %33 = vector.load %arg11[%c2_29, %c0_30, %c0_31] : memref<8x136x32xf32, #tpu.memory_space<vmem>>, vector<1x136x32xf32>
    %34 = vector.shape_cast %33 : vector<1x136x32xf32> to vector<136x32xf32>
    %35 = vector.shape_cast %32 : vector<136x32xf32> to vector<1x136x32xf32>
    tpu.vector_store %arg11[%c2_29, %c0_30, %c0_31], %35 {strides = array<i32>} : memref<8x136x32xf32, #tpu.memory_space<vmem>>, vector<1x136x32xf32>,
    %c3 = arith.constant 3 : index
    %c0_32 = arith.constant 0 : index
    %c0_33 = arith.constant 0 : index
    %36 = vector.load %arg1[%c3, %c0_32, %c0_33] : memref<8x136x384xf32, #tpu.memory_space<vmem>>, vector<1x136x384xf32>
    %37 = vector.shape_cast %36 : vector<1x136x384xf32> to vector<136x384xf32>
    %c0_34 = arith.constant 0 : index
    %c0_35 = arith.constant 0 : index
    %38 = vector.load %arg2[%c0_34, %c0_35] : memref<384x32xf32, #tpu.memory_space<vmem>>, vector<384x32xf32>
    %cst_36 = arith.constant dense<0.000000e+00> : vector<136x32xf32>
    %39 = tpu.matmul %37, %38, %cst_36 {dimension_numbers = #tpu.dot_dimension_numbers<[1], [0], [0], [1], [0, 0, 1, 1], [], []>} : vector<136x384xf32>, vector<384x32xf32>, vector<136x32xf32> -> vector<136x32xf32>
    %c0_37 = arith.constant 0 : index
    %c0_38 = arith.constant 0 : index
    %40 = vector.load %arg3[%c0_37, %c0_38] : memref<1x32xf32, #tpu.memory_space<vmem>>, vector<1x32xf32>
    %41 = vector.broadcast %40 : vector<1x32xf32> to vector<136x32xf32>
    %42 = arith.addf %39, %41 : vector<136x32xf32>
    %cst_39 = arith.constant 0.000000e+00 : f32
    %43 = vector.broadcast %cst_39 : f32 to vector<136x32xf32>
    %44 = arith.maximumf %42, %43 : vector<136x32xf32>
    %c3_40 = arith.constant 3 : index
    %c0_41 = arith.constant 0 : index
    %c0_42 = arith.constant 0 : index
    %45 = vector.load %arg11[%c3_40, %c0_41, %c0_42] : memref<8x136x32xf32, #tpu.memory_space<vmem>>, vector<1x136x32xf32>
    %46 = vector.shape_cast %45 : vector<1x136x32xf32> to vector<136x32xf32>
    %47 = vector.shape_cast %44 : vector<136x32xf32> to vector<1x136x32xf32>
    tpu.vector_store %arg11[%c3_40, %c0_41, %c0_42], %47 {strides = array<i32>} : memref<8x136x32xf32, #tpu.memory_space<vmem>>, vector<1x136x32xf32>,
    %c4 = arith.constant 4 : index
    %c0_43 = arith.constant 0 : index
    %c0_44 = arith.constant 0 : index
    %48 = vector.load %arg1[%c4, %c0_43, %c0_44] : memref<8x136x384xf32, #tpu.memory_space<vmem>>, vector<1x136x384xf32>
    %49 = vector.shape_cast %48 : vector<1x136x384xf32> to vector<136x384xf32>
    %c0_45 = arith.constant 0 : index
    %c0_46 = arith.constant 0 : index
    %50 = vector.load %arg2[%c0_45, %c0_46] : memref<384x32xf32, #tpu.memory_space<vmem>>, vector<384x32xf32>
    %cst_47 = arith.constant dense<0.000000e+00> : vector<136x32xf32>
    %51 = tpu.matmul %49, %50, %cst_47 {dimension_numbers = #tpu.dot_dimension_numbers<[1], [0], [0], [1], [0, 0, 1, 1], [], []>} : vector<136x384xf32>, vector<384x32xf32>, vector<136x32xf32> -> vector<136x32xf32>
    %c0_48 = arith.constant 0 : index
    %c0_49 = arith.constant 0 : index
    %52 = vector.load %arg3[%c0_48, %c0_49] : memref<1x32xf32, #tpu.memory_space<vmem>>, vector<1x32xf32>
    %53 = vector.broadcast %52 : vector<1x32xf32> to vector<136x32xf32>
    %54 = arith.addf %51, %53 : vector<136x32xf32>
    %cst_50 = arith.constant 0.000000e+00 : f32
    %55 = vector.broadcast %cst_50 : f32 to vector<136x32xf32>
    %56 = arith.maximumf %54, %55 : vector<136x32xf32>
    %c4_51 = arith.constant 4 : index
    %c0_52 = arith.constant 0 : index
    %c0_53 = arith.constant 0 : index
    %57 = vector.load %arg11[%c4_51, %c0_52, %c0_53] : memref<8x136x32xf32, #tpu.memory_space<vmem>>, vector<1x136x32xf32>
    %58 = vector.shape_cast %57 : vector<1x136x32xf32> to vector<136x32xf32>
    %59 = vector.shape_cast %56 : vector<136x32xf32> to vector<1x136x32xf32>
    tpu.vector_store %arg11[%c4_51, %c0_52, %c0_53], %59 {strides = array<i32>} : memref<8x136x32xf32, #tpu.memory_space<vmem>>, vector<1x136x32xf32>,
    %c5 = arith.constant 5 : index
    %c0_54 = arith.constant 0 : index
    %c0_55 = arith.constant 0 : index
    %60 = vector.load %arg1[%c5, %c0_54, %c0_55] : memref<8x136x384xf32, #tpu.memory_space<vmem>>, vector<1x136x384xf32>
    %61 = vector.shape_cast %60 : vector<1x136x384xf32> to vector<136x384xf32>
    %c0_56 = arith.constant 0 : index
    %c0_57 = arith.constant 0 : index
    %62 = vector.load %arg2[%c0_56, %c0_57] : memref<384x32xf32, #tpu.memory_space<vmem>>, vector<384x32xf32>
    %cst_58 = arith.constant dense<0.000000e+00> : vector<136x32xf32>
    %63 = tpu.matmul %61, %62, %cst_58 {dimension_numbers = #tpu.dot_dimension_numbers<[1], [0], [0], [1], [0, 0, 1, 1], [], []>} : vector<136x384xf32>, vector<384x32xf32>, vector<136x32xf32> -> vector<136x32xf32>
    %c0_59 = arith.constant 0 : index
    %c0_60 = arith.constant 0 : index
    %64 = vector.load %arg3[%c0_59, %c0_60] : memref<1x32xf32, #tpu.memory_space<vmem>>, vector<1x32xf32>
    %65 = vector.broadcast %64 : vector<1x32xf32> to vector<136x32xf32>
    %66 = arith.addf %63, %65 : vector<136x32xf32>
    %cst_61 = arith.constant 0.000000e+00 : f32
    %67 = vector.broadcast %cst_61 : f32 to vector<136x32xf32>
    %68 = arith.maximumf %66, %67 : vector<136x32xf32>
    %c5_62 = arith.constant 5 : index
    %c0_63 = arith.constant 0 : index
    %c0_64 = arith.constant 0 : index
    %69 = vector.load %arg11[%c5_62, %c0_63, %c0_64] : memref<8x136x32xf32, #tpu.memory_space<vmem>>, vector<1x136x32xf32>
    %70 = vector.shape_cast %69 : vector<1x136x32xf32> to vector<136x32xf32>
    %71 = vector.shape_cast %68 : vector<136x32xf32> to vector<1x136x32xf32>
    tpu.vector_store %arg11[%c5_62, %c0_63, %c0_64], %71 {strides = array<i32>} : memref<8x136x32xf32, #tpu.memory_space<vmem>>, vector<1x136x32xf32>,
    %c6 = arith.constant 6 : index
    %c0_65 = arith.constant 0 : index
    %c0_66 = arith.constant 0 : index
    %72 = vector.load %arg1[%c6, %c0_65, %c0_66] : memref<8x136x384xf32, #tpu.memory_space<vmem>>, vector<1x136x384xf32>
    %73 = vector.shape_cast %72 : vector<1x136x384xf32> to vector<136x384xf32>
    %c0_67 = arith.constant 0 : index
    %c0_68 = arith.constant 0 : index
    %74 = vector.load %arg2[%c0_67, %c0_68] : memref<384x32xf32, #tpu.memory_space<vmem>>, vector<384x32xf32>
    %cst_69 = arith.constant dense<0.000000e+00> : vector<136x32xf32>
    %75 = tpu.matmul %73, %74, %cst_69 {dimension_numbers = #tpu.dot_dimension_numbers<[1], [0], [0], [1], [0, 0, 1, 1], [], []>} : vector<136x384xf32>, vector<384x32xf32>, vector<136x32xf32> -> vector<136x32xf32>
    %c0_70 = arith.constant 0 : index
    %c0_71 = arith.constant 0 : index
    %76 = vector.load %arg3[%c0_70, %c0_71] : memref<1x32xf32, #tpu.memory_space<vmem>>, vector<1x32xf32>
    %77 = vector.broadcast %76 : vector<1x32xf32> to vector<136x32xf32>
    %78 = arith.addf %75, %77 : vector<136x32xf32>
    %cst_72 = arith.constant 0.000000e+00 : f32
    %79 = vector.broadcast %cst_72 : f32 to vector<136x32xf32>
    %80 = arith.maximumf %78, %79 : vector<136x32xf32>
    %c6_73 = arith.constant 6 : index
    %c0_74 = arith.constant 0 : index
    %c0_75 = arith.constant 0 : index
    %81 = vector.load %arg11[%c6_73, %c0_74, %c0_75] : memref<8x136x32xf32, #tpu.memory_space<vmem>>, vector<1x136x32xf32>
    %82 = vector.shape_cast %81 : vector<1x136x32xf32> to vector<136x32xf32>
    %83 = vector.shape_cast %80 : vector<136x32xf32> to vector<1x136x32xf32>
    tpu.vector_store %arg11[%c6_73, %c0_74, %c0_75], %83 {strides = array<i32>} : memref<8x136x32xf32, #tpu.memory_space<vmem>>, vector<1x136x32xf32>,
    %c7 = arith.constant 7 : index
    %c0_76 = arith.constant 0 : index
    %c0_77 = arith.constant 0 : index
    %84 = vector.load %arg1[%c7, %c0_76, %c0_77] : memref<8x136x384xf32, #tpu.memory_space<vmem>>, vector<1x136x384xf32>
    %85 = vector.shape_cast %84 : vector<1x136x384xf32> to vector<136x384xf32>
    %c0_78 = arith.constant 0 : index
    %c0_79 = arith.constant 0 : index
    %86 = vector.load %arg2[%c0_78, %c0_79] : memref<384x32xf32, #tpu.memory_space<vmem>>, vector<384x32xf32>
    %cst_80 = arith.constant dense<0.000000e+00> : vector<136x32xf32>
    %87 = tpu.matmul %85, %86, %cst_80 {dimension_numbers = #tpu.dot_dimension_numbers<[1], [0], [0], [1], [0, 0, 1, 1], [], []>} : vector<136x384xf32>, vector<384x32xf32>, vector<136x32xf32> -> vector<136x32xf32>
    %c0_81 = arith.constant 0 : index
    %c0_82 = arith.constant 0 : index
    %88 = vector.load %arg3[%c0_81, %c0_82] : memref<1x32xf32, #tpu.memory_space<vmem>>, vector<1x32xf32>
    %89 = vector.broadcast %88 : vector<1x32xf32> to vector<136x32xf32>
    %90 = arith.addf %87, %89 : vector<136x32xf32>
    %cst_83 = arith.constant 0.000000e+00 : f32
    %91 = vector.broadcast %cst_83 : f32 to vector<136x32xf32>
    %92 = arith.maximumf %90, %91 : vector<136x32xf32>
    %c7_84 = arith.constant 7 : index
    %c0_85 = arith.constant 0 : index
    %c0_86 = arith.constant 0 : index
    %93 = vector.load %arg11[%c7_84, %c0_85, %c0_86] : memref<8x136x32xf32, #tpu.memory_space<vmem>>, vector<1x136x32xf32>
    %94 = vector.shape_cast %93 : vector<1x136x32xf32> to vector<136x32xf32>
    %95 = vector.shape_cast %92 : vector<136x32xf32> to vector<1x136x32xf32>
    tpu.vector_store %arg11[%c7_84, %c0_85, %c0_86], %95 {strides = array<i32>} : memref<8x136x32xf32, #tpu.memory_space<vmem>>, vector<1x136x32xf32>,
    %cst_87 = arith.constant 0.000000e+00 : f32
    %96 = vector.broadcast %cst_87 : f32 to vector<256x32xf32>
    %c0_88 = arith.constant 0 : index
    %c0_89 = arith.constant 0 : index
    %c0_90 = arith.constant 0 : index
    %97 = vector.load %arg11[%c0_88, %c0_89, %c0_90] : memref<8x136x32xf32, #tpu.memory_space<vmem>>, vector<8x32x32xf32>
    %c0_91 = arith.constant 0 : index
    %c0_92 = arith.constant 0 : index
    %98 = vector.load %arg4[%c0_91, %c0_92] : memref<256x32xf32, #tpu.memory_space<vmem>>, vector<32x32xf32>
    %99 = vector.shape_cast %97 : vector<8x32x32xf32> to vector<256x32xf32>
    %cst_93 = arith.constant dense<0.000000e+00> : vector<256x32xf32>
    %100 = tpu.matmul %99, %98, %cst_93 {dimension_numbers = #tpu.dot_dimension_numbers<[1], [0], [0], [1], [0, 0, 1, 1], [], []>} : vector<256x32xf32>, vector<32x32xf32>, vector<256x32xf32> -> vector<256x32xf32>
    %101 = arith.addf %96, %100 : vector<256x32xf32>
    %c0_94 = arith.constant 0 : index
    %c1_95 = arith.constant 1 : index
    %c0_96 = arith.constant 0 : index
    %102 = vector.load %arg11[%c0_94, %c1_95, %c0_96] : memref<8x136x32xf32, #tpu.memory_space<vmem>>, vector<8x32x32xf32>
    %c32 = arith.constant 32 : index
    %c0_97 = arith.constant 0 : index
    %103 = vector.load %arg4[%c32, %c0_97] : memref<256x32xf32, #tpu.memory_space<vmem>>, vector<32x32xf32>
    %104 = vector.shape_cast %102 : vector<8x32x32xf32> to vector<256x32xf32>
    %cst_98 = arith.constant dense<0.000000e+00> : vector<256x32xf32>
    %105 = tpu.matmul %104, %103, %cst_98 {dimension_numbers = #tpu.dot_dimension_numbers<[1], [0], [0], [1], [0, 0, 1, 1], [], []>} : vector<256x32xf32>, vector<32x32xf32>, vector<256x32xf32> -> vector<256x32xf32>
    %106 = arith.addf %101, %105 : vector<256x32xf32>
    %c0_99 = arith.constant 0 : index
    %c33 = arith.constant 33 : index
    %c0_100 = arith.constant 0 : index
    %107 = vector.load %arg11[%c0_99, %c33, %c0_100] : memref<8x136x32xf32, #tpu.memory_space<vmem>>, vector<8x32x32xf32>
    %c64 = arith.constant 64 : index
    %c0_101 = arith.constant 0 : index
    %108 = vector.load %arg4[%c64, %c0_101] : memref<256x32xf32, #tpu.memory_space<vmem>>, vector<32x32xf32>
    %109 = vector.shape_cast %107 : vector<8x32x32xf32> to vector<256x32xf32>
    %cst_102 = arith.constant dense<0.000000e+00> : vector<256x32xf32>
    %110 = tpu.matmul %109, %108, %cst_102 {dimension_numbers = #tpu.dot_dimension_numbers<[1], [0], [0], [1], [0, 0, 1, 1], [], []>} : vector<256x32xf32>, vector<32x32xf32>, vector<256x32xf32> -> vector<256x32xf32>
    %111 = arith.addf %106, %110 : vector<256x32xf32>
    %c0_103 = arith.constant 0 : index
    %c34 = arith.constant 34 : index
    %c0_104 = arith.constant 0 : index
    %112 = vector.load %arg11[%c0_103, %c34, %c0_104] : memref<8x136x32xf32, #tpu.memory_space<vmem>>, vector<8x32x32xf32>
    %c96 = arith.constant 96 : index
    %c0_105 = arith.constant 0 : index
    %113 = vector.load %arg4[%c96, %c0_105] : memref<256x32xf32, #tpu.memory_space<vmem>>, vector<32x32xf32>
    %114 = vector.shape_cast %112 : vector<8x32x32xf32> to vector<256x32xf32>
    %cst_106 = arith.constant dense<0.000000e+00> : vector<256x32xf32>
    %115 = tpu.matmul %114, %113, %cst_106 {dimension_numbers = #tpu.dot_dimension_numbers<[1], [0], [0], [1], [0, 0, 1, 1], [], []>} : vector<256x32xf32>, vector<32x32xf32>, vector<256x32xf32> -> vector<256x32xf32>
    %116 = arith.addf %111, %115 : vector<256x32xf32>
    %c0_107 = arith.constant 0 : index
    %c66 = arith.constant 66 : index
    %c0_108 = arith.constant 0 : index
    %117 = vector.load %arg11[%c0_107, %c66, %c0_108] : memref<8x136x32xf32, #tpu.memory_space<vmem>>, vector<8x32x32xf32>
    %c128 = arith.constant 128 : index
    %c0_109 = arith.constant 0 : index
    %118 = vector.load %arg4[%c128, %c0_109] : memref<256x32xf32, #tpu.memory_space<vmem>>, vector<32x32xf32>
    %119 = vector.shape_cast %117 : vector<8x32x32xf32> to vector<256x32xf32>
    %cst_110 = arith.constant dense<0.000000e+00> : vector<256x32xf32>
    %120 = tpu.matmul %119, %118, %cst_110 {dimension_numbers = #tpu.dot_dimension_numbers<[1], [0], [0], [1], [0, 0, 1, 1], [], []>} : vector<256x32xf32>, vector<32x32xf32>, vector<256x32xf32> -> vector<256x32xf32>
    %121 = arith.addf %116, %120 : vector<256x32xf32>
    %c0_111 = arith.constant 0 : index
    %c67 = arith.constant 67 : index
    %c0_112 = arith.constant 0 : index
    %122 = vector.load %arg11[%c0_111, %c67, %c0_112] : memref<8x136x32xf32, #tpu.memory_space<vmem>>, vector<8x32x32xf32>
    %c160 = arith.constant 160 : index
    %c0_113 = arith.constant 0 : index
    %123 = vector.load %arg4[%c160, %c0_113] : memref<256x32xf32, #tpu.memory_space<vmem>>, vector<32x32xf32>
    %124 = vector.shape_cast %122 : vector<8x32x32xf32> to vector<256x32xf32>
    %cst_114 = arith.constant dense<0.000000e+00> : vector<256x32xf32>
    %125 = tpu.matmul %124, %123, %cst_114 {dimension_numbers = #tpu.dot_dimension_numbers<[1], [0], [0], [1], [0, 0, 1, 1], [], []>} : vector<256x32xf32>, vector<32x32xf32>, vector<256x32xf32> -> vector<256x32xf32>
    %126 = arith.addf %121, %125 : vector<256x32xf32>
    %c0_115 = arith.constant 0 : index
    %c99 = arith.constant 99 : index
    %c0_116 = arith.constant 0 : index
    %127 = vector.load %arg11[%c0_115, %c99, %c0_116] : memref<8x136x32xf32, #tpu.memory_space<vmem>>, vector<8x32x32xf32>
    %c192 = arith.constant 192 : index
    %c0_117 = arith.constant 0 : index
    %128 = vector.load %arg4[%c192, %c0_117] : memref<256x32xf32, #tpu.memory_space<vmem>>, vector<32x32xf32>
    %129 = vector.shape_cast %127 : vector<8x32x32xf32> to vector<256x32xf32>
    %cst_118 = arith.constant dense<0.000000e+00> : vector<256x32xf32>
    %130 = tpu.matmul %129, %128, %cst_118 {dimension_numbers = #tpu.dot_dimension_numbers<[1], [0], [0], [1], [0, 0, 1, 1], [], []>} : vector<256x32xf32>, vector<32x32xf32>, vector<256x32xf32> -> vector<256x32xf32>
    %131 = arith.addf %126, %130 : vector<256x32xf32>
    %c0_119 = arith.constant 0 : index
    %c100 = arith.constant 100 : index
    %c0_120 = arith.constant 0 : index
    %132 = vector.load %arg11[%c0_119, %c100, %c0_120] : memref<8x136x32xf32, #tpu.memory_space<vmem>>, vector<8x32x32xf32>
    %c224 = arith.constant 224 : index
    %c0_121 = arith.constant 0 : index
    %133 = vector.load %arg4[%c224, %c0_121] : memref<256x32xf32, #tpu.memory_space<vmem>>, vector<32x32xf32>
    %134 = vector.shape_cast %132 : vector<8x32x32xf32> to vector<256x32xf32>
    %cst_122 = arith.constant dense<0.000000e+00> : vector<256x32xf32>
    %135 = tpu.matmul %134, %133, %cst_122 {dimension_numbers = #tpu.dot_dimension_numbers<[1], [0], [0], [1], [0, 0, 1, 1], [], []>} : vector<256x32xf32>, vector<32x32xf32>, vector<256x32xf32> -> vector<256x32xf32>
    %136 = arith.addf %131, %135 : vector<256x32xf32>
    %c0_123 = arith.constant 0 : index
    %c0_124 = arith.constant 0 : index
    %137 = vector.load %arg5[%c0_123, %c0_124] : memref<1x32xf32, #tpu.memory_space<vmem>>, vector<1x32xf32>
    %138 = vector.broadcast %137 : vector<1x32xf32> to vector<256x32xf32>
    %139 = arith.addf %136, %138 : vector<256x32xf32>
    %cst_125 = arith.constant 0.000000e+00 : f32
    %140 = vector.broadcast %cst_125 : f32 to vector<256x32xf32>
    %141 = arith.maximumf %139, %140 : vector<256x32xf32>
    %c0_126 = arith.constant 0 : index
    %c0_127 = arith.constant 0 : index
    %142 = vector.load %arg12[%c0_126, %c0_127] : memref<256x32xf32, #tpu.memory_space<vmem>>, vector<256x32xf32>
    tpu.vector_store %arg12[%c0_126, %c0_127], %141 {strides = array<i32>} : memref<256x32xf32, #tpu.memory_space<vmem>>, vector<256x32xf32>,
    %c0_128 = arith.constant 0 : index
    %c0_129 = arith.constant 0 : index
    %143 = vector.load %arg12[%c0_128, %c0_129] : memref<256x32xf32, #tpu.memory_space<vmem>>, vector<32x32xf32>
    %c0_130 = arith.constant 0 : index
    %c0_131 = arith.constant 0 : index
    %144 = vector.load %arg6[%c0_130, %c0_131] : memref<256x32xf32, #tpu.memory_space<vmem>>, vector<256x32xf32>
    %cst_132 = arith.constant dense<0.000000e+00> : vector<256x32xf32>
    %145 = tpu.matmul %144, %143, %cst_132 {dimension_numbers = #tpu.dot_dimension_numbers<[1], [0], [0], [1], [0, 0, 1, 1], [], []>} : vector<256x32xf32>, vector<32x32xf32>, vector<256x32xf32> -> vector<256x32xf32>
    %c0_133 = arith.constant 0 : index
    %c0_134 = arith.constant 0 : index
    %146 = vector.load %arg7[%c0_133, %c0_134] : memref<256x1xf32, #tpu.memory_space<vmem>>, vector<256x1xf32>
    %147 = vector.broadcast %146 : vector<256x1xf32> to vector<256x32xf32>
    %148 = arith.addf %145, %147 : vector<256x32xf32>
    %cst_135 = arith.constant 0.000000e+00 : f32
    %149 = vector.broadcast %cst_135 : f32 to vector<256x32xf32>
    %150 = arith.maximumf %148, %149 : vector<256x32xf32>
    %c0_136 = arith.constant 0 : index
    %c0_137 = arith.constant 0 : index
    %151 = vector.load %arg8[%c0_136, %c0_137] : memref<6x256xf32, #tpu.memory_space<vmem>>, vector<6x256xf32>
    %cst_138 = arith.constant dense<0.000000e+00> : vector<6x32xf32>
    %152 = tpu.matmul %151, %150, %cst_138 {dimension_numbers = #tpu.dot_dimension_numbers<[1], [0], [0], [1], [0, 0, 1, 1], [], []>} : vector<6x256xf32>, vector<256x32xf32>, vector<6x32xf32> -> vector<6x32xf32>
    %c0_139 = arith.constant 0 : index
    %c0_140 = arith.constant 0 : index
    %153 = vector.load %arg9[%c0_139, %c0_140] : memref<6x1xf32, #tpu.memory_space<vmem>>, vector<6x1xf32>
    %154 = vector.broadcast %153 : vector<6x1xf32> to vector<6x32xf32>
    %155 = arith.addf %152, %154 : vector<6x32xf32>
    %cst_141 = arith.constant 0.000000e+00 : f32
    %156 = vector.broadcast %cst_141 : f32 to vector<6x32xf32>
    %157 = arith.maximumf %155, %156 : vector<6x32xf32>
    %c0_142 = arith.constant 0 : index
    %c0_143 = arith.constant 0 : index
    %c0_144 = arith.constant 0 : index
    %158 = vector.load %arg10[%c0_142, %c0_143, %c0_144] : memref<8x6x32xf32, #tpu.memory_space<vmem>>, vector<1x6x32xf32>
    %159 = vector.shape_cast %158 : vector<1x6x32xf32> to vector<6x32xf32>
    %160 = vector.shape_cast %157 : vector<6x32xf32> to vector<1x6x32xf32>
    tpu.vector_store %arg10[%c0_142, %c0_143, %c0_144], %160 {strides = array<i32>} : memref<8x6x32xf32, #tpu.memory_space<vmem>>, vector<1x6x32xf32>,
    %c32_145 = arith.constant 32 : index
    %c0_146 = arith.constant 0 : index
    %161 = vector.load %arg12[%c32_145, %c0_146] : memref<256x32xf32, #tpu.memory_space<vmem>>, vector<32x32xf32>
    %c0_147 = arith.constant 0 : index
    %c0_148 = arith.constant 0 : index
    %162 = vector.load %arg6[%c0_147, %c0_148] : memref<256x32xf32, #tpu.memory_space<vmem>>, vector<256x32xf32>
    %cst_149 = arith.constant dense<0.000000e+00> : vector<256x32xf32>
    %163 = tpu.matmul %162, %161, %cst_149 {dimension_numbers = #tpu.dot_dimension_numbers<[1], [0], [0], [1], [0, 0, 1, 1], [], []>} : vector<256x32xf32>, vector<32x32xf32>, vector<256x32xf32> -> vector<256x32xf32>
    %c0_150 = arith.constant 0 : index
    %c0_151 = arith.constant 0 : index
    %164 = vector.load %arg7[%c0_150, %c0_151] : memref<256x1xf32, #tpu.memory_space<vmem>>, vector<256x1xf32>
    %165 = vector.broadcast %164 : vector<256x1xf32> to vector<256x32xf32>
    %166 = arith.addf %163, %165 : vector<256x32xf32>
    %cst_152 = arith.constant 0.000000e+00 : f32
    %167 = vector.broadcast %cst_152 : f32 to vector<256x32xf32>
    %168 = arith.maximumf %166, %167 : vector<256x32xf32>
    %c0_153 = arith.constant 0 : index
    %c0_154 = arith.constant 0 : index
    %169 = vector.load %arg8[%c0_153, %c0_154] : memref<6x256xf32, #tpu.memory_space<vmem>>, vector<6x256xf32>
    %cst_155 = arith.constant dense<0.000000e+00> : vector<6x32xf32>
    %170 = tpu.matmul %169, %168, %cst_155 {dimension_numbers = #tpu.dot_dimension_numbers<[1], [0], [0], [1], [0, 0, 1, 1], [], []>} : vector<6x256xf32>, vector<256x32xf32>, vector<6x32xf32> -> vector<6x32xf32>
    %c0_156 = arith.constant 0 : index
    %c0_157 = arith.constant 0 : index
    %171 = vector.load %arg9[%c0_156, %c0_157] : memref<6x1xf32, #tpu.memory_space<vmem>>, vector<6x1xf32>
    %172 = vector.broadcast %171 : vector<6x1xf32> to vector<6x32xf32>
    %173 = arith.addf %170, %172 : vector<6x32xf32>
    %cst_158 = arith.constant 0.000000e+00 : f32
    %174 = vector.broadcast %cst_158 : f32 to vector<6x32xf32>
    %175 = arith.maximumf %173, %174 : vector<6x32xf32>
    %c1_159 = arith.constant 1 : index
    %c0_160 = arith.constant 0 : index
    %c0_161 = arith.constant 0 : index
    %176 = vector.load %arg10[%c1_159, %c0_160, %c0_161] : memref<8x6x32xf32, #tpu.memory_space<vmem>>, vector<1x6x32xf32>
    %177 = vector.shape_cast %176 : vector<1x6x32xf32> to vector<6x32xf32>
    %178 = vector.shape_cast %175 : vector<6x32xf32> to vector<1x6x32xf32>
    tpu.vector_store %arg10[%c1_159, %c0_160, %c0_161], %178 {strides = array<i32>} : memref<8x6x32xf32, #tpu.memory_space<vmem>>, vector<1x6x32xf32>,
    %c64_162 = arith.constant 64 : index
    %c0_163 = arith.constant 0 : index
    %179 = vector.load %arg12[%c64_162, %c0_163] : memref<256x32xf32, #tpu.memory_space<vmem>>, vector<32x32xf32>
    %c0_164 = arith.constant 0 : index
    %c0_165 = arith.constant 0 : index
    %180 = vector.load %arg6[%c0_164, %c0_165] : memref<256x32xf32, #tpu.memory_space<vmem>>, vector<256x32xf32>
    %cst_166 = arith.constant dense<0.000000e+00> : vector<256x32xf32>
    %181 = tpu.matmul %180, %179, %cst_166 {dimension_numbers = #tpu.dot_dimension_numbers<[1], [0], [0], [1], [0, 0, 1, 1], [], []>} : vector<256x32xf32>, vector<32x32xf32>, vector<256x32xf32> -> vector<256x32xf32>
    %c0_167 = arith.constant 0 : index
    %c0_168 = arith.constant 0 : index
    %182 = vector.load %arg7[%c0_167, %c0_168] : memref<256x1xf32, #tpu.memory_space<vmem>>, vector<256x1xf32>
    %183 = vector.broadcast %182 : vector<256x1xf32> to vector<256x32xf32>
    %184 = arith.addf %181, %183 : vector<256x32xf32>
    %cst_169 = arith.constant 0.000000e+00 : f32
    %185 = vector.broadcast %cst_169 : f32 to vector<256x32xf32>
    %186 = arith.maximumf %184, %185 : vector<256x32xf32>
    %c0_170 = arith.constant 0 : index
    %c0_171 = arith.constant 0 : index
    %187 = vector.load %arg8[%c0_170, %c0_171] : memref<6x256xf32, #tpu.memory_space<vmem>>, vector<6x256xf32>
    %cst_172 = arith.constant dense<0.000000e+00> : vector<6x32xf32>
    %188 = tpu.matmul %187, %186, %cst_172 {dimension_numbers = #tpu.dot_dimension_numbers<[1], [0], [0], [1], [0, 0, 1, 1], [], []>} : vector<6x256xf32>, vector<256x32xf32>, vector<6x32xf32> -> vector<6x32xf32>
    %c0_173 = arith.constant 0 : index
    %c0_174 = arith.constant 0 : index
    %189 = vector.load %arg9[%c0_173, %c0_174] : memref<6x1xf32, #tpu.memory_space<vmem>>, vector<6x1xf32>
    %190 = vector.broadcast %189 : vector<6x1xf32> to vector<6x32xf32>
    %191 = arith.addf %188, %190 : vector<6x32xf32>
    %cst_175 = arith.constant 0.000000e+00 : f32
    %192 = vector.broadcast %cst_175 : f32 to vector<6x32xf32>
    %193 = arith.maximumf %191, %192 : vector<6x32xf32>
    %c2_176 = arith.constant 2 : index
    %c0_177 = arith.constant 0 : index
    %c0_178 = arith.constant 0 : index
    %194 = vector.load %arg10[%c2_176, %c0_177, %c0_178] : memref<8x6x32xf32, #tpu.memory_space<vmem>>, vector<1x6x32xf32>
    %195 = vector.shape_cast %194 : vector<1x6x32xf32> to vector<6x32xf32>
    %196 = vector.shape_cast %193 : vector<6x32xf32> to vector<1x6x32xf32>
    tpu.vector_store %arg10[%c2_176, %c0_177, %c0_178], %196 {strides = array<i32>} : memref<8x6x32xf32, #tpu.memory_space<vmem>>, vector<1x6x32xf32>,
    %c96_179 = arith.constant 96 : index
    %c0_180 = arith.constant 0 : index
    %197 = vector.load %arg12[%c96_179, %c0_180] : memref<256x32xf32, #tpu.memory_space<vmem>>, vector<32x32xf32>
    %c0_181 = arith.constant 0 : index
    %c0_182 = arith.constant 0 : index
    %198 = vector.load %arg6[%c0_181, %c0_182] : memref<256x32xf32, #tpu.memory_space<vmem>>, vector<256x32xf32>
    %cst_183 = arith.constant dense<0.000000e+00> : vector<256x32xf32>
    %199 = tpu.matmul %198, %197, %cst_183 {dimension_numbers = #tpu.dot_dimension_numbers<[1], [0], [0], [1], [0, 0, 1, 1], [], []>} : vector<256x32xf32>, vector<32x32xf32>, vector<256x32xf32> -> vector<256x32xf32>
    %c0_184 = arith.constant 0 : index
    %c0_185 = arith.constant 0 : index
    %200 = vector.load %arg7[%c0_184, %c0_185] : memref<256x1xf32, #tpu.memory_space<vmem>>, vector<256x1xf32>
    %201 = vector.broadcast %200 : vector<256x1xf32> to vector<256x32xf32>
    %202 = arith.addf %199, %201 : vector<256x32xf32>
    %cst_186 = arith.constant 0.000000e+00 : f32
    %203 = vector.broadcast %cst_186 : f32 to vector<256x32xf32>
    %204 = arith.maximumf %202, %203 : vector<256x32xf32>
    %c0_187 = arith.constant 0 : index
    %c0_188 = arith.constant 0 : index
    %205 = vector.load %arg8[%c0_187, %c0_188] : memref<6x256xf32, #tpu.memory_space<vmem>>, vector<6x256xf32>
    %cst_189 = arith.constant dense<0.000000e+00> : vector<6x32xf32>
    %206 = tpu.matmul %205, %204, %cst_189 {dimension_numbers = #tpu.dot_dimension_numbers<[1], [0], [0], [1], [0, 0, 1, 1], [], []>} : vector<6x256xf32>, vector<256x32xf32>, vector<6x32xf32> -> vector<6x32xf32>
    %c0_190 = arith.constant 0 : index
    %c0_191 = arith.constant 0 : index
    %207 = vector.load %arg9[%c0_190, %c0_191] : memref<6x1xf32, #tpu.memory_space<vmem>>, vector<6x1xf32>
    %208 = vector.broadcast %207 : vector<6x1xf32> to vector<6x32xf32>
    %209 = arith.addf %206, %208 : vector<6x32xf32>
    %cst_192 = arith.constant 0.000000e+00 : f32
    %210 = vector.broadcast %cst_192 : f32 to vector<6x32xf32>
    %211 = arith.maximumf %209, %210 : vector<6x32xf32>
    %c3_193 = arith.constant 3 : index
    %c0_194 = arith.constant 0 : index
    %c0_195 = arith.constant 0 : index
    %212 = vector.load %arg10[%c3_193, %c0_194, %c0_195] : memref<8x6x32xf32, #tpu.memory_space<vmem>>, vector<1x6x32xf32>
    %213 = vector.shape_cast %212 : vector<1x6x32xf32> to vector<6x32xf32>
    %214 = vector.shape_cast %211 : vector<6x32xf32> to vector<1x6x32xf32>
    tpu.vector_store %arg10[%c3_193, %c0_194, %c0_195], %214 {strides = array<i32>} : memref<8x6x32xf32, #tpu.memory_space<vmem>>, vector<1x6x32xf32>,
    %c128_196 = arith.constant 128 : index
    %c0_197 = arith.constant 0 : index
    %215 = vector.load %arg12[%c128_196, %c0_197] : memref<256x32xf32, #tpu.memory_space<vmem>>, vector<32x32xf32>
    %c0_198 = arith.constant 0 : index
    %c0_199 = arith.constant 0 : index
    %216 = vector.load %arg6[%c0_198, %c0_199] : memref<256x32xf32, #tpu.memory_space<vmem>>, vector<256x32xf32>
    %cst_200 = arith.constant dense<0.000000e+00> : vector<256x32xf32>
    %217 = tpu.matmul %216, %215, %cst_200 {dimension_numbers = #tpu.dot_dimension_numbers<[1], [0], [0], [1], [0, 0, 1, 1], [], []>} : vector<256x32xf32>, vector<32x32xf32>, vector<256x32xf32> -> vector<256x32xf32>
    %c0_201 = arith.constant 0 : index
    %c0_202 = arith.constant 0 : index
    %218 = vector.load %arg7[%c0_201, %c0_202] : memref<256x1xf32, #tpu.memory_space<vmem>>, vector<256x1xf32>
    %219 = vector.broadcast %218 : vector<256x1xf32> to vector<256x32xf32>
    %220 = arith.addf %217, %219 : vector<256x32xf32>
    %cst_203 = arith.constant 0.000000e+00 : f32
    %221 = vector.broadcast %cst_203 : f32 to vector<256x32xf32>
    %222 = arith.maximumf %220, %221 : vector<256x32xf32>
    %c0_204 = arith.constant 0 : index
    %c0_205 = arith.constant 0 : index
    %223 = vector.load %arg8[%c0_204, %c0_205] : memref<6x256xf32, #tpu.memory_space<vmem>>, vector<6x256xf32>
    %cst_206 = arith.constant dense<0.000000e+00> : vector<6x32xf32>
    %224 = tpu.matmul %223, %222, %cst_206 {dimension_numbers = #tpu.dot_dimension_numbers<[1], [0], [0], [1], [0, 0, 1, 1], [], []>} : vector<6x256xf32>, vector<256x32xf32>, vector<6x32xf32> -> vector<6x32xf32>
    %c0_207 = arith.constant 0 : index
    %c0_208 = arith.constant 0 : index
    %225 = vector.load %arg9[%c0_207, %c0_208] : memref<6x1xf32, #tpu.memory_space<vmem>>, vector<6x1xf32>
    %226 = vector.broadcast %225 : vector<6x1xf32> to vector<6x32xf32>
    %227 = arith.addf %224, %226 : vector<6x32xf32>
    %cst_209 = arith.constant 0.000000e+00 : f32
    %228 = vector.broadcast %cst_209 : f32 to vector<6x32xf32>
    %229 = arith.maximumf %227, %228 : vector<6x32xf32>
    %c4_210 = arith.constant 4 : index
    %c0_211 = arith.constant 0 : index
    %c0_212 = arith.constant 0 : index
    %230 = vector.load %arg10[%c4_210, %c0_211, %c0_212] : memref<8x6x32xf32, #tpu.memory_space<vmem>>, vector<1x6x32xf32>
    %231 = vector.shape_cast %230 : vector<1x6x32xf32> to vector<6x32xf32>
    %232 = vector.shape_cast %229 : vector<6x32xf32> to vector<1x6x32xf32>
    tpu.vector_store %arg10[%c4_210, %c0_211, %c0_212], %232 {strides = array<i32>} : memref<8x6x32xf32, #tpu.memory_space<vmem>>, vector<1x6x32xf32>,
    %c160_213 = arith.constant 160 : index
    %c0_214 = arith.constant 0 : index
    %233 = vector.load %arg12[%c160_213, %c0_214] : memref<256x32xf32, #tpu.memory_space<vmem>>, vector<32x32xf32>
    %c0_215 = arith.constant 0 : index
    %c0_216 = arith.constant 0 : index
    %234 = vector.load %arg6[%c0_215, %c0_216] : memref<256x32xf32, #tpu.memory_space<vmem>>, vector<256x32xf32>
    %cst_217 = arith.constant dense<0.000000e+00> : vector<256x32xf32>
    %235 = tpu.matmul %234, %233, %cst_217 {dimension_numbers = #tpu.dot_dimension_numbers<[1], [0], [0], [1], [0, 0, 1, 1], [], []>} : vector<256x32xf32>, vector<32x32xf32>, vector<256x32xf32> -> vector<256x32xf32>
    %c0_218 = arith.constant 0 : index
    %c0_219 = arith.constant 0 : index
    %236 = vector.load %arg7[%c0_218, %c0_219] : memref<256x1xf32, #tpu.memory_space<vmem>>, vector<256x1xf32>
    %237 = vector.broadcast %236 : vector<256x1xf32> to vector<256x32xf32>
    %238 = arith.addf %235, %237 : vector<256x32xf32>
    %cst_220 = arith.constant 0.000000e+00 : f32
    %239 = vector.broadcast %cst_220 : f32 to vector<256x32xf32>
    %240 = arith.maximumf %238, %239 : vector<256x32xf32>
    %c0_221 = arith.constant 0 : index
    %c0_222 = arith.constant 0 : index
    %241 = vector.load %arg8[%c0_221, %c0_222] : memref<6x256xf32, #tpu.memory_space<vmem>>, vector<6x256xf32>
    %cst_223 = arith.constant dense<0.000000e+00> : vector<6x32xf32>
    %242 = tpu.matmul %241, %240, %cst_223 {dimension_numbers = #tpu.dot_dimension_numbers<[1], [0], [0], [1], [0, 0, 1, 1], [], []>} : vector<6x256xf32>, vector<256x32xf32>, vector<6x32xf32> -> vector<6x32xf32>
    %c0_224 = arith.constant 0 : index
    %c0_225 = arith.constant 0 : index
    %243 = vector.load %arg9[%c0_224, %c0_225] : memref<6x1xf32, #tpu.memory_space<vmem>>, vector<6x1xf32>
    %244 = vector.broadcast %243 : vector<6x1xf32> to vector<6x32xf32>
    %245 = arith.addf %242, %244 : vector<6x32xf32>
    %cst_226 = arith.constant 0.000000e+00 : f32
    %246 = vector.broadcast %cst_226 : f32 to vector<6x32xf32>
    %247 = arith.maximumf %245, %246 : vector<6x32xf32>
    %c5_227 = arith.constant 5 : index
    %c0_228 = arith.constant 0 : index
    %c0_229 = arith.constant 0 : index
    %248 = vector.load %arg10[%c5_227, %c0_228, %c0_229] : memref<8x6x32xf32, #tpu.memory_space<vmem>>, vector<1x6x32xf32>
    %249 = vector.shape_cast %248 : vector<1x6x32xf32> to vector<6x32xf32>
    %250 = vector.shape_cast %247 : vector<6x32xf32> to vector<1x6x32xf32>
    tpu.vector_store %arg10[%c5_227, %c0_228, %c0_229], %250 {strides = array<i32>} : memref<8x6x32xf32, #tpu.memory_space<vmem>>, vector<1x6x32xf32>,
    %c192_230 = arith.constant 192 : index
    %c0_231 = arith.constant 0 : index
    %251 = vector.load %arg12[%c192_230, %c0_231] : memref<256x32xf32, #tpu.memory_space<vmem>>, vector<32x32xf32>
    %c0_232 = arith.constant 0 : index
    %c0_233 = arith.constant 0 : index
    %252 = vector.load %arg6[%c0_232, %c0_233] : memref<256x32xf32, #tpu.memory_space<vmem>>, vector<256x32xf32>
    %cst_234 = arith.constant dense<0.000000e+00> : vector<256x32xf32>
    %253 = tpu.matmul %252, %251, %cst_234 {dimension_numbers = #tpu.dot_dimension_numbers<[1], [0], [0], [1], [0, 0, 1, 1], [], []>} : vector<256x32xf32>, vector<32x32xf32>, vector<256x32xf32> -> vector<256x32xf32>
    %c0_235 = arith.constant 0 : index
    %c0_236 = arith.constant 0 : index
    %254 = vector.load %arg7[%c0_235, %c0_236] : memref<256x1xf32, #tpu.memory_space<vmem>>, vector<256x1xf32>
    %255 = vector.broadcast %254 : vector<256x1xf32> to vector<256x32xf32>
    %256 = arith.addf %253, %255 : vector<256x32xf32>
    %cst_237 = arith.constant 0.000000e+00 : f32
    %257 = vector.broadcast %cst_237 : f32 to vector<256x32xf32>
    %258 = arith.maximumf %256, %257 : vector<256x32xf32>
    %c0_238 = arith.constant 0 : index
    %c0_239 = arith.constant 0 : index
    %259 = vector.load %arg8[%c0_238, %c0_239] : memref<6x256xf32, #tpu.memory_space<vmem>>, vector<6x256xf32>
    %cst_240 = arith.constant dense<0.000000e+00> : vector<6x32xf32>
    %260 = tpu.matmul %259, %258, %cst_240 {dimension_numbers = #tpu.dot_dimension_numbers<[1], [0], [0], [1], [0, 0, 1, 1], [], []>} : vector<6x256xf32>, vector<256x32xf32>, vector<6x32xf32> -> vector<6x32xf32>
    %c0_241 = arith.constant 0 : index
    %c0_242 = arith.constant 0 : index
    %261 = vector.load %arg9[%c0_241, %c0_242] : memref<6x1xf32, #tpu.memory_space<vmem>>, vector<6x1xf32>
    %262 = vector.broadcast %261 : vector<6x1xf32> to vector<6x32xf32>
    %263 = arith.addf %260, %262 : vector<6x32xf32>
    %cst_243 = arith.constant 0.000000e+00 : f32
    %264 = vector.broadcast %cst_243 : f32 to vector<6x32xf32>
    %265 = arith.maximumf %263, %264 : vector<6x32xf32>
    %c6_244 = arith.constant 6 : index
    %c0_245 = arith.constant 0 : index
    %c0_246 = arith.constant 0 : index
    %266 = vector.load %arg10[%c6_244, %c0_245, %c0_246] : memref<8x6x32xf32, #tpu.memory_space<vmem>>, vector<1x6x32xf32>
    %267 = vector.shape_cast %266 : vector<1x6x32xf32> to vector<6x32xf32>
    %268 = vector.shape_cast %265 : vector<6x32xf32> to vector<1x6x32xf32>
    tpu.vector_store %arg10[%c6_244, %c0_245, %c0_246], %268 {strides = array<i32>} : memref<8x6x32xf32, #tpu.memory_space<vmem>>, vector<1x6x32xf32>,
    %c224_247 = arith.constant 224 : index
    %c0_248 = arith.constant 0 : index
    %269 = vector.load %arg12[%c224_247, %c0_248] : memref<256x32xf32, #tpu.memory_space<vmem>>, vector<32x32xf32>
    %c0_249 = arith.constant 0 : index
    %c0_250 = arith.constant 0 : index
    %270 = vector.load %arg6[%c0_249, %c0_250] : memref<256x32xf32, #tpu.memory_space<vmem>>, vector<256x32xf32>
    %cst_251 = arith.constant dense<0.000000e+00> : vector<256x32xf32>
    %271 = tpu.matmul %270, %269, %cst_251 {dimension_numbers = #tpu.dot_dimension_numbers<[1], [0], [0], [1], [0, 0, 1, 1], [], []>} : vector<256x32xf32>, vector<32x32xf32>, vector<256x32xf32> -> vector<256x32xf32>
    %c0_252 = arith.constant 0 : index
    %c0_253 = arith.constant 0 : index
    %272 = vector.load %arg7[%c0_252, %c0_253] : memref<256x1xf32, #tpu.memory_space<vmem>>, vector<256x1xf32>
    %273 = vector.broadcast %272 : vector<256x1xf32> to vector<256x32xf32>
    %274 = arith.addf %271, %273 : vector<256x32xf32>
    %cst_254 = arith.constant 0.000000e+00 : f32
    %275 = vector.broadcast %cst_254 : f32 to vector<256x32xf32>
    %276 = arith.maximumf %274, %275 : vector<256x32xf32>
    %c0_255 = arith.constant 0 : index
    %c0_256 = arith.constant 0 : index
    %277 = vector.load %arg8[%c0_255, %c0_256] : memref<6x256xf32, #tpu.memory_space<vmem>>, vector<6x256xf32>
    %cst_257 = arith.constant dense<0.000000e+00> : vector<6x32xf32>
    %278 = tpu.matmul %277, %276, %cst_257 {dimension_numbers = #tpu.dot_dimension_numbers<[1], [0], [0], [1], [0, 0, 1, 1], [], []>} : vector<6x256xf32>, vector<256x32xf32>, vector<6x32xf32> -> vector<6x32xf32>
    %c0_258 = arith.constant 0 : index
    %c0_259 = arith.constant 0 : index
    %279 = vector.load %arg9[%c0_258, %c0_259] : memref<6x1xf32, #tpu.memory_space<vmem>>, vector<6x1xf32>
    %280 = vector.broadcast %279 : vector<6x1xf32> to vector<6x32xf32>
    %281 = arith.addf %278, %280 : vector<6x32xf32>
    %cst_260 = arith.constant 0.000000e+00 : f32
    %282 = vector.broadcast %cst_260 : f32 to vector<6x32xf32>
    %283 = arith.maximumf %281, %282 : vector<6x32xf32>
    %c7_261 = arith.constant 7 : index
    %c0_262 = arith.constant 0 : index
    %c0_263 = arith.constant 0 : index
    %284 = vector.load %arg10[%c7_261, %c0_262, %c0_263] : memref<8x6x32xf32, #tpu.memory_space<vmem>>, vector<1x6x32xf32>
    %285 = vector.shape_cast %284 : vector<1x6x32xf32> to vector<6x32xf32>
    %286 = vector.shape_cast %283 : vector<6x32xf32> to vector<1x6x32xf32>
    tpu.vector_store %arg10[%c7_261, %c0_262, %c0_263], %286 {strides = array<i32>} : memref<8x6x32xf32, #tpu.memory_space<vmem>>, vector<1x6x32xf32>,
    return
  }
  func.func @transform_0(%arg0: i32) -> (i32, i32, i32) {
    %c0_i32 = arith.constant 0 : i32
    %c0_i32_0 = arith.constant 0 : i32
    %c0_i32_1 = arith.constant 0 : i32
    return %arg0, %c0_i32, %c0_i32_0 : i32, i32, i32
  }
  func.func @transform_1(%arg0: i32) -> (i32, i32) {
    %c0_i32 = arith.constant 0 : i32
    %c0_i32_0 = arith.constant 0 : i32
    %c0_i32_1 = arith.constant 0 : i32
    return %c0_i32, %c0_i32_0 : i32, i32
  }
  func.func @transform_2(%arg0: i32) -> (i32, i32) {
    %c0_i32 = arith.constant 0 : i32
    %c0_i32_0 = arith.constant 0 : i32
    %c0_i32_1 = arith.constant 0 : i32
    return %c0_i32, %c0_i32_0 : i32, i32
  }
  func.func @transform_3(%arg0: i32) -> (i32, i32) {
    %c0_i32 = arith.constant 0 : i32
    %c0_i32_0 = arith.constant 0 : i32
    %c0_i32_1 = arith.constant 0 : i32
    return %c0_i32, %c0_i32_0 : i32, i32
  }
  func.func @transform_4(%arg0: i32) -> (i32, i32) {
    %c0_i32 = arith.constant 0 : i32
    %c0_i32_0 = arith.constant 0 : i32
    %c0_i32_1 = arith.constant 0 : i32
    return %c0_i32, %c0_i32_0 : i32, i32
  }
  func.func @transform_5(%arg0: i32) -> (i32, i32) {
    %c0_i32 = arith.constant 0 : i32
    %c0_i32_0 = arith.constant 0 : i32
    %c0_i32_1 = arith.constant 0 : i32
    return %c0_i32, %c0_i32_0 : i32, i32
  }
  func.func @transform_6(%arg0: i32) -> (i32, i32) {
    %c0_i32 = arith.constant 0 : i32
    %c0_i32_0 = arith.constant 0 : i32
    %c0_i32_1 = arith.constant 0 : i32
    return %c0_i32, %c0_i32_0 : i32, i32
  }
  func.func @transform_7(%arg0: i32) -> (i32, i32) {
    %c0_i32 = arith.constant 0 : i32
    %c0_i32_0 = arith.constant 0 : i32
    %c0_i32_1 = arith.constant 0 : i32
    return %c0_i32, %c0_i32_0 : i32, i32
  }
  func.func @transform_8(%arg0: i32) -> (i32, i32) {
    %c0_i32 = arith.constant 0 : i32
    %c0_i32_0 = arith.constant 0 : i32
    %c0_i32_1 = arith.constant 0 : i32
    return %c0_i32, %c0_i32_0 : i32, i32
  }
  func.func @transform_9(%arg0: i32) -> (i32, i32, i32) {
    %c0_i32 = arith.constant 0 : i32
    %c0_i32_0 = arith.constant 0 : i32
    %c0_i32_1 = arith.constant 0 : i32
    return %arg0, %c0_i32, %c0_i32_0 : i32, i32, i32
  }
}

</mosaic_0001>

<bundles_post_ra>
// kernel: dqcnn_forward.1
= control target key start
LH: loop header
LB: loop body
LE: loop exit
PB: predicated region body
PF: predicated region fallthrough
CT: control target
= control target key end

     0   :  { %s10573_s30 = smov 0   ;;  %s16649_s0 = inlined_call_operand.vmem [shape: f32[16,136,384], index: 0, kind: input, shape index: {}]   ;;  %s16650_s1 = inlined_call_operand.vmem [shape: f32[384,32], index: 1, kind: input, shape index: {}]   ;;  %s16651_s2 = inlined_call_operand.vmem [shape: f32[1,32], index: 2, kind: input, shape index: {}]   ;;  %s16652_s3 = inlined_call_operand.vmem [shape: f32[256,32], index: 3, kind: input, shape index: {}]   ;;  %s16653_s4 = inlined_call_operand.vmem [shape: f32[1,32], index: 4, kind: input, shape index: {}]   ;;  %s16654_s5 = inlined_call_operand.vmem [shape: f32[256,32], index: 5, kind: input, shape index: {}]   ;;  %s16655_s6 = inlined_call_operand.vmem [shape: f32[256,1], index: 6, kind: input, shape index: {}]   ;;  %s16656_s7 = inlined_call_operand.vmem [shape: f32[6,256], index: 7, kind: input, shape index: {}]   ;;  %s16657_s8 = inlined_call_operand.vmem [shape: f32[6,1], index: 8, kind: input, shape index: {}]   ;;  %s16658_s9 = inlined_call_operand.vmem [shape: f32[16,6,32], index: 9, kind: output, shape index: {}]  }
   0x1 LB: > { %s9550_s10 = sadd.s32 4294967295, %s10520_s30   ;;  %p9554_p0 = scmp.ge.s32.totalorder %s10520_s30, 1  ;;  %s10520_s30 = sphi %s10573_s30, %s19_s30  }
   0x2   : > { %p289_p1 = scmp.lt.s32.totalorder %s10520_s30, 3 }
   0x4   : > { %p290_p2 = pnand %p9554_p0, %p289_p1 }
   0x6   : > { %293 = sbr.rel (%p290_p2) target bundleno = 3904 (0xf40), region = 56 }
   0xb   : > { %v10584_v0 = vld [vmem:[%s16650_s1 + $0x78] sm:$0xff]  ;;  %v10601_v3 = vld [vmem:[%s16650_s1 + $0x70] sm:$0xff]  ;;  %v10618_v6 = vld [vmem:[%s16650_s1 + $0x68] sm:$0xff]  ;;  %s9555_s19 = sshll.u32 %s9550_s10, 3  ;;  %vm663_vm0 = vcmask 261120   ;;  %vm5852_vm1 = vcmask 259072  }
   0xc   : > { %v10589_v1 = vld [vmem:[%s16650_s1 + $0xf8] sm:$0xff]  ;;  %442 = vmatpush.msra.mxu0 %v10584_v0  ;;  %v10606_v4 = vld [vmem:[%s16650_s1 + $0xf0] sm:$0xff]  ;;  %v10623_v7 = vld [vmem:[%s16650_s1 + $0xe8] sm:$0xff]  ;;  %p327_p3 = scmp.lt.s32.totalorder %s9555_s19, 15 }
   0xd   : > { %v10594_v2 = vld [vmem:[%s16650_s1 + $0x178] sm:$0xff]  ;;  %510 = vmatpush.msra.mxu1 %v10589_v1  ;;  %v10611_v5 = vld [vmem:[%s16650_s1 + $0x170] sm:$0xff]  ;;  %10437 = vmatpush.msra.mxu3 %v10589_v1  ;;  %v10630_v8 = vld [vmem:[%s16650_s1 + $0x168] sm:$0xff] }
   0xe   : > { %578 = vmatpush.msra.mxu2 %v10594_v2  ;;  %443 = vmatpush.msra.mxu0 %v10601_v3  ;;  %v10637_v9 = vld [vmem:[%s16650_s1 + $0x60] sm:$0xff]  ;;  %v10656_v12 = vld [vmem:[%s16650_s1 + $0x58] sm:$0xff]  ;;  %v10675_v15 = vld [vmem:[%s16650_s1 + $0x50] sm:$0xff]  ;;  %s17139_s19 = smov (!%p327_p3, %s9555_s19), 15 }
   0xf   : > { %511 = vmatpush.msra.mxu1 %v10606_v4  ;;  %10438 = vmatpush.msra.mxu3 %v10606_v4  ;;  %v10642_v10 = vld [vmem:[%s16650_s1 + $0xe0] sm:$0xff]  ;;  %v10661_v13 = vld [vmem:[%s16650_s1 + $0xd8] sm:$0xff]  ;;  %v10680_v16 = vld [vmem:[%s16650_s1 + $0xd0] sm:$0xff]  ;;  %s10469_s13 = smul.u32 408, %s17139_s19  ;;  %s9558_s18 = sshll.u32 %s17139_s19, 3 }
  0x10   : > { %579 = vmatpush.msra.mxu2 %v10611_v5  ;;  %444 = vmatpush.msra.mxu0 %v10618_v6  ;;  %v10649_v11 = vld [vmem:[%s16650_s1 + $0x160] sm:$0xff]  ;;  %v10668_v14 = vld [vmem:[%s16650_s1 + $0x158] sm:$0xff]  ;;  %v10687_v17 = vld [vmem:[%s16650_s1 + $0x150] sm:$0xff]  ;;  %s15453_s22 = scalar_lea.vmem %s16658_s9, %s9558_s18 }
  0x11   : > { %512 = vmatpush.msra.mxu1 %v10623_v7  ;;  %10439 = vmatpush.msra.mxu3 %v10623_v7  ;;  %v10694_v18 = vld [vmem:[%s16650_s1 + $0x48] sm:$0xff]  ;;  %v10713_v21 = vld [vmem:[%s16650_s1 + $0x40] sm:$0xff]  ;;  %v10734_v24 = vld [vmem:[%s16650_s1 + $0x38] sm:$0xff]  ;;  %s10869_s28 = scalar_lea.vmem %s16649_s0, %s10469_s13 }
  0x12   : > { %580 = vmatpush.msra.mxu2 %v10630_v8  ;;  %445 = vmatpush.msra.mxu0 %v10637_v9  ;;  %v10699_v19 = vld [vmem:[%s16650_s1 + $0xc8] sm:$0xff]  ;;  %v10718_v22 = vld [vmem:[%s16650_s1 + $0xc0] sm:$0xff]  ;;  %v10739_v25 = vld [vmem:[%s16650_s1 + $0xb8] sm:$0xff] }
  0x13   : > { %513 = vmatpush.msra.mxu1 %v10642_v10  ;;  %10440 = vmatpush.msra.mxu3 %v10642_v10  ;;  %v10706_v20 = vld [vmem:[%s16650_s1 + $0x148] sm:$0xff]  ;;  %v10727_v23 = vld [vmem:[%s16650_s1 + $0x140] sm:$0xff]  ;;  %v10746_v26 = vld [vmem:[%s16650_s1 + $0x138] sm:$0xff] }
  0x14   : > { %581 = vmatpush.msra.mxu2 %v10649_v11  ;;  %446 = vmatpush.msra.mxu0 %v10656_v12  ;;  %v10753_v27 = vld [vmem:[%s16650_s1 + $0x30] sm:$0xff]  ;;  %v10772_v30 = vld [vmem:[%s16650_s1 + $0x28] sm:$0xff]  ;;  %v10789_v33 = vld [vmem:[%s16650_s1 + $0x20] sm:$0xff] }
  0x15   : > { %514 = vmatpush.msra.mxu1 %v10661_v13  ;;  %10441 = vmatpush.msra.mxu3 %v10661_v13  ;;  %v10758_v28 = vld [vmem:[%s16650_s1 + $0xb0] sm:$0xff]  ;;  %v10777_v31 = vld [vmem:[%s16650_s1 + $0xa8] sm:$0xff]  ;;  %v10794_v34 = vld [vmem:[%s16650_s1 + $0xa0] sm:$0xff] }
  0x16   : > { %582 = vmatpush.msra.mxu2 %v10668_v14  ;;  %447 = vmatpush.msra.mxu0 %v10675_v15  ;;  %v10765_v29 = vld [vmem:[%s16650_s1 + $0x130] sm:$0xff]  ;;  %v10782_v32 = vld [vmem:[%s16650_s1 + $0x128] sm:$0xff]  ;;  %v10799_v35 = vld [vmem:[%s16650_s1 + $0x120] sm:$0xff] }
  0x17   : > { %515 = vmatpush.msra.mxu1 %v10680_v16  ;;  %10442 = vmatpush.msra.mxu3 %v10680_v16  ;;  %v10809_v36 = vld [vmem:[%s16650_s1 + $0x18] sm:$0xff]  ;;  %v10833_v39 = vld [vmem:[%s16650_s1 + $0x10] sm:$0xff]  ;;  %v10852_v42 = vld [vmem:[%s16650_s1 + $0x8] sm:$0xff] }
  0x18   : > { %583 = vmatpush.msra.mxu2 %v10687_v17  ;;  %448 = vmatpush.msra.mxu0 %v10694_v18  ;;  %v10814_v37 = vld [vmem:[%s16650_s1 + $0x98] sm:$0xff]  ;;  %v10838_v40 = vld [vmem:[%s16650_s1 + $0x90] sm:$0xff]  ;;  %v10857_v43 = vld [vmem:[%s16650_s1 + $0x88] sm:$0xff] }
  0x19   : > { %516 = vmatpush.msra.mxu1 %v10699_v19  ;;  %10443 = vmatpush.msra.mxu3 %v10699_v19  ;;  %v10825_v38 = vld [vmem:[%s16650_s1 + $0x118] sm:$0xff]  ;;  %v10845_v41 = vld [vmem:[%s16650_s1 + $0x110] sm:$0xff]  ;;  %v10864_v44 = vld [vmem:[%s16650_s1 + $0x108] sm:$0xff] }
  0x1a   : > { %584 = vmatpush.msra.mxu2 %v10706_v20  ;;  %449 = vmatpush.msra.mxu0 %v10713_v21  ;;  %v10876_v45 = vld [vmem:[%s16650_s1] sm:$0xff]  ;;  %v340_v49 = vld [vmem:[%s10869_s28 + $0x8] sm:$0xff]  ;;  %v361_v50 = vld [vmem:[%s10869_s28 + $0xb0] sm:$0xff] }
  0x1b   : > { %517 = vmatpush.msra.mxu1 %v10718_v22  ;;  %10444 = vmatpush.msra.mxu3 %v10718_v22  ;;  %v10881_v46 = vld [vmem:[%s16650_s1 + $0x80] sm:$0xff]  ;;  %v341_v51 = vld [vmem:[%s10869_s28 + $0x10] sm:$0xff]  ;;  %v342_v52 = vld [vmem:[%s10869_s28 + $0x18] sm:$0xff] }
  0x1c   : > { %585 = vmatpush.msra.mxu2 %v10727_v23  ;;  %450 = vmatpush.msra.mxu0 %v10734_v24  ;;  %v10888_v47 = vld [vmem:[%s16650_s1 + $0x100] sm:$0xff]  ;;  %v364_v54 = vld [vmem:[%s10869_s28 + $0xc8] sm:$0xff]  ;;  %v345_v56 = vld [vmem:[%s10869_s28 + $0x30] sm:$0xff] }
  0x1d   : > { %518 = vmatpush.msra.mxu1 %v10739_v25  ;;  %10445 = vmatpush.msra.mxu3 %v10739_v25  ;;  %v339_v48 = vld [vmem:[%s10869_s28] sm:$0xff]  ;;  %v344_v55 = vld [vmem:[%s10869_s28 + $0x28] sm:$0xff]  ;;  %v346_v57 = vld [vmem:[%s10869_s28 + $0x38] sm:$0xff] }
  0x1e   : > { %586 = vmatpush.msra.mxu2 %v10746_v26  ;;  %451 = vmatpush.msra.mxu0 %v10753_v27  ;;  %v343_v53 = vld [vmem:[%s10869_s28 + $0x20] sm:$0xff]  ;;  %v348_v60 = vld [vmem:[%s10869_s28 + $0x48] sm:$0xff]  ;;  %v349_v61 = vld [vmem:[%s10869_s28 + $0x50] sm:$0xff] }
  0x1f   : > { %519 = vmatpush.msra.mxu1 %v10758_v28  ;;  %10446 = vmatpush.msra.mxu3 %v10758_v28  ;;  %v367_v58 = vld [vmem:[%s10869_s28 + $0xe0] sm:$0xff]  ;;  %v370_v62 = vld [vmem:[%s10869_s28 + $0xf8] sm:$0xff] }
  0x20   : > { %587 = vmatpush.msra.mxu2 %v10765_v29  ;;  %452 = vmatpush.msra.mxu0 %v10772_v30  ;;  %v347_v59 = vld [vmem:[%s10869_s28 + $0x40] sm:$0xff]  ;;  %v350_v63 = vld [vmem:[%s10869_s28 + $0x58] sm:$0xff] }
  0x21   : > { %520 = vmatpush.msra.mxu1 %v10777_v31  ;;  %10447 = vmatpush.msra.mxu3 %v10777_v31 }
  0x22   : > { %588 = vmatpush.msra.mxu2 %v10782_v32  ;;  %453 = vmatpush.msra.mxu0 %v10789_v33 }
  0x23   : > { %521 = vmatpush.msra.mxu1 %v10794_v34  ;;  %10448 = vmatpush.msra.mxu3 %v10794_v34 }
  0x24   : > { %589 = vmatpush.msra.mxu2 %v10799_v35  ;;  %454 = vmatpush.msra.mxu0 %v10809_v36 }
  0x25   : > { %522 = vmatpush.msra.mxu1 %v10814_v37  ;;  %10449 = vmatpush.msra.mxu3 %v10814_v37 }
  0x26   : > { %590 = vmatpush.msra.mxu2 %v10825_v38  ;;  %455 = vmatpush.msra.mxu0 %v10833_v39 }
  0x27   : > { %523 = vmatpush.msra.mxu1 %v10838_v40  ;;  %10450 = vmatpush.msra.mxu3 %v10838_v40 }
  0x28   : > { %591 = vmatpush.msra.mxu2 %v10845_v41  ;;  %456 = vmatpush.msra.mxu0 %v10852_v42 }
  0x29   : > { %524 = vmatpush.msra.mxu1 %v10857_v43  ;;  %10451 = vmatpush.msra.mxu3 %v10857_v43 }
  0x2a   : > { %592 = vmatpush.msra.mxu2 %v10864_v44  ;;  %457 = vmatpush.msra.mxu0 %v10876_v45 }
  0x2b   : > { %525 = vmatpush.msra.mxu1 %v10881_v46  ;;  %10452 = vmatpush.msra.mxu3 %v10881_v46 }
  0x2c   : > { %593 = vmatpush.msra.mxu2 %v10888_v47  ;;  %458 = vmatmul.f32.vlgmr.msra.gmra.mxu0 %v339_v48  ;;  %v11043_v48 = vld [vmem:[%s16651_s2] ss:$0 sm:$0xff] }
  0x2d   : > { %526 = vmatmul.f32.vlgmr.msra.gmra.mxu1 %v340_v49  ;;  %547 = vmatmul.f32.vlgmr.msra.gmra.mxu3 %v361_v50 }
  0x2e   : > { %594 = vmatmul.f32.vlgmr.msra.gmra.mxu2 %v341_v51  ;;  %921 = vmatpush.msrb.mxu1 %v10594_v2  ;;  %v352_v2 = vld [vmem:[%s10869_s28 + $0x68] sm:$0xff]  ;;  %v387_v51 = vld [vmem:[%s10869_s28 + $0x180] sm:$0xff] }
  0x2f   : > { %785 = vmatpush.msrb.mxu3 %v10584_v0  ;;  %853 = vmatpush.msrb.mxu0 %v10589_v1  ;;  %v351_v1 = vld [vmem:[%s10869_s28 + $0x60] sm:$0xff] }
  0x30   : > { %1128 = vmatpush.msrb.mxu2 %v10584_v0  ;;  %922 = vmatpush.msrb.mxu1 %v10611_v5  ;;  %v353_v5 = vld [vmem:[%s10869_s28 + $0x70] sm:$0xff] }
  0x31   : > { %786 = vmatpush.msrb.mxu3 %v10601_v3  ;;  %854 = vmatpush.msrb.mxu0 %v10606_v4  ;;  %v373_v4 = vld [vmem:[%s10869_s28 + $0x110] sm:$0xff] }
  0x32   : > { %1129 = vmatpush.msrb.mxu2 %v10601_v3  ;;  %923 = vmatpush.msrb.mxu1 %v10630_v8  ;;  %v355_v8 = vld [vmem:[%s10869_s28 + $0x80] sm:$0xff] }
  0x33   : > { %787 = vmatpush.msrb.mxu3 %v10618_v6  ;;  %855 = vmatpush.msrb.mxu0 %v10623_v7  ;;  %v354_v7 = vld [vmem:[%s10869_s28 + $0x78] sm:$0xff] }
  0x34   : > { %1130 = vmatpush.msrb.mxu2 %v10618_v6  ;;  %461 = vmatmul.f32.gmra.mxu0 %v342_v52  ;;  %v9588_v52 = vld [vmem:[%s10869_s28 + $0x280] sm:$0xff] }
  0x35   : > { %529 = vmatmul.f32.gmra.mxu1 %v343_v53  ;;  %550 = vmatmul.f32.gmra.mxu3 %v364_v54  ;;  %v389_v54 = vld [vmem:[%s10869_s28 + $0x190] sm:$0xff] }
  0x36   : > { %597 = vmatmul.f32.gmra.mxu2 %v344_v55  ;;  %924 = vmatpush.msrb.mxu1 %v10649_v11  ;;  %v356_v11 = vld [vmem:[%s10869_s28 + $0x88] sm:$0xff] }
  0x37   : > { %788 = vmatpush.msrb.mxu3 %v10637_v9  ;;  %856 = vmatpush.msrb.mxu0 %v10642_v10  ;;  %v376_v10 = vld [vmem:[%s10869_s28 + $0x128] sm:$0xff] }
  0x38   : > { %1131 = vmatpush.msrb.mxu2 %v10637_v9  ;;  %925 = vmatpush.msrb.mxu1 %v10668_v14  ;;  %v358_v14 = vld [vmem:[%s10869_s28 + $0x98] sm:$0xff]  ;;  %v9577_v55 = vld [vmem:[%s10869_s28 + $0x228] sm:$0xff] }
  0x39   : > { %789 = vmatpush.msrb.mxu3 %v10656_v12  ;;  %857 = vmatpush.msrb.mxu0 %v10661_v13  ;;  %v357_v13 = vld [vmem:[%s10869_s28 + $0x90] sm:$0xff] }
  0x3a   : > { %1132 = vmatpush.msrb.mxu2 %v10656_v12  ;;  %926 = vmatpush.msrb.mxu1 %v10687_v17  ;;  %v359_v17 = vld [vmem:[%s10869_s28 + $0xa0] sm:$0xff] }
  0x3b   : > { %790 = vmatpush.msrb.mxu3 %v10675_v15  ;;  %858 = vmatpush.msrb.mxu0 %v10680_v16  ;;  %v379_v16 = vld [vmem:[%s10869_s28 + $0x140] sm:$0xff] }
  0x3c   : > { %1133 = vmatpush.msrb.mxu2 %v10675_v15  ;;  %464 = vmatmul.f32.gmra.mxu0 %v345_v56 }
  0x3d   : > { %532 = vmatmul.f32.gmra.mxu1 %v346_v57  ;;  %553 = vmatmul.f32.gmra.mxu3 %v367_v58 }
  0x3e   : > { %600 = vmatmul.f32.gmra.mxu2 %v347_v59  ;;  %927 = vmatpush.msrb.mxu1 %v10706_v20  ;;  %v382_v20 = vld [vmem:[%s10869_s28 + $0x158] sm:$0xff] }
  0x3f   : > { %791 = vmatpush.msrb.mxu3 %v10694_v18  ;;  %859 = vmatpush.msrb.mxu0 %v10699_v19  ;;  %v360_v19 = vld [vmem:[%s10869_s28 + $0xa8] sm:$0xff] }
  0x40   : > { %1134 = vmatpush.msrb.mxu2 %v10694_v18  ;;  %928 = vmatpush.msrb.mxu1 %v10727_v23  ;;  %v365_v23 = vld [vmem:[%s10869_s28 + $0xd0] sm:$0xff] }
  0x41   : > { %792 = vmatpush.msrb.mxu3 %v10713_v21  ;;  %860 = vmatpush.msrb.mxu0 %v10718_v22  ;;  %v362_v22 = vld [vmem:[%s10869_s28 + $0xb8] sm:$0xff] }
  0x42   : > { %1135 = vmatpush.msrb.mxu2 %v10713_v21  ;;  %929 = vmatpush.msrb.mxu1 %v10746_v26  ;;  %v371_v26 = vld [vmem:[%s10869_s28 + $0x100] sm:$0xff] }
  0x43   : > { %793 = vmatpush.msrb.mxu3 %v10734_v24  ;;  %861 = vmatpush.msrb.mxu0 %v10739_v25  ;;  %v368_v25 = vld [vmem:[%s10869_s28 + $0xe8] sm:$0xff] }
  0x44   : > { %1136 = vmatpush.msrb.mxu2 %v10734_v24  ;;  %467 = vmatmul.f32.gmra.mxu0 %v348_v60 }
  0x45   : > { %535 = vmatmul.f32.gmra.mxu1 %v349_v61  ;;  %556 = vmatmul.f32.gmra.mxu3 %v370_v62  ;;  %v9560_v62 = vld [vmem:[%s10869_s28 + $0x1a0] sm:$0xff] }
  0x46   : > { %603 = vmatmul.f32.gmra.mxu2 %v350_v63  ;;  %930 = vmatpush.msrb.mxu1 %v10765_v29  ;;  %v9573_v29 = vld [vmem:[%s10869_s28 + $0x208] sm:$0xff]  ;;  %v9591_v63 = vld [vmem:[%s10869_s28 + $0x298] sm:$0xff] }
  0x47   : > { %794 = vmatpush.msrb.mxu3 %v10753_v27  ;;  %862 = vmatpush.msrb.mxu0 %v10758_v28  ;;  %v372_v28 = vld [vmem:[%s10869_s28 + $0x108] sm:$0xff] }
  0x48   : > { %1137 = vmatpush.msrb.mxu2 %v10753_v27  ;;  %931 = vmatpush.msrb.mxu1 %v10782_v32  ;;  %v375_v32 = vld [vmem:[%s10869_s28 + $0x120] sm:$0xff] }
  0x49   : > { %795 = vmatpush.msrb.mxu3 %v10772_v30  ;;  %863 = vmatpush.msrb.mxu0 %v10777_v31  ;;  %v9562_v31 = vld [vmem:[%s10869_s28 + $0x1b0] sm:$0xff] }
  0x4a   : > { %1138 = vmatpush.msrb.mxu2 %v10772_v30  ;;  %932 = vmatpush.msrb.mxu1 %v10799_v35  ;;  %v9565_v35 = vld [vmem:[%s10869_s28 + $0x1c8] sm:$0xff] }
  0x4b   : > { %796 = vmatpush.msrb.mxu3 %v10789_v33  ;;  %864 = vmatpush.msrb.mxu0 %v10794_v34  ;;  %v377_v34 = vld [vmem:[%s10869_s28 + $0x130] sm:$0xff] }
  0x4c   : > { %1139 = vmatpush.msrb.mxu2 %v10789_v33  ;;  %470 = vmatmul.f32.gmra.mxu0 %v351_v1 }
  0x4d   : > { %538 = vmatmul.f32.gmra.mxu1 %v352_v2  ;;  %559 = vmatmul.f32.gmra.mxu3 %v373_v4  ;;  %v9580_v2 = vld [vmem:[%s10869_s28 + $0x240] sm:$0xff]  ;;  %v9610_v4 = vld [vmem:[%s10869_s28 + $0x330] sm:$0xff] }
  0x4e   : > { %606 = vmatmul.f32.gmra.mxu2 %v353_v5  ;;  %933 = vmatpush.msrb.mxu1 %v10825_v38  ;;  %v380_v38 = vld [vmem:[%s10869_s28 + $0x148] sm:$0xff] }
  0x4f   : > { %797 = vmatpush.msrb.mxu3 %v10809_v36  ;;  %865 = vmatpush.msrb.mxu0 %v10814_v37  ;;  %v9579_v37 = vld [vmem:[%s10869_s28 + $0x238] sm:$0xff] }
  0x50   : > { %1140 = vmatpush.msrb.mxu2 %v10809_v36  ;;  %934 = vmatpush.msrb.mxu1 %v10845_v41  ;;  %v9582_v41 = vld [vmem:[%s10869_s28 + $0x250] sm:$0xff] }
  0x51   : > { %798 = vmatpush.msrb.mxu3 %v10833_v39  ;;  %866 = vmatpush.msrb.mxu0 %v10838_v40  ;;  %v381_v40 = vld [vmem:[%s10869_s28 + $0x150] sm:$0xff] }
  0x52   : > { %1141 = vmatpush.msrb.mxu2 %v10833_v39  ;;  %935 = vmatpush.msrb.mxu1 %v10864_v44  ;;  %v384_v44 = vld [vmem:[%s10869_s28 + $0x168] sm:$0xff] }
  0x53   : > { %799 = vmatpush.msrb.mxu3 %v10852_v42  ;;  %867 = vmatpush.msrb.mxu0 %v10857_v43  ;;  %v9571_v43 = vld [vmem:[%s10869_s28 + $0x1f8] sm:$0xff] }
  0x54   : > { %1142 = vmatpush.msrb.mxu2 %v10852_v42  ;;  %473 = vmatmul.f32.gmra.mxu0 %v354_v7 }
  0x55   : > { %541 = vmatmul.f32.gmra.mxu1 %v355_v8  ;;  %562 = vmatmul.f32.gmra.mxu3 %v376_v10 }
  0x56   : > { %609 = vmatmul.f32.gmra.mxu2 %v356_v11  ;;  %936 = vmatpush.msrb.mxu1 %v10888_v47  ;;  %v9574_v47 = vld [vmem:[%s10869_s28 + $0x210] sm:$0xff] }
  0x57   : > { %800 = vmatpush.msrb.mxu3 %v10876_v45  ;;  %868 = vmatpush.msrb.mxu0 %v10881_v46  ;;  %v386_v46 = vld [vmem:[%s10869_s28 + $0x178] sm:$0xff] }
  0x58   : > { %1143 = vmatpush.msrb.mxu2 %v10876_v45  ;;  %1471 = vmatpush.msra.mxu1 %v10584_v0  ;;  %v9561_v0 = vld [vmem:[%s10869_s28 + $0x1a8] sm:$0xff] }
  0x5a   : > { %1472 = vmatpush.msra.mxu1 %v10601_v3  ;;  %v363_v3 = vld [vmem:[%s10869_s28 + $0xc0] sm:$0xff] }
  0x5c   : > { %476 = vmatmul.f32.gmra.mxu0 %v357_v13  ;;  %1473 = vmatpush.msra.mxu1 %v10618_v6  ;;  %v9564_v6 = vld [vmem:[%s10869_s28 + $0x1c0] sm:$0xff] }
  0x5d   : > { %544 = vmatmul.f32.gmra.mxu1 %v358_v14  ;;  %565 = vmatmul.f32.gmra.mxu3 %v379_v16  ;;  %v9563_v16 = vld [vmem:[%s10869_s28 + $0x1b8] sm:$0xff] }
  0x5e   : > { %612 = vmatmul.f32.gmra.mxu2 %v359_v17  ;;  %1474 = vmatpush.msra.mxu1 %v10637_v9  ;;  %v385_v9 = vld [vmem:[%s10869_s28 + $0x170] sm:$0xff] }
  0x5f   : > { %v9594_v17 = vld [vmem:[%s10869_s28 + $0x2b0] sm:$0xff] }
  0x60   : > { %1475 = vmatpush.msra.mxu1 %v10656_v12  ;;  %v366_v12 = vld [vmem:[%s10869_s28 + $0xd8] sm:$0xff] }
  0x62   : > { %1476 = vmatpush.msra.mxu1 %v10675_v15  ;;  %v9567_v15 = vld [vmem:[%s10869_s28 + $0x1d8] sm:$0xff] }
  0x64   : > { %479 = vmatmul.f32.gmra.mxu0 %v360_v19  ;;  %1477 = vmatpush.msra.mxu1 %v10694_v18  ;;  %v388_v18 = vld [vmem:[%s10869_s28 + $0x188] sm:$0xff] }
  0x65   : > { %937 = vmatmul.f32.vlgmr.msrb.gmra.mxu1 %v9561_v0  ;;  %568 = vmatmul.f32.gmra.mxu3 %v382_v20  ;;  %v9583_v0 = vld [vmem:[%s10869_s28 + $0x258] sm:$0xff]  ;;  %v9613_v20 = vld [vmem:[%s10869_s28 + $0x348] sm:$0xff] }
  0x66   : > { %615 = vmatmul.f32.gmra.mxu2 %v362_v22  ;;  %1478 = vmatpush.msra.mxu1 %v10713_v21  ;;  %v369_v21 = vld [vmem:[%s10869_s28 + $0xf0] sm:$0xff] }
  0x68   : > { %1479 = vmatpush.msra.mxu1 %v10734_v24  ;;  %v9570_v24 = vld [vmem:[%s10869_s28 + $0x1f0] sm:$0xff] }
  0x6a   : > { %1480 = vmatpush.msra.mxu1 %v10753_v27  ;;  %v9559_v27 = vld [vmem:[%s10869_s28 + $0x198] sm:$0xff] }
  0x6c   : > { %482 = vmatmul.f32.gmra.mxu0 %v363_v3  ;;  %1481 = vmatpush.msra.mxu1 %v10772_v30  ;;  %v374_v30 = vld [vmem:[%s10869_s28 + $0x118] sm:$0xff] }
  0x6d   : > { %940 = vmatmul.f32.gmra.mxu1 %v9564_v6  ;;  %571 = vmatmul.f32.gmra.mxu3 %v385_v9 }
  0x6e   : > { %618 = vmatmul.f32.gmra.mxu2 %v365_v23  ;;  %1482 = vmatpush.msra.mxu1 %v10789_v33  ;;  %v9576_v33 = vld [vmem:[%s10869_s28 + $0x220] sm:$0xff] }
  0x70   : > { %1483 = vmatpush.msra.mxu1 %v10809_v36  ;;  %v378_v36 = vld [vmem:[%s10869_s28 + $0x138] sm:$0xff] }
  0x72   : > { %1484 = vmatpush.msra.mxu1 %v10833_v39  ;;  %v9568_v39 = vld [vmem:[%s10869_s28 + $0x1e0] sm:$0xff] }
  0x74   : > { %485 = vmatmul.f32.gmra.mxu0 %v366_v12  ;;  %1485 = vmatpush.msra.mxu1 %v10852_v42  ;;  %v383_v42 = vld [vmem:[%s10869_s28 + $0x160] sm:$0xff] }
  0x75   : > { %943 = vmatmul.f32.gmra.mxu1 %v9567_v15  ;;  %574 = vmatmul.f32.gmra.mxu3 %v388_v18  ;;  %v9566_v18 = vld [vmem:[%s10869_s28 + $0x1d0] sm:$0xff] }
  0x76   : > { %621 = vmatmul.f32.gmra.mxu2 %v368_v25  ;;  %1486 = vmatpush.msra.mxu1 %v10876_v45  ;;  %v9585_v45 = vld [vmem:[%s10869_s28 + $0x268] sm:$0xff] }
  0x77   : > { %v9597_v25 = vld [vmem:[%s10869_s28 + $0x2c8] sm:$0xff] }
  0x7c   : > { %488 = vmatmul.f32.gmra.mxu0 %v369_v21 }
  0x7d   : > { %946 = vmatmul.f32.gmra.mxu1 %v9570_v24  ;;  %801 = vmatmul.f32.vlgmr.msrb.gmra.mxu3 %v9559_v27  ;;  %v9586_v24 = vld [vmem:[%s10869_s28 + $0x270] sm:$0xff] }
  0x7e   : > { %624 = vmatmul.f32.gmra.mxu2 %v371_v26  ;;  %v9616_v26 = vld [vmem:[%s10869_s28 + $0x360] sm:$0xff] }
  0x84   : > { %491 = vmatmul.f32.gmra.mxu0 %v372_v28 }
  0x85   : > { %949 = vmatmul.f32.gmra.mxu1 %v9573_v29  ;;  %804 = vmatmul.f32.gmra.mxu3 %v9562_v31  ;;  %v1107_v29 = vld [vmem:[%s16650_s1 + $0xf8] sm:$0xff] }
  0x86   : > { %627 = vmatmul.f32.gmra.mxu2 %v374_v30  ;;  %1196 = vmatpush.msra.mxu3 %v1107_v29  ;;  %v1106_v30 = vld [vmem:[%s16650_s1 + $0xf0] sm:$0xff] }
  0x87   : > { %1539 = vmatpush.msra.mxu2 %v1107_v29  ;;  %1882 = vmatpush.msrb.mxu1 %v1107_v29  ;;  %v1094_v29 = vld [vmem:[%s16650_s1 + $0x90] sm:$0xff] }
  0x88   : > { %1197 = vmatpush.msra.mxu3 %v1106_v30 }
  0x89   : > { %1540 = vmatpush.msra.mxu2 %v1106_v30  ;;  %1883 = vmatpush.msrb.mxu1 %v1106_v30 }
  0x8c   : > { %494 = vmatmul.f32.gmra.mxu0 %v375_v32 }
  0x8d   : > { %952 = vmatmul.f32.gmra.mxu1 %v9576_v33  ;;  %807 = vmatmul.f32.gmra.mxu3 %v9565_v35 }
  0x8e   : > { %630 = vmatmul.f32.gmra.mxu2 %v377_v34 }
  0x94   : > { %497 = vmatmul.f32.gmra.mxu0 %v378_v36  ;;  %v9569_v36 = vld [vmem:[%s10869_s28 + $0x1e8] sm:$0xff] }
  0x95   : > { %955 = vmatmul.f32.gmra.mxu1 %v9579_v37  ;;  %810 = vmatmul.f32.gmra.mxu3 %v9568_v39  ;;  %v9600_v37 = vld [vmem:[%s10869_s28 + $0x2e0] sm:$0xff] }
  0x96   : > { %633 = vmatmul.f32.gmra.mxu2 %v380_v38  ;;  %v1105_v38 = vld [vmem:[%s16650_s1 + $0xe8] sm:$0xff] }
  0x97   : > { %1198 = vmatpush.msra.mxu3 %v1105_v38  ;;  %1541 = vmatpush.msra.mxu2 %v1105_v38 }
  0x98   : > { %1884 = vmatpush.msrb.mxu1 %v1105_v38  ;;  %v9581_v38 = vld [vmem:[%s10869_s28 + $0x248] sm:$0xff] }
  0x9c   : > { %500 = vmatmul.f32.gmra.mxu0 %v381_v40  ;;  %v9589_v40 = vld [vmem:[%s10869_s28 + $0x288] sm:$0xff] }
  0x9d   : > { %958 = vmatmul.f32.gmra.mxu1 %v9582_v41  ;;  %813 = vmatmul.f32.gmra.mxu3 %v9571_v43  ;;  %v9619_v41 = vld [vmem:[%s10869_s28 + $0x378] sm:$0xff]  ;;  %v1104_v43 = vld [vmem:[%s16650_s1 + $0xe0] sm:$0xff] }
  0x9e   : > { %636 = vmatmul.f32.gmra.mxu2 %v383_v42  ;;  %1199 = vmatpush.msra.mxu3 %v1104_v43 }
  0x9f   : > { %1542 = vmatpush.msra.mxu2 %v1104_v43  ;;  %1885 = vmatpush.msrb.mxu1 %v1104_v43  ;;  %v1092_v43 = vld [vmem:[%s16650_s1 + $0x80] sm:$0xff] }
  0xa4   : > { %503 = vmatmul.f32.gmra.mxu0 %v384_v44 }
  0xa5   : > { %961 = vmatmul.f32.gmra.mxu1 %v9585_v45  ;;  %816 = vmatmul.f32.gmra.mxu3 %v9574_v47  ;;  %v1103_v45 = vld [vmem:[%s16650_s1 + $0xd8] sm:$0xff] }
  0xa6   : > { %639 = vmatmul.f32.gmra.mxu2 %v386_v46  ;;  %v1102_v46 = vld [vmem:[%s16650_s1 + $0xd0] sm:$0xff]  ;;  %1200 = vmatpush.msra.mxu3 %v1103_v45 }
  0xa7   : > { %1543 = vmatpush.msra.mxu2 %v1103_v45  ;;  %1886 = vmatpush.msrb.mxu1 %v1103_v45 }
  0xa8   : > { %1201 = vmatpush.msra.mxu3 %v1102_v46 }
  0xa9   : > { %v459_v49 = vpop.f32.mrf.mxu0  ;;  %1544 = vmatpush.msra.mxu2 %v1102_v46  ;;  %1887 = vmatpush.msrb.mxu1 %v1102_v46 }
  0xaa   : > { %v527_v50 = vpop.f32.mrf.mxu1  ;;  %v460_v53 = vadd.f32 %v11043_v48, %v459_v49 }
  0xac   : > { %506 = vmatmul.f32.gmra.mxu0 %v387_v51  ;;  %v528_v56 = vadd.f32 %v527_v50, %v460_v53  ;;  %v9572_v53 = vld [vmem:[%s10869_s28 + $0x200] sm:$0xff] }
  0xad   : > { %964 = vmatmul.f32.gmra.mxu1 %v9588_v52  ;;  %819 = vmatmul.f32.gmra.mxu3 %v9577_v55 }
  0xae   : > { %642 = vmatmul.f32.gmra.mxu2 %v389_v54  ;;  %v9603_v54 = vld [vmem:[%s10869_s28 + $0x2f8] sm:$0xff] }
  0xb0   : > { %v11050_v57 = vpop.f32.mrf.mxu3 }
  0xb1   : > { %v595_v58 = vpop.f32.mrf.mxu2  ;;  %v462_v60 = vpop.f32.mrf.mxu0 }
  0xb2   : > { %v596_v59 = vadd.f32 %v595_v58, %v528_v56  ;;  %v530_v61 = vpop.f32.mrf.mxu1  ;;  %v463_v1 = vadd.f32 %v11043_v48, %v462_v60  ;;  %v9592_v56 = vld [vmem:[%s10869_s28 + $0x2a0] sm:$0xff]  ;;  %v9622_v58 = vld [vmem:[%s10869_s28 + $0x390] sm:$0xff]  ;;  %v1101_v60 = vld [vmem:[%s16650_s1 + $0xc8] sm:$0xff] }
  0xb3   : > { %1202 = vmatpush.msra.mxu3 %v1101_v60  ;;  %1545 = vmatpush.msra.mxu2 %v1101_v60 }
  0xb4   : > { %v646_v5 = vmax.f32 %v596_v59, 0.0  ;;  %869 = vmatmul.f32.vlgmr.msrb.gmra.mxu0 %v9560_v62  ;;  %v531_v7 = vadd.f32 %v530_v61, %v463_v1  ;;  %v1100_v62 = vld [vmem:[%s16650_s1 + $0xc0] sm:$0xff]  ;;  %1888 = vmatpush.msrb.mxu1 %v1101_v60 }
  0xb5   : > { %967 = vmatmul.f32.gmra.mxu1 %v9591_v63  ;;  %822 = vmatmul.f32.gmra.mxu3 %v9580_v2  ;;  %v1099_v63 = vld [vmem:[%s16650_s1 + $0xb8] sm:$0xff] }
  0xb6   : > { %664 = vst.msk [vmem:[#allocation2] sm:$0xff] %vm663_vm0, %v646_v5  ;;  %1144 = vmatmul.f32.vlgmr.msrb.gmra.mxu2 %v9610_v4  ;;  %1203 = vmatpush.msra.mxu3 %v1100_v62 }
  0xb7   : > { %1546 = vmatpush.msra.mxu2 %v1100_v62  ;;  %1889 = vmatpush.msrb.mxu1 %v1100_v62 }
  0xb8   : > { %v11058_v8 = vpop.f32.mrf.mxu3  ;;  %1204 = vmatpush.msra.mxu3 %v1099_v63 }
  0xb9   : > { %v598_v10 = vpop.f32.mrf.mxu2  ;;  %v465_v13 = vpop.f32.mrf.mxu0  ;;  %1547 = vmatpush.msra.mxu2 %v1099_v63  ;;  %1890 = vmatpush.msrb.mxu1 %v1099_v63 }
  0xba   : > { %v599_v11 = vadd.f32 %v598_v10, %v531_v7  ;;  %v533_v14 = vpop.f32.mrf.mxu1  ;;  %v466_v19 = vadd.f32 %v11043_v48, %v465_v13  ;;  %v9575_v10 = vld [vmem:[%s10869_s28 + $0x218] sm:$0xff] }
  0xbc   : > { %v647_v22 = vmax.f32 %v599_v11, 0.0  ;;  %872 = vmatmul.f32.gmra.mxu0 %v9563_v16  ;;  %v534_v3 = vadd.f32 %v533_v14, %v466_v19  ;;  %v9606_v11 = vld [vmem:[%s10869_s28 + $0x310] sm:$0xff]  ;;  %v9595_v14 = vld [vmem:[%s10869_s28 + $0x2b8] sm:$0xff]  ;;  %v9625_v16 = vld [vmem:[%s10869_s28 + $0x3a8] sm:$0xff] }
  0xbd   : > { %970 = vmatmul.f32.gmra.mxu1 %v9594_v17  ;;  %825 = vmatmul.f32.gmra.mxu3 %v9583_v0  ;;  %v1098_v19 = vld [vmem:[%s16650_s1 + $0xb0] sm:$0xff] }
  0xbe   : > { %665 = vst.msk [vmem:[#allocation2 + $0x8] sm:$0xff] %vm663_vm0, %v647_v22  ;;  %1147 = vmatmul.f32.gmra.mxu2 %v9613_v20  ;;  %v1097_v20 = vld [vmem:[%s16650_s1 + $0xa8] sm:$0xff]  ;;  %1205 = vmatpush.msra.mxu3 %v1098_v19  ;;  %v1096_v22 = vld [vmem:[%s16650_s1 + $0xa0] sm:$0xff] }
  0xbf   : > { %1548 = vmatpush.msra.mxu2 %v1098_v19  ;;  %1891 = vmatpush.msrb.mxu1 %v1098_v19 }
  0xc0   : > { %v11066_v6 = vpop.f32.mrf.mxu3  ;;  %1206 = vmatpush.msra.mxu3 %v1097_v20 }
  0xc1   : > { %v601_v9 = vpop.f32.mrf.mxu2  ;;  %v468_v12 = vpop.f32.mrf.mxu0  ;;  %1549 = vmatpush.msra.mxu2 %v1097_v20  ;;  %1892 = vmatpush.msrb.mxu1 %v1097_v20 }
  0xc2   : > { %v602_v23 = vadd.f32 %v601_v9, %v534_v3  ;;  %v536_v15 = vpop.f32.mrf.mxu1  ;;  %v469_v21 = vadd.f32 %v11043_v48, %v468_v12  ;;  %1207 = vmatpush.msra.mxu3 %v1096_v22 }
  0xc3   : > { %1550 = vmatpush.msra.mxu2 %v1096_v22  ;;  %1893 = vmatpush.msrb.mxu1 %v1096_v22  ;;  %v9590_v22 = vld [vmem:[%s10869_s28 + $0x290] sm:$0xff] }
  0xc4   : > { %v648_v27 = vmax.f32 %v602_v23, 0.0  ;;  %875 = vmatmul.f32.gmra.mxu0 %v9566_v18  ;;  %v537_v28 = vadd.f32 %v536_v15, %v469_v21  ;;  %v9578_v18 = vld [vmem:[%s10869_s28 + $0x230] sm:$0xff] }
  0xc5   : > { %973 = vmatmul.f32.gmra.mxu1 %v9597_v25  ;;  %828 = vmatmul.f32.gmra.mxu3 %v9586_v24  ;;  %v9609_v25 = vld [vmem:[%s10869_s28 + $0x328] sm:$0xff]  ;;  %v9598_v21 = vld [vmem:[%s10869_s28 + $0x2d0] sm:$0xff]  ;;  %v9628_v24 = vld [vmem:[%s10869_s28 + $0x3c0] sm:$0xff] }
  0xc6   : > { %666 = vst.msk [vmem:[#allocation2 + $0x10] sm:$0xff] %vm663_vm0, %v648_v27  ;;  %1150 = vmatmul.f32.gmra.mxu2 %v9616_v26 }
  0xc8   : > { %v11080_v31 = vpop.f32.mrf.mxu3 }
  0xc9   : > { %v604_v32 = vpop.f32.mrf.mxu2  ;;  %v471_v34 = vpop.f32.mrf.mxu0 }
  0xca   : > { %v605_v33 = vadd.f32 %v604_v32, %v537_v28  ;;  %v539_v35 = vpop.f32.mrf.mxu1  ;;  %v472_v39 = vadd.f32 %v11043_v48, %v471_v34  ;;  %v1095_v28 = vld [vmem:[%s16650_s1 + $0x98] sm:$0xff]  ;;  %v1093_v32 = vld [vmem:[%s16650_s1 + $0x88] sm:$0xff] }
  0xcb   : > { %1208 = vmatpush.msra.mxu3 %v1095_v28  ;;  %1551 = vmatpush.msra.mxu2 %v1095_v28 }
  0xcc   : > { %v649_v42 = vmax.f32 %v605_v33, 0.0  ;;  %878 = vmatmul.f32.gmra.mxu0 %v9569_v36  ;;  %v540_v44 = vadd.f32 %v539_v35, %v472_v39  ;;  %1894 = vmatpush.msrb.mxu1 %v1095_v28  ;;  %v9661_v39 = vld [vmem:[%s10869_s28 + $0x4c8] sm:$0xff] }
  0xcd   : > { %976 = vmatmul.f32.gmra.mxu1 %v9600_v37  ;;  %831 = vmatmul.f32.gmra.mxu3 %v9589_v40  ;;  %v9601_v40 = vld [vmem:[%s10869_s28 + $0x2e8] sm:$0xff] }
  0xce   : > { %667 = vst.msk [vmem:[#allocation2 + $0x18] sm:$0xff] %vm663_vm0, %v649_v42  ;;  %1153 = vmatmul.f32.gmra.mxu2 %v9619_v41  ;;  %1209 = vmatpush.msra.mxu3 %v1094_v29  ;;  %v9631_v41 = vld [vmem:[%s10869_s28 + $0x3d8] sm:$0xff] }
  0xcf   : > { %1552 = vmatpush.msra.mxu2 %v1094_v29  ;;  %1895 = vmatpush.msrb.mxu1 %v1094_v29 }
  0xd0   : > { %v11100_v47 = vpop.f32.mrf.mxu3  ;;  %1210 = vmatpush.msra.mxu3 %v1093_v32 }
  0xd1   : > { %v607_v49 = vpop.f32.mrf.mxu2  ;;  %v474_v51 = vpop.f32.mrf.mxu0  ;;  %1553 = vmatpush.msra.mxu2 %v1093_v32  ;;  %1896 = vmatpush.msrb.mxu1 %v1093_v32 }
  0xd2   : > { %v608_v50 = vadd.f32 %v607_v49, %v540_v44  ;;  %v542_v52 = vpop.f32.mrf.mxu1  ;;  %v475_v55 = vadd.f32 %v11043_v48, %v474_v51  ;;  %1211 = vmatpush.msra.mxu3 %v1092_v43 }
  0xd3   : > { %1554 = vmatpush.msra.mxu2 %v1092_v43  ;;  %1897 = vmatpush.msrb.mxu1 %v1092_v43  ;;  %v1115_v43 = vld [vmem:[%s16650_s1 + $0x138] sm:$0xff] }
  0xd4   : > { %v650_v59 = vmax.f32 %v608_v50, 0.0  ;;  %881 = vmatmul.f32.gmra.mxu0 %v9572_v53  ;;  %v543_v61 = vadd.f32 %v542_v52, %v475_v55  ;;  %v9584_v52 = vld [vmem:[%s10869_s28 + $0x260] sm:$0xff]  ;;  %v9634_v55 = vld [vmem:[%s10869_s28 + $0x3f0] sm:$0xff] }
  0xd5   : > { %979 = vmatmul.f32.gmra.mxu1 %v9603_v54  ;;  %834 = vmatmul.f32.gmra.mxu3 %v9592_v56  ;;  %v9664_v53 = vld [vmem:[%s10869_s28 + $0x4e0] sm:$0xff] }
  0xd6   : > { %668 = vst.msk [vmem:[#allocation2 + $0x20] sm:$0xff] %vm663_vm0, %v650_v59  ;;  %1156 = vmatmul.f32.gmra.mxu2 %v9622_v58  ;;  %v9604_v54 = vld [vmem:[%s10869_s28 + $0x300] sm:$0xff] }
  0xd8   : > { %v11117_v1 = vpop.f32.mrf.mxu3 }
  0xd9   : > { %v610_v2 = vpop.f32.mrf.mxu2  ;;  %v477_v5 = vpop.f32.mrf.mxu0 }
  0xda   : > { %v611_v4 = vadd.f32 %v610_v2, %v543_v61  ;;  %v545_v7 = vpop.f32.mrf.mxu1  ;;  %v478_v13 = vadd.f32 %v11043_v48, %v477_v5  ;;  %v9587_v2 = vld [vmem:[%s10869_s28 + $0x278] sm:$0xff] }
  0xdb   : > { %v9607_v5 = vld [vmem:[%s10869_s28 + $0x318] sm:$0xff] }
  0xdc   : > { %v651_v17 = vmax.f32 %v611_v4, 0.0  ;;  %884 = vmatmul.f32.gmra.mxu0 %v9575_v10  ;;  %v546_v0 = vadd.f32 %v545_v7, %v478_v13  ;;  %v9667_v4 = vld [vmem:[%s10869_s28 + $0x4f8] sm:$0xff]  ;;  %v9637_v7 = vld [vmem:[%s10869_s28 + $0x408] sm:$0xff] }
  0xdd   : > { %982 = vmatmul.f32.gmra.mxu1 %v9606_v11  ;;  %837 = vmatmul.f32.gmra.mxu3 %v9595_v14  ;;  %v1122_v14 = vld [vmem:[%s16650_s1 + $0x170] sm:$0xff] }
  0xde   : > { %669 = vst.msk [vmem:[#allocation2 + $0x28] sm:$0xff] %vm663_vm0, %v651_v17  ;;  %1159 = vmatmul.f32.gmra.mxu2 %v9625_v16 }
  0xe0   : > { %v11134_v3 = vpop.f32.mrf.mxu3 }
  0xe1   : > { %v613_v9 = vpop.f32.mrf.mxu2  ;;  %v480_v12 = vpop.f32.mrf.mxu0 }
  0xe2   : > { %v614_v23 = vadd.f32 %v613_v9, %v546_v0  ;;  %v11136_v15 = vpop.f32.mrf.mxu1  ;;  %v481_v27 = vadd.f32 %v11043_v48, %v480_v12  ;;  %v9670_v9 = vld [vmem:[%s10869_s28 + $0x510] sm:$0xff]  ;;  %v9611_v12 = vld [vmem:[%s10869_s28 + $0x338] sm:$0xff] }
  0xe4   : > { %v652_v26 = vmax.f32 %v614_v23, 0.0  ;;  %887 = vmatmul.f32.gmra.mxu0 %v9578_v18  ;;  %v549_v30 = vadd.f32 %v11050_v57, %v481_v27  ;;  %v9640_v23 = vld [vmem:[%s10869_s28 + $0x420] sm:$0xff]  ;;  %v1118_v27 = vld [vmem:[%s16650_s1 + $0x150] sm:$0xff] }
  0xe5   : > { %985 = vmatmul.f32.gmra.mxu1 %v9609_v25  ;;  %840 = vmatmul.f32.gmra.mxu3 %v9598_v21  ;;  %v1120_v21 = vld [vmem:[%s16650_s1 + $0x160] sm:$0xff] }
  0xe6   : > { %670 = vst.msk [vmem:[#allocation2 + $0x30] sm:$0xff] %vm663_vm0, %v652_v26  ;;  %1162 = vmatmul.f32.gmra.mxu2 %v9628_v24  ;;  %v1119_v24 = vld [vmem:[%s16650_s1 + $0x158] sm:$0xff] }
  0xe8   : > { %v11154_v33 = vpop.f32.mrf.mxu3 }
  0xe9   : > { %v616_v34 = vpop.f32.mrf.mxu2  ;;  %v483_v36 = vpop.f32.mrf.mxu0 }
  0xea   : > { %v617_v35 = vadd.f32 %v616_v34, %v549_v30  ;;  %v11156_v37 = vpop.f32.mrf.mxu1  ;;  %v484_v42 = vadd.f32 %v11043_v48, %v483_v36  ;;  %v9673_v36 = vld [vmem:[%s10869_s28 + $0x528] sm:$0xff] }
  0xec   : > { %v653_v57 = vmax.f32 %v617_v35, 0.0  ;;  %890 = vmatmul.f32.gmra.mxu0 %v9581_v38  ;;  %v552_v44 = vadd.f32 %v11058_v8, %v484_v42  ;;  %v9593_v35 = vld [vmem:[%s10869_s28 + $0x2a8] sm:$0xff]  ;;  %v9643_v38 = vld [vmem:[%s10869_s28 + $0x438] sm:$0xff] }
  0xed   : > { %1487 = vmatmul.f32.vlgmr.msra.gmra.mxu1 %v9661_v39  ;;  %843 = vmatmul.f32.gmra.mxu3 %v9601_v40  ;;  %v9614_v39 = vld [vmem:[%s10869_s28 + $0x350] sm:$0xff] }
  0xee   : > { %671 = vst.msk [vmem:[#allocation2 + $0x38] sm:$0xff] %vm663_vm0, %v653_v57  ;;  %1165 = vmatmul.f32.gmra.mxu2 %v9631_v41  ;;  %v1117_v41 = vld [vmem:[%s16650_s1 + $0x148] sm:$0xff]  ;;  %v1116_v57 = vld [vmem:[%s16650_s1 + $0x140] sm:$0xff] }
  0xf0   : > { %v11168_v45 = vpop.f32.mrf.mxu3 }
  0xf1   : > { %v619_v46 = vpop.f32.mrf.mxu2  ;;  %v486_v50 = vpop.f32.mrf.mxu0 }
  0xf2   : > { %v620_v49 = vadd.f32 %v619_v46, %v552_v44  ;;  %v11170_v51 = vpop.f32.mrf.mxu1  ;;  %v487_v58 = vadd.f32 %v11043_v48, %v486_v50 }
  0xf4   : > { %v654_v56 = vmax.f32 %v620_v49, 0.0  ;;  %893 = vmatmul.f32.gmra.mxu0 %v9584_v52  ;;  %v555_v8 = vadd.f32 %v11066_v6, %v487_v58  ;;  %v1123_v6 = vld [vmem:[%s16650_s1 + $0x178] sm:$0xff] }
  0xf5   : > { %1490 = vmatmul.f32.gmra.mxu1 %v9664_v53  ;;  %846 = vmatmul.f32.gmra.mxu3 %v9604_v54  ;;  %v9596_v53 = vld [vmem:[%s10869_s28 + $0x2c0] sm:$0xff] }
  0xf6   : > { %672 = vst.msk [vmem:[#allocation2 + $0x40] sm:$0xff] %vm663_vm0, %v654_v56  ;;  %1168 = vmatmul.f32.gmra.mxu2 %v9634_v55  ;;  %1264 = vmatpush.msra.mxu0 %v1123_v6  ;;  %v9676_v54 = vld [vmem:[%s10869_s28 + $0x540] sm:$0xff]  ;;  %v9646_v55 = vld [vmem:[%s10869_s28 + $0x450] sm:$0xff]  ;;  %v9617_v56 = vld [vmem:[%s10869_s28 + $0x368] sm:$0xff] }
  0xf7   : > { %1607 = vmatpush.msrb.mxu3 %v1123_v6  ;;  %1950 = vmatpush.msrb.mxu2 %v1123_v6  ;;  %v9679_v6 = vld [vmem:[%s10869_s28 + $0x558] sm:$0xff] }
  0xf8   : > { %v11179_v59 = vpop.f32.mrf.mxu3  ;;  %1265 = vmatpush.msra.mxu0 %v1122_v14 }
  0xf9   : > { %v622_v60 = vpop.f32.mrf.mxu2  ;;  %v489_v62 = vpop.f32.mrf.mxu0  ;;  %1608 = vmatpush.msrb.mxu3 %v1122_v14  ;;  %1951 = vmatpush.msrb.mxu2 %v1122_v14  ;;  %v9620_v14 = vld [vmem:[%s10869_s28 + $0x380] sm:$0xff] }
  0xfa   : > { %v623_v61 = vadd.f32 %v622_v60, %v555_v8  ;;  %v11181_v63 = vpop.f32.mrf.mxu1  ;;  %v490_v11 = vadd.f32 %v11043_v48, %v489_v62  ;;  %v1114_v8 = vld [vmem:[%s16650_s1 + $0x130] sm:$0xff]  ;;  %v1113_v60 = vld [vmem:[%s16650_s1 + $0x128] sm:$0xff]  ;;  %v1112_v62 = vld [vmem:[%s16650_s1 + $0x120] sm:$0xff] }
  0xfc   : > { %v655_v10 = vmax.f32 %v623_v61, 0.0  ;;  %896 = vmatmul.f32.gmra.mxu0 %v9587_v2  ;;  %v558_v13 = vadd.f32 %v11080_v31, %v490_v11  ;;  %v1121_v31 = vld [vmem:[%s16650_s1 + $0x168] sm:$0xff]  ;;  %v9599_v11 = vld [vmem:[%s10869_s28 + $0x2d8] sm:$0xff] }
  0xfd   : > { %1493 = vmatmul.f32.gmra.mxu1 %v9667_v4  ;;  %849 = vmatmul.f32.gmra.mxu3 %v9607_v5 }
  0xfe   : > { %673 = vst.msk [vmem:[#allocation2 + $0x48] sm:$0xff] %vm663_vm0, %v655_v10  ;;  %1171 = vmatmul.f32.gmra.mxu2 %v9637_v7  ;;  %1266 = vmatpush.msra.mxu0 %v1121_v31 }
  0xff   : > { %1609 = vmatpush.msrb.mxu3 %v1121_v31  ;;  %1952 = vmatpush.msrb.mxu2 %v1121_v31 }
 0x100   : > { %v11196_v17 = vpop.f32.mrf.mxu3  ;;  %1267 = vmatpush.msra.mxu0 %v1120_v21 }
 0x101   : > { %v625_v16 = vpop.f32.mrf.mxu2  ;;  %v492_v0 = vpop.f32.mrf.mxu0  ;;  %1610 = vmatpush.msrb.mxu3 %v1120_v21  ;;  %1953 = vmatpush.msrb.mxu2 %v1120_v21  ;;  %v9602_v21 = vld [vmem:[%s10869_s28 + $0x2f0] sm:$0xff] }
 0x102   : > { %v626_v19 = vadd.f32 %v625_v16, %v558_v13  ;;  %v11198_v20 = vpop.f32.mrf.mxu1  ;;  %v493_v25 = vadd.f32 %v11043_v48, %v492_v0  ;;  %1268 = vmatpush.msra.mxu0 %v1119_v24  ;;  %v9649_v13 = vld [vmem:[%s10869_s28 + $0x468] sm:$0xff]  ;;  %v1110_v0 = vld [vmem:[%s16650_s1 + $0x110] sm:$0xff] }
 0x103   : > { %1611 = vmatpush.msrb.mxu3 %v1119_v24  ;;  %1954 = vmatpush.msrb.mxu2 %v1119_v24  ;;  %v9682_v24 = vld [vmem:[%s10869_s28 + $0x570] sm:$0xff] }
 0x104   : > { %v656_v18 = vmax.f32 %v626_v19, 0.0  ;;  %899 = vmatmul.f32.gmra.mxu0 %v9590_v22  ;;  %v561_v26 = vadd.f32 %v11100_v47, %v493_v25  ;;  %v1111_v19 = vld [vmem:[%s16650_s1 + $0x118] sm:$0xff] }
 0x105   : > { %1496 = vmatmul.f32.gmra.mxu1 %v9670_v9  ;;  %1212 = vmatmul.f32.vlgmr.msra.gmra.mxu3 %v9611_v12  ;;  %v1109_v9 = vld [vmem:[%s16650_s1 + $0x108] sm:$0xff] }
 0x106   : > { %674 = vst.msk [vmem:[#allocation2 + $0x50] sm:$0xff] %vm663_vm0, %v656_v18  ;;  %1174 = vmatmul.f32.gmra.mxu2 %v9640_v23  ;;  %1269 = vmatpush.msra.mxu0 %v1118_v27 }
 0x107   : > { %1612 = vmatpush.msrb.mxu3 %v1118_v27  ;;  %1955 = vmatpush.msrb.mxu2 %v1118_v27  ;;  %v9623_v27 = vld [vmem:[%s10869_s28 + $0x398] sm:$0xff] }
 0x108   : > { %v11219_v29 = vpop.f32.mrf.mxu3  ;;  %1270 = vmatpush.msra.mxu0 %v1117_v41 }
 0x109   : > { %v628_v28 = vpop.f32.mrf.mxu2  ;;  %v495_v32 = vpop.f32.mrf.mxu0  ;;  %1613 = vmatpush.msrb.mxu3 %v1117_v41  ;;  %1956 = vmatpush.msrb.mxu2 %v1117_v41  ;;  %v9685_v41 = vld [vmem:[%s10869_s28 + $0x588] sm:$0xff] }
 0x10a   : > { %v629_v30 = vadd.f32 %v628_v28, %v561_v26  ;;  %v11221_v34 = vpop.f32.mrf.mxu1  ;;  %v496_v40 = vadd.f32 %v11043_v48, %v495_v32  ;;  %1271 = vmatpush.msra.mxu0 %v1116_v57  ;;  %v9652_v26 = vld [vmem:[%s10869_s28 + $0x480] sm:$0xff] }
 0x10b   : > { %1614 = vmatpush.msrb.mxu3 %v1116_v57  ;;  %1957 = vmatpush.msrb.mxu2 %v1116_v57  ;;  %v9655_v57 = vld [vmem:[%s10869_s28 + $0x498] sm:$0xff] }
 0x10c   : > { %v657_v47 = vmax.f32 %v629_v30, 0.0  ;;  %902 = vmatmul.f32.gmra.mxu0 %v9593_v35  ;;  %v564_v42 = vadd.f32 %v11117_v1, %v496_v40  ;;  %v1108_v30 = vld [vmem:[%s16650_s1 + $0x100] sm:$0xff]  ;;  %v9605_v40 = vld [vmem:[%s10869_s28 + $0x308] sm:$0xff] }
 0x10d   : > { %1499 = vmatmul.f32.gmra.mxu1 %v9673_v36  ;;  %1215 = vmatmul.f32.gmra.mxu3 %v9614_v39 }
 0x10e   : > { %675 = vst.msk [vmem:[#allocation2 + $0x58] sm:$0xff] %vm663_vm0, %v657_v47  ;;  %1177 = vmatmul.f32.gmra.mxu2 %v9643_v38  ;;  %1272 = vmatpush.msra.mxu0 %v1115_v43 }
 0x10f   : > { %1615 = vmatpush.msrb.mxu3 %v1115_v43  ;;  %1958 = vmatpush.msrb.mxu2 %v1115_v43 }
 0x110   : > { %v11239_v46 = vpop.f32.mrf.mxu3  ;;  %1273 = vmatpush.msra.mxu0 %v1114_v8 }
 0x111   : > { %v631_v44 = vpop.f32.mrf.mxu2  ;;  %v498_v50 = vpop.f32.mrf.mxu0  ;;  %1616 = vmatpush.msrb.mxu3 %v1114_v8  ;;  %1959 = vmatpush.msrb.mxu2 %v1114_v8 }
 0x112   : > { %v632_v49 = vadd.f32 %v631_v44, %v564_v42  ;;  %v11241_v52 = vpop.f32.mrf.mxu1  ;;  %v499_v58 = vadd.f32 %v11043_v48, %v498_v50  ;;  %1274 = vmatpush.msra.mxu0 %v1113_v60  ;;  %v9626_v42 = vld [vmem:[%s10869_s28 + $0x3b0] sm:$0xff] }
 0x113   : > { %1617 = vmatpush.msrb.mxu3 %v1113_v60  ;;  %1960 = vmatpush.msrb.mxu2 %v1113_v60  ;;  %v9658_v60 = vld [vmem:[%s10869_s28 + $0x4b0] sm:$0xff] }
 0x114   : > { %v658_v1 = vmax.f32 %v632_v49, 0.0  ;;  %905 = vmatmul.f32.gmra.mxu0 %v9596_v53  ;;  %v567_v61 = vadd.f32 %v11134_v3, %v499_v58  ;;  %v9688_v58 = vld [vmem:[%s10869_s28 + $0x5a0] sm:$0xff] }
 0x115   : > { %1502 = vmatmul.f32.gmra.mxu1 %v9676_v54  ;;  %1218 = vmatmul.f32.gmra.mxu3 %v9617_v56 }
 0x116   : > { %676 = vst.msk [vmem:[#allocation2 + $0x60] sm:$0xff] %vm663_vm0, %v658_v1  ;;  %1180 = vmatmul.f32.gmra.mxu2 %v9646_v55  ;;  %1275 = vmatpush.msra.mxu0 %v1112_v62  ;;  %v9608_v1 = vld [vmem:[%s10869_s28 + $0x320] sm:$0xff] }
 0x117   : > { %1618 = vmatpush.msrb.mxu3 %v1112_v62  ;;  %1961 = vmatpush.msrb.mxu2 %v1112_v62 }
 0x118   : > { %v11259_v4 = vpop.f32.mrf.mxu3  ;;  %1276 = vmatpush.msra.mxu0 %v1111_v19 }
 0x119   : > { %v634_v2 = vpop.f32.mrf.mxu2  ;;  %v501_v7 = vpop.f32.mrf.mxu0  ;;  %1619 = vmatpush.msrb.mxu3 %v1111_v19  ;;  %1962 = vmatpush.msrb.mxu2 %v1111_v19 }
 0x11a   : > { %v635_v5 = vadd.f32 %v634_v2, %v567_v61  ;;  %v11261_v10 = vpop.f32.mrf.mxu1  ;;  %v502_v16 = vadd.f32 %v11043_v48, %v501_v7  ;;  %1277 = vmatpush.msra.mxu0 %v1110_v0  ;;  %v9629_v61 = vld [vmem:[%s10869_s28 + $0x3c8] sm:$0xff] }
 0x11b   : > { %1620 = vmatpush.msrb.mxu3 %v1110_v0  ;;  %1963 = vmatpush.msrb.mxu2 %v1110_v0 }
 0x11c   : > { %v659_v3 = vmax.f32 %v635_v5, 0.0  ;;  %908 = vmatmul.f32.gmra.mxu0 %v9599_v11  ;;  %v570_v22 = vadd.f32 %v11154_v33, %v502_v16  ;;  %v9662_v16 = vld [vmem:[%s10869_s28 + $0x4d0] sm:$0xff] }
 0x11d   : > { %1505 = vmatmul.f32.gmra.mxu1 %v9679_v6  ;;  %1221 = vmatmul.f32.gmra.mxu3 %v9620_v14  ;;  %v9612_v6 = vld [vmem:[%s10869_s28 + $0x340] sm:$0xff] }
 0x11e   : > { %677 = vst.msk [vmem:[#allocation2 + $0x68] sm:$0xff] %vm663_vm0, %v659_v3  ;;  %1183 = vmatmul.f32.gmra.mxu2 %v9649_v13  ;;  %1278 = vmatpush.msra.mxu0 %v1109_v9  ;;  %v9691_v13 = vld [vmem:[%s10869_s28 + $0x5b8] sm:$0xff]  ;;  %v9632_v3 = vld [vmem:[%s10869_s28 + $0x3e0] sm:$0xff] }
 0x11f   : > { %1621 = vmatpush.msrb.mxu3 %v1109_v9  ;;  %1964 = vmatpush.msrb.mxu2 %v1109_v9 }
 0x120   : > { %v11279_v23 = vpop.f32.mrf.mxu3  ;;  %1279 = vmatpush.msra.mxu0 %v1108_v30 }
 0x121   : > { %v637_v31 = vpop.f32.mrf.mxu2  ;;  %v504_v18 = vpop.f32.mrf.mxu0  ;;  %1622 = vmatpush.msrb.mxu3 %v1108_v30  ;;  %1965 = vmatpush.msrb.mxu2 %v1108_v30 }
 0x122   : > { %v638_v12 = vadd.f32 %v637_v31, %v570_v22  ;;  %v11281_v25 = vpop.f32.mrf.mxu1  ;;  %v505_v28 = vadd.f32 %v11043_v48, %v504_v18  ;;  %v9615_v18 = vld [vmem:[%s10869_s28 + $0x358] sm:$0xff] }
 0x124   : > { %v660_v33 = vmax.f32 %v638_v12, 0.0  ;;  %911 = vmatmul.f32.gmra.mxu0 %v9602_v21  ;;  %v573_v32 = vadd.f32 %v11168_v45, %v505_v28  ;;  %v11305_v45 = vld [vmem:[%s16651_s2] ss:$0 sm:$0xff] }
 0x125   : > { %1508 = vmatmul.f32.gmra.mxu1 %v9682_v24  ;;  %1224 = vmatmul.f32.gmra.mxu3 %v9623_v27  ;;  %v803_v50 = vadd.f32 %v11305_v45, %v11196_v17  ;;  %v806_v2 = vadd.f32 %v11305_v45, %v11219_v29  ;;  %v809_v0 = vadd.f32 %v11305_v45, %v11239_v46  ;;  %v9635_v24 = vld [vmem:[%s10869_s28 + $0x3f8] sm:$0xff] }
 0x126   : > { %678 = vst.msk [vmem:[#allocation2 + $0x70] sm:$0xff] %vm663_vm0, %v660_v33  ;;  %1186 = vmatmul.f32.gmra.mxu2 %v9652_v26  ;;  %v9665_v26 = vld [vmem:[%s10869_s28 + $0x4e8] sm:$0xff]  ;;  %v812_v33 = vadd.f32 %v11305_v45, %v11259_v4 }
 0x128   : > { %v11293_v36 = vpop.f32.mrf.mxu3 }
 0x129   : > { %v640_v35 = vpop.f32.mrf.mxu2  ;;  %v507_v39 = vpop.f32.mrf.mxu0 }
 0x12a   : > { %v641_v38 = vadd.f32 %v640_v35, %v573_v32  ;;  %v11295_v47 = vpop.f32.mrf.mxu1  ;;  %v508_v44 = vadd.f32 %v11043_v48, %v507_v39 }
 0x12c   : > { %v661_v43 = vmax.f32 %v641_v38, 0.0  ;;  %914 = vmatmul.f32.gmra.mxu0 %v9605_v40  ;;  %v576_v49 = vadd.f32 %v11179_v59, %v508_v44  ;;  %v9618_v38 = vld [vmem:[%s10869_s28 + $0x370] sm:$0xff] }
 0x12d   : > { %1511 = vmatmul.f32.gmra.mxu1 %v9685_v41  ;;  %1227 = vmatmul.f32.gmra.mxu3 %v9626_v42  ;;  %v9638_v40 = vld [vmem:[%s10869_s28 + $0x410] sm:$0xff]  ;;  %v9668_v41 = vld [vmem:[%s10869_s28 + $0x500] sm:$0xff]  ;;  %v815_v42 = vadd.f32 %v11305_v45, %v11279_v23 }
 0x12e   : > { %679 = vst.msk [vmem:[#allocation2 + $0x78] sm:$0xff] %vm663_vm0, %v661_v43  ;;  %1189 = vmatmul.f32.gmra.mxu2 %v9655_v57 }
 0x130   : > { %v11311_v48 = vpop.f32.mrf.mxu3 }
 0x131   : > { %v643_v53 = vpop.f32.mrf.mxu2  ;;  %v870_v55 = vpop.f32.mrf.mxu0 }
 0x132   : > { %v644_v54 = vadd.f32 %v643_v53, %v576_v49  ;;  %v11313_v56 = vpop.f32.mrf.mxu1  ;;  %v871_v8 = vadd.f32 %v870_v55, %v803_v50  ;;  %v9621_v53 = vld [vmem:[%s10869_s28 + $0x388] sm:$0xff] }
 0x133   : > { %v9641_v55 = vld [vmem:[%s10869_s28 + $0x428] sm:$0xff] }
 0x134   : > { %v662_v62 = vmax.f32 %v644_v54, 0.0  ;;  %v939_v59 = vadd.f32 %v11136_v15, %v871_v8  ;;  %917 = vmatmul.f32.gmra.mxu0 %v9608_v1  ;;  %v9671_v1 = vld [vmem:[%s10869_s28 + $0x518] sm:$0xff]  ;;  %v818_v8 = vadd.f32 %v11305_v45, %v11293_v36 }
 0x135   : > { %1514 = vmatmul.f32.gmra.mxu1 %v9688_v58  ;;  %1230 = vmatmul.f32.gmra.mxu3 %v9629_v61 }
 0x136   : > { %680 = vst.msk [vmem:[#allocation2 + $0x80] sm:$0xff] %vm663_vm0, %v662_v62  ;;  %1192 = vmatmul.f32.gmra.mxu2 %v9658_v60  ;;  %v989_v17 = vmax.f32 %v939_v59, 0.0 }
 0x138   : > { %1007 = vst.msk [vmem:[#allocation2 + $0x88] sm:$0xff] %vm663_vm0, %v989_v17  ;;  %v11324_v5 = vpop.f32.mrf.mxu3  ;;  %v9624_v17 = vld [vmem:[%s10869_s28 + $0x3a0] sm:$0xff] }
 0x139   : > { %v11326_v7 = vpop.f32.mrf.mxu2  ;;  %v873_v11 = vpop.f32.mrf.mxu0 }
 0x13a   : > { %v11328_v15 = vpop.f32.mrf.mxu1  ;;  %v874_v14 = vadd.f32 %v873_v11, %v806_v2  ;;  %v9644_v11 = vld [vmem:[%s10869_s28 + $0x440] sm:$0xff] }
 0x13c   : > { %v942_v19 = vadd.f32 %v11156_v37, %v874_v14  ;;  %1280 = vmatmul.f32.vlgmr.msra.gmra.mxu0 %v9612_v6  ;;  %v9694_v37 = vld [vmem:[%s10869_s28 + $0x5d0] sm:$0xff]  ;;  %v821_v14 = vadd.f32 %v11305_v45, %v11311_v48 }
 0x13d   : > { %1517 = vmatmul.f32.gmra.mxu1 %v9691_v13  ;;  %1233 = vmatmul.f32.gmra.mxu3 %v9632_v3  ;;  %v9674_v6 = vld [vmem:[%s10869_s28 + $0x530] sm:$0xff] }
 0x13e   : > { %1555 = vmatmul.f32.vlgmr.msra.gmra.mxu2 %v9662_v16  ;;  %v990_v29 = vmax.f32 %v942_v19, 0.0 }
 0x140   : > { %1008 = vst.msk [vmem:[#allocation2 + $0x90] sm:$0xff] %vm663_vm0, %v990_v29  ;;  %v11338_v22 = vpop.f32.mrf.mxu3 }
 0x141   : > { %v11340_v9 = vpop.f32.mrf.mxu2  ;;  %v876_v31 = vpop.f32.mrf.mxu0 }
 0x142   : > { %v11342_v12 = vpop.f32.mrf.mxu1  ;;  %v877_v21 = vadd.f32 %v876_v31, %v809_v0  ;;  %v9627_v0 = vld [vmem:[%s10869_s28 + $0x3b8] sm:$0xff] }
 0x144   : > { %v945_v27 = vadd.f32 %v11170_v51, %v877_v21  ;;  %1283 = vmatmul.f32.gmra.mxu0 %v9615_v18  ;;  %v9697_v51 = vld [vmem:[%s10869_s28 + $0x5e8] sm:$0xff]  ;;  %v9647_v18 = vld [vmem:[%s10869_s28 + $0x458] sm:$0xff] }
 0x145   : > { %1520 = vmatmul.f32.gmra.mxu1 %v9694_v37  ;;  %1236 = vmatmul.f32.gmra.mxu3 %v9635_v24  ;;  %v9677_v37 = vld [vmem:[%s10869_s28 + $0x548] sm:$0xff]  ;;  %v824_v24 = vadd.f32 %v11305_v45, %v11324_v5 }
 0x146   : > { %1558 = vmatmul.f32.gmra.mxu2 %v9665_v26  ;;  %v991_v46 = vmax.f32 %v945_v27, 0.0 }
 0x148   : > { %1009 = vst.msk [vmem:[#allocation2 + $0x98] sm:$0xff] %vm663_vm0, %v991_v46  ;;  %v11352_v28 = vpop.f32.mrf.mxu3 }
 0x149   : > { %v11354_v30 = vpop.f32.mrf.mxu2  ;;  %v879_v32 = vpop.f32.mrf.mxu0 }
 0x14a   : > { %v11356_v35 = vpop.f32.mrf.mxu1  ;;  %v880_v39 = vadd.f32 %v879_v32, %v812_v33  ;;  %v9630_v32 = vld [vmem:[%s10869_s28 + $0x3d0] sm:$0xff] }
 0x14c   : > { %v948_v57 = vadd.f32 %v11181_v63, %v880_v39  ;;  %1286 = vmatmul.f32.gmra.mxu0 %v9618_v38  ;;  %v9700_v63 = vld [vmem:[%s10869_s28 + $0x600] sm:$0xff] }
 0x14d   : > { %1523 = vmatmul.f32.gmra.mxu1 %v9697_v51  ;;  %1239 = vmatmul.f32.gmra.mxu3 %v9638_v40  ;;  %v9650_v51 = vld [vmem:[%s10869_s28 + $0x470] sm:$0xff]  ;;  %v9680_v39 = vld [vmem:[%s10869_s28 + $0x560] sm:$0xff] }
 0x14e   : > { %1561 = vmatmul.f32.gmra.mxu2 %v9668_v41  ;;  %v992_v4 = vmax.f32 %v948_v57, 0.0  ;;  %v827_v41 = vadd.f32 %v11305_v45, %v11338_v22 }
 0x150   : > { %1010 = vst.msk [vmem:[#allocation2 + $0xa0] sm:$0xff] %vm663_vm0, %v992_v4  ;;  %v11366_v43 = vpop.f32.mrf.mxu3 }
 0x151   : > { %v11368_v44 = vpop.f32.mrf.mxu2  ;;  %v882_v49 = vpop.f32.mrf.mxu0 }
 0x152   : > { %v11370_v50 = vpop.f32.mrf.mxu1  ;;  %v883_v54 = vadd.f32 %v882_v49, %v815_v42 }
 0x154   : > { %v951_v58 = vadd.f32 %v11198_v20, %v883_v54  ;;  %1289 = vmatmul.f32.gmra.mxu0 %v9621_v53  ;;  %v9703_v20 = vld [vmem:[%s10869_s28 + $0x618] sm:$0xff]  ;;  %v9633_v53 = vld [vmem:[%s10869_s28 + $0x3e8] sm:$0xff] }
 0x155   : > { %1526 = vmatmul.f32.gmra.mxu1 %v9700_v63  ;;  %1242 = vmatmul.f32.gmra.mxu3 %v9641_v55  ;;  %v9653_v54 = vld [vmem:[%s10869_s28 + $0x488] sm:$0xff]  ;;  %v9683_v55 = vld [vmem:[%s10869_s28 + $0x578] sm:$0xff] }
 0x156   : > { %1564 = vmatmul.f32.gmra.mxu2 %v9671_v1  ;;  %v993_v23 = vmax.f32 %v951_v58, 0.0  ;;  %v830_v58 = vadd.f32 %v11305_v45, %v11352_v28 }
 0x158   : > { %1011 = vst.msk [vmem:[#allocation2 + $0xa8] sm:$0xff] %vm663_vm0, %v993_v23  ;;  %v11380_v60 = vpop.f32.mrf.mxu3 }
 0x159   : > { %v11382_v61 = vpop.f32.mrf.mxu2  ;;  %v885_v62 = vpop.f32.mrf.mxu0 }
 0x15a   : > { %v11384_v59 = vpop.f32.mrf.mxu1  ;;  %v886_v2 = vadd.f32 %v885_v62, %v818_v8 }
 0x15c   : > { %v954_v13 = vadd.f32 %v11221_v34, %v886_v2  ;;  %1292 = vmatmul.f32.gmra.mxu0 %v9624_v17  ;;  %v9706_v34 = vld [vmem:[%s10869_s28 + $0x630] sm:$0xff] }
 0x15d   : > { %1529 = vmatmul.f32.gmra.mxu1 %v9703_v20  ;;  %1245 = vmatmul.f32.gmra.mxu3 %v9644_v11  ;;  %v9636_v20 = vld [vmem:[%s10869_s28 + $0x400] sm:$0xff] }
 0x15e   : > { %1567 = vmatmul.f32.gmra.mxu2 %v9674_v6  ;;  %v994_v36 = vmax.f32 %v954_v13, 0.0  ;;  %v9656_v11 = vld [vmem:[%s10869_s28 + $0x4a0] sm:$0xff]  ;;  %v9686_v6 = vld [vmem:[%s10869_s28 + $0x590] sm:$0xff] }
 0x160   : > { %1012 = vst.msk [vmem:[#allocation2 + $0xb0] sm:$0xff] %vm663_vm0, %v994_v36  ;;  %v11394_v3 = vpop.f32.mrf.mxu3  ;;  %v833_v36 = vadd.f32 %v11305_v45, %v11366_v43  ;;  %v1777_v43 = vld [vmem:[%s16650_s1 + $0x78] sm:$0xff] }
 0x161   : > { %v11396_v16 = vpop.f32.mrf.mxu2  ;;  %v888_v19 = vpop.f32.mrf.mxu0  ;;  %1814 = vmatpush.msrb.mxu0 %v1777_v43  ;;  %2157 = vmatpush.msra.mxu3 %v1777_v43 }
 0x162   : > { %v11398_v29 = vpop.f32.mrf.mxu1  ;;  %v889_v31 = vadd.f32 %v888_v19, %v821_v14  ;;  %2500 = vmatpush.msra.mxu2 %v1777_v43 }
 0x164   : > { %v957_v21 = vadd.f32 %v11241_v52, %v889_v31  ;;  %1295 = vmatmul.f32.gmra.mxu0 %v9627_v0  ;;  %v9709_v52 = vld [vmem:[%s10869_s28 + $0x648] sm:$0xff]  ;;  %v9639_v31 = vld [vmem:[%s10869_s28 + $0x418] sm:$0xff] }
 0x165   : > { %1532 = vmatmul.f32.gmra.mxu1 %v9706_v34  ;;  %1248 = vmatmul.f32.gmra.mxu3 %v9647_v18 }
 0x166   : > { %1570 = vmatmul.f32.gmra.mxu2 %v9677_v37  ;;  %v995_v48 = vmax.f32 %v957_v21, 0.0  ;;  %v9659_v37 = vld [vmem:[%s10869_s28 + $0x4b8] sm:$0xff]  ;;  %v9689_v21 = vld [vmem:[%s10869_s28 + $0x5a8] sm:$0xff] }
 0x168   : > { %1013 = vst.msk [vmem:[#allocation2 + $0xb8] sm:$0xff] %vm663_vm0, %v995_v48  ;;  %v11408_v26 = vpop.f32.mrf.mxu3 }
 0x169   : > { %v11410_v27 = vpop.f32.mrf.mxu2  ;;  %v891_v46 = vpop.f32.mrf.mxu0 }
 0x16a   : > { %v11412_v33 = vpop.f32.mrf.mxu1  ;;  %v892_v38 = vadd.f32 %v891_v46, %v824_v24  ;;  %v1776_v46 = vld [vmem:[%s16650_s1 + $0x70] sm:$0xff] }
 0x16b   : > { %1815 = vmatpush.msrb.mxu0 %v1776_v46  ;;  %2158 = vmatpush.msra.mxu3 %v1776_v46 }
 0x16c   : > { %v960_v40 = vadd.f32 %v11261_v10, %v892_v38  ;;  %1298 = vmatmul.f32.gmra.mxu0 %v9630_v32  ;;  %v9713_v10 = vld [vmem:[%s10869_s28 + $0x668] sm:$0xff]  ;;  %2501 = vmatpush.msra.mxu2 %v1776_v46 }
 0x16d   : > { %1535 = vmatmul.f32.gmra.mxu1 %v9709_v52  ;;  %1251 = vmatmul.f32.gmra.mxu3 %v9650_v51  ;;  %v9669_v46 = vld [vmem:[%s10869_s28 + $0x508] sm:$0xff] }
 0x16e   : > { %1573 = vmatmul.f32.gmra.mxu2 %v9680_v39  ;;  %v996_v5 = vmax.f32 %v960_v40, 0.0  ;;  %v9642_v39 = vld [vmem:[%s10869_s28 + $0x430] sm:$0xff] }
 0x16f   : > { %v9722_v40 = vld [vmem:[%s10869_s28 + $0x6b0] sm:$0xff] }
 0x170   : > { %1014 = vst.msk [vmem:[#allocation2 + $0xc0] sm:$0xff] %vm663_vm0, %v996_v5  ;;  %v11422_v57 = vpop.f32.mrf.mxu3  ;;  %v1775_v5 = vld [vmem:[%s16650_s1 + $0x68] sm:$0xff] }
 0x171   : > { %v11424_v4 = vpop.f32.mrf.mxu2  ;;  %v894_v42 = vpop.f32.mrf.mxu0  ;;  %1816 = vmatpush.msrb.mxu0 %v1775_v5  ;;  %2159 = vmatpush.msra.mxu3 %v1775_v5 }
 0x172   : > { %v11426_v49 = vpop.f32.mrf.mxu1  ;;  %v895_v63 = vadd.f32 %v894_v42, %v827_v41  ;;  %v9663_v42 = vld [vmem:[%s10869_s28 + $0x4d8] sm:$0xff]  ;;  %2502 = vmatpush.msra.mxu2 %v1775_v5 }
 0x174   : > { %v963_v1 = vadd.f32 %v11281_v25, %v895_v63  ;;  %1301 = vmatmul.f32.gmra.mxu0 %v9633_v53  ;;  %v9716_v25 = vld [vmem:[%s10869_s28 + $0x680] sm:$0xff]  ;;  %v1773_v63 = vld [vmem:[%s16650_s1 + $0x58] sm:$0xff] }
 0x175   : > { %1898 = vmatmul.f32.vlgmr.msrb.gmra.mxu1 %v9713_v10  ;;  %1254 = vmatmul.f32.gmra.mxu3 %v9653_v54  ;;  %v1774_v53 = vld [vmem:[%s16650_s1 + $0x60] sm:$0xff] }
 0x176   : > { %1576 = vmatmul.f32.gmra.mxu2 %v9683_v55  ;;  %v997_v22 = vmax.f32 %v963_v1, 0.0  ;;  %1817 = vmatpush.msrb.mxu0 %v1774_v53  ;;  %v1772_v55 = vld [vmem:[%s16650_s1 + $0x50] sm:$0xff] }
 0x177   : > { %2160 = vmatpush.msra.mxu3 %v1774_v53  ;;  %2503 = vmatpush.msra.mxu2 %v1774_v53  ;;  %v9651_v53 = vld [vmem:[%s10869_s28 + $0x478] sm:$0xff] }
 0x178   : > { %1015 = vst.msk [vmem:[#allocation2 + $0xc8] sm:$0xff] %vm663_vm0, %v997_v22  ;;  %v11436_v23 = vpop.f32.mrf.mxu3  ;;  %1818 = vmatpush.msrb.mxu0 %v1773_v63 }
 0x179   : > { %v11438_v8 = vpop.f32.mrf.mxu2  ;;  %v897_v62 = vpop.f32.mrf.mxu0  ;;  %2161 = vmatpush.msra.mxu3 %v1773_v63  ;;  %2504 = vmatpush.msra.mxu2 %v1773_v63 }
 0x17a   : > { %v11440_v17 = vpop.f32.mrf.mxu1  ;;  %v898_v2 = vadd.f32 %v897_v62, %v830_v58  ;;  %1819 = vmatpush.msrb.mxu0 %v1772_v55 }
 0x17b   : > { %2162 = vmatpush.msra.mxu3 %v1772_v55  ;;  %2505 = vmatpush.msra.mxu2 %v1772_v55  ;;  %v9672_v55 = vld [vmem:[%s10869_s28 + $0x520] sm:$0xff] }
 0x17c   : > { %v966_v13 = vadd.f32 %v11295_v47, %v898_v2  ;;  %1304 = vmatmul.f32.gmra.mxu0 %v9636_v20  ;;  %v9719_v47 = vld [vmem:[%s10869_s28 + $0x698] sm:$0xff]  ;;  %v9645_v20 = vld [vmem:[%s10869_s28 + $0x448] sm:$0xff] }
 0x17d   : > { %1901 = vmatmul.f32.gmra.mxu1 %v9716_v25  ;;  %1257 = vmatmul.f32.gmra.mxu3 %v9656_v11  ;;  %v9725_v25 = vld [vmem:[%s10869_s28 + $0x6c8] sm:$0xff]  ;;  %v9695_v11 = vld [vmem:[%s10869_s28 + $0x5d8] sm:$0xff] }
 0x17e   : > { %1579 = vmatmul.f32.gmra.mxu2 %v9686_v6  ;;  %v998_v28 = vmax.f32 %v966_v13, 0.0  ;;  %v9666_v6 = vld [vmem:[%s10869_s28 + $0x4f0] sm:$0xff] }
 0x180   : > { %1016 = vst.msk [vmem:[#allocation2 + $0xd0] sm:$0xff] %vm663_vm0, %v998_v28  ;;  %v11450_v14 = vpop.f32.mrf.mxu3  ;;  %v1770_v28 = vld [vmem:[%s16650_s1 + $0x40] sm:$0xff] }
 0x181   : > { %v11452_v19 = vpop.f32.mrf.mxu2  ;;  %v900_v0 = vpop.f32.mrf.mxu0 }
 0x182   : > { %v11454_v34 = vpop.f32.mrf.mxu1  ;;  %v901_v18 = vadd.f32 %v900_v0, %v833_v36  ;;  %v1769_v0 = vld [vmem:[%s16650_s1 + $0x38] sm:$0xff] }
 0x184   : > { %v969_v48 = vadd.f32 %v11313_v56, %v901_v18  ;;  %1307 = vmatmul.f32.gmra.mxu0 %v9639_v31  ;;  %v836_v56 = vadd.f32 %v11305_v45, %v11380_v60  ;;  %v9692_v60 = vld [vmem:[%s10869_s28 + $0x5c0] sm:$0xff] }
 0x185   : > { %1904 = vmatmul.f32.gmra.mxu1 %v9719_v47  ;;  %1260 = vmatmul.f32.gmra.mxu3 %v9659_v37 }
 0x186   : > { %1582 = vmatmul.f32.gmra.mxu2 %v9689_v21  ;;  %v999_v24 = vmax.f32 %v969_v48, 0.0  ;;  %v9648_v21 = vld [vmem:[%s10869_s28 + $0x460] sm:$0xff] }
 0x187   : > { %v9728_v48 = vld [vmem:[%s10869_s28 + $0x6e0] sm:$0xff] }
 0x188   : > { %1017 = vst.msk [vmem:[#allocation2 + $0xd8] sm:$0xff] %vm663_vm0, %v999_v24  ;;  %v11472_v52 = vpop.f32.mrf.mxu3  ;;  %v9698_v24 = vld [vmem:[%s10869_s28 + $0x5f0] sm:$0xff] }
 0x189   : > { %v11470_v32 = vpop.f32.mrf.mxu2  ;;  %v903_v38 = vpop.f32.mrf.mxu0 }
 0x18a   : > { %v11474_v51 = vpop.f32.mrf.mxu1  ;;  %v904_v41 = vadd.f32 %v903_v38, %v836_v56  ;;  %v1767_v38 = vld [vmem:[%s16650_s1 + $0x28] sm:$0xff] }
 0x18c   : > { %v972_v10 = vadd.f32 %v11328_v15, %v904_v41  ;;  %1310 = vmatmul.f32.gmra.mxu0 %v9642_v39  ;;  %v839_v15 = vadd.f32 %v11305_v45, %v11394_v3  ;;  %v1771_v3 = vld [vmem:[%s16650_s1 + $0x48] sm:$0xff] }
 0x18d   : > { %1907 = vmatmul.f32.gmra.mxu1 %v9722_v40  ;;  %1623 = vmatmul.f32.vlgmr.msrb.gmra.mxu3 %v9663_v42  ;;  %v1766_v40 = vld [vmem:[%s16650_s1 + $0x20] sm:$0xff] }
 0x18e   : > { %1585 = vmatmul.f32.gmra.mxu2 %v9692_v60  ;;  %v1000_v54 = vmax.f32 %v972_v10, 0.0  ;;  %1820 = vmatpush.msrb.mxu0 %v1771_v3  ;;  %v9731_v10 = vld [vmem:[%s10869_s28 + $0x6f8] sm:$0xff] }
 0x18f   : > { %2163 = vmatpush.msra.mxu3 %v1771_v3  ;;  %2506 = vmatpush.msra.mxu2 %v1771_v3 }
 0x190   : > { %1018 = vst.msk [vmem:[#allocation2 + $0xe0] sm:$0xff] %vm663_vm0, %v1000_v54  ;;  %v11498_v22 = vpop.f32.mrf.mxu3  ;;  %1821 = vmatpush.msrb.mxu0 %v1770_v28  ;;  %v9701_v54 = vld [vmem:[%s10869_s28 + $0x608] sm:$0xff] }
 0x191   : > { %v11496_v1 = vpop.f32.mrf.mxu2  ;;  %v906_v58 = vpop.f32.mrf.mxu0  ;;  %2164 = vmatpush.msra.mxu3 %v1770_v28  ;;  %2507 = vmatpush.msra.mxu2 %v1770_v28  ;;  %v9734_v28 = vld [vmem:[%s10869_s28 + $0x710] sm:$0xff] }
 0x192   : > { %v11500_v62 = vpop.f32.mrf.mxu1  ;;  %v907_v2 = vadd.f32 %v906_v58, %v839_v15  ;;  %1822 = vmatpush.msrb.mxu0 %v1769_v0  ;;  %v1764_v58 = vld [vmem:[%s16650_s1 + $0x10] sm:$0xff] }
 0x193   : > { %2165 = vmatpush.msra.mxu3 %v1769_v0  ;;  %2508 = vmatpush.msra.mxu2 %v1769_v0  ;;  %v9704_v0 = vld [vmem:[%s10869_s28 + $0x620] sm:$0xff] }
 0x194   : > { %v975_v13 = vadd.f32 %v11342_v12, %v907_v2  ;;  %1313 = vmatmul.f32.gmra.mxu0 %v9645_v20  ;;  %v842_v12 = vadd.f32 %v11305_v45, %v11408_v26  ;;  %v1768_v26 = vld [vmem:[%s16650_s1 + $0x30] sm:$0xff] }
 0x195   : > { %1910 = vmatmul.f32.gmra.mxu1 %v9725_v25  ;;  %1626 = vmatmul.f32.gmra.mxu3 %v9666_v6  ;;  %v1763_v25 = vld [vmem:[%s16650_s1 + $0x8] sm:$0xff] }
 0x196   : > { %1588 = vmatmul.f32.gmra.mxu2 %v9695_v11  ;;  %v1001_v36 = vmax.f32 %v975_v13, 0.0  ;;  %1823 = vmatpush.msrb.mxu0 %v1768_v26  ;;  %v9654_v13 = vld [vmem:[%s10869_s28 + $0x490] sm:$0xff] }
 0x197   : > { %2166 = vmatpush.msra.mxu3 %v1768_v26  ;;  %2509 = vmatpush.msra.mxu2 %v1768_v26 }
 0x198   : > { %1019 = vst.msk [vmem:[#allocation2 + $0xe8] sm:$0xff] %vm663_vm0, %v1001_v36  ;;  %v11521_v47 = vpop.f32.mrf.mxu3  ;;  %1824 = vmatpush.msrb.mxu0 %v1767_v38 }
 0x199   : > { %v11519_v31 = vpop.f32.mrf.mxu2  ;;  %v909_v18 = vpop.f32.mrf.mxu0  ;;  %2167 = vmatpush.msra.mxu3 %v1767_v38  ;;  %2510 = vmatpush.msra.mxu2 %v1767_v38  ;;  %v9737_v38 = vld [vmem:[%s10869_s28 + $0x728] sm:$0xff] }
 0x19a   : > { %v11523_v37 = vpop.f32.mrf.mxu1  ;;  %v910_v43 = vadd.f32 %v909_v18, %v842_v12  ;;  %1825 = vmatpush.msrb.mxu0 %v1766_v40  ;;  %v9675_v12 = vld [vmem:[%s10869_s28 + $0x538] sm:$0xff] }
 0x19b   : > { %2168 = vmatpush.msra.mxu3 %v1766_v40  ;;  %2511 = vmatpush.msra.mxu2 %v1766_v40  ;;  %v9707_v40 = vld [vmem:[%s10869_s28 + $0x638] sm:$0xff] }
 0x19c   : > { %v978_v56 = vadd.f32 %v11356_v35, %v910_v43  ;;  %1316 = vmatmul.f32.gmra.mxu0 %v9648_v21  ;;  %v845_v35 = vadd.f32 %v11305_v45, %v11422_v57  ;;  %v1765_v57 = vld [vmem:[%s16650_s1 + $0x18] sm:$0xff] }
 0x19d   : > { %1913 = vmatmul.f32.gmra.mxu1 %v9728_v48  ;;  %1629 = vmatmul.f32.gmra.mxu3 %v9669_v46  ;;  %v11582_v48 = vld [vmem:[%s16651_s2] ss:$0 sm:$0xff] }
 0x19e   : > { %1591 = vmatmul.f32.gmra.mxu2 %v9698_v24  ;;  %v1002_v39 = vmax.f32 %v978_v56, 0.0  ;;  %1826 = vmatpush.msrb.mxu0 %v1765_v57  ;;  %v9657_v56 = vld [vmem:[%s10869_s28 + $0x4a8] sm:$0xff] }
 0x19f   : > { %2169 = vmatpush.msra.mxu3 %v1765_v57  ;;  %2512 = vmatpush.msra.mxu2 %v1765_v57  ;;  %v9740_v57 = vld [vmem:[%s10869_s28 + $0x740] sm:$0xff] }
 0x1a0   : > { %1020 = vst.msk [vmem:[#allocation2 + $0xf0] sm:$0xff] %vm663_vm0, %v1002_v39  ;;  %v11544_v41 = vpop.f32.mrf.mxu3  ;;  %1827 = vmatpush.msrb.mxu0 %v1764_v58 }
 0x1a1   : > { %v11542_v5 = vpop.f32.mrf.mxu2  ;;  %v912_v60 = vpop.f32.mrf.mxu0  ;;  %2170 = vmatpush.msra.mxu3 %v1764_v58  ;;  %2513 = vmatpush.msra.mxu2 %v1764_v58  ;;  %v9681_v58 = vld [vmem:[%s10869_s28 + $0x568] sm:$0xff] }
 0x1a2   : > { %v11546_v42 = vpop.f32.mrf.mxu1  ;;  %v913_v63 = vadd.f32 %v912_v60, %v845_v35  ;;  %1828 = vmatpush.msrb.mxu0 %v1763_v25  ;;  %v9678_v35 = vld [vmem:[%s10869_s28 + $0x550] sm:$0xff]  ;;  %v1146_v60 = vadd.f32 %v11582_v48, %v11326_v7  ;;  %v9660_v7 = vld [vmem:[%s10869_s28 + $0x4c0] sm:$0xff] }
 0x1a3   : > { %2171 = vmatpush.msra.mxu3 %v1763_v25  ;;  %2514 = vmatpush.msra.mxu2 %v1763_v25 }
 0x1a4   : > { %v981_v15 = vadd.f32 %v11370_v50, %v913_v63  ;;  %1319 = vmatmul.f32.gmra.mxu0 %v9651_v53  ;;  %v848_v50 = vadd.f32 %v11305_v45, %v11436_v23  ;;  %v1762_v23 = vld [vmem:[%s16650_s1] sm:$0xff]  ;;  %v1214_v53 = vadd.f32 %v11472_v52, %v1146_v60  ;;  %v2152_v52 = vld [vmem:[%s16650_s1 + $0x178] sm:$0xff] }
 0x1a5   : > { %1916 = vmatmul.f32.gmra.mxu1 %v9731_v10  ;;  %1632 = vmatmul.f32.gmra.mxu3 %v9672_v55 }
 0x1a6   : > { %1594 = vmatmul.f32.gmra.mxu2 %v9701_v54  ;;  %v1003_v20 = vmax.f32 %v981_v15, 0.0  ;;  %1829 = vmatpush.msrb.mxu0 %v1762_v23  ;;  %v9710_v15 = vld [vmem:[%s10869_s28 + $0x650] sm:$0xff] }
 0x1a7   : > { %2172 = vmatpush.msra.mxu3 %v1762_v23  ;;  %2515 = vmatpush.msra.mxu2 %v1762_v23  ;;  %v2150_v23 = vld [vmem:[%s16650_s1 + $0x168] sm:$0xff] }
 0x1a8   : > { %1021 = vst.msk [vmem:[#allocation2 + $0xf8] sm:$0xff] %vm663_vm0, %v1003_v20  ;;  %v11567_v11 = vpop.f32.mrf.mxu3  ;;  %v1149_v20 = vadd.f32 %v11582_v48, %v11340_v9  ;;  %2293 = vmatpush.msra.mxu1 %v2152_v52  ;;  %v2151_v9 = vld [vmem:[%s16650_s1 + $0x170] sm:$0xff] }
 0x1a9   : > { %v11565_v2 = vpop.f32.mrf.mxu2  ;;  %v915_v6 = vpop.f32.mrf.mxu0 }
 0x1aa   : > { %v11569_v3 = vpop.f32.mrf.mxu1  ;;  %v916_v36 = vadd.f32 %v915_v6, %v848_v50  ;;  %v1217_v50 = vadd.f32 %v11498_v22, %v1149_v20  ;;  %2294 = vmatpush.msra.mxu1 %v2151_v9  ;;  %v2149_v22 = vld [vmem:[%s16650_s1 + $0x160] sm:$0xff] }
 0x1ac   : > { %v984_v18 = vadd.f32 %v11384_v59, %v916_v36  ;;  %1322 = vmatmul.f32.gmra.mxu0 %v9654_v13  ;;  %v851_v59 = vadd.f32 %v11305_v45, %v11450_v14  ;;  %2295 = vmatpush.msra.mxu1 %v2150_v23  ;;  %v9690_v23 = vld [vmem:[%s10869_s28 + $0x5b0] sm:$0xff] }
 0x1ad   : > { %1919 = vmatmul.f32.gmra.mxu1 %v9734_v28  ;;  %1635 = vmatmul.f32.gmra.mxu3 %v9675_v12  ;;  %v9743_v12 = vld [vmem:[%s10869_s28 + $0x758] sm:$0xff] }
 0x1ae   : > { %1597 = vmatmul.f32.gmra.mxu2 %v9704_v0  ;;  %v1004_v21 = vmax.f32 %v984_v18, 0.0  ;;  %v9712_v0 = vld [vmem:[%s10869_s28 + $0x660] sm:$0xff]  ;;  %2296 = vmatpush.msra.mxu1 %v2149_v22  ;;  %v2142_v22 = vld [vmem:[%s16650_s1 + $0x128] sm:$0xff] }
 0x1b0   : > { %1022 = vst.msk [vmem:[#allocation2 + $0x100] sm:$0xff] %vm663_vm0, %v1004_v21  ;;  %v11589_v24 = vpop.f32.mrf.mxu3  ;;  %v9684_v21 = vld [vmem:[%s10869_s28 + $0x580] sm:$0xff] }
 0x1b1   : > { %v11587_v43 = vpop.f32.mrf.mxu2  ;;  %v918_v46 = vpop.f32.mrf.mxu0 }
 0x1b2   : > { %v11591_v26 = vpop.f32.mrf.mxu1  ;;  %v919_v39 = vadd.f32 %v918_v46, %v851_v59  ;;  %v9714_v59 = vld [vmem:[%s10869_s28 + $0x670] sm:$0xff]  ;;  %v1152_v46 = vadd.f32 %v11582_v48, %v11354_v30 }
 0x1b3   : > { %v2147_v30 = vld [vmem:[%s16650_s1 + $0x150] sm:$0xff] }
 0x1b4   : > { %v987_v45 = vadd.f32 %v11398_v29, %v919_v39  ;;  %1325 = vmatmul.f32.gmra.mxu0 %v9657_v56  ;;  %v1220_v39 = vadd.f32 %v11521_v47, %v1152_v46  ;;  %v1155_v47 = vadd.f32 %v11582_v48, %v11368_v44  ;;  %v2144_v44 = vld [vmem:[%s16650_s1 + $0x138] sm:$0xff] }
 0x1b5   : > { %1922 = vmatmul.f32.gmra.mxu1 %v9737_v38  ;;  %1638 = vmatmul.f32.gmra.mxu3 %v9678_v35  ;;  %v2148_v38 = vld [vmem:[%s16650_s1 + $0x158] sm:$0xff] }
 0x1b6   : > { %1600 = vmatmul.f32.gmra.mxu2 %v9707_v40  ;;  %v1005_v14 = vmax.f32 %v987_v45, 0.0  ;;  %2297 = vmatpush.msra.mxu1 %v2148_v38  ;;  %v1223_v20 = vadd.f32 %v11544_v41, %v1155_v47  ;;  %v1158_v41 = vadd.f32 %v11582_v48, %v11382_v61  ;;  %v2141_v61 = vld [vmem:[%s16650_s1 + $0x120] sm:$0xff]  ;;  %v2139_v47 = vld [vmem:[%s16650_s1 + $0x110] sm:$0xff] }
 0x1b8   : > { %1023 = vst.msk [vmem:[#allocation2 + $0x108] sm:$0xff] %vm663_vm0, %v1005_v14  ;;  %v11604_v63 = vpop.f32.mrf.mxu3  ;;  %v9715_v14 = vld [vmem:[%s10869_s28 + $0x678] sm:$0xff]  ;;  %2298 = vmatpush.msra.mxu1 %v2147_v30  ;;  %v1226_v46 = vadd.f32 %v11567_v11, %v1158_v41  ;;  %v1161_v11 = vadd.f32 %v11582_v48, %v11396_v16  ;;  %v2138_v16 = vld [vmem:[%s16650_s1 + $0x108] sm:$0xff] }
 0x1b9   : > { %v11602_v10 = vpop.f32.mrf.mxu2  ;;  %v1281_v54 = vpop.f32.mrf.mxu0 }
 0x1ba   : > { %v11606_v55 = vpop.f32.mrf.mxu1  ;;  %v1282_v29 = vadd.f32 %v1281_v54, %v1214_v53  ;;  %v9746_v53 = vld [vmem:[%s10869_s28 + $0x770] sm:$0xff] }
 0x1bc   : > { %v1332_v25 = vmax.f32 %v1282_v29, 0.0  ;;  %1328 = vmatmul.f32.gmra.mxu0 %v9660_v7  ;;  %v9687_v7 = vld [vmem:[%s10869_s28 + $0x598] sm:$0xff]  ;;  %v2146_v29 = vld [vmem:[%s16650_s1 + $0x148] sm:$0xff] }
 0x1bd   : > { %1925 = vmatmul.f32.gmra.mxu1 %v9740_v57  ;;  %1641 = vmatmul.f32.gmra.mxu3 %v9681_v58  ;;  %v9717_v57 = vld [vmem:[%s10869_s28 + $0x688] sm:$0xff]  ;;  %v2145_v58 = vld [vmem:[%s16650_s1 + $0x140] sm:$0xff] }
 0x1be   : > { %1603 = vmatmul.f32.gmra.mxu2 %v9710_v15  ;;  %1350 = vst.msk [vmem:[#allocation2 + $0x110] sm:$0xff] %vm663_vm0, %v1332_v25  ;;  %2299 = vmatpush.msra.mxu1 %v2146_v29 }
 0x1c0   : > { %v11622_v6 = vpop.f32.mrf.mxu3  ;;  %2300 = vmatpush.msra.mxu1 %v2145_v58 }
 0x1c1   : > { %v11624_v13 = vpop.f32.mrf.mxu2  ;;  %v1284_v28 = vpop.f32.mrf.mxu0 }
 0x1c2   : > { %v11626_v36 = vpop.f32.mrf.mxu1  ;;  %v1285_v18 = vadd.f32 %v1284_v28, %v1217_v50  ;;  %v9718_v28 = vld [vmem:[%s10869_s28 + $0x690] sm:$0xff]  ;;  %2301 = vmatpush.msra.mxu1 %v2144_v44 }
 0x1c4   : > { %v1333_v56 = vmax.f32 %v1285_v18, 0.0  ;;  %1830 = vmatmul.f32.vlgmr.msrb.gmra.mxu0 %v9712_v0  ;;  %v9749_v0 = vld [vmem:[%s10869_s28 + $0x788] sm:$0xff]  ;;  %v9720_v18 = vld [vmem:[%s10869_s28 + $0x6a0] sm:$0xff] }
 0x1c5   : > { %1928 = vmatmul.f32.gmra.mxu1 %v9743_v12  ;;  %1644 = vmatmul.f32.gmra.mxu3 %v9684_v21  ;;  %v2143_v21 = vld [vmem:[%s16650_s1 + $0x130] sm:$0xff] }
 0x1c6   : > { %1966 = vmatmul.f32.vlgmr.msrb.gmra.mxu2 %v9714_v59  ;;  %1351 = vst.msk [vmem:[#allocation2 + $0x118] sm:$0xff] %vm663_vm0, %v1333_v56  ;;  %2302 = vmatpush.msra.mxu1 %v2143_v21  ;;  %v1164_v21 = vadd.f32 %v11582_v48, %v11410_v27  ;;  %v9727_v27 = vld [vmem:[%s10869_s28 + $0x6d8] sm:$0xff] }
 0x1c8   : > { %v11648_v40 = vpop.f32.mrf.mxu3  ;;  %2303 = vmatpush.msra.mxu1 %v2142_v22 }
 0x1c9   : > { %v11650_v35 = vpop.f32.mrf.mxu2  ;;  %v1287_v60 = vpop.f32.mrf.mxu0 }
 0x1ca   : > { %v11652_v45 = vpop.f32.mrf.mxu1  ;;  %v1288_v54 = vadd.f32 %v1287_v60, %v1220_v39  ;;  %v9721_v60 = vld [vmem:[%s10869_s28 + $0x6a8] sm:$0xff]  ;;  %2304 = vmatpush.msra.mxu1 %v2141_v61 }
 0x1cc   : > { %v1334_v15 = vmax.f32 %v1288_v54, 0.0  ;;  %1833 = vmatmul.f32.gmra.mxu0 %v9715_v14  ;;  %v9752_v14 = vld [vmem:[%s10869_s28 + $0x7a0] sm:$0xff]  ;;  %v9693_v54 = vld [vmem:[%s10869_s28 + $0x5c8] sm:$0xff] }
 0x1cd   : > { %1931 = vmatmul.f32.gmra.mxu1 %v9746_v53  ;;  %1647 = vmatmul.f32.gmra.mxu3 %v9687_v7  ;;  %v9723_v7 = vld [vmem:[%s10869_s28 + $0x6b8] sm:$0xff] }
 0x1ce   : > { %1969 = vmatmul.f32.gmra.mxu2 %v9717_v57  ;;  %1352 = vst.msk [vmem:[#allocation2 + $0x120] sm:$0xff] %vm663_vm0, %v1334_v15  ;;  %v2140_v57 = vld [vmem:[%s16650_s1 + $0x118] sm:$0xff]  ;;  %v1229_v15 = vadd.f32 %v11589_v24, %v1161_v11  ;;  %v2137_v24 = vld [vmem:[%s16650_s1 + $0x100] sm:$0xff] }
 0x1cf   : > { %2305 = vmatpush.msra.mxu1 %v2140_v57 }
 0x1d0   : > { %v11671_v25 = vpop.f32.mrf.mxu3 }
 0x1d1   : > { %v11673_v52 = vpop.f32.mrf.mxu2  ;;  %v1290_v9 = vpop.f32.mrf.mxu0  ;;  %2306 = vmatpush.msra.mxu1 %v2139_v47 }
 0x1d2   : > { %v11675_v50 = vpop.f32.mrf.mxu1  ;;  %v1291_v12 = vadd.f32 %v1290_v9, %v1223_v20 }
 0x1d3   : > { %2307 = vmatpush.msra.mxu1 %v2138_v16 }
 0x1d4   : > { %v1335_v59 = vmax.f32 %v1291_v12, 0.0  ;;  %1836 = vmatmul.f32.gmra.mxu0 %v9718_v28  ;;  %v9724_v28 = vld [vmem:[%s10869_s28 + $0x6c0] sm:$0xff] }
 0x1d5   : > { %1934 = vmatmul.f32.gmra.mxu1 %v9749_v0  ;;  %1650 = vmatmul.f32.gmra.mxu3 %v9690_v23  ;;  %v9755_v0 = vld [vmem:[%s10869_s28 + $0x7b8] sm:$0xff]  ;;  %v9696_v23 = vld [vmem:[%s10869_s28 + $0x5e0] sm:$0xff] }
 0x1d6   : > { %1972 = vmatmul.f32.gmra.mxu2 %v9720_v18  ;;  %1353 = vst.msk [vmem:[#allocation2 + $0x128] sm:$0xff] %vm663_vm0, %v1335_v59  ;;  %v9726_v18 = vld [vmem:[%s10869_s28 + $0x6d0] sm:$0xff]  ;;  %2308 = vmatpush.msra.mxu1 %v2137_v24  ;;  %v1232_v59 = vadd.f32 %v11604_v63, %v1164_v21 }
 0x1d8   : > { %v11694_v56 = vpop.f32.mrf.mxu3 }
 0x1d9   : > { %v11696_v38 = vpop.f32.mrf.mxu2  ;;  %v1293_v30 = vpop.f32.mrf.mxu0 }
 0x1da   : > { %v11698_v39 = vpop.f32.mrf.mxu1  ;;  %v1294_v53 = vadd.f32 %v1293_v30, %v1226_v46 }
 0x1dc   : > { %v1336_v29 = vmax.f32 %v1294_v53, 0.0  ;;  %1839 = vmatmul.f32.gmra.mxu0 %v9721_v60  ;;  %v9758_v60 = vld [vmem:[%s10869_s28 + $0x7d0] sm:$0xff]  ;;  %v9699_v53 = vld [vmem:[%s10869_s28 + $0x5f8] sm:$0xff] }
 0x1dd   : > { %1937 = vmatmul.f32.gmra.mxu1 %v9752_v14  ;;  %1653 = vmatmul.f32.gmra.mxu3 %v9693_v54  ;;  %v9729_v54 = vld [vmem:[%s10869_s28 + $0x6e8] sm:$0xff] }
 0x1de   : > { %1975 = vmatmul.f32.gmra.mxu2 %v9723_v7  ;;  %1354 = vst.msk [vmem:[#allocation2 + $0x130] sm:$0xff] %vm663_vm0, %v1336_v29  ;;  %v1167_v7 = vadd.f32 %v11582_v48, %v11424_v4 }
 0x1e0   : > { %v11717_v58 = vpop.f32.mrf.mxu3  ;;  %v1235_v57 = vadd.f32 %v11622_v6, %v1167_v7 }
 0x1e1   : > { %v11719_v44 = vpop.f32.mrf.mxu2  ;;  %v1296_v20 = vpop.f32.mrf.mxu0 }
 0x1e2   : > { %v11721_v9 = vpop.f32.mrf.mxu1  ;;  %v1297_v12 = vadd.f32 %v1296_v20, %v1229_v15  ;;  %v9730_v15 = vld [vmem:[%s10869_s28 + $0x6f0] sm:$0xff]  ;;  %v9761_v20 = vld [vmem:[%s10869_s28 + $0x7e8] sm:$0xff] }
 0x1e4   : > { %v1337_v41 = vmax.f32 %v1297_v12, 0.0  ;;  %1842 = vmatmul.f32.gmra.mxu0 %v9724_v28  ;;  %v9702_v28 = vld [vmem:[%s10869_s28 + $0x610] sm:$0xff]  ;;  %v1170_v12 = vadd.f32 %v11582_v48, %v11438_v8 }
 0x1e5   : > { %1940 = vmatmul.f32.gmra.mxu1 %v9755_v0  ;;  %1656 = vmatmul.f32.gmra.mxu3 %v9696_v23  ;;  %v9732_v0 = vld [vmem:[%s10869_s28 + $0x700] sm:$0xff] }
 0x1e6   : > { %1978 = vmatmul.f32.gmra.mxu2 %v9726_v18  ;;  %1355 = vst.msk [vmem:[#allocation2 + $0x138] sm:$0xff] %vm663_vm0, %v1337_v41  ;;  %v1238_v23 = vadd.f32 %v11648_v40, %v1170_v12 }
 0x1e8   : > { %v11734_v22 = vpop.f32.mrf.mxu3 }
 0x1e9   : > { %v11736_v61 = vpop.f32.mrf.mxu2  ;;  %v1299_v46 = vpop.f32.mrf.mxu0 }
 0x1ea   : > { %v11738_v30 = vpop.f32.mrf.mxu1  ;;  %v1300_v14 = vadd.f32 %v1299_v46, %v1232_v59  ;;  %v9733_v59 = vld [vmem:[%s10869_s28 + $0x708] sm:$0xff] }
 0x1eb   : > { %v9765_v46 = vld [vmem:[%s10869_s28 + $0x808] sm:$0xff] }
 0x1ec   : > { %v1338_v63 = vmax.f32 %v1300_v14, 0.0  ;;  %1845 = vmatmul.f32.gmra.mxu0 %v9727_v27  ;;  %v9705_v27 = vld [vmem:[%s10869_s28 + $0x628] sm:$0xff]  ;;  %v1173_v14 = vadd.f32 %v11582_v48, %v11452_v19 }
 0x1ed   : > { %1943 = vmatmul.f32.gmra.mxu1 %v9758_v60  ;;  %1659 = vmatmul.f32.gmra.mxu3 %v9699_v53  ;;  %v9735_v60 = vld [vmem:[%s10869_s28 + $0x718] sm:$0xff] }
 0x1ee   : > { %1981 = vmatmul.f32.gmra.mxu2 %v9729_v54  ;;  %1356 = vst.msk [vmem:[#allocation2 + $0x140] sm:$0xff] %vm663_vm0, %v1338_v63  ;;  %v1241_v53 = vadd.f32 %v11671_v25, %v1173_v14  ;;  %v11791_v25 = vld [vmem:[%s16651_s2] ss:$0 sm:$0xff]  ;;  %v9741_v14 = vld [vmem:[%s10869_s28 + $0x748] sm:$0xff] }
 0x1f0   : > { %v11748_v11 = vpop.f32.mrf.mxu3 }
 0x1f1   : > { %v11750_v29 = vpop.f32.mrf.mxu2  ;;  %v1302_v47 = vpop.f32.mrf.mxu0 }
 0x1f2   : > { %v11752_v16 = vpop.f32.mrf.mxu1  ;;  %v1303_v4 = vadd.f32 %v1302_v47, %v1235_v57  ;;  %v9736_v47 = vld [vmem:[%s10869_s28 + $0x720] sm:$0xff] }
 0x1f4   : > { %v1339_v6 = vmax.f32 %v1303_v4, 0.0  ;;  %1848 = vmatmul.f32.gmra.mxu0 %v9730_v15  ;;  %v9768_v15 = vld [vmem:[%s10869_s28 + $0x820] sm:$0xff]  ;;  %v9738_v4 = vld [vmem:[%s10869_s28 + $0x730] sm:$0xff] }
 0x1f5   : > { %1946 = vmatmul.f32.gmra.mxu1 %v9761_v20  ;;  %1662 = vmatmul.f32.gmra.mxu3 %v9702_v28  ;;  %v9708_v20 = vld [vmem:[%s10869_s28 + $0x640] sm:$0xff]  ;;  %v1176_v28 = vadd.f32 %v11582_v48, %v11470_v32  ;;  %v1489_v32 = vadd.f32 %v11791_v25, %v11412_v33  ;;  %v2136_v33 = vld [vmem:[%s16650_s1 + $0xf8] sm:$0xff] }
 0x1f6   : > { %1984 = vmatmul.f32.gmra.mxu2 %v9732_v0  ;;  %1357 = vst.msk [vmem:[#allocation2 + $0x148] sm:$0xff] %vm663_vm0, %v1339_v6  ;;  %2225 = vmatpush.msra.mxu0 %v2136_v33 }
 0x1f7   : > { %v1244_v12 = vadd.f32 %v11694_v56, %v1176_v28  ;;  %v1557_v56 = vadd.f32 %v11624_v13, %v1489_v32  ;;  %2568 = vmatpush.msrb.mxu3 %v2136_v33  ;;  %10453 = vmatpush.msrb.mxu2 %v2136_v33  ;;  %v9742_v28 = vld [vmem:[%s10869_s28 + $0x750] sm:$0xff]  ;;  %v9744_v32 = vld [vmem:[%s10869_s28 + $0x760] sm:$0xff] }
 0x1f8   : > { %v11762_v18 = vpop.f32.mrf.mxu3 }
 0x1f9   : > { %v11764_v24 = vpop.f32.mrf.mxu2  ;;  %v1305_v21 = vpop.f32.mrf.mxu0 }
 0x1fa   : > { %v11766_v41 = vpop.f32.mrf.mxu1  ;;  %v1306_v8 = vadd.f32 %v1305_v21, %v1238_v23 }
 0x1fc   : > { %v1340_v40 = vmax.f32 %v1306_v8, 0.0  ;;  %1851 = vmatmul.f32.gmra.mxu0 %v9733_v59  ;;  %v9771_v8 = vld [vmem:[%s10869_s28 + $0x838] sm:$0xff] }
 0x1fd   : > { %2309 = vmatmul.f32.vlgmr.msra.gmra.mxu1 %v9765_v46  ;;  %1665 = vmatmul.f32.gmra.mxu3 %v9705_v27  ;;  %v9739_v46 = vld [vmem:[%s10869_s28 + $0x738] sm:$0xff] }
 0x1fe   : > { %1987 = vmatmul.f32.gmra.mxu2 %v9735_v60  ;;  %1358 = vst.msk [vmem:[#allocation2 + $0x150] sm:$0xff] %vm663_vm0, %v1340_v40  ;;  %v9711_v60 = vld [vmem:[%s10869_s28 + $0x658] sm:$0xff]  ;;  %v1179_v40 = vadd.f32 %v11582_v48, %v11496_v1  ;;  %v2135_v1 = vld [vmem:[%s16650_s1 + $0xf0] sm:$0xff] }
 0x1ff   : > { %2226 = vmatpush.msra.mxu0 %v2135_v1  ;;  %2569 = vmatpush.msrb.mxu3 %v2135_v1 }
 0x200   : > { %v11776_v54 = vpop.f32.mrf.mxu3  ;;  %v1247_v13 = vadd.f32 %v11717_v58, %v1179_v40  ;;  %10454 = vmatpush.msrb.mxu2 %v2135_v1 }
 0x201   : > { %v11778_v7 = vpop.f32.mrf.mxu2  ;;  %v1308_v63 = vpop.f32.mrf.mxu0 }
 0x202   : > { %v11780_v57 = vpop.f32.mrf.mxu1  ;;  %v1309_v19 = vadd.f32 %v1308_v63, %v1241_v53 }
 0x204   : > { %v1341_v0 = vmax.f32 %v1309_v19, 0.0  ;;  %1854 = vmatmul.f32.gmra.mxu0 %v9736_v47 }
 0x205   : > { %2312 = vmatmul.f32.gmra.mxu1 %v9768_v15  ;;  %1668 = vmatmul.f32.gmra.mxu3 %v9708_v20  ;;  %v1492_v15 = vadd.f32 %v11791_v25, %v11426_v49  ;;  %v2133_v49 = vld [vmem:[%s16650_s1 + $0xe0] sm:$0xff] }
 0x206   : > { %1990 = vmatmul.f32.gmra.mxu2 %v9738_v4  ;;  %1359 = vst.msk [vmem:[#allocation2 + $0x158] sm:$0xff] %vm663_vm0, %v1341_v0  ;;  %v9774_v0 = vld [vmem:[%s10869_s28 + $0x850] sm:$0xff] }
 0x208   : > { %v11795_v6 = vpop.f32.mrf.mxu3 }
 0x209   : > { %v11797_v23 = vpop.f32.mrf.mxu2  ;;  %v1311_v21 = vpop.f32.mrf.mxu0 }
 0x20a   : > { %v11801_v59 = vpop.f32.mrf.mxu1  ;;  %v1312_v27 = vadd.f32 %v1311_v21, %v1244_v12  ;;  %v2134_v12 = vld [vmem:[%s16650_s1 + $0xe8] sm:$0xff]  ;;  %v9763_v21 = vld [vmem:[%s10869_s28 + $0x7f8] sm:$0xff] }
 0x20b   : > { %2227 = vmatpush.msra.mxu0 %v2134_v12  ;;  %2570 = vmatpush.msrb.mxu3 %v2134_v12 }
 0x20c   : > { %v1342_v53 = vmax.f32 %v1312_v27, 0.0  ;;  %1857 = vmatmul.f32.gmra.mxu0 %v9739_v46  ;;  %10455 = vmatpush.msrb.mxu2 %v2134_v12 }
 0x20d   : > { %2315 = vmatmul.f32.gmra.mxu1 %v9771_v8  ;;  %1671 = vmatmul.f32.gmra.mxu3 %v9711_v60  ;;  %v1182_v8 = vadd.f32 %v11582_v48, %v11519_v31  ;;  %v1560_v60 = vadd.f32 %v11650_v35, %v1492_v15  ;;  %v2131_v31 = vld [vmem:[%s16650_s1 + $0xd0] sm:$0xff]  ;;  %v9777_v15 = vld [vmem:[%s10869_s28 + $0x868] sm:$0xff] }
 0x20e   : > { %1993 = vmatmul.f32.gmra.mxu2 %v9741_v14  ;;  %1360 = vst.msk [vmem:[#allocation2 + $0x160] sm:$0xff] %vm663_vm0, %v1342_v53  ;;  %v2132_v14 = vld [vmem:[%s16650_s1 + $0xd8] sm:$0xff]  ;;  %2228 = vmatpush.msra.mxu0 %v2133_v49 }
 0x20f   : > { %2571 = vmatpush.msrb.mxu3 %v2133_v49  ;;  %10456 = vmatpush.msrb.mxu2 %v2133_v49  ;;  %v1250_v35 = vadd.f32 %v11734_v22, %v1182_v8  ;;  %v1498_v49 = vadd.f32 %v11791_v25, %v11454_v34  ;;  %v1188_v34 = vadd.f32 %v11582_v48, %v11565_v2  ;;  %v2125_v2 = vld [vmem:[%s16650_s1 + $0xa0] sm:$0xff] }
 0x210   : > { %v1624_v47 = vpop.f32.mrf.mxu3  ;;  %2229 = vmatpush.msra.mxu0 %v2132_v14 }
 0x211   : > { %v11818_v63 = vpop.f32.mrf.mxu2  ;;  %v1625_v19 = vadd.f32 %v1624_v47, %v1557_v56  ;;  %v1314_v20 = vpop.f32.mrf.mxu0  ;;  %2572 = vmatpush.msrb.mxu3 %v2132_v14  ;;  %v1495_v56 = vadd.f32 %v11791_v25, %v11440_v17  ;;  %v9745_v47 = vld [vmem:[%s10869_s28 + $0x768] sm:$0xff]  ;;  %10457 = vmatpush.msrb.mxu2 %v2132_v14  ;;  %v1185_v17 = vadd.f32 %v11582_v48, %v11542_v5  ;;  %v2128_v5 = vld [vmem:[%s16650_s1 + $0xb8] sm:$0xff]  ;;  %v9748_v14 = vld [vmem:[%s10869_s28 + $0x780] sm:$0xff] }
 0x212   : > { %v11822_v4 = vpop.f32.mrf.mxu1  ;;  %v1315_v58 = vadd.f32 %v1314_v20, %v1247_v13  ;;  %v9747_v20 = vld [vmem:[%s10869_s28 + $0x778] sm:$0xff]  ;;  %2230 = vmatpush.msra.mxu0 %v2131_v31 }
 0x213   : > { %v1675_v46 = vmax.f32 %v1625_v19, 0.0  ;;  %2573 = vmatpush.msrb.mxu3 %v2131_v31  ;;  %10458 = vmatpush.msrb.mxu2 %v2131_v31  ;;  %v9780_v31 = vld [vmem:[%s10869_s28 + $0x880] sm:$0xff] }
 0x214   : > { %v1343_v27 = vmax.f32 %v1315_v58, 0.0  ;;  %1860 = vmatmul.f32.gmra.mxu0 %v9742_v28  ;;  %v9766_v28 = vld [vmem:[%s10869_s28 + $0x810] sm:$0xff]  ;;  %v1563_v58 = vadd.f32 %v11673_v52, %v1495_v56  ;;  %v1253_v52 = vadd.f32 %v11748_v11, %v1185_v17  ;;  %v9769_v56 = vld [vmem:[%s10869_s28 + $0x828] sm:$0xff] }
 0x215   : > { %2318 = vmatmul.f32.gmra.mxu1 %v9774_v0  ;;  %1693 = vst.msk [vmem:[#allocation2 + $0x198] sm:$0xff] %vm663_vm0, %v1675_v46  ;;  %2173 = vmatmul.f32.vlgmr.msra.gmra.mxu3 %v9763_v21  ;;  %v2130_v0 = vld [vmem:[%s16650_s1 + $0xc8] sm:$0xff] }
 0x216   : > { %1996 = vmatmul.f32.gmra.mxu2 %v9744_v32  ;;  %1361 = vst.msk [vmem:[#allocation2 + $0x168] sm:$0xff] %vm663_vm0, %v1343_v27  ;;  %v2129_v32 = vld [vmem:[%s16650_s1 + $0xc0] sm:$0xff]  ;;  %2231 = vmatpush.msra.mxu0 %v2130_v0 }
 0x217   : > { %2574 = vmatpush.msrb.mxu3 %v2130_v0  ;;  %10459 = vmatpush.msrb.mxu2 %v2130_v0 }
 0x218   : > { %v1627_v53 = vpop.f32.mrf.mxu3  ;;  %2232 = vmatpush.msra.mxu0 %v2129_v32 }
 0x219   : > { %v11846_v40 = vpop.f32.mrf.mxu2  ;;  %v1628_v33 = vadd.f32 %v1627_v53, %v1560_v60  ;;  %v1317_v1 = vpop.f32.mrf.mxu0  ;;  %2575 = vmatpush.msrb.mxu3 %v2129_v32  ;;  %10460 = vmatpush.msrb.mxu2 %v2129_v32  ;;  %v9750_v53 = vld [vmem:[%s10869_s28 + $0x790] sm:$0xff] }
 0x21a   : > { %v11850_v13 = vpop.f32.mrf.mxu1  ;;  %v1318_v19 = vadd.f32 %v1317_v1, %v1250_v35  ;;  %2233 = vmatpush.msra.mxu0 %v2128_v5 }
 0x21b   : > { %v1676_v22 = vmax.f32 %v1628_v33, 0.0  ;;  %2576 = vmatpush.msrb.mxu3 %v2128_v5  ;;  %v2127_v33 = vld [vmem:[%s16650_s1 + $0xb0] sm:$0xff]  ;;  %10461 = vmatpush.msrb.mxu2 %v2128_v5  ;;  %v9753_v5 = vld [vmem:[%s10869_s28 + $0x7a8] sm:$0xff] }
 0x21c   : > { %v1344_v12 = vmax.f32 %v1318_v19, 0.0  ;;  %1863 = vmatmul.f32.gmra.mxu0 %v9745_v47  ;;  %v1566_v47 = vadd.f32 %v11696_v38, %v1498_v49  ;;  %v1256_v38 = vadd.f32 %v11762_v18, %v1188_v34  ;;  %v9786_v34 = vld [vmem:[%s10869_s28 + $0x8b0] sm:$0xff] }
 0x21d   : > { %2321 = vmatmul.f32.gmra.mxu1 %v9777_v15  ;;  %1694 = vst.msk [vmem:[#allocation2 + $0x1a0] sm:$0xff] %vm663_vm0, %v1676_v22  ;;  %2176 = vmatmul.f32.gmra.mxu3 %v9766_v28  ;;  %v2126_v15 = vld [vmem:[%s16650_s1 + $0xa8] sm:$0xff]  ;;  %v1501_v28 = vadd.f32 %v11791_v25, %v11474_v51  ;;  %v1191_v51 = vadd.f32 %v11582_v48, %v11587_v43 }
 0x21e   : > { %1999 = vmatmul.f32.gmra.mxu2 %v9747_v20  ;;  %1362 = vst.msk [vmem:[#allocation2 + $0x170] sm:$0xff] %vm663_vm0, %v1344_v12  ;;  %2234 = vmatpush.msra.mxu0 %v2127_v33  ;;  %v9751_v12 = vld [vmem:[%s10869_s28 + $0x798] sm:$0xff]  ;;  %v2122_v43 = vld [vmem:[%s16650_s1 + $0x88] sm:$0xff] }
 0x21f   : > { %2577 = vmatpush.msrb.mxu3 %v2127_v33  ;;  %10462 = vmatpush.msrb.mxu2 %v2127_v33  ;;  %v9754_v33 = vld [vmem:[%s10869_s28 + $0x7b0] sm:$0xff] }
 0x220   : > { %v1630_v46 = vpop.f32.mrf.mxu3  ;;  %2235 = vmatpush.msra.mxu0 %v2126_v15 }
 0x221   : > { %v11871_v21 = vpop.f32.mrf.mxu2  ;;  %v1631_v8 = vadd.f32 %v1630_v46, %v1563_v58  ;;  %v1320_v27 = vpop.f32.mrf.mxu0  ;;  %2578 = vmatpush.msrb.mxu3 %v2126_v15  ;;  %v9783_v58 = vld [vmem:[%s10869_s28 + $0x898] sm:$0xff]  ;;  %10463 = vmatpush.msrb.mxu2 %v2126_v15 }
 0x222   : > { %v11875_v60 = vpop.f32.mrf.mxu1  ;;  %v1321_v35 = vadd.f32 %v1320_v27, %v1253_v52  ;;  %v9772_v52 = vld [vmem:[%s10869_s28 + $0x840] sm:$0xff]  ;;  %2236 = vmatpush.msra.mxu0 %v2125_v2  ;;  %v2124_v46 = vld [vmem:[%s16650_s1 + $0x98] sm:$0xff]  ;;  %v2123_v27 = vld [vmem:[%s16650_s1 + $0x90] sm:$0xff] }
 0x223   : > { %v1677_v11 = vmax.f32 %v1631_v8, 0.0  ;;  %2579 = vmatpush.msrb.mxu3 %v2125_v2  ;;  %10464 = vmatpush.msrb.mxu2 %v2125_v2  ;;  %v1569_v8 = vadd.f32 %v11719_v44, %v1501_v28  ;;  %v1259_v44 = vadd.f32 %v11776_v54, %v1191_v51  ;;  %v9775_v15 = vld [vmem:[%s10869_s28 + $0x858] sm:$0xff]  ;;  %v2121_v2 = vld [vmem:[%s16650_s1 + $0x80] sm:$0xff] }
 0x224   : > { %v1345_v1 = vmax.f32 %v1321_v35, 0.0  ;;  %1866 = vmatmul.f32.gmra.mxu0 %v9748_v14  ;;  %v1504_v35 = vadd.f32 %v11791_v25, %v11500_v62  ;;  %v1194_v62 = vadd.f32 %v11582_v48, %v11602_v10 }
 0x225   : > { %2324 = vmatmul.f32.gmra.mxu1 %v9780_v31  ;;  %1695 = vst.msk [vmem:[#allocation2 + $0x1a8] sm:$0xff] %vm663_vm0, %v1677_v11  ;;  %2179 = vmatmul.f32.gmra.mxu3 %v9769_v56 }
 0x226   : > { %2002 = vmatmul.f32.gmra.mxu2 %v9750_v53  ;;  %1363 = vst.msk [vmem:[#allocation2 + $0x178] sm:$0xff] %vm663_vm0, %v1345_v1  ;;  %2237 = vmatpush.msra.mxu0 %v2124_v46  ;;  %v1262_v48 = vadd.f32 %v11795_v6, %v1194_v62 }
 0x227   : > { %2580 = vmatpush.msrb.mxu3 %v2124_v46  ;;  %10465 = vmatpush.msrb.mxu2 %v2124_v46 }
 0x228   : > { %v1633_v20 = vpop.f32.mrf.mxu3  ;;  %2238 = vmatpush.msra.mxu0 %v2123_v27 }
 0x229   : > { %v11896_v19 = vpop.f32.mrf.mxu2  ;;  %v1634_v22 = vadd.f32 %v1633_v20, %v1566_v47  ;;  %v1323_v0 = vpop.f32.mrf.mxu0  ;;  %2581 = vmatpush.msrb.mxu3 %v2123_v27  ;;  %10466 = vmatpush.msrb.mxu2 %v2123_v27  ;;  %v9756_v47 = vld [vmem:[%s10869_s28 + $0x7c0] sm:$0xff]  ;;  %v1572_v20 = vadd.f32 %v11736_v61, %v1504_v35  ;;  %v1507_v61 = vadd.f32 %v11791_v25, %v11523_v37 }
 0x22a   : > { %v11900_v17 = vpop.f32.mrf.mxu1  ;;  %v1324_v32 = vadd.f32 %v1323_v0, %v1256_v38  ;;  %2239 = vmatpush.msra.mxu0 %v2122_v43  ;;  %v11956_v37 = vld [vmem:[%s16651_s2] ss:$0 sm:$0xff]  ;;  %v1510_v27 = vadd.f32 %v11791_v25, %v11546_v42 }
 0x22b   : > { %v1678_v18 = vmax.f32 %v1634_v22, 0.0  ;;  %2582 = vmatpush.msrb.mxu3 %v2122_v43  ;;  %10467 = vmatpush.msrb.mxu2 %v2122_v43  ;;  %v1575_v6 = vadd.f32 %v11750_v29, %v1507_v61  ;;  %v9792_v35 = vld [vmem:[%s10869_s28 + $0x8e0] sm:$0xff]  ;;  %v2804_v61 = vld [vmem:[%s16650_s1 + $0x68] sm:$0xff] }
 0x22c   : > { %v1346_v49 = vmax.f32 %v1324_v32, 0.0  ;;  %1869 = vmatmul.f32.gmra.mxu0 %v9751_v12  ;;  %v9789_v32 = vld [vmem:[%s10869_s28 + $0x8c8] sm:$0xff] }
 0x22d   : > { %2327 = vmatmul.f32.gmra.mxu1 %v9783_v58  ;;  %1696 = vst.msk [vmem:[#allocation2 + $0x1b0] sm:$0xff] %vm663_vm0, %v1678_v18  ;;  %2182 = vmatmul.f32.gmra.mxu3 %v9772_v52  ;;  %v9757_v58 = vld [vmem:[%s10869_s28 + $0x7c8] sm:$0xff]  ;;  %v9759_v52 = vld [vmem:[%s10869_s28 + $0x7d8] sm:$0xff]  ;;  %v9778_v18 = vld [vmem:[%s10869_s28 + $0x870] sm:$0xff] }
 0x22e   : > { %2005 = vmatmul.f32.gmra.mxu2 %v9753_v5  ;;  %1364 = vst.msk [vmem:[#allocation2 + $0x180] sm:$0xff] %vm663_vm0, %v1346_v49  ;;  %2240 = vmatpush.msra.mxu0 %v2121_v2 }
 0x22f   : > { %2583 = vmatpush.msrb.mxu3 %v2121_v2  ;;  %10468 = vmatpush.msrb.mxu2 %v2121_v2  ;;  %v1513_v2 = vadd.f32 %v11791_v25, %v11569_v3  ;;  %v2803_v3 = vld [vmem:[%s16650_s1 + $0x60] sm:$0xff] }
 0x230   : > { %v1636_v31 = vpop.f32.mrf.mxu3 }
 0x231   : > { %v11921_v14 = vpop.f32.mrf.mxu2  ;;  %v1637_v53 = vadd.f32 %v1636_v31, %v1569_v8  ;;  %v1326_v56 = vpop.f32.mrf.mxu0  ;;  %v9760_v31 = vld [vmem:[%s10869_s28 + $0x7e0] sm:$0xff] }
 0x232   : > { %v11925_v11 = vpop.f32.mrf.mxu1  ;;  %v1327_v1 = vadd.f32 %v1326_v56, %v1259_v44  ;;  %v9762_v56 = vld [vmem:[%s10869_s28 + $0x7f0] sm:$0xff] }
 0x233   : > { %v1679_v54 = vmax.f32 %v1637_v53, 0.0 }
 0x234   : > { %v1347_v38 = vmax.f32 %v1327_v1, 0.0  ;;  %1872 = vmatmul.f32.gmra.mxu0 %v9754_v33  ;;  %v9781_v33 = vld [vmem:[%s10869_s28 + $0x888] sm:$0xff]  ;;  %v1578_v1 = vadd.f32 %v11764_v24, %v1510_v27 }
 0x235   : > { %2330 = vmatmul.f32.gmra.mxu1 %v9786_v34  ;;  %1697 = vst.msk [vmem:[#allocation2 + $0x1b8] sm:$0xff] %vm663_vm0, %v1679_v54  ;;  %2185 = vmatmul.f32.gmra.mxu3 %v9775_v15  ;;  %v2805_v15 = vld [vmem:[%s16650_s1 + $0x70] sm:$0xff] }
 0x236   : > { %2008 = vmatmul.f32.gmra.mxu2 %v9756_v47  ;;  %1365 = vst.msk [vmem:[#allocation2 + $0x188] sm:$0xff] %vm663_vm0, %v1347_v38  ;;  %v2806_v47 = vld [vmem:[%s16650_s1 + $0x78] sm:$0xff] }
 0x237   : > { %2843 = vmatpush.msrb.mxu1 %v2806_v47 }
 0x238   : > { %v1639_v28 = vpop.f32.mrf.mxu3 }
 0x239   : > { %v11940_v10 = vpop.f32.mrf.mxu2  ;;  %v1640_v22 = vadd.f32 %v1639_v28, %v1572_v20  ;;  %v1329_v0 = vpop.f32.mrf.mxu0  ;;  %2844 = vmatpush.msrb.mxu1 %v2805_v15  ;;  %v9795_v28 = vld [vmem:[%s10869_s28 + $0x8f8] sm:$0xff]  ;;  %v2799_v15 = vld [vmem:[%s16650_s1 + $0x40] sm:$0xff] }
 0x23a   : > { %v11944_v12 = vpop.f32.mrf.mxu1  ;;  %v1330_v5 = vadd.f32 %v1329_v0, %v1262_v48  ;;  %v9764_v48 = vld [vmem:[%s10869_s28 + $0x800] sm:$0xff] }
 0x23b   : > { %v1680_v46 = vmax.f32 %v1640_v22, 0.0  ;;  %v9784_v0 = vld [vmem:[%s10869_s28 + $0x8a0] sm:$0xff]  ;;  %2845 = vmatpush.msrb.mxu1 %v2804_v61 }
 0x23c   : > { %v1348_v51 = vmax.f32 %v1330_v5, 0.0  ;;  %1875 = vmatmul.f32.gmra.mxu0 %v9757_v58  ;;  %v9814_v58 = vld [vmem:[%s10869_s28 + $0x990] sm:$0xff] }
 0x23d   : > { %2333 = vmatmul.f32.gmra.mxu1 %v9789_v32  ;;  %1698 = vst.msk [vmem:[#allocation2 + $0x1c0] sm:$0xff] %vm663_vm0, %v1680_v46  ;;  %2188 = vmatmul.f32.gmra.mxu3 %v9778_v18  ;;  %v2802_v46 = vld [vmem:[%s16650_s1 + $0x58] sm:$0xff] }
 0x23e   : > { %2011 = vmatmul.f32.gmra.mxu2 %v9759_v52  ;;  %1366 = vst.msk [vmem:[#allocation2 + $0x190] sm:$0xff] %vm663_vm0, %v1348_v51  ;;  %v1581_v52 = vadd.f32 %v11778_v7, %v1513_v2  ;;  %2846 = vmatpush.msrb.mxu1 %v2803_v3  ;;  %v2801_v7 = vld [vmem:[%s16650_s1 + $0x50] sm:$0xff]  ;;  %v1519_v2 = vadd.f32 %v11791_v25, %v11606_v55 }
 0x240   : > { %v1642_v8 = vpop.f32.mrf.mxu3  ;;  %2847 = vmatpush.msrb.mxu1 %v2802_v46  ;;  %v1587_v55 = vadd.f32 %v11818_v63, %v1519_v2  ;;  %v2795_v63 = vld [vmem:[%s16650_s1 + $0x20] sm:$0xff]  ;;  %v9807_v2 = vld [vmem:[%s10869_s28 + $0x958] sm:$0xff] }
 0x241   : > { %v11958_v49 = vpop.f32.mrf.mxu2  ;;  %v1643_v43 = vadd.f32 %v1642_v8, %v1575_v6  ;;  %v1831_v29 = vpop.f32.mrf.mxu0  ;;  %v1516_v8 = vadd.f32 %v11791_v25, %v11591_v26 }
 0x242   : > { %v11962_v44 = vpop.f32.mrf.mxu1  ;;  %v1832_v53 = vadd.f32 %v11956_v37, %v1831_v29  ;;  %2848 = vmatpush.msrb.mxu1 %v2801_v7  ;;  %v1522_v7 = vadd.f32 %v11791_v25, %v11626_v36 }
 0x243   : > { %v1681_v34 = vmax.f32 %v1643_v43, 0.0  ;;  %v1584_v26 = vadd.f32 %v11797_v23, %v1516_v8  ;;  %v2798_v23 = vld [vmem:[%s16650_s1 + $0x38] sm:$0xff] }
 0x244   : > { %1878 = vmatmul.f32.gmra.mxu0 %v9760_v31  ;;  %v1900_v42 = vadd.f32 %v11752_v16, %v1832_v53  ;;  %v9767_v31 = vld [vmem:[%s10869_s28 + $0x818] sm:$0xff]  ;;  %v1590_v36 = vadd.f32 %v11846_v40, %v1522_v7  ;;  %v2792_v40 = vld [vmem:[%s16650_s1 + $0x8] sm:$0xff] }
 0x245   : > { %2336 = vmatmul.f32.gmra.mxu1 %v9792_v35  ;;  %1699 = vst.msk [vmem:[#allocation2 + $0x1c8] sm:$0xff] %vm663_vm0, %v1681_v34  ;;  %2191 = vmatmul.f32.gmra.mxu3 %v9781_v33  ;;  %v9798_v35 = vld [vmem:[%s10869_s28 + $0x910] sm:$0xff]  ;;  %v9817_v33 = vld [vmem:[%s10869_s28 + $0x9a8] sm:$0xff] }
 0x246   : > { %2014 = vmatmul.f32.gmra.mxu2 %v9762_v56  ;;  %v9787_v56 = vld [vmem:[%s10869_s28 + $0x8b8] sm:$0xff]  ;;  %v9829_v7 = vld [vmem:[%s10869_s28 + $0xa08] sm:$0xff] }
 0x248   : > { %v1645_v24 = vpop.f32.mrf.mxu3 }
 0x249   : > { %v1967_v54 = vpop.f32.mrf.mxu2  ;;  %v1646_v62 = vadd.f32 %v1645_v24, %v1578_v1  ;;  %v1834_v16 = vpop.f32.mrf.mxu0 }
 0x24a   : > { %v1968_v38 = vadd.f32 %v1967_v54, %v1900_v42  ;;  %v11980_v20 = vpop.f32.mrf.mxu1  ;;  %v1835_v22 = vadd.f32 %v11956_v37, %v1834_v16  ;;  %v2800_v42 = vld [vmem:[%s16650_s1 + $0x48] sm:$0xff] }
 0x24b   : > { %v1682_v32 = vmax.f32 %v1646_v62, 0.0  ;;  %2849 = vmatpush.msrb.mxu1 %v2800_v42 }
 0x24c   : > { %v2018_v5 = vmax.f32 %v1968_v38, 0.0  ;;  %2241 = vmatmul.f32.vlgmr.msra.gmra.mxu0 %v9764_v48  ;;  %v1903_v18 = vadd.f32 %v11766_v41, %v1835_v22  ;;  %v9770_v48 = vld [vmem:[%s10869_s28 + $0x830] sm:$0xff] }
 0x24d   : > { %2339 = vmatmul.f32.gmra.mxu1 %v9795_v28  ;;  %1700 = vst.msk [vmem:[#allocation2 + $0x1d0] sm:$0xff] %vm663_vm0, %v1682_v32  ;;  %2194 = vmatmul.f32.gmra.mxu3 %v9784_v0  ;;  %v9801_v28 = vld [vmem:[%s10869_s28 + $0x928] sm:$0xff]  ;;  %v9790_v22 = vld [vmem:[%s10869_s28 + $0x8d0] sm:$0xff]  ;;  %v9820_v0 = vld [vmem:[%s10869_s28 + $0x9c0] sm:$0xff] }
 0x24e   : > { %2516 = vmatmul.f32.vlgmr.msra.gmra.mxu2 %v9814_v58  ;;  %2036 = vst.msk [vmem:[#allocation2 + $0x220] sm:$0xff] %vm663_vm0, %v2018_v5  ;;  %2850 = vmatpush.msrb.mxu1 %v2799_v15  ;;  %v2797_v5 = vld [vmem:[%s16650_s1 + $0x30] sm:$0xff] }
 0x250   : > { %v1648_v51 = vpop.f32.mrf.mxu3  ;;  %2851 = vmatpush.msrb.mxu1 %v2798_v23 }
 0x251   : > { %v1970_v6 = vpop.f32.mrf.mxu2  ;;  %v1649_v41 = vadd.f32 %v1648_v51, %v1581_v52  ;;  %v1837_v43 = vpop.f32.mrf.mxu0  ;;  %v2796_v52 = vld [vmem:[%s16650_s1 + $0x28] sm:$0xff] }
 0x252   : > { %v1971_v27 = vadd.f32 %v1970_v6, %v1903_v18  ;;  %v12005_v29 = vpop.f32.mrf.mxu1  ;;  %v1838_v53 = vadd.f32 %v11956_v37, %v1837_v43  ;;  %2852 = vmatpush.msrb.mxu1 %v2797_v5 }
 0x253   : > { %v1683_v34 = vmax.f32 %v1649_v41, 0.0  ;;  %v9773_v41 = vld [vmem:[%s10869_s28 + $0x848] sm:$0xff] }
 0x254   : > { %v2019_v1 = vmax.f32 %v1971_v27, 0.0  ;;  %2244 = vmatmul.f32.gmra.mxu0 %v9767_v31  ;;  %v1906_v47 = vadd.f32 %v11780_v57, %v1838_v53  ;;  %2853 = vmatpush.msrb.mxu1 %v2796_v52  ;;  %v9804_v27 = vld [vmem:[%s10869_s28 + $0x940] sm:$0xff]  ;;  %v9793_v31 = vld [vmem:[%s10869_s28 + $0x8e8] sm:$0xff]  ;;  %v9779_v52 = vld [vmem:[%s10869_s28 + $0x878] sm:$0xff] }
 0x255   : > { %2342 = vmatmul.f32.gmra.mxu1 %v9798_v35  ;;  %1701 = vst.msk [vmem:[#allocation2 + $0x1d8] sm:$0xff] %vm663_vm0, %v1683_v34  ;;  %2197 = vmatmul.f32.gmra.mxu3 %v9787_v56  ;;  %v9823_v35 = vld [vmem:[%s10869_s28 + $0x9d8] sm:$0xff] }
 0x256   : > { %2519 = vmatmul.f32.gmra.mxu2 %v9817_v33  ;;  %2037 = vst.msk [vmem:[#allocation2 + $0x228] sm:$0xff] %vm663_vm0, %v2019_v1  ;;  %2854 = vmatpush.msrb.mxu1 %v2795_v63  ;;  %v2794_v33 = vld [vmem:[%s16650_s1 + $0x18] sm:$0xff]  ;;  %v2793_v1 = vld [vmem:[%s16650_s1 + $0x10] sm:$0xff] }
 0x257   : > { %v9810_v63 = vld [vmem:[%s10869_s28 + $0x970] sm:$0xff] }
 0x258   : > { %v1651_v24 = vpop.f32.mrf.mxu3  ;;  %2855 = vmatpush.msrb.mxu1 %v2794_v33 }
 0x259   : > { %v1973_v54 = vpop.f32.mrf.mxu2  ;;  %v1652_v57 = vadd.f32 %v1651_v24, %v1584_v26  ;;  %v1840_v38 = vpop.f32.mrf.mxu0 }
 0x25a   : > { %v1974_v62 = vadd.f32 %v1973_v54, %v1906_v47  ;;  %v12027_v16 = vpop.f32.mrf.mxu1  ;;  %v1841_v61 = vadd.f32 %v11956_v37, %v1840_v38  ;;  %2856 = vmatpush.msrb.mxu1 %v2793_v1  ;;  %v1525_v47 = vadd.f32 %v11791_v25, %v11652_v45  ;;  %v9776_v54 = vld [vmem:[%s10869_s28 + $0x860] sm:$0xff]  ;;  %v9826_v38 = vld [vmem:[%s10869_s28 + $0x9f0] sm:$0xff] }
 0x25b   : > { %v1684_v58 = vmax.f32 %v1652_v57, 0.0 }
 0x25c   : > { %v2020_v32 = vmax.f32 %v1974_v62, 0.0  ;;  %2247 = vmatmul.f32.gmra.mxu0 %v9770_v48  ;;  %v1909_v3 = vadd.f32 %v11801_v59, %v1841_v61  ;;  %v9796_v62 = vld [vmem:[%s10869_s28 + $0x900] sm:$0xff]  ;;  %2857 = vmatpush.msrb.mxu1 %v2792_v40  ;;  %v1593_v45 = vadd.f32 %v11871_v21, %v1525_v47  ;;  %v1534_v47 = vadd.f32 %v11791_v25, %v11721_v9 }
 0x25d   : > { %2345 = vmatmul.f32.gmra.mxu1 %v9801_v28  ;;  %1702 = vst.msk [vmem:[#allocation2 + $0x1e0] sm:$0xff] %vm663_vm0, %v1684_v58  ;;  %2200 = vmatmul.f32.gmra.mxu3 %v9790_v22  ;;  %v2791_v61 = vld [vmem:[%s16650_s1] sm:$0xff] }
 0x25e   : > { %2522 = vmatmul.f32.gmra.mxu2 %v9820_v0  ;;  %2038 = vst.msk [vmem:[#allocation2 + $0x230] sm:$0xff] %vm663_vm0, %v2020_v32  ;;  %2858 = vmatpush.msrb.mxu1 %v2791_v61  ;;  %v1528_v32 = vadd.f32 %v11791_v25, %v11675_v50 }
 0x260   : > { %v1654_v18 = vpop.f32.mrf.mxu3 }
 0x261   : > { %v1976_v46 = vpop.f32.mrf.mxu2  ;;  %v1655_v59 = vadd.f32 %v1654_v18, %v1587_v55  ;;  %v1843_v6 = vpop.f32.mrf.mxu0 }
 0x262   : > { %v1977_v51 = vadd.f32 %v1976_v46, %v1909_v3  ;;  %v12049_v8 = vpop.f32.mrf.mxu1  ;;  %v1844_v43 = vadd.f32 %v11956_v37, %v1843_v6  ;;  %v9799_v46 = vld [vmem:[%s10869_s28 + $0x918] sm:$0xff] }
 0x263   : > { %v1685_v53 = vmax.f32 %v1655_v59, 0.0 }
 0x264   : > { %v2021_v56 = vmax.f32 %v1977_v51, 0.0  ;;  %2250 = vmatmul.f32.gmra.mxu0 %v9773_v41  ;;  %v1912_v34 = vadd.f32 %v11822_v4, %v1844_v43  ;;  %v1596_v51 = vadd.f32 %v11896_v19, %v1528_v32  ;;  %v9782_v19 = vld [vmem:[%s10869_s28 + $0x890] sm:$0xff] }
 0x265   : > { %2348 = vmatmul.f32.gmra.mxu1 %v9804_v27  ;;  %1703 = vst.msk [vmem:[#allocation2 + $0x1e8] sm:$0xff] %vm663_vm0, %v1685_v53  ;;  %2203 = vmatmul.f32.gmra.mxu3 %v9793_v31  ;;  %v1531_v27 = vadd.f32 %v11791_v25, %v11698_v39 }
 0x266   : > { %2525 = vmatmul.f32.gmra.mxu2 %v9823_v35  ;;  %2039 = vst.msk [vmem:[#allocation2 + $0x238] sm:$0xff] %vm663_vm0, %v2021_v56  ;;  %v9813_v56 = vld [vmem:[%s10869_s28 + $0x988] sm:$0xff] }
 0x267   : > { %v1599_v40 = vadd.f32 %v11921_v14, %v1531_v27  ;;  %v9785_v14 = vld [vmem:[%s10869_s28 + $0x8a8] sm:$0xff]  ;;  %v9811_v27 = vld [vmem:[%s10869_s28 + $0x978] sm:$0xff] }
 0x268   : > { %v1657_v42 = vpop.f32.mrf.mxu3 }
 0x269   : > { %v1979_v26 = vpop.f32.mrf.mxu2  ;;  %v1658_v4 = vadd.f32 %v1657_v42, %v1590_v36  ;;  %v1846_v23 = vpop.f32.mrf.mxu0  ;;  %v9802_v36 = vld [vmem:[%s10869_s28 + $0x930] sm:$0xff] }
 0x26a   : > { %v1980_v15 = vadd.f32 %v1979_v26, %v1912_v34  ;;  %v12071_v24 = vpop.f32.mrf.mxu1  ;;  %v1847_v57 = vadd.f32 %v11956_v37, %v1846_v23  ;;  %v9832_v34 = vld [vmem:[%s10869_s28 + $0xa20] sm:$0xff] }
 0x26b   : > { %v1686_v48 = vmax.f32 %v1658_v4, 0.0 }
 0x26c   : > { %v2022_v28 = vmax.f32 %v1980_v15, 0.0  ;;  %2253 = vmatmul.f32.gmra.mxu0 %v9776_v54  ;;  %v1915_v22 = vadd.f32 %v11850_v13, %v1847_v57 }
 0x26d   : > { %2351 = vmatmul.f32.gmra.mxu1 %v9807_v2  ;;  %1704 = vst.msk [vmem:[#allocation2 + $0x1f0] sm:$0xff] %vm663_vm0, %v1686_v48  ;;  %2206 = vmatmul.f32.gmra.mxu3 %v9796_v62  ;;  %v9865_v2 = vld [vmem:[%s10869_s28 + $0xb28] sm:$0xff] }
 0x26e   : > { %2528 = vmatmul.f32.gmra.mxu2 %v9826_v38  ;;  %2040 = vst.msk [vmem:[#allocation2 + $0x240] sm:$0xff] %vm663_vm0, %v2022_v28  ;;  %v9805_v62 = vld [vmem:[%s10869_s28 + $0x948] sm:$0xff]  ;;  %v9835_v38 = vld [vmem:[%s10869_s28 + $0xa38] sm:$0xff]  ;;  %v1602_v28 = vadd.f32 %v11940_v10, %v1534_v47  ;;  %v9788_v10 = vld [vmem:[%s10869_s28 + $0x8c0] sm:$0xff] }
 0x26f   : > { %v9815_v47 = vld [vmem:[%s10869_s28 + $0x998] sm:$0xff] }
 0x270   : > { %v1660_v0 = vpop.f32.mrf.mxu3 }
 0x271   : > { %v1982_v58 = vpop.f32.mrf.mxu2  ;;  %v1661_v5 = vadd.f32 %v1660_v0, %v1593_v45  ;;  %v1849_v3 = vpop.f32.mrf.mxu0 }
 0x272   : > { %v1983_v55 = vadd.f32 %v1982_v58, %v1915_v22  ;;  %v12087_v21 = vpop.f32.mrf.mxu1  ;;  %v1850_v18 = vadd.f32 %v11956_v37, %v1849_v3  ;;  %v1537_v22 = vadd.f32 %v11791_v25, %v11738_v30 }
 0x273   : > { %v1687_v13 = vmax.f32 %v1661_v5, 0.0 }
 0x274   : > { %v2023_v59 = vmax.f32 %v1983_v55, 0.0  ;;  %2256 = vmatmul.f32.gmra.mxu0 %v9779_v52  ;;  %v1918_v50 = vadd.f32 %v11875_v60, %v1850_v18  ;;  %v9868_v55 = vld [vmem:[%s10869_s28 + $0xb40] sm:$0xff]  ;;  %v1605_v30 = vadd.f32 %v11958_v49, %v1537_v22 }
 0x275   : > { %2354 = vmatmul.f32.gmra.mxu1 %v9810_v63  ;;  %1705 = vst.msk [vmem:[#allocation2 + $0x1f8] sm:$0xff] %vm663_vm0, %v1687_v13  ;;  %2209 = vmatmul.f32.gmra.mxu3 %v9799_v46  ;;  %v9808_v52 = vld [vmem:[%s10869_s28 + $0x960] sm:$0xff]  ;;  %v9838_v63 = vld [vmem:[%s10869_s28 + $0xa50] sm:$0xff] }
 0x276   : > { %2531 = vmatmul.f32.gmra.mxu2 %v9829_v7  ;;  %2041 = vst.msk [vmem:[#allocation2 + $0x248] sm:$0xff] %vm663_vm0, %v2023_v59 }
 0x278   : > { %v1663_v6 = vpop.f32.mrf.mxu3 }
 0x279   : > { %v1985_v41 = vpop.f32.mrf.mxu2  ;;  %v1664_v43 = vadd.f32 %v1663_v6, %v1596_v51  ;;  %v1852_v35 = vpop.f32.mrf.mxu0  ;;  %v9791_v6 = vld [vmem:[%s10869_s28 + $0x8d8] sm:$0xff] }
 0x27a   : > { %v1986_v31 = vadd.f32 %v1985_v41, %v1918_v50  ;;  %v12100_v53 = vpop.f32.mrf.mxu1  ;;  %v1853_v33 = vadd.f32 %v11956_v37, %v1852_v35  ;;  %v9871_v41 = vld [vmem:[%s10869_s28 + $0xb58] sm:$0xff] }
 0x27b   : > { %v1688_v1 = vmax.f32 %v1664_v43, 0.0  ;;  %v9841_v43 = vld [vmem:[%s10869_s28 + $0xa68] sm:$0xff] }
 0x27c   : > { %v2024_v60 = vmax.f32 %v1986_v31, 0.0  ;;  %2259 = vmatmul.f32.gmra.mxu0 %v9782_v19  ;;  %v1921_v39 = vadd.f32 %v11900_v17, %v1853_v33  ;;  %v2495_v19 = vld [vmem:[%s16650_s1 + $0x178] sm:$0xff] }
 0x27d   : > { %2357 = vmatmul.f32.gmra.mxu1 %v9813_v56  ;;  %1706 = vst.msk [vmem:[#allocation2 + $0x200] sm:$0xff] %vm663_vm0, %v1688_v1  ;;  %2212 = vmatmul.f32.gmra.mxu3 %v9802_v36  ;;  %v2494_v56 = vld [vmem:[%s16650_s1 + $0x170] sm:$0xff] }
 0x27e   : > { %2534 = vmatmul.f32.gmra.mxu2 %v9832_v34  ;;  %2042 = vst.msk [vmem:[#allocation2 + $0x250] sm:$0xff] %vm663_vm0, %v2024_v60  ;;  %2636 = vmatpush.msrb.mxu0 %v2495_v19  ;;  %v9794_v60 = vld [vmem:[%s10869_s28 + $0x8f0] sm:$0xff] }
 0x27f   : > { %2979 = vmatpush.msra.mxu3 %v2495_v19  ;;  %v9853_v19 = vld [vmem:[%s10869_s28 + $0xac8] sm:$0xff] }
 0x280   : > { %v1666_v42 = vpop.f32.mrf.mxu3  ;;  %2637 = vmatpush.msrb.mxu0 %v2494_v56 }
 0x281   : > { %v1988_v26 = vpop.f32.mrf.mxu2  ;;  %v1667_v4 = vadd.f32 %v1666_v42, %v1599_v40  ;;  %v1855_v23 = vpop.f32.mrf.mxu0  ;;  %2980 = vmatpush.msra.mxu3 %v2494_v56  ;;  %v9874_v40 = vld [vmem:[%s10869_s28 + $0xb70] sm:$0xff]  ;;  %v9824_v56 = vld [vmem:[%s10869_s28 + $0x9e0] sm:$0xff] }
 0x282   : > { %v1989_v15 = vadd.f32 %v1988_v26, %v1921_v39  ;;  %v12113_v54 = vpop.f32.mrf.mxu1  ;;  %v1856_v57 = vadd.f32 %v11956_v37, %v1855_v23  ;;  %v2493_v39 = vld [vmem:[%s16650_s1 + $0x168] sm:$0xff]  ;;  %v9844_v26 = vld [vmem:[%s10869_s28 + $0xa80] sm:$0xff] }
 0x283   : > { %v1689_v48 = vmax.f32 %v1667_v4, 0.0  ;;  %2638 = vmatpush.msrb.mxu0 %v2493_v39  ;;  %2981 = vmatpush.msra.mxu3 %v2493_v39 }
 0x284   : > { %v2025_v17 = vmax.f32 %v1989_v15, 0.0  ;;  %2262 = vmatmul.f32.gmra.mxu0 %v9785_v14  ;;  %v1924_v9 = vadd.f32 %v11925_v11, %v1856_v57  ;;  %v2492_v15 = vld [vmem:[%s16650_s1 + $0x160] sm:$0xff]  ;;  %v2491_v14 = vld [vmem:[%s16650_s1 + $0x158] sm:$0xff] }
 0x285   : > { %2859 = vmatmul.f32.vlgmr.msrb.gmra.mxu1 %v9865_v2  ;;  %1707 = vst.msk [vmem:[#allocation2 + $0x208] sm:$0xff] %vm663_vm0, %v1689_v48  ;;  %2215 = vmatmul.f32.gmra.mxu3 %v9805_v62  ;;  %v2490_v2 = vld [vmem:[%s16650_s1 + $0x150] sm:$0xff] }
 0x286   : > { %2537 = vmatmul.f32.gmra.mxu2 %v9835_v38  ;;  %2043 = vst.msk [vmem:[#allocation2 + $0x258] sm:$0xff] %vm663_vm0, %v2025_v17  ;;  %2639 = vmatpush.msrb.mxu0 %v2492_v15 }
 0x287   : > { %2982 = vmatpush.msra.mxu3 %v2492_v15  ;;  %v9886_v15 = vld [vmem:[%s10869_s28 + $0xbd0] sm:$0xff] }
 0x288   : > { %v1669_v61 = vpop.f32.mrf.mxu3  ;;  %2640 = vmatpush.msrb.mxu0 %v2491_v14 }
 0x289   : > { %v1991_v45 = vpop.f32.mrf.mxu2  ;;  %v1670_v0 = vadd.f32 %v1669_v61, %v1602_v28  ;;  %v1858_v32 = vpop.f32.mrf.mxu0  ;;  %2983 = vmatpush.msra.mxu3 %v2491_v14  ;;  %v9877_v28 = vld [vmem:[%s10869_s28 + $0xb88] sm:$0xff]  ;;  %v9847_v61 = vld [vmem:[%s10869_s28 + $0xa98] sm:$0xff]  ;;  %v9856_v14 = vld [vmem:[%s10869_s28 + $0xae0] sm:$0xff] }
 0x28a   : > { %v1992_v58 = vadd.f32 %v1991_v45, %v1924_v9  ;;  %v12126_v5 = vpop.f32.mrf.mxu1  ;;  %v1859_v3 = vadd.f32 %v11956_v37, %v1858_v32  ;;  %v9818_v45 = vld [vmem:[%s10869_s28 + $0x9b0] sm:$0xff]  ;;  %2641 = vmatpush.msrb.mxu0 %v2490_v2  ;;  %v2488_v32 = vld [vmem:[%s16650_s1 + $0x140] sm:$0xff] }
 0x28b   : > { %v1690_v18 = vmax.f32 %v1670_v0, 0.0  ;;  %2984 = vmatpush.msra.mxu3 %v2490_v2  ;;  %v2489_v0 = vld [vmem:[%s16650_s1 + $0x148] sm:$0xff]  ;;  %v9827_v2 = vld [vmem:[%s10869_s28 + $0x9f8] sm:$0xff] }
 0x28c   : > { %v2026_v11 = vmax.f32 %v1992_v58, 0.0  ;;  %2265 = vmatmul.f32.gmra.mxu0 %v9788_v10  ;;  %v1927_v25 = vadd.f32 %v11944_v12, %v1859_v3  ;;  %v2487_v10 = vld [vmem:[%s16650_s1 + $0x138] sm:$0xff] }
 0x28d   : > { %2862 = vmatmul.f32.gmra.mxu1 %v9868_v55  ;;  %1708 = vst.msk [vmem:[#allocation2 + $0x210] sm:$0xff] %vm663_vm0, %v1690_v18  ;;  %2218 = vmatmul.f32.gmra.mxu3 %v9808_v52 }
 0x28e   : > { %2540 = vmatmul.f32.gmra.mxu2 %v9838_v63  ;;  %2044 = vst.msk [vmem:[#allocation2 + $0x260] sm:$0xff] %vm663_vm0, %v2026_v11  ;;  %2642 = vmatpush.msrb.mxu0 %v2489_v0  ;;  %v9880_v11 = vld [vmem:[%s10869_s28 + $0xba0] sm:$0xff] }
 0x28f   : > { %2985 = vmatpush.msra.mxu3 %v2489_v0  ;;  %v9809_v0 = vld [vmem:[%s10869_s28 + $0x968] sm:$0xff] }
 0x290   : > { %v1672_v46 = vpop.f32.mrf.mxu3  ;;  %2643 = vmatpush.msrb.mxu0 %v2488_v32 }
 0x291   : > { %v1994_v7 = vpop.f32.mrf.mxu2  ;;  %v1673_v13 = vadd.f32 %v1672_v46, %v1605_v30  ;;  %v1861_v51 = vpop.f32.mrf.mxu0  ;;  %2986 = vmatpush.msra.mxu3 %v2488_v32  ;;  %v9821_v46 = vld [vmem:[%s10869_s28 + $0x9c8] sm:$0xff] }
 0x292   : > { %v1995_v59 = vadd.f32 %v1994_v7, %v1927_v25  ;;  %v12137_v50 = vpop.f32.mrf.mxu1  ;;  %v1862_v49 = vadd.f32 %v11956_v37, %v1861_v51  ;;  %v9850_v25 = vld [vmem:[%s10869_s28 + $0xab0] sm:$0xff]  ;;  %2644 = vmatpush.msrb.mxu0 %v2487_v10  ;;  %v2485_v51 = vld [vmem:[%s16650_s1 + $0x128] sm:$0xff] }
 0x293   : > { %v1691_v31 = vmax.f32 %v1673_v13, 0.0  ;;  %2987 = vmatpush.msra.mxu3 %v2487_v10  ;;  %v2486_v13 = vld [vmem:[%s16650_s1 + $0x130] sm:$0xff]  ;;  %v9859_v10 = vld [vmem:[%s10869_s28 + $0xaf8] sm:$0xff] }
 0x294   : > { %v2027_v35 = vmax.f32 %v1995_v59, 0.0  ;;  %2268 = vmatmul.f32.gmra.mxu0 %v9791_v6  ;;  %v1930_v12 = vadd.f32 %v11962_v44, %v1862_v49  ;;  %v2484_v6 = vld [vmem:[%s16650_s1 + $0x120] sm:$0xff] }
 0x295   : > { %2865 = vmatmul.f32.gmra.mxu1 %v9871_v41  ;;  %1709 = vst.msk [vmem:[#allocation2 + $0x218] sm:$0xff] %vm663_vm0, %v1691_v31  ;;  %2221 = vmatmul.f32.gmra.mxu3 %v9811_v27 }
 0x296   : > { %2543 = vmatmul.f32.gmra.mxu2 %v9841_v43  ;;  %2045 = vst.msk [vmem:[#allocation2 + $0x268] sm:$0xff] %vm663_vm0, %v2027_v35  ;;  %2645 = vmatpush.msrb.mxu0 %v2486_v13  ;;  %v9883_v35 = vld [vmem:[%s10869_s28 + $0xbb8] sm:$0xff] }
 0x297   : > { %2988 = vmatpush.msra.mxu3 %v2486_v13 }
 0x298   : > { %v12153_v36 = vpop.f32.mrf.mxu3  ;;  %2646 = vmatpush.msrb.mxu0 %v2485_v51 }
 0x299   : > { %v1997_v33 = vpop.f32.mrf.mxu2  ;;  %v1864_v34 = vpop.f32.mrf.mxu0  ;;  %2989 = vmatpush.msra.mxu3 %v2485_v51 }
 0x29a   : > { %v1998_v44 = vadd.f32 %v1997_v33, %v1930_v12  ;;  %v12155_v1 = vpop.f32.mrf.mxu1  ;;  %v1865_v42 = vadd.f32 %v11956_v37, %v1864_v34  ;;  %2647 = vmatpush.msrb.mxu0 %v2484_v6 }
 0x29b   : > { %2990 = vmatpush.msra.mxu3 %v2484_v6  ;;  %v9892_v6 = vld [vmem:[%s10869_s28 + $0xc00] sm:$0xff] }
 0x29c   : > { %v2028_v4 = vmax.f32 %v1998_v44, 0.0  ;;  %2271 = vmatmul.f32.gmra.mxu0 %v9794_v60  ;;  %v1933_v23 = vadd.f32 %v11980_v20, %v1865_v42  ;;  %v9797_v20 = vld [vmem:[%s10869_s28 + $0x908] sm:$0xff]  ;;  %v2483_v44 = vld [vmem:[%s16650_s1 + $0x118] sm:$0xff]  ;;  %v2482_v60 = vld [vmem:[%s16650_s1 + $0x110] sm:$0xff] }
 0x29d   : > { %2868 = vmatmul.f32.gmra.mxu1 %v9874_v40  ;;  %2584 = vmatmul.f32.vlgmr.msrb.gmra.mxu3 %v9815_v47  ;;  %v2481_v40 = vld [vmem:[%s16650_s1 + $0x108] sm:$0xff] }
 0x29e   : > { %2046 = vst.msk [vmem:[#allocation2 + $0x270] sm:$0xff] %vm663_vm0, %v2028_v4  ;;  %2546 = vmatmul.f32.gmra.mxu2 %v9844_v26  ;;  %2648 = vmatpush.msrb.mxu0 %v2483_v44 }
 0x29f   : > { %2991 = vmatpush.msra.mxu3 %v2483_v44  ;;  %v10498_v44 = vld [vmem:[%s16650_s1 + $0xc0] sm:$0xff] }
 0x2a0   : > { %v12176_v62 = vpop.f32.mrf.mxu3  ;;  %2649 = vmatpush.msrb.mxu0 %v2482_v60 }
 0x2a1   : > { %v2000_v57 = vpop.f32.mrf.mxu2  ;;  %v1867_v48 = vpop.f32.mrf.mxu0  ;;  %2992 = vmatpush.msra.mxu3 %v2482_v60 }
 0x2a2   : > { %v2001_v38 = vadd.f32 %v2000_v57, %v1933_v23  ;;  %v12178_v17 = vpop.f32.mrf.mxu1  ;;  %v1868_v9 = vadd.f32 %v11956_v37, %v1867_v48  ;;  %2650 = vmatpush.msrb.mxu0 %v2481_v40 }
 0x2a3   : > { %2993 = vmatpush.msra.mxu3 %v2481_v40  ;;  %v9816_v40 = vld [vmem:[%s10869_s28 + $0x9a0] sm:$0xff] }
 0x2a4   : > { %v2029_v22 = vmax.f32 %v2001_v38, 0.0  ;;  %2274 = vmatmul.f32.gmra.mxu0 %v9797_v20  ;;  %v1936_v58 = vadd.f32 %v12005_v29, %v1868_v9  ;;  %v9800_v29 = vld [vmem:[%s10869_s28 + $0x920] sm:$0xff]  ;;  %v10491_v20 = vld [vmem:[%s16650_s1 + $0xf8] sm:$0xff] }
 0x2a5   : > { %2871 = vmatmul.f32.gmra.mxu1 %v9877_v28  ;;  %2587 = vmatmul.f32.gmra.mxu3 %v9818_v45  ;;  %v2480_v38 = vld [vmem:[%s16650_s1 + $0x100] sm:$0xff] }
 0x2a6   : > { %2047 = vst.msk [vmem:[#allocation2 + $0x278] sm:$0xff] %vm663_vm0, %v2029_v22  ;;  %2549 = vmatmul.f32.gmra.mxu2 %v9847_v61  ;;  %2651 = vmatpush.msrb.mxu0 %v2480_v38 }
 0x2a7   : > { %2994 = vmatpush.msra.mxu3 %v2480_v38  ;;  %v10501_v38 = vld [vmem:[%s16650_s1 + $0xa8] sm:$0xff] }
 0x2a8   : > { %v12196_v3 = vpop.f32.mrf.mxu3  ;;  %2911 = vmatpush.msra.mxu0 %v10491_v20 }
 0x2a9   : > { %v2003_v55 = vpop.f32.mrf.mxu2  ;;  %v1870_v63 = vpop.f32.mrf.mxu0 }
 0x2aa   : > { %v2004_v52 = vadd.f32 %v2003_v55, %v1936_v58  ;;  %v12198_v18 = vpop.f32.mrf.mxu1  ;;  %v1871_v30 = vadd.f32 %v11956_v37, %v1870_v63  ;;  %v9889_v58 = vld [vmem:[%s10869_s28 + $0xbe8] sm:$0xff]  ;;  %v9830_v55 = vld [vmem:[%s10869_s28 + $0xa10] sm:$0xff] }
 0x2ab   : > { %v10493_v63 = vld [vmem:[%s16650_s1 + $0xe8] sm:$0xff] }
 0x2ac   : > { %v2030_v7 = vmax.f32 %v2004_v52, 0.0  ;;  %2277 = vmatmul.f32.gmra.mxu0 %v9800_v29  ;;  %v1939_v59 = vadd.f32 %v12027_v16, %v1871_v30  ;;  %v9803_v16 = vld [vmem:[%s10869_s28 + $0x938] sm:$0xff]  ;;  %v12271_v29 = vld [vmem:[%s16651_s2] ss:$0 sm:$0xff] }
 0x2ad   : > { %2874 = vmatmul.f32.gmra.mxu1 %v9880_v11  ;;  %2590 = vmatmul.f32.gmra.mxu3 %v9821_v46  ;;  %v10494_v11 = vld [vmem:[%s16650_s1 + $0xe0] sm:$0xff]  ;;  %v2175_v30 = vadd.f32 %v12271_v29, %v12153_v36  ;;  %v10496_v36 = vld [vmem:[%s16650_s1 + $0xd0] sm:$0xff] }
 0x2ae   : > { %2048 = vst.msk [vmem:[#allocation2 + $0x280] sm:$0xff] %vm663_vm0, %v2030_v7  ;;  %2552 = vmatmul.f32.gmra.mxu2 %v9850_v25  ;;  %v10495_v7 = vld [vmem:[%s16650_s1 + $0xd8] sm:$0xff] }
 0x2b0   : > { %v12216_v49 = vpop.f32.mrf.mxu3 }
 0x2b1   : > { %v2006_v41 = vpop.f32.mrf.mxu2  ;;  %v1873_v43 = vpop.f32.mrf.mxu0 }
 0x2b2   : > { %v2007_v27 = vadd.f32 %v2006_v41, %v1939_v59  ;;  %v12218_v31 = vpop.f32.mrf.mxu1  ;;  %v1874_v12 = vadd.f32 %v11956_v37, %v1873_v43  ;;  %v9833_v43 = vld [vmem:[%s10869_s28 + $0xa28] sm:$0xff] }
 0x2b4   : > { %v2031_v33 = vmax.f32 %v2007_v27, 0.0  ;;  %2280 = vmatmul.f32.gmra.mxu0 %v9803_v16  ;;  %v1942_v34 = vadd.f32 %v12049_v8, %v1874_v12  ;;  %v9806_v8 = vld [vmem:[%s10869_s28 + $0x950] sm:$0xff] }
 0x2b5   : > { %2877 = vmatmul.f32.gmra.mxu1 %v9883_v35  ;;  %2593 = vmatmul.f32.gmra.mxu3 %v9824_v56  ;;  %v9862_v27 = vld [vmem:[%s10869_s28 + $0xb10] sm:$0xff]  ;;  %v2178_v56 = vadd.f32 %v12271_v29, %v12176_v62  ;;  %v10499_v62 = vld [vmem:[%s16650_s1 + $0xb8] sm:$0xff] }
 0x2b6   : > { %2049 = vst.msk [vmem:[#allocation2 + $0x288] sm:$0xff] %vm663_vm0, %v2031_v33  ;;  %2555 = vmatmul.f32.gmra.mxu2 %v9853_v19  ;;  %v10497_v19 = vld [vmem:[%s16650_s1 + $0xc8] sm:$0xff] }
 0x2b8   : > { %v12236_v42 = vpop.f32.mrf.mxu3 }
 0x2b9   : > { %v2009_v39 = vpop.f32.mrf.mxu2  ;;  %v1876_v47 = vpop.f32.mrf.mxu0 }
 0x2ba   : > { %v2010_v26 = vadd.f32 %v2009_v39, %v1942_v34  ;;  %v12238_v4 = vpop.f32.mrf.mxu1  ;;  %v1877_v23 = vadd.f32 %v11956_v37, %v1876_v47  ;;  %v9895_v39 = vld [vmem:[%s10869_s28 + $0xc18] sm:$0xff]  ;;  %v9836_v47 = vld [vmem:[%s10869_s28 + $0xa40] sm:$0xff] }
 0x2bc   : > { %v2032_v57 = vmax.f32 %v2010_v26, 0.0  ;;  %2283 = vmatmul.f32.gmra.mxu0 %v9806_v8  ;;  %v1945_v48 = vadd.f32 %v12071_v24, %v1877_v23  ;;  %v10492_v24 = vld [vmem:[%s16650_s1 + $0xf0] sm:$0xff]  ;;  %v9869_v8 = vld [vmem:[%s10869_s28 + $0xb48] sm:$0xff] }
 0x2bd   : > { %2880 = vmatmul.f32.gmra.mxu1 %v9886_v15  ;;  %2596 = vmatmul.f32.gmra.mxu3 %v9827_v2  ;;  %v2181_v2 = vadd.f32 %v12271_v29, %v12196_v3  ;;  %v10502_v3 = vld [vmem:[%s16650_s1 + $0xa0] sm:$0xff] }
 0x2be   : > { %2050 = vst.msk [vmem:[#allocation2 + $0x290] sm:$0xff] %vm663_vm0, %v2032_v57  ;;  %2558 = vmatmul.f32.gmra.mxu2 %v9856_v14  ;;  %2912 = vmatpush.msra.mxu0 %v10492_v24  ;;  %v10500_v14 = vld [vmem:[%s16650_s1 + $0xb0] sm:$0xff] }
 0x2c0   : > { %v12253_v9 = vpop.f32.mrf.mxu3  ;;  %2913 = vmatpush.msra.mxu0 %v10493_v63  ;;  %v10504_v63 = vld [vmem:[%s16650_s1 + $0x90] sm:$0xff] }
 0x2c1   : > { %v2012_v28 = vpop.f32.mrf.mxu2  ;;  %v1879_v45 = vpop.f32.mrf.mxu0 }
 0x2c2   : > { %v2013_v61 = vadd.f32 %v2012_v28, %v1945_v48  ;;  %v12255_v22 = vpop.f32.mrf.mxu1  ;;  %v1880_v32 = vadd.f32 %v11956_v37, %v1879_v45  ;;  %2914 = vmatpush.msra.mxu0 %v10494_v11  ;;  %v9819_v28 = vld [vmem:[%s10869_s28 + $0x9b8] sm:$0xff] }
 0x2c4   : > { %v2033_v52 = vmax.f32 %v2013_v61, 0.0  ;;  %2286 = vmatmul.f32.gmra.mxu0 %v9809_v0  ;;  %v1948_v37 = vadd.f32 %v12087_v21, %v1880_v32  ;;  %v9812_v21 = vld [vmem:[%s10869_s28 + $0x980] sm:$0xff]  ;;  %v9898_v61 = vld [vmem:[%s10869_s28 + $0xc30] sm:$0xff]  ;;  %v9839_v0 = vld [vmem:[%s10869_s28 + $0xa58] sm:$0xff] }
 0x2c5   : > { %2883 = vmatmul.f32.gmra.mxu1 %v9889_v58  ;;  %2599 = vmatmul.f32.gmra.mxu3 %v9830_v55  ;;  %v9872_v58 = vld [vmem:[%s10869_s28 + $0xb60] sm:$0xff]  ;;  %v2184_v55 = vadd.f32 %v12271_v29, %v12216_v49  ;;  %v10505_v49 = vld [vmem:[%s16650_s1 + $0x88] sm:$0xff] }
 0x2c6   : > { %2051 = vst.msk [vmem:[#allocation2 + $0x298] sm:$0xff] %vm663_vm0, %v2033_v52  ;;  %2561 = vmatmul.f32.gmra.mxu2 %v9859_v10  ;;  %2915 = vmatpush.msra.mxu0 %v10495_v7  ;;  %v10503_v10 = vld [vmem:[%s16650_s1 + $0x98] sm:$0xff] }
 0x2c8   : > { %v12280_v46 = vpop.f32.mrf.mxu3  ;;  %2916 = vmatpush.msra.mxu0 %v10496_v36 }
 0x2c9   : > { %v2015_v25 = vpop.f32.mrf.mxu2  ;;  %v2242_v59 = vpop.f32.mrf.mxu0 }
 0x2ca   : > { %v2016_v13 = vadd.f32 %v2015_v25, %v1948_v37  ;;  %v12285_v51 = vpop.f32.mrf.mxu1  ;;  %v2243_v41 = vadd.f32 %v2242_v59, %v2175_v30  ;;  %2917 = vmatpush.msra.mxu0 %v10497_v19  ;;  %v9822_v30 = vld [vmem:[%s10869_s28 + $0x9d0] sm:$0xff]  ;;  %v9901_v25 = vld [vmem:[%s10869_s28 + $0xc48] sm:$0xff]  ;;  %v9875_v59 = vld [vmem:[%s10869_s28 + $0xb78] sm:$0xff] }
 0x2cb   : > { %v9825_v19 = vld [vmem:[%s10869_s28 + $0x9e8] sm:$0xff] }
 0x2cc   : > { %v2034_v16 = vmax.f32 %v2016_v13, 0.0  ;;  %v2311_v35 = vadd.f32 %v12100_v53, %v2243_v41  ;;  %2289 = vmatmul.f32.gmra.mxu0 %v9812_v21  ;;  %v9842_v13 = vld [vmem:[%s10869_s28 + $0xa70] sm:$0xff] }
 0x2cd   : > { %2886 = vmatmul.f32.gmra.mxu1 %v9892_v6  ;;  %2602 = vmatmul.f32.gmra.mxu3 %v9833_v43  ;;  %v3117_v6 = vld [vmem:[%s16652_s3 + $0x18] sm:$0xff]  ;;  %v2187_v43 = vadd.f32 %v12271_v29, %v12236_v42  ;;  %v3114_v42 = vld [vmem:[%s16652_s3] sm:$0xff] }
 0x2ce   : > { %2052 = vst.msk [vmem:[#allocation2 + $0x2a0] sm:$0xff] %vm663_vm0, %v2034_v16  ;;  %2564 = vmatmul.f32.gmra.mxu2 %v9862_v27  ;;  %v2361_v12 = vmax.f32 %v2311_v35, 0.0  ;;  %2918 = vmatpush.msra.mxu0 %v10498_v44  ;;  %v10506_v27 = vld [vmem:[%s16650_s1 + $0x80] sm:$0xff]  ;;  %v3115_v44 = vld [vmem:[%s16652_s3 + $0x8] sm:$0xff] }
 0x2cf   : > { %3471 = vmatpush.msra.mxu1 %v3117_v6  ;;  %v9854_v6 = vld [vmem:[%s10869_s28 + $0xad0] sm:$0xff] }
 0x2d0   : > { %2379 = vst.msk [vmem:[#allocation2 + $0x2a8] sm:$0xff] %vm663_vm0, %v2361_v12  ;;  %v12302_v53 = vpop.f32.mrf.mxu3  ;;  %2919 = vmatpush.msra.mxu0 %v10499_v62 }
 0x2d1   : > { %v12304_v33 = vpop.f32.mrf.mxu2  ;;  %v2245_v34 = vpop.f32.mrf.mxu0 }
 0x2d2   : > { %v12309_v60 = vpop.f32.mrf.mxu1  ;;  %v2246_v26 = vadd.f32 %v2245_v34, %v2178_v56  ;;  %2920 = vmatpush.msra.mxu0 %v10500_v14  ;;  %v9904_v56 = vld [vmem:[%s10869_s28 + $0xc60] sm:$0xff] }
 0x2d4   : > { %v2314_v15 = vadd.f32 %v12113_v54, %v2246_v26  ;;  %2652 = vmatmul.f32.vlgmr.msrb.gmra.mxu0 %v9816_v40  ;;  %v9845_v40 = vld [vmem:[%s10869_s28 + $0xa88] sm:$0xff] }
 0x2d5   : > { %2889 = vmatmul.f32.gmra.mxu1 %v9895_v39  ;;  %2605 = vmatmul.f32.gmra.mxu3 %v9836_v47  ;;  %v9878_v39 = vld [vmem:[%s10869_s28 + $0xb90] sm:$0xff] }
 0x2d6   : > { %2930 = vmatmul.f32.vlgmr.msrb.gmra.mxu2 %v9869_v8  ;;  %v2362_v23 = vmax.f32 %v2314_v15, 0.0  ;;  %2921 = vmatpush.msra.mxu0 %v10501_v38  ;;  %v2190_v8 = vadd.f32 %v12271_v29, %v12253_v9 }
 0x2d8   : > { %2380 = vst.msk [vmem:[#allocation2 + $0x2b0] sm:$0xff] %vm663_vm0, %v2362_v23  ;;  %v12325_v54 = vpop.f32.mrf.mxu3  ;;  %2922 = vmatpush.msra.mxu0 %v10502_v3 }
 0x2d9   : > { %v12327_v57 = vpop.f32.mrf.mxu2  ;;  %v2248_v48 = vpop.f32.mrf.mxu0 }
 0x2da   : > { %v12332_v20 = vpop.f32.mrf.mxu1  ;;  %v2249_v45 = vadd.f32 %v2248_v48, %v2181_v2  ;;  %2923 = vmatpush.msra.mxu0 %v10503_v10  ;;  %v9907_v2 = vld [vmem:[%s10869_s28 + $0xc78] sm:$0xff]  ;;  %v9848_v48 = vld [vmem:[%s10869_s28 + $0xaa0] sm:$0xff] }
 0x2dc   : > { %v2317_v24 = vadd.f32 %v12126_v5, %v2249_v45  ;;  %2655 = vmatmul.f32.gmra.mxu0 %v9819_v28  ;;  %v9881_v28 = vld [vmem:[%s10869_s28 + $0xba8] sm:$0xff]  ;;  %v2193_v45 = vadd.f32 %v12271_v29, %v12280_v46 }
 0x2dd   : > { %2892 = vmatmul.f32.gmra.mxu1 %v9898_v61  ;;  %2608 = vmatmul.f32.gmra.mxu3 %v9839_v0 }
 0x2de   : > { %2933 = vmatmul.f32.gmra.mxu2 %v9872_v58  ;;  %v2363_v32 = vmax.f32 %v2317_v24, 0.0  ;;  %2924 = vmatpush.msra.mxu0 %v10504_v63  ;;  %v9884_v63 = vld [vmem:[%s10869_s28 + $0xbc0] sm:$0xff] }
 0x2e0   : > { %2381 = vst.msk [vmem:[#allocation2 + $0x2b8] sm:$0xff] %vm663_vm0, %v2363_v32  ;;  %v12348_v5 = vpop.f32.mrf.mxu3  ;;  %2925 = vmatpush.msra.mxu0 %v10505_v49  ;;  %v9831_v32 = vld [vmem:[%s10869_s28 + $0xa18] sm:$0xff]  ;;  %v9834_v49 = vld [vmem:[%s10869_s28 + $0xa30] sm:$0xff] }
 0x2e1   : > { %v12350_v52 = vpop.f32.mrf.mxu2  ;;  %v2251_v37 = vpop.f32.mrf.mxu0 }
 0x2e2   : > { %v12355_v11 = vpop.f32.mrf.mxu1  ;;  %v2252_v7 = vadd.f32 %v2251_v37, %v2184_v55  ;;  %2926 = vmatpush.msra.mxu0 %v10506_v27  ;;  %v9851_v55 = vld [vmem:[%s10869_s28 + $0xab8] sm:$0xff] }
 0x2e4   : > { %v2320_v21 = vadd.f32 %v12137_v50, %v2252_v7  ;;  %2658 = vmatmul.f32.gmra.mxu0 %v9822_v30  ;;  %v3116_v50 = vld [vmem:[%s16652_s3 + $0x10] sm:$0xff]  ;;  %v2196_v30 = vadd.f32 %v12271_v29, %v12302_v53 }
 0x2e5   : > { %2895 = vmatmul.f32.gmra.mxu1 %v9901_v25  ;;  %2611 = vmatmul.f32.gmra.mxu3 %v9842_v13 }
 0x2e6   : > { %2936 = vmatmul.f32.gmra.mxu2 %v9875_v59  ;;  %v2364_v41 = vmax.f32 %v2320_v21, 0.0  ;;  %3472 = vmatpush.msra.mxu1 %v3116_v50  ;;  %v2199_v50 = vadd.f32 %v12271_v29, %v12325_v54 }
 0x2e8   : > { %2382 = vst.msk [vmem:[#allocation2 + $0x2c0] sm:$0xff] %vm663_vm0, %v2364_v41  ;;  %v12377_v36 = vpop.f32.mrf.mxu3  ;;  %3473 = vmatpush.msra.mxu1 %v3115_v44  ;;  %v9887_v41 = vld [vmem:[%s10869_s28 + $0xbd8] sm:$0xff]  ;;  %v9837_v44 = vld [vmem:[%s10869_s28 + $0xa48] sm:$0xff] }
 0x2e9   : > { %v12379_v16 = vpop.f32.mrf.mxu2  ;;  %v2254_v35 = vpop.f32.mrf.mxu0 }
 0x2ea   : > { %v12381_v12 = vpop.f32.mrf.mxu1  ;;  %v2255_v34 = vadd.f32 %v2254_v35, %v2187_v43  ;;  %3474 = vmatpush.msra.mxu1 %v3114_v42 }
 0x2ec   : > { %v2323_v26 = vadd.f32 %v12155_v1, %v2255_v34  ;;  %2661 = vmatmul.f32.gmra.mxu0 %v9825_v19  ;;  %v9828_v1 = vld [vmem:[%s10869_s28 + $0xa00] sm:$0xff] }
 0x2ed   : > { %2898 = vmatmul.f32.gmra.mxu1 %v9904_v56  ;;  %2614 = vmatmul.f32.gmra.mxu3 %v9845_v40  ;;  %v9890_v40 = vld [vmem:[%s10869_s28 + $0xbf0] sm:$0xff] }
 0x2ee   : > { %2939 = vmatmul.f32.gmra.mxu2 %v9878_v39  ;;  %v2365_v47 = vmax.f32 %v2323_v26, 0.0  ;;  %v3082_v39 = vld [vmem:[#allocation2] sm:$0xff]  ;;  %v2202_v26 = vadd.f32 %v12271_v29, %v12348_v5 }
 0x2f0   : > { %2383 = vst.msk [vmem:[#allocation2 + $0x2c8] sm:$0xff] %vm663_vm0, %v2365_v47  ;;  %v12397_v62 = vpop.f32.mrf.mxu3 }
 0x2f1   : > { %v12399_v15 = vpop.f32.mrf.mxu2  ;;  %v2257_v23 = vpop.f32.mrf.mxu0 }
 0x2f2   : > { %v12401_v14 = vpop.f32.mrf.mxu1  ;;  %v2258_v38 = vadd.f32 %v2257_v23, %v2190_v8 }
 0x2f4   : > { %v2326_v61 = vadd.f32 %v12178_v17, %v2258_v38  ;;  %2664 = vmatmul.f32.gmra.mxu0 %v9828_v1  ;;  %v9910_v17 = vld [vmem:[%s10869_s28 + $0xc90] sm:$0xff]  ;;  %v9860_v38 = vld [vmem:[%s10869_s28 + $0xb00] sm:$0xff] }
 0x2f5   : > { %2901 = vmatmul.f32.gmra.mxu1 %v9907_v2  ;;  %2617 = vmatmul.f32.gmra.mxu3 %v9848_v48  ;;  %v9840_v2 = vld [vmem:[%s10869_s28 + $0xa60] sm:$0xff]  ;;  %v9893_v48 = vld [vmem:[%s10869_s28 + $0xc08] sm:$0xff] }
 0x2f6   : > { %2942 = vmatmul.f32.gmra.mxu2 %v9881_v28  ;;  %v2366_v9 = vmax.f32 %v2326_v61, 0.0  ;;  %v3083_v28 = vld [vmem:[#allocation2 + $0x8] sm:$0xff] }
 0x2f8   : > { %2384 = vst.msk [vmem:[#allocation2 + $0x2d0] sm:$0xff] %vm663_vm0, %v2366_v9  ;;  %v12411_v0 = vpop.f32.mrf.mxu3  ;;  %v2205_v9 = vadd.f32 %v12271_v29, %v12377_v36  ;;  %v3084_v36 = vld [vmem:[#allocation2 + $0x10] sm:$0xff] }
 0x2f9   : > { %v12413_v58 = vpop.f32.mrf.mxu2  ;;  %v2260_v3 = vpop.f32.mrf.mxu0 }
 0x2fa   : > { %v12415_v24 = vpop.f32.mrf.mxu1  ;;  %v2261_v10 = vadd.f32 %v2260_v3, %v2193_v45 }
 0x2fc   : > { %v2329_v37 = vadd.f32 %v12198_v18, %v2261_v10  ;;  %2667 = vmatmul.f32.gmra.mxu0 %v9831_v32  ;;  %v9913_v18 = vld [vmem:[%s10869_s28 + $0xca8] sm:$0xff]  ;;  %v9843_v10 = vld [vmem:[%s10869_s28 + $0xa78] sm:$0xff] }
 0x2fd   : > { %2904 = vmatmul.f32.gmra.mxu1 %v9910_v17  ;;  %2620 = vmatmul.f32.gmra.mxu3 %v9851_v55  ;;  %v9863_v55 = vld [vmem:[%s10869_s28 + $0xb18] sm:$0xff] }
 0x2fe   : > { %2945 = vmatmul.f32.gmra.mxu2 %v9884_v63  ;;  %v2367_v46 = vmax.f32 %v2329_v37, 0.0  ;;  %v9896_v63 = vld [vmem:[%s10869_s28 + $0xc20] sm:$0xff]  ;;  %v10522_v37 = vmov 0  }
 0x2ff   : > { %10479 = vset.pattern.permute.xlu0 %v10522_v37  ;;  %10480 = vset.pattern.permute.xlu1 %v10522_v37 }
 0x300   : > { %2385 = vst.msk [vmem:[#allocation2 + $0x2d8] sm:$0xff] %vm663_vm0, %v2367_v46  ;;  %v12425_v25 = vpop.f32.mrf.mxu3  ;;  %v12479_v46 = vld [vmem:[%s16655_s6 + $0x78] sm:$0xff]  ;;  %10481 = vset.pattern.permute.xlu2 %v10522_v37  ;;  %v3605_v37 = vld [vmem:[%s16652_s3 + $0x48] sm:$0xff] }
 0x301   : > { %v12427_v7 = vpop.f32.mrf.mxu2  ;;  %v2263_v13 = vpop.f32.mrf.mxu0  ;;  %5479 = vperm.xlu0 %10479, %v12479_v46  }
 0x302   : > { %v12429_v59 = vpop.f32.mrf.mxu1  ;;  %v2264_v21 = vadd.f32 %v2263_v13, %v2196_v30 }
 0x304   : > { %v2332_v27 = vadd.f32 %v12218_v31, %v2264_v21  ;;  %2670 = vmatmul.f32.gmra.mxu0 %v9834_v49  ;;  %v9857_v31 = vld [vmem:[%s10869_s28 + $0xae8] sm:$0xff]  ;;  %v2208_v49 = vadd.f32 %v12271_v29, %v12397_v62  ;;  %v5384_v62 = vld [vmem:[%s16655_s6 + $0x70] sm:$0xff] }
 0x305   : > { %2907 = vmatmul.f32.gmra.mxu1 %v9913_v18  ;;  %2623 = vmatmul.f32.gmra.mxu3 %v9854_v6 }
 0x306   : > { %2948 = vmatmul.f32.gmra.mxu2 %v9887_v41  ;;  %v2368_v53 = vmax.f32 %v2332_v27, 0.0  ;;  %v9846_v27 = vld [vmem:[%s10869_s28 + $0xa90] sm:$0xff] }
 0x308   : > { %2386 = vst.msk [vmem:[#allocation2 + $0x2e0] sm:$0xff] %vm663_vm0, %v2368_v53  ;;  %v12439_v43 = vpop.f32.mrf.mxu3 }
 0x309   : > { %v12441_v35 = vpop.f32.mrf.mxu2  ;;  %v2266_v19 = vpop.f32.mrf.mxu0  ;;  %5474 = vperm.xlu0 %10479, %v5384_v62  }
 0x30a   : > { %v12443_v56 = vpop.f32.mrf.mxu1  ;;  %v2267_v34 = vadd.f32 %v2266_v19, %v2199_v50  ;;  %v9899_v50 = vld [vmem:[%s10869_s28 + $0xc38] sm:$0xff] }
 0x30b   : > { %v9867_v19 = vld [vmem:[%s10869_s28 + $0xb38] sm:$0xff] }
 0x30c   : > { %v2335_v42 = vadd.f32 %v12238_v4, %v2267_v34  ;;  %2673 = vmatmul.f32.gmra.mxu0 %v9837_v44  ;;  %v3085_v44 = vld [vmem:[#allocation2 + $0x18] sm:$0xff] }
 0x30d   : > { %9948 = vmatmul.msk.f32.vlgmr.msra.gmra.mxu1 %vm663_vm0, %v3082_v39  ;;  %2626 = vmatmul.f32.gmra.mxu3 %v9857_v31 }
 0x30e   : > { %2951 = vmatmul.f32.gmra.mxu2 %v9890_v40  ;;  %v2369_v54 = vmax.f32 %v2335_v42, 0.0  ;;  %v2211_v40 = vadd.f32 %v12271_v29, %v12411_v0  ;;  %v9870_v0 = vld [vmem:[%s10869_s28 + $0xb50] sm:$0xff] }
 0x310   : > { %2387 = vst.msk [vmem:[#allocation2 + $0x2e8] sm:$0xff] %vm663_vm0, %v2369_v54  ;;  %v12453_v47 = vpop.f32.mrf.mxu3 }
 0x311   : > { %v12455_v8 = vpop.f32.mrf.mxu2  ;;  %v2269_v23 = vpop.f32.mrf.mxu0 }
 0x312   : > { %v12457_v1 = vpop.f32.mrf.mxu1  ;;  %v2270_v4 = vadd.f32 %v2269_v23, %v2202_v26  ;;  %v9849_v23 = vld [vmem:[%s10869_s28 + $0xaa8] sm:$0xff] }
 0x314   : > { %v2338_v61 = vadd.f32 %v12255_v22, %v2270_v4  ;;  %2676 = vmatmul.f32.gmra.mxu0 %v9840_v2  ;;  %v9902_v4 = vld [vmem:[%s10869_s28 + $0xc50] sm:$0xff] }
 0x315   : > { %9949 = vmatmul.msk.f32.gmra.mxu1 %vm663_vm0, %v3083_v28  ;;  %2629 = vmatmul.f32.gmra.mxu3 %v9860_v38  ;;  %v12525_v38 = vld [vmem:[%s16655_s6 + $0x50] sm:$0xff] }
 0x316   : > { %2954 = vmatmul.f32.gmra.mxu2 %v9893_v48  ;;  %v2370_v5 = vmax.f32 %v2338_v61, 0.0  ;;  %v3086_v48 = vld [vmem:[#allocation2 + $0x88] sm:$0xff]  ;;  %5454 = vperm.xlu0 %10479, %v12525_v38   ;;  %v3607_v61 = vld [vmem:[%s16652_s3 + $0x58] sm:$0xff] }
 0x317   : > { %3716 = vmatpush.msra.mxu2 %v3607_v61 }
 0x318   : > { %2388 = vst.msk [vmem:[#allocation2 + $0x2f0] sm:$0xff] %vm663_vm0, %v2370_v5  ;;  %v12467_v45 = vpop.f32.mrf.mxu3 }
 0x319   : > { %v12469_v3 = vpop.f32.mrf.mxu2  ;;  %v2272_v32 = vpop.f32.mrf.mxu0 }
 0x31a   : > { %v12471_v17 = vpop.f32.mrf.mxu1  ;;  %v2273_v22 = vadd.f32 %v2272_v32, %v2205_v9  ;;  %v3606_v9 = vld [vmem:[%s16652_s3 + $0x50] sm:$0xff] }
 0x31b   : > { %3717 = vmatpush.msra.mxu2 %v3606_v9 }
 0x31c   : > { %v2341_v30 = vadd.f32 %v12285_v51, %v2273_v22  ;;  %2679 = vmatmul.f32.gmra.mxu0 %v9843_v10  ;;  %v5383_v51 = vld [vmem:[%s16655_s6 + $0x68] sm:$0xff] }
 0x31d   : > { %9950 = vmatmul.msk.f32.gmra.mxu1 %vm663_vm0, %v3084_v36  ;;  %2632 = vmatmul.f32.gmra.mxu3 %v9863_v55 }
 0x31e   : > { %2957 = vmatmul.f32.gmra.mxu2 %v9896_v63  ;;  %v2371_v13 = vmax.f32 %v2341_v30, 0.0  ;;  %5469 = vperm.xlu1 %10480, %v5383_v51   ;;  %v9852_v63 = vld [vmem:[%s10869_s28 + $0xac0] sm:$0xff]  ;;  %v9905_v30 = vld [vmem:[%s10869_s28 + $0xc68] sm:$0xff] }
 0x31f   : > { %3718 = vmatpush.msra.mxu2 %v3605_v37  ;;  %5989 = vperm.xlu0 %10479, %v5383_v51   ;;  %v2217_v51 = vadd.f32 %v12271_v29, %v12439_v43  ;;  %v9876_v43 = vld [vmem:[%s10869_s28 + $0xb80] sm:$0xff]  ;;  %v9879_v37 = vld [vmem:[%s10869_s28 + $0xb98] sm:$0xff] }
 0x320   : > { %2389 = vst.msk [vmem:[#allocation2 + $0x2f8] sm:$0xff] %vm663_vm0, %v2371_v13  ;;  %v12489_v21 = vpop.f32.mrf.mxu3  ;;  %v9873_v13 = vld [vmem:[%s10869_s28 + $0xb68] sm:$0xff] }
 0x321   : > { %v12487_v18 = vpop.f32.mrf.mxu2  ;;  %v2275_v6 = vpop.f32.mrf.mxu0 }
 0x322   : > { %v12494_v41 = vpop.f32.mrf.mxu1  ;;  %v2276_v53 = vadd.f32 %v2275_v6, %v2208_v49  ;;  %v3604_v49 = vld [vmem:[%s16652_s3 + $0x40] sm:$0xff] }
 0x323   : > { %3719 = vmatpush.msra.mxu2 %v3604_v49 }
 0x324   : > { %v2344_v34 = vadd.f32 %v12309_v60, %v2276_v53  ;;  %2682 = vmatmul.f32.gmra.mxu0 %v9846_v27  ;;  %v12514_v60 = vld [vmem:[%s16655_s6 + $0x60] sm:$0xff]  ;;  %v5381_v27 = vld [vmem:[%s16655_s6 + $0x58] sm:$0xff] }
 0x325   : > { %9951 = vmatmul.msk.f32.gmra.mxu1 %vm663_vm0, %v3085_v44  ;;  %2995 = vmatmul.f32.vlgmr.msra.gmra.mxu3 %v9867_v19  ;;  %v12569_v19 = vld [vmem:[%s16655_s6 + $0x40] sm:$0xff] }
 0x326   : > { %2960 = vmatmul.f32.gmra.mxu2 %v9899_v50  ;;  %v2372_v31 = vmax.f32 %v2344_v34, 0.0  ;;  %5464 = vperm.xlu1 %10480, %v12514_v60   ;;  %v9855_v34 = vld [vmem:[%s10869_s28 + $0xad8] sm:$0xff] }
 0x327   : > { %5459 = vperm.xlu2 %10481, %v5381_v27  }
 0x328   : > { %2390 = vst.msk [vmem:[#allocation2 + $0x300] sm:$0xff] %vm663_vm0, %v2372_v31  ;;  %v12509_v42 = vpop.f32.mrf.mxu3 }
 0x329   : > { %v12507_v39 = vpop.f32.mrf.mxu2  ;;  %v2278_v54 = vpop.f32.mrf.mxu0 }
 0x32a   : > { %v12516_v26 = vpop.f32.mrf.mxu1  ;;  %v2279_v2 = vadd.f32 %v2278_v54, %v2211_v40  ;;  %v9908_v40 = vld [vmem:[%s10869_s28 + $0xc80] sm:$0xff]  ;;  %v12580_v54 = vld [vmem:[%s16655_s6 + $0x38] sm:$0xff] }
 0x32b   : > { %5439 = vperm.xlu0 %10479, %v12580_v54  }
 0x32c   : > { %v2347_v28 = vadd.f32 %v12332_v20, %v2279_v2  ;;  %2685 = vmatmul.f32.gmra.mxu0 %v9849_v23  ;;  %v2214_v20 = vadd.f32 %v12271_v29, %v12425_v25  ;;  %v3087_v25 = vld [vmem:[#allocation2 + $0x90] sm:$0xff]  ;;  %v3088_v23 = vld [vmem:[#allocation2 + $0x98] sm:$0xff] }
 0x32d   : > { %9952 = vmatmul.msk.f32.gmra.mxu1 %vm663_vm0, %v3086_v48  ;;  %2998 = vmatmul.f32.gmra.mxu3 %v9870_v0  ;;  %v2220_v48 = vadd.f32 %v12271_v29, %v12453_v47  ;;  %v3089_v47 = vld [vmem:[#allocation2 + $0xa0] sm:$0xff] }
 0x32e   : > { %2963 = vmatmul.f32.gmra.mxu2 %v9902_v4  ;;  %v2373_v5 = vmax.f32 %v2347_v28, 0.0  ;;  %5994 = vperm.xlu1 %10480, %v5384_v62   ;;  %v3153_v4 = vld [vmem:[%s16652_s3 + $0x38] sm:$0xff] }
 0x32f   : > { %5999 = vperm.xlu2 %10481, %v12479_v46   ;;  %3262 = vmatpush.msrb.mxu0 %v3153_v4  ;;  %v3151_v46 = vld [vmem:[%s16652_s3 + $0x28] sm:$0xff] }
 0x330   : > { %2391 = vst.msk [vmem:[#allocation2 + $0x308] sm:$0xff] %vm663_vm0, %v2373_v5  ;;  %v12541_v10 = vpop.f32.mrf.mxu3 }
 0x331   : > { %v12539_v32 = vpop.f32.mrf.mxu2  ;;  %v2281_v22 = vpop.f32.mrf.mxu0 }
 0x332   : > { %v12543_v55 = vpop.f32.mrf.mxu1  ;;  %v2282_v36 = vadd.f32 %v2281_v22, %v2214_v20  ;;  %v9858_v20 = vld [vmem:[%s10869_s28 + $0xaf0] sm:$0xff] }
 0x333   : > { %5974 = vperm.xlu0 %10479, %v12525_v38  }
 0x334   : > { %v2350_v6 = vadd.f32 %v12355_v11, %v2282_v36  ;;  %2688 = vmatmul.f32.gmra.mxu0 %v9852_v63  ;;  %v9911_v63 = vld [vmem:[%s10869_s28 + $0xc98] sm:$0xff]  ;;  %v3150_v36 = vld [vmem:[%s16652_s3 + $0x20] sm:$0xff] }
 0x335   : > { %9953 = vmatmul.msk.f32.gmra.mxu1 %vm663_vm0, %v3087_v25  ;;  %3001 = vmatmul.f32.gmra.mxu3 %v9873_v13  ;;  %v12616_v13 = vld [vmem:[%s16655_s6 + $0x48] sm:$0xff]  ;;  %v2223_v25 = vadd.f32 %v12271_v29, %v12467_v45  ;;  %v3090_v29 = vld [vmem:[#allocation2 + $0x110] sm:$0xff]  ;;  %v12645_v45 = vld [vmem:[%s16655_s6 + $0x20] sm:$0xff] }
 0x336   : > { %2966 = vmatmul.f32.gmra.mxu2 %v9905_v30  ;;  %v2374_v53 = vmax.f32 %v2350_v6, 0.0  ;;  %5444 = vperm.xlu1 %10480, %v12569_v19  }
 0x337   : > { %5449 = vperm.xlu2 %10481, %v12616_v13  }
 0x338   : > { %2392 = vst.msk [vmem:[#allocation2 + $0x310] sm:$0xff] %vm663_vm0, %v2374_v53  ;;  %v12564_v50 = vpop.f32.mrf.mxu3 }
 0x339   : > { %v12562_v11 = vpop.f32.mrf.mxu2  ;;  %v2284_v62 = vpop.f32.mrf.mxu0 }
 0x33a   : > { %v12571_v44 = vpop.f32.mrf.mxu1  ;;  %v2285_v31 = vadd.f32 %v2284_v62, %v2217_v51  ;;  %v9861_v51 = vld [vmem:[%s10869_s28 + $0xb08] sm:$0xff] }
 0x33b   : > { %v12637_v62 = vld [vmem:[%s16655_s6 + $0x28] sm:$0xff]  ;;  %5424 = vperm.xlu0 %10479, %v12645_v45  }
 0x33c   : > { %v2353_v2 = vadd.f32 %v12381_v12, %v2285_v31  ;;  %2691 = vmatmul.f32.gmra.mxu0 %v9855_v34  ;;  %v3152_v12 = vld [vmem:[%s16652_s3 + $0x30] sm:$0xff] }
 0x33d   : > { %9954 = vmatmul.msk.f32.gmra.mxu1 %vm663_vm0, %v3088_v23  ;;  %3004 = vmatmul.f32.gmra.mxu3 %v9876_v43  ;;  %v9914_v31 = vld [vmem:[%s10869_s28 + $0xcb0] sm:$0xff] }
 0x33e   : > { %2969 = vmatmul.f32.gmra.mxu2 %v9908_v40  ;;  %v2375_v0 = vmax.f32 %v2353_v2, 0.0  ;;  %3263 = vmatpush.msrb.mxu0 %v3152_v12  ;;  %v9882_v40 = vld [vmem:[%s10869_s28 + $0xbb0] sm:$0xff] }
 0x33f   : > { %5979 = vperm.xlu1 %10480, %v5381_v27   ;;  %5984 = vperm.xlu2 %10481, %v12514_v60  }
 0x340   : > { %2393 = vst.msk [vmem:[#allocation2 + $0x318] sm:$0xff] %vm663_vm0, %v2375_v0  ;;  %v12597_v61 = vpop.f32.mrf.mxu3  ;;  %3264 = vmatpush.msrb.mxu0 %v3151_v46  ;;  %v3091_v46 = vld [vmem:[#allocation2 + $0x118] sm:$0xff] }
 0x341   : > { %v12595_v28 = vpop.f32.mrf.mxu2  ;;  %v2287_v5 = vpop.f32.mrf.mxu0 }
 0x342   : > { %v12599_v9 = vpop.f32.mrf.mxu1  ;;  %v2288_v22 = vadd.f32 %v2287_v5, %v2220_v48  ;;  %3265 = vmatpush.msrb.mxu0 %v3150_v36  ;;  %v9864_v48 = vld [vmem:[%s10869_s28 + $0xb20] sm:$0xff] }
 0x343   : > { %5959 = vperm.xlu0 %10479, %v12580_v54   ;;  %v3092_v54 = vld [vmem:[#allocation2 + $0x120] sm:$0xff] }
 0x344   : > { %v2356_v30 = vadd.f32 %v12401_v14, %v2288_v22  ;;  %2694 = vmatmul.f32.gmra.mxu0 %v9858_v20  ;;  %v12622_v14 = vld [vmem:[%s16651_s2] ss:$0 sm:$0xff]  ;;  %v9885_v20 = vld [vmem:[%s10869_s28 + $0xbc8] sm:$0xff] }
 0x345   : > { %9955 = vmatmul.msk.f32.gmra.mxu1 %vm663_vm0, %v3089_v47  ;;  %3007 = vmatmul.f32.gmra.mxu3 %v9879_v37  ;;  %v2518_v43 = vadd.f32 %v12622_v14, %v12304_v33  ;;  %v2521_v60 = vadd.f32 %v12622_v14, %v12327_v57  ;;  %v3572_v22 = vld [vmem:[#allocation2 + $0x21] sm:$0xff] }
 0x346   : > { %2972 = vmatmul.f32.gmra.mxu2 %v9911_v63  ;;  %v2376_v38 = vmax.f32 %v2356_v30, 0.0  ;;  %v12671_v63 = vld [vmem:[%s16655_s6 + $0x30] sm:$0xff] }
 0x347   : > { %5429 = vperm.xlu1 %10480, %v12637_v62   ;;  %v2586_v4 = vadd.f32 %v12489_v21, %v2518_v43  ;;  %5434 = vperm.xlu2 %10481, %v12671_v63   ;;  %v2589_v57 = vadd.f32 %v12509_v42, %v2521_v60  ;;  %v9866_v30 = vld [vmem:[%s10869_s28 + $0xb30] sm:$0xff]  ;;  %v2524_v42 = vadd.f32 %v12622_v14, %v12350_v52 }
 0x348   : > { %2394 = vst.msk [vmem:[#allocation2 + $0x320] sm:$0xff] %vm663_vm0, %v2376_v38  ;;  %v12629_v6 = vpop.f32.mrf.mxu3  ;;  %v12687_v38 = vld [vmem:[%s16655_s6 + $0x10] sm:$0xff] }
 0x349   : > { %v12627_v49 = vpop.f32.mrf.mxu2  ;;  %v2290_v27 = vpop.f32.mrf.mxu0  ;;  %v2592_v52 = vadd.f32 %v12541_v10, %v2524_v42  ;;  %v3574_v10 = vld [vmem:[#allocation2 + $0x31] sm:$0xff] }
 0x34a   : > { %v12631_v53 = vpop.f32.mrf.mxu1  ;;  %v2291_v34 = vadd.f32 %v2290_v27, %v2223_v25  ;;  %v9888_v27 = vld [vmem:[%s10869_s28 + $0xbe0] sm:$0xff] }
 0x34c   : > { %v2359_v23 = vadd.f32 %v12415_v24, %v2291_v34  ;;  %2697 = vmatmul.f32.gmra.mxu0 %v9861_v51  ;;  %v3573_v34 = vld [vmem:[#allocation2 + $0x29] sm:$0xff] }
 0x34d   : > { %9956 = vmatmul.msk.f32.gmra.mxu1 %vm663_vm0, %v3090_v29  ;;  %3010 = vmatmul.f32.gmra.mxu3 %v9882_v40 }
 0x34e   : > { %2975 = vmatmul.f32.gmra.mxu2 %v9914_v31  ;;  %v2377_v2 = vmax.f32 %v2359_v23, 0.0  ;;  %v5371_v31 = vld [vmem:[%s16655_s6 + $0x8] sm:$0xff] }
 0x34f   : > { %5964 = vperm.xlu1 %10480, %v12569_v19   ;;  %5409 = vperm.xlu0 %10479, %v5371_v31  }
 0x350   : > { %2395 = vst.msk [vmem:[#allocation2 + $0x328] sm:$0xff] %vm663_vm0, %v2377_v2  ;;  %v12657_v33 = vpop.f32.mrf.mxu3  ;;  %5969 = vperm.xlu2 %10481, %v12616_v13  }
 0x351   : > { %v12655_v0 = vpop.f32.mrf.mxu2  ;;  %v2653_v24 = vpop.f32.mrf.mxu0 }
 0x352   : > { %v12659_v12 = vpop.f32.mrf.mxu1  ;;  %v2654_v5 = vadd.f32 %v2653_v24, %v2586_v4  ;;  %v9891_v4 = vld [vmem:[%s10869_s28 + $0xbf8] sm:$0xff]  ;;  %v3118_v24 = vld [vmem:[#allocation2 + $0x1] sm:$0xff] }
 0x354   : > { %v2704_v21 = vmax.f32 %v2654_v5, 0.0  ;;  %2700 = vmatmul.f32.gmra.mxu0 %v9864_v48  ;;  %v3093_v48 = vld [vmem:[#allocation2 + $0x128] sm:$0xff]  ;;  %v2527_v5 = vadd.f32 %v12622_v14, %v12379_v16 }
 0x355   : > { %9957 = vmatmul.msk.f32.gmra.mxu1 %vm663_vm0, %v3091_v46  ;;  %3013 = vmatmul.f32.gmra.mxu3 %v9885_v20 }
 0x356   : > { %9980 = vmatmul.msk.f32.vlgmr.msra.gmra.mxu2 %vm663_vm0, %v3572_v22  ;;  %2722 = vst.msk [vmem:[#allocation2 + $0x330] sm:$0xff] %vm663_vm0, %v2704_v21  ;;  %v2595_v16 = vadd.f32 %v12564_v50, %v2527_v5  ;;  %v3575_v50 = vld [vmem:[#allocation2 + $0x39] sm:$0xff]  ;;  %v12759_v5 = vld [vmem:[%s16655_s6 + $0xf0] sm:$0xff] }
 0x357   : > { %5414 = vperm.xlu1 %10480, %v12687_v38   ;;  %5944 = vperm.xlu0 %10479, %v12645_v45   ;;  %v3119_v45 = vld [vmem:[#allocation2 + $0x9] sm:$0xff] }
 0x358   : > { %v12677_v19 = vpop.f32.mrf.mxu3 }
 0x359   : > { %v12679_v37 = vpop.f32.mrf.mxu2  ;;  %v2656_v47 = vpop.f32.mrf.mxu0 }
 0x35a   : > { %v12681_v36 = vpop.f32.mrf.mxu1  ;;  %v2657_v25 = vadd.f32 %v2656_v47, %v2589_v57  ;;  %v9894_v47 = vld [vmem:[%s10869_s28 + $0xc10] sm:$0xff] }
 0x35c   : > { %v2705_v51 = vmax.f32 %v2657_v25, 0.0  ;;  %2927 = vmatmul.f32.vlgmr.msra.gmra.mxu0 %v9866_v30  ;;  %v3094_v30 = vld [vmem:[#allocation2 + $0x198] sm:$0xff]  ;;  %v2530_v25 = vadd.f32 %v12622_v14, %v12399_v15 }
 0x35d   : > { %9958 = vmatmul.msk.f32.gmra.mxu1 %vm663_vm0, %v3092_v54  ;;  %3016 = vmatmul.f32.gmra.mxu3 %v9888_v27 }
 0x35e   : > { %9981 = vmatmul.msk.f32.gmra.mxu2 %vm663_vm0, %v3573_v34  ;;  %2723 = vst.msk [vmem:[#allocation2 + $0x338] sm:$0xff] %vm663_vm0, %v2705_v51  ;;  %v2598_v54 = vadd.f32 %v12597_v61, %v2530_v25  ;;  %v2533_v61 = vadd.f32 %v12622_v14, %v12413_v58  ;;  %v3096_v25 = vld [vmem:[#allocation2 + $0x1a8] sm:$0xff] }
 0x35f   : > { %5949 = vperm.xlu1 %10480, %v12637_v62   ;;  %v12719_v62 = vld [vmem:[%s16655_s6 + $0x18] sm:$0xff]  ;;  %5929 = vperm.xlu0 %10479, %v5371_v31  }
 0x360   : > { %v12701_v40 = vpop.f32.mrf.mxu3  ;;  %5419 = vperm.xlu2 %10481, %v12719_v62   ;;  %v3120_v31 = vld [vmem:[#allocation2 + $0x11] sm:$0xff]  ;;  %v2601_v58 = vadd.f32 %v12629_v6, %v2533_v61  ;;  %v2536_v6 = vadd.f32 %v12622_v14, %v12427_v7 }
 0x361   : > { %v12703_v29 = vpop.f32.mrf.mxu2  ;;  %v2659_v43 = vpop.f32.mrf.mxu0 }
 0x362   : > { %v12705_v23 = vpop.f32.mrf.mxu1  ;;  %v2660_v2 = vadd.f32 %v2659_v43, %v2592_v52  ;;  %v12748_v52 = vld [vmem:[%s16655_s6] sm:$0xff]  ;;  %v2604_v7 = vadd.f32 %v12657_v33, %v2536_v6  ;;  %v2539_v33 = vadd.f32 %v12622_v14, %v12441_v35 }
 0x363   : > { %16703 = vst [vmem:[#allocation5_spill] sm:$0xff] %v12748_v52 }
 0x364   : > { %v2706_v20 = vmax.f32 %v2660_v2, 0.0  ;;  %9916 = vmatmul.msk.f32.vlgmr.msrb.gmra.mxu0 %vm663_vm0, %v3118_v24  ;;  %v9897_v2 = vld [vmem:[%s10869_s28 + $0xc28] sm:$0xff]  ;;  %v2607_v35 = vadd.f32 %v12677_v19, %v2539_v33  ;;  %v3123_v19 = vld [vmem:[#allocation2 + $0x91] sm:$0xff] }
 0x365   : > { %9959 = vmatmul.msk.f32.gmra.mxu1 %vm663_vm0, %v3093_v48  ;;  %3019 = vmatmul.f32.gmra.mxu3 %v9891_v4  ;;  %v3095_v4 = vld [vmem:[#allocation2 + $0x1a0] sm:$0xff]  ;;  %v3576_v48 = vld [vmem:[#allocation2 + $0xa9] sm:$0xff] }
 0x366   : > { %9982 = vmatmul.msk.f32.gmra.mxu2 %vm663_vm0, %v3574_v10  ;;  %2724 = vst.msk [vmem:[#allocation2 + $0x340] sm:$0xff] %vm663_vm0, %v2706_v20  ;;  %v3579_v33 = vld [vmem:[#allocation2 + $0xc1] sm:$0xff] }
 0x367   : > { %5939 = vperm.xlu1 %10480, %v12719_v62   ;;  %5554 = vperm.xlu0 %10479, %v12759_v5  }
 0x368   : > { %v12723_v46 = vpop.f32.mrf.mxu3  ;;  %5954 = vperm.xlu2 %10481, %v12671_v63  }
 0x369   : > { %v12725_v60 = vpop.f32.mrf.mxu2  ;;  %v2662_v21 = vpop.f32.mrf.mxu0 }
 0x36a   : > { %v12727_v22 = vpop.f32.mrf.mxu1  ;;  %v2663_v57 = vadd.f32 %v2662_v21, %v2595_v16 }
 0x36c   : > { %v2707_v27 = vmax.f32 %v2663_v57, 0.0  ;;  %9917 = vmatmul.msk.f32.gmra.mxu0 %vm663_vm0, %v3119_v45  ;;  %v12775_v57 = vld [vmem:[%s16655_s6 + $0xe8] sm:$0xff]  ;;  %v9900_v45 = vld [vmem:[%s10869_s28 + $0xc40] sm:$0xff] }
 0x36d   : > { %9960 = vmatmul.msk.f32.gmra.mxu1 %vm663_vm0, %v3094_v30  ;;  %3022 = vmatmul.f32.gmra.mxu3 %v9894_v47  ;;  %v3121_v30 = vld [vmem:[#allocation2 + $0x19] sm:$0xff] }
 0x36e   : > { %9983 = vmatmul.msk.f32.gmra.mxu2 %vm663_vm0, %v3575_v50  ;;  %2725 = vst.msk [vmem:[#allocation2 + $0x348] sm:$0xff] %vm663_vm0, %v2707_v27  ;;  %v3577_v50 = vld [vmem:[#allocation2 + $0xb1] sm:$0xff] }
 0x36f   : > { %5924 = vperm.xlu1 %10480, %v12748_v52  }
 0x370   : > { %v12739_v42 = vpop.f32.mrf.mxu3  ;;  %5404 = vperm.xlu2 %10481, %v12748_v52   ;;  %v2557_v52 = vadd.f32 %v12622_v14, %v12562_v11  ;;  %v12985_v11 = vld [vmem:[%s16655_s6 + $0xa0] sm:$0xff] }
 0x371   : > { %v12741_v15 = vpop.f32.mrf.mxu2  ;;  %v2665_v51 = vpop.f32.mrf.mxu0 }
 0x372   : > { %v12743_v34 = vpop.f32.mrf.mxu1  ;;  %v2666_v43 = vadd.f32 %v2665_v51, %v2598_v54  ;;  %v12786_v54 = vld [vmem:[%s16655_s6 + $0xd8] sm:$0xff] }
 0x373   : > { %16702 = vst [vmem:[#allocation4_spill] sm:$0xff] %v12743_v34  ;;  %5539 = vperm.xlu0 %10479, %v12786_v54  }
 0x374   : > { %v2708_v24 = vmax.f32 %v2666_v43, 0.0  ;;  %9918 = vmatmul.msk.f32.gmra.mxu0 %vm663_vm0, %v3120_v31 }
 0x375   : > { %9961 = vmatmul.msk.f32.gmra.mxu1 %vm663_vm0, %v3095_v4  ;;  %3025 = vmatmul.f32.gmra.mxu3 %v9897_v2  ;;  %v12802_v4 = vld [vmem:[%s16655_s6 + $0xf8] sm:$0xff] }
 0x376   : > { %9984 = vmatmul.msk.f32.gmra.mxu2 %vm663_vm0, %v3576_v48  ;;  %2726 = vst.msk [vmem:[#allocation2 + $0x350] sm:$0xff] %vm663_vm0, %v2708_v24  ;;  %v9903_v24 = vld [vmem:[%s10869_s28 + $0xc58] sm:$0xff]  ;;  %v3122_v48 = vld [vmem:[#allocation2 + $0x89] sm:$0xff] }
 0x377   : > { %5549 = vperm.xlu1 %10480, %v12775_v57  }
 0x378   : > { %v12766_v20 = vpop.f32.mrf.mxu3  ;;  %5934 = vperm.xlu2 %10481, %v12687_v38   ;;  %v3097_v38 = vld [vmem:[#allocation2 + $0x1b0] sm:$0xff] }
 0x379   : > { %v12768_v10 = vpop.f32.mrf.mxu2  ;;  %v2668_v16 = vpop.f32.mrf.mxu0 }
 0x37a   : > { %v12770_v21 = vpop.f32.mrf.mxu1  ;;  %v2669_v47 = vadd.f32 %v2668_v16, %v2601_v58  ;;  %v3578_v16 = vld [vmem:[#allocation2 + $0xb9] sm:$0xff] }
 0x37b   : > { %16704 = vst [vmem:[#allocation6_spill] sm:$0xff] %v12770_v21  ;;  %6074 = vperm.xlu0 %10479, %v12759_v5   ;;  %v3102_v21 = vld [vmem:[#allocation2 + $0x2a8] sm:$0xff] }
 0x37c   : > { %v2709_v27 = vmax.f32 %v2669_v47, 0.0  ;;  %9919 = vmatmul.msk.f32.gmra.mxu0 %vm663_vm0, %v3121_v30  ;;  %v3884_v47 = vld [vmem:[%s16652_s3 + $0x78] sm:$0xff] }
 0x37d   : > { %9962 = vmatmul.msk.f32.gmra.mxu1 %vm663_vm0, %v3096_v25  ;;  %3028 = vmatmul.f32.gmra.mxu3 %v9900_v45 }
 0x37e   : > { %9985 = vmatmul.msk.f32.gmra.mxu2 %vm663_vm0, %v3577_v50  ;;  %2727 = vst.msk [vmem:[#allocation2 + $0x358] sm:$0xff] %vm663_vm0, %v2709_v27  ;;  %3993 = vmatpush.msrb.mxu3 %v3884_v47  ;;  %v3883_v27 = vld [vmem:[%s16652_s3 + $0x70] sm:$0xff]  ;;  %v12830_v50 = vld [vmem:[%s16655_s6 + $0xc8] sm:$0xff] }
 0x37f   : > { %6079 = vperm.xlu1 %10480, %v12802_v4  }
 0x380   : > { %v12793_v51 = vpop.f32.mrf.mxu3  ;;  %5559 = vperm.xlu2 %10481, %v12802_v4   ;;  %3994 = vmatpush.msrb.mxu3 %v3883_v27 }
 0x381   : > { %v12795_v43 = vpop.f32.mrf.mxu2  ;;  %v2671_v2 = vpop.f32.mrf.mxu0 }
 0x382   : > { %v12797_v31 = vpop.f32.mrf.mxu1  ;;  %v2672_v61 = vadd.f32 %v2671_v2, %v2604_v7  ;;  %v9906_v2 = vld [vmem:[%s10869_s28 + $0xc70] sm:$0xff] }
 0x383   : > { %16705 = vst [vmem:[#allocation7_spill] sm:$0xff] %v12797_v31  ;;  %v3101_v31 = vld [vmem:[#allocation2 + $0x238] sm:$0xff] }
 0x384   : > { %v2710_v58 = vmax.f32 %v2672_v61, 0.0  ;;  %9920 = vmatmul.msk.f32.gmra.mxu0 %vm663_vm0, %v3122_v48  ;;  %v3098_v61 = vld [vmem:[#allocation2 + $0x220] sm:$0xff]  ;;  %v2542_v48 = vadd.f32 %v12622_v14, %v12455_v8 }
 0x385   : > { %9963 = vmatmul.msk.f32.gmra.mxu1 %vm663_vm0, %v3097_v38  ;;  %3031 = vmatmul.f32.gmra.mxu3 %v9903_v24  ;;  %v3882_v24 = vld [vmem:[%s16652_s3 + $0x68] sm:$0xff]  ;;  %v12855_v8 = vld [vmem:[%s16655_s6 + $0xe0] sm:$0xff] }
 0x386   : > { %9986 = vmatmul.msk.f32.gmra.mxu2 %vm663_vm0, %v3578_v16  ;;  %2728 = vst.msk [vmem:[#allocation2 + $0x360] sm:$0xff] %vm663_vm0, %v2710_v58  ;;  %v12844_v58 = vld [vmem:[%s16655_s6 + $0xc0] sm:$0xff]  ;;  %3995 = vmatpush.msrb.mxu3 %v3882_v24  ;;  %v2610_v47 = vadd.f32 %v12701_v40, %v2542_v48  ;;  %v3099_v24 = vld [vmem:[#allocation2 + $0x228] sm:$0xff]  ;;  %v3580_v40 = vld [vmem:[#allocation2 + $0x131] sm:$0xff] }
 0x387   : > { %5529 = vperm.xlu1 %10480, %v12830_v50   ;;  %16707 = vst [vmem:[#allocation9_spill] sm:$0xff] %v12844_v58  ;;  %v3881_v16 = vld [vmem:[%s16652_s3 + $0x60] sm:$0xff]  ;;  %5524 = vperm.xlu0 %10479, %v12844_v58   ;;  %v12877_v48 = vld [vmem:[%s16655_s6 + $0xd0] sm:$0xff] }
 0x388   : > { %v12818_v45 = vpop.f32.mrf.mxu3  ;;  %5544 = vperm.xlu2 %10481, %v12855_v8   ;;  %3996 = vmatpush.msrb.mxu3 %v3881_v16 }
 0x389   : > { %v12820_v30 = vpop.f32.mrf.mxu2  ;;  %v2674_v25 = vpop.f32.mrf.mxu0 }
 0x38a   : > { %v12822_v6 = vpop.f32.mrf.mxu1  ;;  %v2675_v7 = vadd.f32 %v2674_v25, %v2607_v35 }
 0x38b   : > { %16706 = vst [vmem:[#allocation8_spill] sm:$0xff] %v12822_v6  ;;  %v9915_v6 = vld [vmem:[%s10869_s28 + $0xcb8] sm:$0xff] }
 0x38c   : > { %v2711_v38 = vmax.f32 %v2675_v7, 0.0  ;;  %9921 = vmatmul.msk.f32.gmra.mxu0 %vm663_vm0, %v3123_v19  ;;  %v9909_v19 = vld [vmem:[%s10869_s28 + $0xc88] sm:$0xff] }
 0x38d   : > { %9964 = vmatmul.msk.f32.gmra.mxu1 %vm663_vm0, %v3098_v61  ;;  %3034 = vmatmul.f32.gmra.mxu3 %v9906_v2  ;;  %v3124_v61 = vld [vmem:[#allocation2 + $0x99] sm:$0xff] }
 0x38e   : > { %9987 = vmatmul.msk.f32.gmra.mxu2 %vm663_vm0, %v3579_v33  ;;  %2729 = vst.msk [vmem:[#allocation2 + $0x368] sm:$0xff] %vm663_vm0, %v2711_v38  ;;  %v2545_v38 = vadd.f32 %v12622_v14, %v12469_v3 }
 0x38f   : > { %6064 = vperm.xlu1 %10480, %v12855_v8   ;;  %6059 = vperm.xlu0 %10479, %v12786_v54  }
 0x390   : > { %v12859_v35 = vpop.f32.mrf.mxu3  ;;  %5534 = vperm.xlu2 %10481, %v12877_v48   ;;  %v2613_v3 = vadd.f32 %v12723_v46, %v2545_v38  ;;  %v2548_v46 = vadd.f32 %v12622_v14, %v12487_v18 }
 0x391   : > { %v12861_v25 = vpop.f32.mrf.mxu2  ;;  %v2677_v27 = vpop.f32.mrf.mxu0 }
 0x392   : > { %v12863_v7 = vpop.f32.mrf.mxu1  ;;  %v2678_v2 = vadd.f32 %v2677_v27, %v2610_v47  ;;  %v2616_v18 = vadd.f32 %v12739_v42, %v2548_v46  ;;  %v3582_v42 = vld [vmem:[#allocation2 + $0x141] sm:$0xff]  ;;  %v12923_v46 = vld [vmem:[%s16651_s2] ss:$0 sm:$0xff] }
 0x393   : > { %16708 = vst [vmem:[#allocation10_spill] sm:$0xff] %v12863_v7 }
 0x394   : > { %v2712_v33 = vmax.f32 %v2678_v2, 0.0  ;;  %9922 = vmatmul.msk.f32.gmra.mxu0 %vm663_vm0, %v3124_v61  ;;  %v9912_v61 = vld [vmem:[%s10869_s28 + $0xca0] sm:$0xff] }
 0x395   : > { %9965 = vmatmul.msk.f32.gmra.mxu1 %vm663_vm0, %v3099_v24  ;;  %3037 = vmatmul.f32.gmra.mxu3 %v9909_v19  ;;  %v12891_v24 = vld [vmem:[%s16655_s6 + $0xb0] sm:$0xff] }
 0x396   : > { %9988 = vmatmul.msk.f32.gmra.mxu2 %vm663_vm0, %v3580_v40  ;;  %2730 = vst.msk [vmem:[#allocation2 + $0x370] sm:$0xff] %vm663_vm0, %v2712_v33  ;;  %v3125_v33 = vld [vmem:[#allocation2 + $0xa1] sm:$0xff]  ;;  %v3100_v40 = vld [vmem:[#allocation2 + $0x230] sm:$0xff] }
 0x397   : > { %5514 = vperm.xlu1 %10480, %v12891_v24  }
 0x398   : > { %v12881_v16 = vpop.f32.mrf.mxu3  ;;  %6069 = vperm.xlu2 %10481, %v12775_v57  }
 0x399   : > { %v12883_v47 = vpop.f32.mrf.mxu2  ;;  %v2680_v27 = vpop.f32.mrf.mxu0 }
 0x39a   : > { %v12885_v2 = vpop.f32.mrf.mxu1  ;;  %v2681_v19 = vadd.f32 %v2680_v27, %v2613_v3  ;;  %v3581_v3 = vld [vmem:[#allocation2 + $0x139] sm:$0xff]  ;;  %v12901_v27 = vld [vmem:[%s16655_s6 + $0xa8] sm:$0xff] }
 0x39b   : > { %16709 = vst [vmem:[#allocation11_spill] sm:$0xff] %v12885_v2  ;;  %5509 = vperm.xlu0 %10479, %v12901_v27  }
 0x39c   : > { %v2713_v38 = vmax.f32 %v2681_v19, 0.0  ;;  %9923 = vmatmul.msk.f32.gmra.mxu0 %vm663_vm0, %v3125_v33 }
 0x39d   : > { %9966 = vmatmul.msk.f32.gmra.mxu1 %vm663_vm0, %v3100_v40  ;;  %3040 = vmatmul.f32.gmra.mxu3 %v9912_v61  ;;  %v3126_v61 = vld [vmem:[#allocation2 + $0x111] sm:$0xff] }
 0x39e   : > { %9989 = vmatmul.msk.f32.gmra.mxu2 %vm663_vm0, %v3581_v3  ;;  %2731 = vst.msk [vmem:[#allocation2 + $0x378] sm:$0xff] %vm663_vm0, %v2713_v38  ;;  %v2551_v38 = vadd.f32 %v12622_v14, %v12507_v39  ;;  %v12931_v39 = vld [vmem:[%s16655_s6 + $0xb8] sm:$0xff] }
 0x39f   : > { %6049 = vperm.xlu1 %10480, %v12830_v50  }
 0x3a0   : > { %v12908_v19 = vpop.f32.mrf.mxu3  ;;  %5519 = vperm.xlu2 %10481, %v12931_v39  }
 0x3a1   : > { %v12910_v33 = vpop.f32.mrf.mxu2  ;;  %v2683_v40 = vpop.f32.mrf.mxu0 }
 0x3a2   : > { %v12912_v2 = vpop.f32.mrf.mxu1  ;;  %v2684_v7 = vadd.f32 %v2683_v40, %v2616_v18 }
 0x3a3   : > { %16710 = vst [vmem:[#allocation12_spill] sm:$0xff] %v12912_v2  ;;  %6044 = vperm.xlu0 %10479, %v12844_v58   ;;  %v3127_v2 = vld [vmem:[#allocation2 + $0x119] sm:$0xff]  ;;  %v3128_v58 = vld [vmem:[#allocation2 + $0x121] sm:$0xff] }
 0x3a4   : > { %v2714_v3 = vmax.f32 %v2684_v7, 0.0  ;;  %9924 = vmatmul.msk.f32.gmra.mxu0 %vm663_vm0, %v3126_v61 }
 0x3a5   : > { %9967 = vmatmul.msk.f32.gmra.mxu1 %vm663_vm0, %v3101_v31  ;;  %3043 = vmatmul.f32.gmra.mxu3 %v9915_v6  ;;  %v2619_v31 = vadd.f32 %v12766_v20, %v2551_v38  ;;  %v2864_v6 = vadd.f32 %v12923_v46, %v12443_v56  ;;  %v2554_v20 = vadd.f32 %v12622_v14, %v12539_v32  ;;  %v3583_v56 = vld [vmem:[#allocation2 + $0x149] sm:$0xff] }
 0x3a6   : > { %9990 = vmatmul.msk.f32.gmra.mxu2 %vm663_vm0, %v3582_v42  ;;  %2732 = vst.msk [vmem:[#allocation2 + $0x380] sm:$0xff] %vm663_vm0, %v2714_v3  ;;  %v12946_v42 = vld [vmem:[%s16655_s6 + $0x98] sm:$0xff] }
 0x3a7   : > { %5499 = vperm.xlu1 %10480, %v12946_v42   ;;  %v2622_v32 = vadd.f32 %v12793_v51, %v2554_v20  ;;  %v3584_v20 = vld [vmem:[#allocation2 + $0x1b9] sm:$0xff] }
 0x3a8   : > { %v12937_v18 = vpop.f32.mrf.mxu3  ;;  %6054 = vperm.xlu2 %10481, %v12877_v48  }
 0x3a9   : > { %v12935_v7 = vpop.f32.mrf.mxu2  ;;  %v2686_v40 = vpop.f32.mrf.mxu0 }
 0x3aa   : > { %v12941_v61 = vpop.f32.mrf.mxu1  ;;  %v2687_v3 = vadd.f32 %v2686_v40, %v2619_v31  ;;  %v12956_v31 = vld [vmem:[%s16655_s6 + $0x90] sm:$0xff]  ;;  %v2932_v40 = vadd.f32 %v12679_v37, %v2864_v6 }
 0x3ab   : > { %16711 = vst [vmem:[#allocation13_spill] sm:$0xff] %v12941_v61  ;;  %v3849_v61 = vld [vmem:[#allocation2 + $0x22] sm:$0xff]  ;;  %5494 = vperm.xlu0 %10479, %v12956_v31  }
 0x3ac   : > { %v2715_v38 = vmax.f32 %v2687_v3, 0.0  ;;  %9925 = vmatmul.msk.f32.gmra.mxu0 %vm663_vm0, %v3127_v2  ;;  %v2867_v3 = vadd.f32 %v12923_v46, %v12457_v1  ;;  %v3850_v1 = vld [vmem:[#allocation2 + $0x2a] sm:$0xff] }
 0x3ad   : > { %9968 = vmatmul.msk.f32.gmra.mxu1 %vm663_vm0, %v3102_v21  ;;  %10012 = vmatmul.msk.f32.vlgmr.msrb.gmra.mxu3 %vm663_vm0, %v3849_v61 }
 0x3ae   : > { %9991 = vmatmul.msk.f32.gmra.mxu2 %vm663_vm0, %v3583_v56  ;;  %2733 = vst.msk [vmem:[#allocation2 + $0x388] sm:$0xff] %vm663_vm0, %v2715_v38  ;;  %v3103_v38 = vld [vmem:[#allocation2 + $0x2b0] sm:$0xff] }
 0x3af   : > { %6034 = vperm.xlu1 %10480, %v12891_v24  }
 0x3b0   : > { %v2999_v2 = vpop.f32.mrf.mxu3  ;;  %5504 = vperm.xlu2 %10481, %v12985_v11  }
 0x3b1   : > { %v12965_v21 = vpop.f32.mrf.mxu2  ;;  %v3000_v34 = vadd.f32 %v2999_v2, %v2932_v40  ;;  %v2689_v37 = vpop.f32.mrf.mxu0  ;;  %v2935_v40 = vadd.f32 %v12703_v29, %v2867_v3 }
 0x3b2   : > { %v12969_v6 = vpop.f32.mrf.mxu1  ;;  %v2690_v56 = vadd.f32 %v2689_v37, %v2622_v32  ;;  %v2870_v32 = vadd.f32 %v12923_v46, %v12471_v17  ;;  %v3585_v17 = vld [vmem:[#allocation2 + $0x1c1] sm:$0xff] }
 0x3b3   : > { %v3048_v61 = vmax.f32 %v3000_v34, 0.0  ;;  %6029 = vperm.xlu0 %10479, %v12901_v27   ;;  %v2625_v34 = vadd.f32 %v12818_v45, %v2557_v52  ;;  %v2560_v52 = vadd.f32 %v12622_v14, %v12595_v28 }
 0x3b4   : > { %v2716_v51 = vmax.f32 %v2690_v56, 0.0  ;;  %9926 = vmatmul.msk.f32.gmra.mxu0 %vm663_vm0, %v3128_v58 }
 0x3b5   : > { %9969 = vmatmul.msk.f32.gmra.mxu1 %vm663_vm0, %v3103_v38  ;;  %3066 = vst.msk [vmem:[#allocation2 + $0x3c0] sm:$0xff] %vm663_vm0, %v3048_v61  ;;  %10013 = vmatmul.msk.f32.gmra.mxu3 %vm663_vm0, %v3850_v1  ;;  %v12998_v61 = vld [vmem:[%s16655_s6 + $0x80] sm:$0xff]  ;;  %v3851_v1 = vld [vmem:[#allocation2 + $0x32] sm:$0xff]  ;;  %v2628_v28 = vadd.f32 %v12859_v35, %v2560_v52  ;;  %v2563_v35 = vadd.f32 %v12622_v14, %v12627_v49  ;;  %v13041_v49 = vld [vmem:[%s16655_s6 + $0x88] sm:$0xff] }
 0x3b6   : > { %9992 = vmatmul.msk.f32.gmra.mxu2 %vm663_vm0, %v3584_v20  ;;  %2734 = vst.msk [vmem:[#allocation2 + $0x390] sm:$0xff] %vm663_vm0, %v2716_v51  ;;  %v3129_v51 = vld [vmem:[#allocation2 + $0x129] sm:$0xff]  ;;  %v3104_v20 = vld [vmem:[#allocation2 + $0x2b8] sm:$0xff] }
 0x3b7   : > { %5484 = vperm.xlu1 %10480, %v12998_v61  }
 0x3b8   : > { %v3002_v58 = vpop.f32.mrf.mxu3  ;;  %6039 = vperm.xlu2 %10481, %v12931_v39  }
 0x3b9   : > { %v12989_v29 = vpop.f32.mrf.mxu2  ;;  %v3003_v2 = vadd.f32 %v3002_v58, %v2935_v40  ;;  %v2692_v3 = vpop.f32.mrf.mxu0  ;;  %v2938_v40 = vadd.f32 %v12725_v60, %v2870_v32  ;;  %v2873_v60 = vadd.f32 %v12923_v46, %v12494_v41  ;;  %v3586_v41 = vld [vmem:[#allocation2 + $0x1c9] sm:$0xff] }
 0x3ba   : > { %v12993_v37 = vpop.f32.mrf.mxu1  ;;  %v2693_v56 = vadd.f32 %v2692_v3, %v2625_v34 }
 0x3bb   : > { %v3049_v38 = vmax.f32 %v3003_v2, 0.0  ;;  %6019 = vperm.xlu0 %10479, %v12946_v42  }
 0x3bc   : > { %v2717_v45 = vmax.f32 %v2693_v56, 0.0  ;;  %9927 = vmatmul.msk.f32.gmra.mxu0 %vm663_vm0, %v3129_v51  ;;  %v13020_v56 = vld [vmem:[%s16655_s6 + $0x78] sm:$0xff] }
 0x3bd   : > { %9970 = vmatmul.msk.f32.gmra.mxu1 %vm663_vm0, %v3104_v20  ;;  %3067 = vst.msk [vmem:[#allocation2 + $0x3c8] sm:$0xff] %vm663_vm0, %v3049_v38  ;;  %10014 = vmatmul.msk.f32.gmra.mxu3 %vm663_vm0, %v3851_v1  ;;  %v3130_v20 = vld [vmem:[#allocation2 + $0x199] sm:$0xff]  ;;  %v13032_v1 = vld [vmem:[%s16655_s6 + $0x70] sm:$0xff] }
 0x3be   : > { %9993 = vmatmul.msk.f32.gmra.mxu2 %vm663_vm0, %v3585_v17  ;;  %2735 = vst.msk [vmem:[#allocation2 + $0x398] sm:$0xff] %vm663_vm0, %v2717_v45  ;;  %v3105_v45 = vld [vmem:[#allocation2 + $0x2c0] sm:$0xff] }
 0x3bf   : > { %6519 = vperm.xlu1 %10480, %v13020_v56   ;;  %v3852_v17 = vld [vmem:[#allocation2 + $0x3a] sm:$0xff] }
 0x3c0   : > { %v3005_v58 = vpop.f32.mrf.mxu3  ;;  %5489 = vperm.xlu2 %10481, %v13041_v49  }
 0x3c1   : > { %v13013_v34 = vpop.f32.mrf.mxu2  ;;  %v3006_v32 = vadd.f32 %v3005_v58, %v2938_v40  ;;  %v2695_v2 = vpop.f32.mrf.mxu0  ;;  %v2941_v40 = vadd.f32 %v12741_v15, %v2873_v60  ;;  %v2876_v60 = vadd.f32 %v12923_v46, %v12516_v26 }
 0x3c2   : > { %v2696_v3 = vadd.f32 %v2695_v2, %v2628_v28  ;;  %v13022_v51 = vpop.f32.mrf.mxu1  ;;  %v2631_v28 = vadd.f32 %v12881_v16, %v2563_v35  ;;  %v3587_v16 = vld [vmem:[#allocation2 + $0x1d1] sm:$0xff] }
 0x3c3   : > { %v3050_v38 = vmax.f32 %v3006_v32, 0.0  ;;  %6514 = vperm.xlu0 %10479, %v13032_v1   ;;  %v3853_v35 = vld [vmem:[#allocation2 + $0xaa] sm:$0xff]  ;;  %v2944_v26 = vadd.f32 %v12768_v10, %v2876_v60  ;;  %v2879_v10 = vadd.f32 %v12923_v46, %v12543_v55  ;;  %v3854_v55 = vld [vmem:[#allocation2 + $0xb2] sm:$0xff] }
 0x3c4   : > { %v2718_v52 = vmax.f32 %v2696_v3, 0.0  ;;  %9928 = vmatmul.msk.f32.gmra.mxu0 %vm663_vm0, %v3130_v20  ;;  %v3131_v20 = vld [vmem:[#allocation2 + $0x1a1] sm:$0xff] }
 0x3c5   : > { %9971 = vmatmul.msk.f32.gmra.mxu1 %vm663_vm0, %v3105_v45  ;;  %3068 = vst.msk [vmem:[#allocation2 + $0x3d0] sm:$0xff] %vm663_vm0, %v3050_v38  ;;  %10015 = vmatmul.msk.f32.gmra.mxu3 %vm663_vm0, %v3852_v17  ;;  %v3106_v45 = vld [vmem:[#allocation2 + $0x330] sm:$0xff] }
 0x3c6   : > { %9994 = vmatmul.msk.f32.gmra.mxu2 %vm663_vm0, %v3586_v41  ;;  %2736 = vst.msk [vmem:[#allocation2 + $0x3a0] sm:$0xff] %vm663_vm0, %v2718_v52  ;;  %v2566_v52 = vadd.f32 %v12622_v14, %v12655_v0 }
 0x3c7   : > { %6009 = vperm.xlu1 %10480, %v13041_v49  }
 0x3c8   : > { %v3008_v58 = vpop.f32.mrf.mxu3  ;;  %6024 = vperm.xlu2 %10481, %v12985_v11   ;;  %v2634_v14 = vadd.f32 %v12908_v19, %v2566_v52 }
 0x3c9   : > { %v13047_v15 = vpop.f32.mrf.mxu2  ;;  %v3009_v32 = vadd.f32 %v3008_v58, %v2941_v40  ;;  %v2698_v2 = vpop.f32.mrf.mxu0 }
 0x3ca   : > { %v2699_v3 = vadd.f32 %v2698_v2, %v2631_v28  ;;  %v13058_v17 = vpop.f32.mrf.mxu1 }
 0x3cb   : > { %v3051_v38 = vmax.f32 %v3009_v32, 0.0  ;;  %6004 = vperm.xlu0 %10479, %v12998_v61   ;;  %v13073_v32 = vld [vmem:[%s16655_s6 + $0x60] sm:$0xff] }
 0x3cc   : > { %v2719_v41 = vmax.f32 %v2699_v3, 0.0  ;;  %9929 = vmatmul.msk.f32.gmra.mxu0 %vm663_vm0, %v3131_v20  ;;  %v3132_v3 = vld [vmem:[#allocation2 + $0x1a9] sm:$0xff]  ;;  %v3588_v20 = vld [vmem:[#allocation2 + $0x241] sm:$0xff] }
 0x3cd   : > { %9972 = vmatmul.msk.f32.gmra.mxu1 %vm663_vm0, %v3106_v45  ;;  %3069 = vst.msk [vmem:[#allocation2 + $0x3d8] sm:$0xff] %vm663_vm0, %v3051_v38  ;;  %10016 = vmatmul.msk.f32.gmra.mxu3 %vm663_vm0, %v3853_v35  ;;  %v3107_v38 = vld [vmem:[#allocation2 + $0x338] sm:$0xff]  ;;  %v2947_v45 = vadd.f32 %v12795_v43, %v2879_v10  ;;  %v2882_v43 = vadd.f32 %v12923_v46, %v12571_v44  ;;  %v3589_v44 = vld [vmem:[#allocation2 + $0x249] sm:$0xff] }
 0x3ce   : > { %9995 = vmatmul.msk.f32.gmra.mxu2 %vm663_vm0, %v3587_v16  ;;  %2737 = vst.msk [vmem:[#allocation2 + $0x3a8] sm:$0xff] %vm663_vm0, %v2719_v41  ;;  %v2861_v41 = vadd.f32 %v12923_v46, %v12429_v59 }
 0x3cf   : > { %6504 = vperm.xlu1 %10480, %v13073_v32  }
 0x3d0   : > { %v3011_v40 = vpop.f32.mrf.mxu3  ;;  %6014 = vperm.xlu2 %10481, %v12956_v31  }
 0x3d1   : > { %v13066_v0 = vpop.f32.mrf.mxu2  ;;  %v3012_v28 = vadd.f32 %v3011_v40, %v2944_v26  ;;  %v2701_v58 = vpop.f32.mrf.mxu0 }
 0x3d2   : > { %v2702_v60 = vadd.f32 %v2701_v58, %v2634_v14  ;;  %v13084_v52 = vpop.f32.mrf.mxu1  ;;  %v3108_v58 = vld [vmem:[#allocation2 + $0x340] sm:$0xff] }
 0x3d3   : > { %v3052_v2 = vmax.f32 %v3012_v28, 0.0  ;;  %6599 = vperm.xlu0 %10479, %v12802_v4   ;;  %v13096_v4 = vld [vmem:[%s16655_s6 + $0x50] sm:$0xff] }
 0x3d4   : > { %v2720_v19 = vmax.f32 %v2702_v60, 0.0  ;;  %9930 = vmatmul.msk.f32.gmra.mxu0 %vm663_vm0, %v3132_v3  ;;  %v3133_v28 = vld [vmem:[#allocation2 + $0x1b1] sm:$0xff]  ;;  %v3855_v60 = vld [vmem:[#allocation2 + $0xba] sm:$0xff]  ;;  %v13109_v3 = vld [vmem:[%s16655_s6 + $0x68] sm:$0xff] }
 0x3d5   : > { %9973 = vmatmul.msk.f32.gmra.mxu1 %vm663_vm0, %v3107_v38  ;;  %3070 = vst.msk [vmem:[#allocation2 + $0x3e0] sm:$0xff] %vm663_vm0, %v3052_v2  ;;  %10017 = vmatmul.msk.f32.gmra.mxu3 %vm663_vm0, %v3854_v55  ;;  %v2950_v2 = vadd.f32 %v12820_v30, %v2882_v43  ;;  %v3109_v43 = vld [vmem:[#allocation2 + $0x348] sm:$0xff] }
 0x3d6   : > { %9996 = vmatmul.msk.f32.gmra.mxu2 %vm663_vm0, %v3588_v20  ;;  %2738 = vst.msk [vmem:[#allocation2 + $0x3b0] sm:$0xff] %vm663_vm0, %v2720_v19  ;;  %v2885_v19 = vadd.f32 %v12923_v46, %v12599_v9  ;;  %v13132_v9 = vld [vmem:[%s16655_s6 + $0x58] sm:$0xff] }
 0x3d7   : > { %6494 = vperm.xlu1 %10480, %v13096_v4  }
 0x3d8   : > { %v3014_v16 = vpop.f32.mrf.mxu3  ;;  %6509 = vperm.xlu2 %10481, %v13109_v3  }
 0x3d9   : > { %v13089_v35 = vpop.f32.mrf.mxu2  ;;  %v3015_v26 = vadd.f32 %v3014_v16, %v2947_v45  ;;  %v2928_v14 = vpop.f32.mrf.mxu0  ;;  %v3134_v16 = vld [vmem:[#allocation2 + $0x221] sm:$0xff] }
 0x3da   : > { %v2929_v40 = vadd.f32 %v2928_v14, %v2861_v41  ;;  %v13118_v20 = vpop.f32.mrf.mxu1  ;;  %v2953_v14 = vadd.f32 %v12861_v25, %v2885_v19  ;;  %v3857_v19 = vld [vmem:[#allocation2 + $0x132] sm:$0xff] }
 0x3db   : > { %v3053_v10 = vmax.f32 %v3015_v26, 0.0  ;;  %6489 = vperm.xlu0 %10479, %v12616_v13   ;;  %v3590_v13 = vld [vmem:[#allocation2 + $0x251] sm:$0xff]  ;;  %v3856_v26 = vld [vmem:[#allocation2 + $0xc2] sm:$0xff] }
 0x3dc   : > { %v2997_v59 = vadd.f32 %v12937_v18, %v2929_v40  ;;  %9931 = vmatmul.msk.f32.gmra.mxu0 %vm663_vm0, %v3133_v28 }
 0x3dd   : > { %9974 = vmatmul.msk.f32.gmra.mxu1 %vm663_vm0, %v3108_v58  ;;  %3071 = vst.msk [vmem:[#allocation2 + $0x3e8] sm:$0xff] %vm663_vm0, %v3053_v10  ;;  %10018 = vmatmul.msk.f32.gmra.mxu3 %vm663_vm0, %v3855_v60  ;;  %v2888_v10 = vadd.f32 %v12923_v46, %v12631_v53  ;;  %v4436_v53 = vld [vmem:[%s16652_s3 + $0xa8] sm:$0xff] }
 0x3de   : > { %9997 = vmatmul.msk.f32.gmra.mxu2 %vm663_vm0, %v3589_v44  ;;  %v3047_v18 = vmax.f32 %v2997_v59, 0.0  ;;  %v4437_v59 = vld [vmem:[%s16652_s3 + $0xb0] sm:$0xff] }
 0x3df   : > { %6589 = vperm.xlu1 %10480, %v12775_v57   ;;  %v4438_v57 = vld [vmem:[%s16652_s3 + $0xb8] sm:$0xff] }
 0x3e0   : > { %3065 = vst.msk [vmem:[#allocation2 + $0x3b8] sm:$0xff] %vm663_vm0, %v3047_v18  ;;  %v3017_v38 = vpop.f32.mrf.mxu3  ;;  %4547 = vmatpush.msrb.mxu1 %v4438_v57  ;;  %6499 = vperm.xlu2 %10481, %v13132_v9   ;;  %v3136_v57 = vld [vmem:[#allocation2 + $0x231] sm:$0xff] }
 0x3e1   : > { %v13114_v30 = vpop.f32.mrf.mxu2  ;;  %v3018_v55 = vadd.f32 %v3017_v38, %v2950_v2  ;;  %v13120_v45 = vpop.f32.mrf.mxu0  ;;  %v3135_v2 = vld [vmem:[#allocation2 + $0x229] sm:$0xff]  ;;  %v3591_v38 = vld [vmem:[#allocation2 + $0x259] sm:$0xff] }
 0x3e2   : > { %4548 = vmatpush.msrb.mxu1 %v4437_v59  ;;  %v13153_v44 = vpop.f32.mrf.mxu1 }
 0x3e3   : > { %v3054_v41 = vmax.f32 %v3018_v55, 0.0  ;;  %6584 = vperm.xlu0 %10479, %v12855_v8   ;;  %v13151_v8 = vld [vmem:[%s16655_s6 + $0x38] sm:$0xff]  ;;  %v2956_v55 = vadd.f32 %v12883_v47, %v2888_v10  ;;  %v2891_v47 = vadd.f32 %v12923_v46, %v12659_v12  ;;  %v13188_v12 = vld [vmem:[%s16655_s6 + $0x40] sm:$0xff] }
 0x3e4   : > { %9932 = vmatmul.msk.f32.gmra.mxu0 %vm663_vm0, %v3134_v16  ;;  %4549 = vmatpush.msrb.mxu1 %v4436_v53 }
 0x3e5   : > { %9975 = vmatmul.msk.f32.gmra.mxu1 %vm663_vm0, %v3109_v43  ;;  %3072 = vst.msk [vmem:[#allocation2 + $0x3f0] sm:$0xff] %vm663_vm0, %v3054_v41  ;;  %10019 = vmatmul.msk.f32.gmra.mxu3 %vm663_vm0, %v3856_v26  ;;  %v4435_v41 = vld [vmem:[%s16652_s3 + $0xa0] sm:$0xff]  ;;  %v2959_v10 = vadd.f32 %v12910_v33, %v2891_v47  ;;  %v2894_v33 = vadd.f32 %v12923_v46, %v12681_v36 }
 0x3e6   : > { %9998 = vmatmul.msk.f32.gmra.mxu2 %vm663_vm0, %v3590_v13  ;;  %4550 = vmatpush.msrb.mxu1 %v4435_v41 }
 0x3e7   : > { %v3110_v18 = vld [vmem:[#allocation2 + $0x3b8] sm:$0xff]  ;;  %6479 = vperm.xlu1 %10480, %v13151_v8   ;;  %v2962_v36 = vadd.f32 %v12935_v7, %v2894_v33 }
 0x3e8   : > { %v3020_v25 = vpop.f32.mrf.mxu3  ;;  %6594 = vperm.xlu2 %10481, %v12759_v5   ;;  %v3858_v5 = vld [vmem:[#allocation2 + $0x13a] sm:$0xff] }
 0x3e9   : > { %v13139_v40 = vpop.f32.mrf.mxu2  ;;  %v3021_v28 = vadd.f32 %v3020_v25, %v2953_v14  ;;  %v13143_v58 = vpop.f32.mrf.mxu0  ;;  %v3111_v25 = vld [vmem:[#allocation2 + $0x3c0] sm:$0xff] }
 0x3eb   : > { %v3055_v60 = vmax.f32 %v3021_v28, 0.0  ;;  %6474 = vperm.xlu0 %10479, %v12671_v63   ;;  %v3592_v63 = vld [vmem:[#allocation2 + $0x2c9] sm:$0xff]  ;;  %v13180_v28 = vpop.f32.mrf.mxu1 }
 0x3ec   : > { %9933 = vmatmul.msk.f32.gmra.mxu0 %vm663_vm0, %v3135_v2 }
 0x3ed   : > { %9976 = vmatmul.msk.f32.gmra.mxu1 %vm663_vm0, %v3110_v18  ;;  %3073 = vst.msk [vmem:[#allocation2 + $0x3f8] sm:$0xff] %vm663_vm0, %v3055_v60  ;;  %10020 = vmatmul.msk.f32.gmra.mxu3 %vm663_vm0, %v3857_v19  ;;  %v13201_v18 = vld [vmem:[%s16655_s6 + $0x20] sm:$0xff]  ;;  %v3112_v19 = vld [vmem:[#allocation2 + $0x3c8] sm:$0xff] }
 0x3ee   : > { %9999 = vmatmul.msk.f32.gmra.mxu2 %vm663_vm0, %v3591_v38  ;;  %v3137_v38 = vld [vmem:[#allocation2 + $0x239] sm:$0xff] }
 0x3ef   : > { %6574 = vperm.xlu1 %10480, %v12877_v48  }
 0x3f0   : > { %v3023_v16 = vpop.f32.mrf.mxu3  ;;  %6484 = vperm.xlu2 %10481, %v13188_v12  }
 0x3f1   : > { %v13170_v43 = vpop.f32.mrf.mxu2  ;;  %v3024_v13 = vadd.f32 %v3023_v16, %v2956_v55  ;;  %v13174_v26 = vpop.f32.mrf.mxu0  ;;  %v3859_v55 = vld [vmem:[#allocation2 + $0x142] sm:$0xff] }
 0x3f3   : > { %v3056_v14 = vmax.f32 %v3024_v13, 0.0  ;;  %6569 = vperm.xlu0 %10479, %v12830_v50   ;;  %v3593_v50 = vld [vmem:[#allocation2 + $0x2d1] sm:$0xff]  ;;  %v13211_v41 = vpop.f32.mrf.mxu1  ;;  %v2897_v13 = vadd.f32 %v12923_v46, %v12705_v23  ;;  %v13230_v23 = vld [vmem:[%s16655_s6 + $0x28] sm:$0xff] }
 0x3f4   : > { %9934 = vmatmul.msk.f32.gmra.mxu0 %vm663_vm0, %v3136_v57 }
 0x3f5   : > { %9977 = vmatmul.msk.f32.gmra.mxu1 %vm663_vm0, %v3111_v25  ;;  %3074 = vst.msk [vmem:[#allocation2 + $0x400] sm:$0xff] %vm663_vm0, %v3056_v14  ;;  %10021 = vmatmul.msk.f32.gmra.mxu3 %vm663_vm0, %v3858_v5  ;;  %v3138_v25 = vld [vmem:[#allocation2 + $0x2a9] sm:$0xff]  ;;  %v2965_v5 = vadd.f32 %v12965_v21, %v2897_v13  ;;  %v2900_v21 = vadd.f32 %v12923_v46, %v12727_v22 }
 0x3f6   : > { %10000 = vmatmul.msk.f32.gmra.mxu2 %vm663_vm0, %v3592_v63  ;;  %v3113_v63 = vld [vmem:[#allocation2 + $0x3d0] sm:$0xff] }
 0x3f7   : > { %6464 = vperm.xlu1 %10480, %v13201_v18   ;;  %v2968_v22 = vadd.f32 %v12989_v29, %v2900_v21  ;;  %v3596_v21 = vld [vmem:[#allocation2 + $0x351] sm:$0xff] }
 0x3f8   : > { %v3026_v48 = vpop.f32.mrf.mxu3  ;;  %6579 = vperm.xlu2 %10481, %v12786_v54   ;;  %v3860_v54 = vld [vmem:[#allocation2 + $0x14a] sm:$0xff] }
 0x3f9   : > { %v13192_v59 = vpop.f32.mrf.mxu2  ;;  %v3027_v60 = vadd.f32 %v3026_v48, %v2959_v10  ;;  %v13196_v2 = vpop.f32.mrf.mxu0 }
 0x3fb   : > { %v3057_v53 = vmax.f32 %v3027_v60, 0.0  ;;  %6459 = vperm.xlu0 %10479, %v12719_v62   ;;  %v3594_v62 = vld [vmem:[#allocation2 + $0x2d9] sm:$0xff]  ;;  %v13238_v48 = vpop.f32.mrf.mxu1 }
 0x3fc   : > { %9935 = vmatmul.msk.f32.gmra.mxu0 %vm663_vm0, %v3137_v38 }
 0x3fd   : > { %9978 = vmatmul.msk.f32.gmra.mxu1 %vm663_vm0, %v3112_v19  ;;  %3075 = vst.msk [vmem:[#allocation2 + $0x408] sm:$0xff] %vm663_vm0, %v3057_v53  ;;  %10022 = vmatmul.msk.f32.gmra.mxu3 %vm663_vm0, %v3859_v55  ;;  %v13245_v53 = vld [vmem:[%s16655_s6 + $0x8] sm:$0xff]  ;;  %v3861_v55 = vld [vmem:[#allocation2 + $0x1ba] sm:$0xff] }
 0x3fe   : > { %10001 = vmatmul.msk.f32.gmra.mxu2 %vm663_vm0, %v3593_v50  ;;  %v4403_v19 = vld [vmem:[#allocation2 + $0x43] sm:$0xff] }
 0x3ff   : > { %6559 = vperm.xlu1 %10480, %v12931_v39   ;;  %v3595_v50 = vld [vmem:[#allocation2 + $0x2e1] sm:$0xff] }
 0x400   : > { %v3029_v16 = vpop.f32.mrf.mxu3  ;;  %6469 = vperm.xlu2 %10481, %v13230_v23  }
 0x401   : > { %v13214_v47 = vpop.f32.mrf.mxu2  ;;  %v3030_v14 = vadd.f32 %v3029_v16, %v2962_v36  ;;  %v13218_v7 = vpop.f32.mrf.mxu0  ;;  %v16712_v36 = vld [vmem:[#allocation5_spill] sm:$0xff] }
 0x402   : > { %v16713_v16 = vld [vmem:[#allocation9_spill] sm:$0xff] }
 0x403   : > { %v3058_v57 = vmax.f32 %v3030_v14, 0.0  ;;  %6554 = vperm.xlu0 %10479, %v12891_v24   ;;  %v3139_v24 = vld [vmem:[#allocation2 + $0x2b1] sm:$0xff]  ;;  %v13262_v29 = vpop.f32.mrf.mxu1 }
 0x404   : > { %9936 = vmatmul.msk.f32.gmra.mxu0 %vm663_vm0, %v3138_v25 }
 0x405   : > { %9979 = vmatmul.msk.f32.gmra.mxu1 %vm663_vm0, %v3113_v63  ;;  %3076 = vst.msk [vmem:[#allocation2 + $0x410] sm:$0xff] %vm663_vm0, %v3058_v57  ;;  %10023 = vmatmul.msk.f32.gmra.mxu3 %vm663_vm0, %v3860_v54  ;;  %v16714_v57 = vld [vmem:[#allocation4_spill] sm:$0xff] }
 0x406   : > { %10002 = vmatmul.msk.f32.gmra.mxu2 %vm663_vm0, %v3594_v62  ;;  %v2903_v25 = vadd.f32 %v12923_v46, %v16714_v57  ;;  %v3597_v57 = vld [vmem:[#allocation2 + $0x359] sm:$0xff] }
 0x407   : > { %6449 = vperm.xlu1 %10480, %v13245_v53  }
 0x408   : > { %v3032_v39 = vpop.f32.mrf.mxu3  ;;  %6564 = vperm.xlu2 %10481, %v16713_v16   ;;  %v3141_v16 = vld [vmem:[#allocation2 + $0x2c1] sm:$0xff] }
 0x409   : > { %v13234_v10 = vpop.f32.mrf.mxu2  ;;  %v3033_v33 = vadd.f32 %v3032_v39, %v2965_v5  ;;  %v13240_v60 = vpop.f32.mrf.mxu0  ;;  %v3140_v5 = vld [vmem:[#allocation2 + $0x2b9] sm:$0xff]  ;;  %v4404_v39 = vld [vmem:[#allocation2 + $0x4b] sm:$0xff] }
 0x40b   : > { %v3059_v38 = vmax.f32 %v3033_v33, 0.0  ;;  %6444 = vperm.xlu0 %10479, %v16712_v36   ;;  %v3862_v33 = vld [vmem:[#allocation2 + $0x1c2] sm:$0xff] }
 0x40c   : > { %9937 = vmatmul.msk.f32.gmra.mxu0 %vm663_vm0, %v3139_v24  ;;  %v2971_v24 = vadd.f32 %v13013_v34, %v2903_v25 }
 0x40d   : > { %10076 = vmatmul.msk.f32.vlgmr.msrb.gmra.mxu1 %vm663_vm0, %v4403_v19  ;;  %3077 = vst.msk [vmem:[#allocation2 + $0x418] sm:$0xff] %vm663_vm0, %v3059_v38  ;;  %10024 = vmatmul.msk.f32.gmra.mxu3 %vm663_vm0, %v3861_v55  ;;  %v13270_v38 = vld [vmem:[%s16655_s6 + $0x10] sm:$0xff] }
 0x40e   : > { %10003 = vmatmul.msk.f32.gmra.mxu2 %vm663_vm0, %v3595_v50  ;;  %v16715_v50 = vld [vmem:[#allocation6_spill] sm:$0xff] }
 0x40f   : > { %6544 = vperm.xlu1 %10480, %v12985_v11   ;;  %v2906_v55 = vadd.f32 %v12923_v46, %v16715_v50  ;;  %v3598_v50 = vld [vmem:[#allocation2 + $0x361] sm:$0xff] }
 0x410   : > { %v3035_v13 = vpop.f32.mrf.mxu3  ;;  %6454 = vperm.xlu2 %10481, %v13270_v38  }
 0x411   : > { %v13256_v14 = vpop.f32.mrf.mxu2  ;;  %v3036_v63 = vadd.f32 %v3035_v13, %v2968_v22  ;;  %v13260_v62 = vpop.f32.mrf.mxu0  ;;  %v4405_v13 = vld [vmem:[#allocation2 + $0x53] sm:$0xff]  ;;  %v2974_v25 = vadd.f32 %v13047_v15, %v2906_v55 }
 0x413   : > { %v3060_v54 = vmax.f32 %v3036_v63, 0.0  ;;  %6534 = vperm.xlu0 %10479, %v12956_v31   ;;  %v3863_v31 = vld [vmem:[#allocation2 + $0x1ca] sm:$0xff]  ;;  %v13288_v63 = vpop.f32.mrf.mxu1 }
 0x414   : > { %9938 = vmatmul.msk.f32.gmra.mxu0 %vm663_vm0, %v3140_v5  ;;  %v16716_v5 = vld [vmem:[#allocation7_spill] sm:$0xff] }
 0x415   : > { %10077 = vmatmul.msk.f32.gmra.mxu1 %vm663_vm0, %v4404_v39  ;;  %3078 = vst.msk [vmem:[#allocation2 + $0x420] sm:$0xff] %vm663_vm0, %v3060_v54  ;;  %10025 = vmatmul.msk.f32.gmra.mxu3 %vm663_vm0, %v3862_v33  ;;  %v2909_v39 = vadd.f32 %v12923_v46, %v16716_v5 }
 0x416   : > { %10004 = vmatmul.msk.f32.gmra.mxu2 %vm663_vm0, %v3596_v21 }
 0x417   : > { %6529 = vperm.xlu1 %10480, %v13041_v49  }
 0x418   : > { %v3038_v11 = vpop.f32.mrf.mxu3  ;;  %6549 = vperm.xlu2 %10481, %v12901_v27   ;;  %v2977_v27 = vadd.f32 %v13066_v0, %v2909_v39  ;;  %v16717_v0 = vld [vmem:[#allocation8_spill] sm:$0xff] }
 0x419   : > { %v13278_v19 = vpop.f32.mrf.mxu2  ;;  %v3039_v22 = vadd.f32 %v3038_v11, %v2971_v24  ;;  %v13282_v36 = vpop.f32.mrf.mxu0  ;;  %v3142_v24 = vld [vmem:[#allocation2 + $0x331] sm:$0xff]  ;;  %v4406_v11 = vld [vmem:[#allocation2 + $0x5b] sm:$0xff] }
 0x41b   : > { %v3061_v34 = vmax.f32 %v3039_v22, 0.0  ;;  %7039 = vperm.xlu0 %10479, %v13020_v56   ;;  %v3864_v56 = vld [vmem:[#allocation2 + $0x1d2] sm:$0xff]  ;;  %v13309_v46 = vpop.f32.mrf.mxu1 }
 0x41c   : > { %9939 = vmatmul.msk.f32.gmra.mxu0 %vm663_vm0, %v3141_v16  ;;  %v3477_v16 = vadd.f32 %v16717_v0, %v13120_v45 }
 0x41d   : > { %10078 = vmatmul.msk.f32.gmra.mxu1 %vm663_vm0, %v4405_v13  ;;  %3079 = vst.msk [vmem:[#allocation2 + $0x428] sm:$0xff] %vm663_vm0, %v3061_v34  ;;  %10026 = vmatmul.msk.f32.gmra.mxu3 %vm663_vm0, %v3863_v31  ;;  %v4407_v31 = vld [vmem:[#allocation2 + $0xcb] sm:$0xff] }
 0x41e   : > { %10005 = vmatmul.msk.f32.gmra.mxu2 %vm663_vm0, %v3597_v57  ;;  %v3143_v57 = vld [vmem:[#allocation2 + $0x339] sm:$0xff]  ;;  %v3817_v45 = vadd.f32 %v13089_v35, %v3477_v16 }
 0x41f   : > { %7034 = vperm.xlu1 %10480, %v13032_v1   ;;  %v4408_v35 = vld [vmem:[#allocation2 + $0xd3] sm:$0xff] }
 0x420   : > { %v3041_v49 = vpop.f32.mrf.mxu3  ;;  %6539 = vperm.xlu2 %10481, %v12946_v42   ;;  %v4715_v42 = vld [vmem:[%s16652_s3 + $0xd8] sm:$0xff] }
 0x421   : > { %v13295_v54 = vpop.f32.mrf.mxu2  ;;  %v3042_v21 = vadd.f32 %v3041_v49, %v2974_v25  ;;  %v13299_v15 = vpop.f32.mrf.mxu0  ;;  %v3865_v25 = vld [vmem:[#allocation2 + $0x242] sm:$0xff]  ;;  %4824 = vmatpush.msrb.mxu2 %v4715_v42 }
 0x423   : > { %v3062_v33 = vmax.f32 %v3042_v21, 0.0  ;;  %7024 = vperm.xlu0 %10479, %v13073_v32   ;;  %v3599_v32 = vld [vmem:[#allocation2 + $0x369] sm:$0xff]  ;;  %v13332_v39 = vpop.f32.mrf.mxu1 }
 0x424   : > { %9940 = vmatmul.msk.f32.gmra.mxu0 %vm663_vm0, %v3142_v24  ;;  %v4714_v24 = vld [vmem:[%s16652_s3 + $0xd0] sm:$0xff] }
 0x425   : > { %10079 = vmatmul.msk.f32.gmra.mxu1 %vm663_vm0, %v4406_v11  ;;  %3080 = vst.msk [vmem:[#allocation2 + $0x430] sm:$0xff] %vm663_vm0, %v3062_v33  ;;  %10027 = vmatmul.msk.f32.gmra.mxu3 %vm663_vm0, %v3864_v56  ;;  %v4713_v56 = vld [vmem:[%s16652_s3 + $0xc8] sm:$0xff] }
 0x426   : > { %10006 = vmatmul.msk.f32.gmra.mxu2 %vm663_vm0, %v3598_v50  ;;  %v3144_v50 = vld [vmem:[#allocation2 + $0x341] sm:$0xff] }
 0x427   : > { %7019 = vperm.xlu1 %10480, %v13132_v9   ;;  %4825 = vmatpush.msrb.mxu2 %v4714_v24  ;;  %v3867_v24 = vld [vmem:[#allocation2 + $0x252] sm:$0xff] }
 0x428   : > { %v3044_v1 = vpop.f32.mrf.mxu3  ;;  %6524 = vperm.xlu2 %10481, %v12998_v61   ;;  %v16719_v61 = vld [vmem:[#allocation10_spill] sm:$0xff] }
 0x429   : > { %v13312_v55 = vpop.f32.mrf.mxu2  ;;  %v3045_v22 = vadd.f32 %v3044_v1, %v2977_v27  ;;  %v13314_v34 = vpop.f32.mrf.mxu0  ;;  %v3480_v11 = vadd.f32 %v16719_v61, %v13143_v58  ;;  %v13355_v27 = vld [vmem:[%s16655_s6 + $0xe8] sm:$0xff]  ;;  %v3600_v1 = vld [vmem:[#allocation2 + $0x3d9] sm:$0xff]  ;;  %4826 = vmatpush.msrb.mxu2 %v4713_v56 }
 0x42a   : > { %v4712_v58 = vld [vmem:[%s16652_s3 + $0xc0] sm:$0xff] }
 0x42b   : > { %v3063_v13 = vmax.f32 %v3045_v22, 0.0  ;;  %7014 = vperm.xlu0 %10479, %v13096_v4   ;;  %v13344_v4 = vld [vmem:[%s16655_s6 + $0xf0] sm:$0xff]  ;;  %v3818_v0 = vadd.f32 %v13114_v30, %v3480_v11  ;;  %4827 = vmatpush.msrb.mxu2 %v4712_v58  ;;  %v13375_v42 = vpop.f32.mrf.mxu1  ;;  %v3601_v30 = vld [vmem:[#allocation2 + $0x3e1] sm:$0xff]  ;;  %v13405_v58 = vld [vmem:[%s16655_s6 + $0xd8] sm:$0xff] }
 0x42c   : > { %9941 = vmatmul.msk.f32.gmra.mxu0 %vm663_vm0, %v3143_v57  ;;  %v3866_v22 = vld [vmem:[#allocation2 + $0x24a] sm:$0xff] }
 0x42d   : > { %10080 = vmatmul.msk.f32.gmra.mxu1 %vm663_vm0, %v4407_v31  ;;  %3081 = vst.msk [vmem:[#allocation2 + $0x438] sm:$0xff] %vm663_vm0, %v3063_v13  ;;  %10028 = vmatmul.msk.f32.gmra.mxu3 %vm663_vm0, %v3865_v25 }
 0x42e   : > { %10007 = vmatmul.msk.f32.gmra.mxu2 %vm663_vm0, %v3599_v32  ;;  %v16721_v32 = vld [vmem:[#allocation11_spill] sm:$0xff] }
 0x42f   : > { %7114 = vperm.xlu1 %10480, %v13344_v4   ;;  %v3483_v25 = vadd.f32 %v16721_v32, %v13174_v26  ;;  %v4161_v26 = vld [vmem:[%s16652_s3 + $0x98] sm:$0xff] }
 0x430   : > { %v3998_v5 = vpop.f32.mrf.mxu3  ;;  %7029 = vperm.xlu2 %10481, %v13109_v3   ;;  %4270 = vmatpush.msra.mxu0 %v4161_v26  ;;  %v3146_v32 = vld [vmem:[#allocation2 + $0x3b9] sm:$0xff] }
 0x431   : > { %v13330_v49 = vpop.f32.mrf.mxu2  ;;  %v13334_v21 = vadd.f32 %v3998_v5, %v3817_v45  ;;  %v13336_v33 = vpop.f32.mrf.mxu0  ;;  %v3145_v45 = vld [vmem:[#allocation2 + $0x349] sm:$0xff]  ;;  %v4409_v5 = vld [vmem:[#allocation2 + $0xdb] sm:$0xff]  ;;  %v3819_v61 = vadd.f32 %v13139_v40, %v3483_v25 }
 0x432   : > { %v16723_v40 = vld [vmem:[#allocation12_spill] sm:$0xff]  ;;  %v4159_v25 = vld [vmem:[%s16652_s3 + $0x88] sm:$0xff] }
 0x433   : > { %16718 = vst [vmem:[#allocation5_spill] sm:$0xff] %v13334_v21  ;;  %7109 = vperm.xlu0 %10479, %v13355_v27   ;;  %v4158_v26 = vld [vmem:[%s16652_s3 + $0x80] sm:$0xff] }
 0x434   : > { %9942 = vmatmul.msk.f32.gmra.mxu0 %vm663_vm0, %v3144_v50 }
 0x435   : > { %10081 = vmatmul.msk.f32.gmra.mxu1 %vm663_vm0, %v4408_v35  ;;  %10029 = vmatmul.msk.f32.gmra.mxu3 %vm663_vm0, %v3866_v22  ;;  %v13383_v35 = vld [vmem:[%s16655_s6 + $0xf8] sm:$0xff]  ;;  %v4160_v22 = vld [vmem:[%s16652_s3 + $0x90] sm:$0xff] }
 0x436   : > { %10008 = vmatmul.msk.f32.gmra.mxu2 %vm663_vm0, %v3600_v1  ;;  %4271 = vmatpush.msra.mxu0 %v4160_v22 }
 0x437   : > { %7004 = vperm.xlu1 %10480, %v13188_v12  }
 0x438   : > { %v4001_v13 = vpop.f32.mrf.mxu3  ;;  %7119 = vperm.xlu2 %10481, %v13383_v35   ;;  %4272 = vmatpush.msra.mxu0 %v4159_v25  ;;  %v13449_v25 = vld [vmem:[%s16655_s6 + $0xe0] sm:$0xff] }
 0x439   : > { %v13367_v16 = vpop.f32.mrf.mxu2  ;;  %v13369_v57 = vadd.f32 %v4001_v13, %v3818_v0  ;;  %v13371_v31 = vpop.f32.mrf.mxu0  ;;  %v4410_v0 = vld [vmem:[#allocation2 + $0xe3] sm:$0xff]  ;;  %v3486_v13 = vadd.f32 %v16723_v40, %v13196_v2 }
 0x43a   : > { %v13423_v2 = vld [vmem:[%s16655_s6 + $0x48] sm:$0xff]  ;;  %4273 = vmatpush.msra.mxu0 %v4158_v26 }
 0x43b   : > { %16720 = vst [vmem:[#allocation9_spill] sm:$0xff] %v13369_v57  ;;  %6999 = vperm.xlu0 %10479, %v13151_v8  }
 0x43c   : > { %9943 = vmatmul.msk.f32.gmra.mxu0 %vm663_vm0, %v3145_v45  ;;  %v13416_v45 = vld [vmem:[%s16655_s6 + $0xd0] sm:$0xff] }
 0x43d   : > { %10082 = vmatmul.msk.f32.gmra.mxu1 %vm663_vm0, %v4409_v5  ;;  %10030 = vmatmul.msk.f32.gmra.mxu3 %vm663_vm0, %v3867_v24  ;;  %16724 = vst [vmem:[#allocation6_spill] sm:$0xff] %v13416_v45  ;;  %v3602_v5 = vld [vmem:[#allocation2 + $0x3e9] sm:$0xff]  ;;  %v13425_v24 = vpop.f32.mrf.mxu1 }
 0x43e   : > { %10009 = vmatmul.msk.f32.gmra.mxu2 %vm663_vm0, %v3601_v30  ;;  %v3868_v30 = vld [vmem:[#allocation2 + $0x25a] sm:$0xff] }
 0x43f   : > { %7099 = vperm.xlu1 %10480, %v13405_v58  }
 0x440   : > { %v4004_v50 = vpop.f32.mrf.mxu3  ;;  %7009 = vperm.xlu2 %10481, %v13423_v2  }
 0x441   : > { %v13393_v11 = vpop.f32.mrf.mxu2  ;;  %v13395_v56 = vadd.f32 %v4004_v50, %v3819_v61  ;;  %v13397_v1 = vpop.f32.mrf.mxu0  ;;  %v3820_v61 = vadd.f32 %v13170_v43, %v3486_v13  ;;  %v3603_v43 = vld [vmem:[#allocation2 + $0x3f1] sm:$0xff] }
 0x442   : > { %v3869_v13 = vld [vmem:[#allocation2 + $0x2ca] sm:$0xff] }
 0x443   : > { %16722 = vst [vmem:[#allocation4_spill] sm:$0xff] %v13395_v56  ;;  %7094 = vperm.xlu0 %10479, %v13416_v45   ;;  %v4411_v56 = vld [vmem:[#allocation2 + $0x153] sm:$0xff] }
 0x444   : > { %9944 = vmatmul.msk.f32.gmra.mxu0 %vm663_vm0, %v3146_v32  ;;  %v16726_v32 = vld [vmem:[#allocation13_spill] sm:$0xff] }
 0x445   : > { %10083 = vmatmul.msk.f32.gmra.mxu1 %vm663_vm0, %v4410_v0  ;;  %10031 = vmatmul.msk.f32.gmra.mxu3 %vm663_vm0, %v3868_v30  ;;  %v3147_v30 = vld [vmem:[#allocation2 + $0x3c1] sm:$0xff] }
 0x446   : > { %10010 = vmatmul.msk.f32.gmra.mxu2 %vm663_vm0, %v3602_v5  ;;  %v3489_v5 = vadd.f32 %v16726_v32, %v13218_v7  ;;  %v13454_v7 = vpop.f32.mrf.mxu1 }
 0x447   : > { %6989 = vperm.xlu1 %10480, %v13230_v23   ;;  %16727 = vst [vmem:[#allocation8_spill] sm:$0xff] %v13454_v7 }
 0x448   : > { %v4007_v22 = vpop.f32.mrf.mxu3  ;;  %v3821_v26 = vadd.f32 %v13192_v59, %v3489_v5  ;;  %7104 = vperm.xlu2 %10481, %v13449_v25   ;;  %v13475_v59 = vld [vmem:[%s16655_s6 + $0xb8] sm:$0xff] }
 0x449   : > { %v13435_v50 = vpop.f32.mrf.mxu2  ;;  %v13437_v0 = vadd.f32 %v4007_v22, %v3820_v61  ;;  %v13439_v40 = vpop.f32.mrf.mxu0  ;;  %16729 = vst [vmem:[#allocation11_spill] sm:$0xff] %v13475_v59  ;;  %v3870_v5 = vld [vmem:[#allocation2 + $0x2d2] sm:$0xff] }
 0x44b   : > { %16725 = vst [vmem:[#allocation7_spill] sm:$0xff] %v13437_v0  ;;  %6984 = vperm.xlu0 %10479, %v13201_v18   ;;  %v4412_v0 = vld [vmem:[#allocation2 + $0x15b] sm:$0xff] }
 0x44c   : > { %9945 = vmatmul.msk.f32.gmra.mxu0 %vm663_vm0, %v3147_v30  ;;  %v13467_v30 = vld [vmem:[%s16655_s6 + $0xc0] sm:$0xff] }
 0x44d   : > { %10084 = vmatmul.msk.f32.gmra.mxu1 %vm663_vm0, %v4411_v56  ;;  %10032 = vmatmul.msk.f32.gmra.mxu3 %vm663_vm0, %v3869_v13  ;;  %v3148_v13 = vld [vmem:[#allocation2 + $0x3c9] sm:$0xff] }
 0x44e   : > { %10011 = vmatmul.msk.f32.gmra.mxu2 %vm663_vm0, %v3603_v43  ;;  %v3492_v43 = vadd.f32 %v12969_v6, %v13240_v60  ;;  %v13487_v6 = vpop.permute.xlu0 %5479 }
 0x44f   : > { %7084 = vperm.xlu1 %10480, %v13467_v30   ;;  %16730 = vst [vmem:[#allocation12_spill] sm:$0xff] %v13487_v6 }
 0x450   : > { %v4010_v56 = vpop.f32.mrf.mxu3  ;;  %v3822_v60 = vadd.f32 %v13214_v47, %v3492_v43  ;;  %v3871_v47 = vld [vmem:[#allocation2 + $0x2da] sm:$0xff]  ;;  %v4681_v43 = vld [vmem:[#allocation2 + $0x6b] sm:$0xff] }
 0x451   : > { %v13458_v61 = vpop.f32.mrf.mxu2  ;;  %v13460_v22 = vadd.f32 %v4010_v56, %v3821_v26  ;;  %v13462_v32 = vpop.f32.mrf.mxu0  ;;  %v4680_v26 = vld [vmem:[#allocation2 + $0x63] sm:$0xff]  ;;  %v13482_v56 = vld [vmem:[%s16655_s6 + $0x30] sm:$0xff] }
 0x452   : > { %6994 = vperm.xlu2 %10481, %v13482_v56  }
 0x453   : > { %16728 = vst [vmem:[#allocation10_spill] sm:$0xff] %v13460_v22  ;;  %7079 = vperm.xlu0 %10479, %v13475_v59   ;;  %v13493_v22 = vpop.f32.mrf.mxu1  ;;  %v4413_v59 = vld [vmem:[#allocation2 + $0x163] sm:$0xff] }
 0x454   : > { %9946 = vmatmul.msk.f32.gmra.mxu0 %vm663_vm0, %v3148_v13  ;;  %16731 = vst [vmem:[#allocation13_spill] sm:$0xff] %v13493_v22 }
 0x455   : > { %10085 = vmatmul.msk.f32.gmra.mxu1 %vm663_vm0, %v4412_v0  ;;  %10033 = vmatmul.msk.f32.gmra.mxu3 %vm663_vm0, %v3870_v5  ;;  %v3495_v5 = vadd.f32 %v12993_v37, %v13260_v62  ;;  %v13512_v37 = vpop.permute.xlu1 %5469 }
 0x456   : > { %10108 = vmatmul.msk.f32.vlgmr.msrb.gmra.mxu2 %vm663_vm0, %v4680_v26  ;;  %v3149_v26 = vld [vmem:[#allocation2 + $0x3d1] sm:$0xff]  ;;  %16733 = vst [vmem:[#allocation15_spill] sm:$0xff] %v13512_v37  ;;  %v3498_v37 = vadd.f32 %v13022_v51, %v13282_v36 }
 0x457   : > { %6974 = vperm.xlu1 %10480, %v13270_v38   ;;  %v3823_v62 = vadd.f32 %v13234_v10, %v3495_v5  ;;  %v4126_v5 = vld [vmem:[#allocation2 + $0x42] sm:$0xff]  ;;  %v13544_v51 = vld [vmem:[%s16655_s6 + $0x18] sm:$0xff] }
 0x458   : > { %v4013_v0 = vpop.f32.mrf.mxu3  ;;  %v3824_v36 = vadd.f32 %v13256_v14, %v3498_v37  ;;  %v4127_v14 = vld [vmem:[#allocation2 + $0x4a] sm:$0xff]  ;;  %v4415_v37 = vld [vmem:[#allocation2 + $0x1db] sm:$0xff] }
 0x459   : > { %v13491_v13 = vpop.f32.mrf.mxu2  ;;  %v13495_v57 = vadd.f32 %v4013_v0, %v3822_v60  ;;  %v13497_v21 = vpop.f32.mrf.mxu0  ;;  %v13507_v60 = vld [vmem:[%s16655_s6 + $0xc8] sm:$0xff] }
 0x45a   : > { %7089 = vperm.xlu2 %10481, %v13507_v60  }
 0x45b   : > { %16732 = vst [vmem:[#allocation14_spill] sm:$0xff] %v13495_v57  ;;  %6969 = vperm.xlu0 %10479, %v13245_v53   ;;  %v13531_v10 = vpop.f32.mrf.mxu1  ;;  %v4414_v57 = vld [vmem:[#allocation2 + $0x16b] sm:$0xff] }
 0x45c   : > { %9947 = vmatmul.msk.f32.gmra.mxu0 %vm663_vm0, %v3149_v26  ;;  %16737 = vst [vmem:[#allocation19_spill] sm:$0xff] %v13531_v10 }
 0x45d   : > { %10086 = vmatmul.msk.f32.gmra.mxu1 %vm663_vm0, %v4413_v59  ;;  %10034 = vmatmul.msk.f32.gmra.mxu3 %vm663_vm0, %v3871_v47  ;;  %v13525_v47 = vld [vmem:[%s16655_s6 + $0xa8] sm:$0xff] }
 0x45e   : > { %10109 = vmatmul.msk.f32.gmra.mxu2 %vm663_vm0, %v4681_v43  ;;  %16735 = vst [vmem:[#allocation17_spill] sm:$0xff] %v13525_v47  ;;  %v13527_v43 = vpop.permute.xlu0 %5474 }
 0x45f   : > { %16736 = vst [vmem:[#allocation18_spill] sm:$0xff] %v13527_v43  ;;  %7069 = vperm.xlu1 %10480, %v13525_v47   ;;  %v4682_v43 = vld [vmem:[#allocation2 + $0x73] sm:$0xff] }
 0x460   : > { %v4016_v59 = vpop.f32.mrf.mxu3 }
 0x461   : > { %v13516_v0 = vpop.f32.mrf.mxu2  ;;  %v13518_v26 = vadd.f32 %v4016_v59, %v3823_v62  ;;  %v13520_v6 = vpop.f32.mrf.mxu0  ;;  %v13537_v62 = vld [vmem:[%s16655_s6 + $0xa0] sm:$0xff] }
 0x462   : > { %16738 = vst [vmem:[#allocation20_spill] sm:$0xff] %v13537_v62  ;;  %v3872_v59 = vld [vmem:[#allocation2 + $0x2e2] sm:$0xff]  ;;  %6979 = vperm.xlu2 %10481, %v13544_v51  }
 0x463   : > { %16734 = vst [vmem:[#allocation16_spill] sm:$0xff] %v13518_v26  ;;  %7064 = vperm.xlu0 %10479, %v13537_v62  }
 0x464   : > { %10044 = vmatmul.msk.f32.vlgmr.msra.gmra.mxu0 %vm663_vm0, %v4126_v5 }
 0x465   : > { %10087 = vmatmul.msk.f32.gmra.mxu1 %vm663_vm0, %v4414_v57  ;;  %10035 = vmatmul.msk.f32.gmra.mxu3 %vm663_vm0, %v3872_v59  ;;  %v13553_v57 = vpop.permute.xlu1 %5464  ;;  %v13562_v59 = vld [vmem:[%s16655_s6 + $0x98] sm:$0xff] }
 0x466   : > { %10110 = vmatmul.msk.f32.gmra.mxu2 %vm663_vm0, %v4682_v43  ;;  %16739 = vst [vmem:[#allocation21_spill] sm:$0xff] %v13553_v57  ;;  %v3501_v43 = vadd.f32 %v13058_v17, %v13299_v15  ;;  %v13570_v57 = vld [vmem:[%s16655_s6 + $0x88] sm:$0xff]  ;;  %v13579_v17 = vld [vmem:[%s16655_s6 + $0xb0] sm:$0xff]  ;;  %v13581_v15 = vpop.f32.mrf.mxu1 }
 0x467   : > { %16741 = vst [vmem:[#allocation23_spill] sm:$0xff] %v13562_v59  ;;  %7059 = vperm.xlu1 %10480, %v13562_v59  }
 0x468   : > { %v4019_v5 = vpop.f32.mrf.mxu3  ;;  %16743 = vst [vmem:[#allocation25_spill] sm:$0xff] %v13581_v15 }
 0x469   : > { %v13551_v26 = vpop.f32.mrf.mxu2  ;;  %v13555_v10 = vadd.f32 %v4019_v5, %v3824_v36  ;;  %v13557_v22 = vpop.f32.mrf.mxu0  ;;  %v3873_v5 = vld [vmem:[#allocation2 + $0x352] sm:$0xff] }
 0x46a   : > { %v13572_v36 = vpop.permute.xlu0 %5454  ;;  %7074 = vperm.xlu2 %10481, %v13579_v17  }
 0x46b   : > { %16740 = vst [vmem:[#allocation22_spill] sm:$0xff] %v13555_v10  ;;  %v4683_v10 = vld [vmem:[#allocation2 + $0x7b] sm:$0xff]  ;;  %7049 = vperm.xlu0 %10479, %v13570_v57  }
 0x46c   : > { %16742 = vst [vmem:[#allocation24_spill] sm:$0xff] %v13572_v36  ;;  %10045 = vmatmul.msk.f32.gmra.mxu0 %vm663_vm0, %v4127_v14  ;;  %v4992_v36 = vld [vmem:[%s16652_s3 + $0xf8] sm:$0xff]  ;;  %v3825_v14 = vadd.f32 %v13278_v19, %v3501_v43  ;;  %v3504_v19 = vadd.f32 %v13084_v52, %v13314_v34 }
 0x46d   : > { %10088 = vmatmul.msk.f32.gmra.mxu1 %vm663_vm0, %v4415_v37  ;;  %10036 = vmatmul.msk.f32.gmra.mxu3 %vm663_vm0, %v3873_v5  ;;  %v13602_v5 = vpop.permute.xlu2 %5459  ;;  %v13604_v45 = vpop.permute.xlu1 %5994  ;;  %v4128_v43 = vld [vmem:[#allocation2 + $0x52] sm:$0xff] }
 0x46e   : > { %10111 = vmatmul.msk.f32.gmra.mxu2 %vm663_vm0, %v4683_v10  ;;  %5101 = vmatpush.msra.mxu3 %v4992_v36  ;;  %v13600_v10 = vld [vmem:[%s16655_s6 + $0x80] sm:$0xff]  ;;  %16745 = vst [vmem:[#allocation27_spill] sm:$0xff] %v13602_v5  ;;  %v4684_v5 = vld [vmem:[#allocation2 + $0xeb] sm:$0xff]  ;;  %v13626_v34 = vpop.f32.mrf.mxu1 }
 0x46f   : > { %16746 = vst [vmem:[#allocation28_spill] sm:$0xff] %v13604_v45  ;;  %v4416_v36 = vld [vmem:[#allocation2 + $0x1e3] sm:$0xff]  ;;  %7044 = vperm.xlu1 %10480, %v13600_v10  }
 0x470   : > { %v4022_v62 = vpop.f32.mrf.mxu3  ;;  %v13619_v45 = vld [vmem:[%s16655_s6] sm:$0xff]  ;;  %16749 = vst [vmem:[#allocation31_spill] sm:$0xff] %v13626_v34 }
 0x471   : > { %v13591_v37 = vpop.f32.mrf.mxu2  ;;  %v13593_v7 = vadd.f32 %v4022_v62, %v3825_v14  ;;  %v13595_v15 = vpop.f32.mrf.mxu0  ;;  %v13612_v62 = vld [vmem:[%s16655_s6 + $0x70] sm:$0xff]  ;;  %v3874_v14 = vld [vmem:[#allocation2 + $0x35a] sm:$0xff]  ;;  %v3875_v34 = vld [vmem:[#allocation2 + $0x362] sm:$0xff] }
 0x472   : > { %16747 = vst [vmem:[#allocation29_spill] sm:$0xff] %v13612_v62  ;;  %v13623_v52 = vpop.permute.xlu0 %5989  ;;  %6964 = vperm.xlu2 %10481, %v13619_v45  }
 0x473   : > { %16744 = vst [vmem:[#allocation26_spill] sm:$0xff] %v13593_v7  ;;  %7554 = vperm.xlu0 %10479, %v13612_v62  }
 0x474   : > { %10046 = vmatmul.msk.f32.gmra.mxu0 %vm663_vm0, %v4128_v43  ;;  %16748 = vst [vmem:[#allocation30_spill] sm:$0xff] %v13623_v52  ;;  %v3826_v43 = vadd.f32 %v13295_v54, %v3504_v19  ;;  %v4417_v52 = vld [vmem:[#allocation2 + $0x1eb] sm:$0xff]  ;;  %v4685_v54 = vld [vmem:[#allocation2 + $0xf3] sm:$0xff] }
 0x475   : > { %10089 = vmatmul.msk.f32.gmra.mxu1 %vm663_vm0, %v4416_v36  ;;  %10037 = vmatmul.msk.f32.gmra.mxu3 %vm663_vm0, %v3874_v14  ;;  %v4129_v14 = vld [vmem:[#allocation2 + $0x5a] sm:$0xff]  ;;  %v13639_v62 = vpop.permute.xlu2 %5999  ;;  %v13648_v19 = vpop.permute.xlu1 %5444 }
 0x476   : > { %10112 = vmatmul.msk.f32.gmra.mxu2 %vm663_vm0, %v4684_v5  ;;  %v3507_v5 = vadd.f32 %v13118_v20, %v13336_v33  ;;  %16750 = vst [vmem:[#allocation32_spill] sm:$0xff] %v13639_v62  ;;  %v3876_v62 = vld [vmem:[#allocation2 + $0x36a] sm:$0xff] }
 0x477   : > { %7549 = vperm.xlu1 %10480, %v13109_v3   ;;  %16751 = vst [vmem:[#allocation33_spill] sm:$0xff] %v13648_v19 }
 0x478   : > { %v4025_v7 = vpop.f32.mrf.mxu3  ;;  %v3827_v3 = vadd.f32 %v13312_v55, %v3507_v5  ;;  %v4130_v55 = vld [vmem:[#allocation2 + $0xca] sm:$0xff]  ;;  %v4418_v5 = vld [vmem:[#allocation2 + $0x1f3] sm:$0xff] }
 0x479   : > { %v13630_v36 = vpop.f32.mrf.mxu2  ;;  %v13632_v59 = vadd.f32 %v4025_v7, %v3826_v43  ;;  %v13634_v47 = vpop.f32.mrf.mxu0  ;;  %v13646_v7 = vld [vmem:[%s16655_s6 + $0x90] sm:$0xff] }
 0x47a   : > { %7054 = vperm.xlu2 %10481, %v13646_v7   ;;  %v13655_v20 = vpop.permute.xlu0 %5439 }
 0x47b   : > { %7539 = vperm.xlu0 %10479, %v13132_v9   ;;  %16752 = vst [vmem:[#allocation34_spill] sm:$0xff] %v13655_v20  ;;  %v3510_v9 = vadd.f32 %v13153_v44, %v13371_v31 }
 0x47c   : > { %10047 = vmatmul.msk.f32.gmra.mxu0 %vm663_vm0, %v4129_v14 }
 0x47d   : > { %10090 = vmatmul.msk.f32.gmra.mxu1 %vm663_vm0, %v4417_v52  ;;  %10038 = vmatmul.msk.f32.gmra.mxu3 %vm663_vm0, %v3875_v34  ;;  %v13657_v52 = vpop.f32.mrf.mxu1  ;;  %v13666_v34 = vld [vmem:[%s16655_s6 + $0x50] sm:$0xff]  ;;  %v13682_v44 = vpop.permute.xlu2 %5449 }
 0x47e   : > { %10113 = vmatmul.msk.f32.gmra.mxu2 %vm663_vm0, %v4685_v54  ;;  %16754 = vst [vmem:[#allocation36_spill] sm:$0xff] %v13682_v44  ;;  %v13685_v31 = vpop.permute.xlu1 %5979  ;;  %v3877_v44 = vld [vmem:[#allocation2 + $0x3da] sm:$0xff] }
 0x47f   : > { %7534 = vperm.xlu1 %10480, %v13666_v34   ;;  %16755 = vst [vmem:[#allocation37_spill] sm:$0xff] %v13685_v31 }
 0x480   : > { %v4028_v33 = vpop.f32.mrf.mxu3 }
 0x481   : > { %v13659_v43 = vadd.f32 %v4028_v33, %v3827_v3  ;;  %v13661_v14 = vpop.f32.mrf.mxu0  ;;  %v13668_v54 = vpop.f32.mrf.mxu2  ;;  %v4686_v3 = vld [vmem:[#allocation2 + $0xfb] sm:$0xff] }
 0x482   : > { %v13678_v33 = vld [vmem:[%s16655_s6 + $0x78] sm:$0xff] }
 0x483   : > { %16753 = vst [vmem:[#allocation35_spill] sm:$0xff] %v13659_v43  ;;  %7524 = vperm.xlu0 %10479, %v13188_v12   ;;  %7559 = vperm.xlu2 %10481, %v13678_v33   ;;  %v3513_v12 = vadd.f32 %v13180_v28, %v13397_v1  ;;  %v13713_v28 = vld [vmem:[%s16655_s6 + $0x60] sm:$0xff]  ;;  %v4420_v43 = vld [vmem:[#allocation2 + $0x26b] sm:$0xff] }
 0x484   : > { %10048 = vmatmul.msk.f32.gmra.mxu0 %vm663_vm0, %v4130_v55  ;;  %v3828_v55 = vadd.f32 %v13330_v49, %v3510_v9  ;;  %v4131_v49 = vld [vmem:[#allocation2 + $0xd2] sm:$0xff]  ;;  %v4419_v9 = vld [vmem:[#allocation2 + $0x263] sm:$0xff] }
 0x485   : > { %10091 = vmatmul.msk.f32.gmra.mxu1 %vm663_vm0, %v4418_v5  ;;  %10039 = vmatmul.msk.f32.gmra.mxu3 %vm663_vm0, %v3876_v62  ;;  %v4991_v62 = vld [vmem:[%s16652_s3 + $0xf0] sm:$0xff]  ;;  %v13700_v31 = vpop.f32.mrf.mxu1  ;;  %v3829_v1 = vadd.f32 %v13367_v16, %v3513_v12  ;;  %v3878_v16 = vld [vmem:[#allocation2 + $0x3e2] sm:$0xff] }
 0x486   : > { %10114 = vmatmul.msk.f32.gmra.mxu2 %vm663_vm0, %v4686_v3  ;;  %v13696_v3 = vpop.permute.xlu0 %5974  ;;  %5102 = vmatpush.msra.mxu3 %v4991_v62  ;;  %v4687_v62 = vld [vmem:[#allocation2 + $0x103] sm:$0xff]  ;;  %v4688_v12 = vld [vmem:[#allocation2 + $0x173] sm:$0xff] }
 0x487   : > { %16757 = vst [vmem:[#allocation39_spill] sm:$0xff] %v13696_v3  ;;  %7519 = vperm.xlu1 %10480, %v13151_v8   ;;  %v4989_v8 = vld [vmem:[%s16652_s3 + $0xe0] sm:$0xff]  ;;  %v13725_v3 = vpop.permute.xlu1 %5429 }
 0x488   : > { %v4031_v5 = vpop.f32.mrf.mxu3  ;;  %16759 = vst [vmem:[#allocation41_spill] sm:$0xff] %v13725_v3 }
 0x489   : > { %v13689_v20 = vadd.f32 %v4031_v5, %v3828_v55  ;;  %v13691_v19 = vpop.f32.mrf.mxu0  ;;  %v4990_v55 = vld [vmem:[%s16652_s3 + $0xe8] sm:$0xff]  ;;  %v13706_v5 = vpop.f32.mrf.mxu2 }
 0x48a   : > { %5103 = vmatpush.msra.mxu3 %v4990_v55  ;;  %v4132_v55 = vld [vmem:[#allocation2 + $0xda] sm:$0xff] }
 0x48b   : > { %16756 = vst [vmem:[#allocation38_spill] sm:$0xff] %v13689_v20  ;;  %7509 = vperm.xlu0 %10479, %v13230_v23   ;;  %7544 = vperm.xlu2 %10481, %v13713_v28   ;;  %v3516_v20 = vadd.f32 %v13211_v41, %v13439_v40 }
 0x48c   : > { %10049 = vmatmul.msk.f32.gmra.mxu0 %vm663_vm0, %v4131_v49  ;;  %v13723_v49 = vpop.permute.xlu2 %5984  ;;  %5104 = vmatpush.msra.mxu3 %v4989_v8 }
 0x48d   : > { %10092 = vmatmul.msk.f32.gmra.mxu1 %vm663_vm0, %v4419_v9  ;;  %10040 = vmatmul.msk.f32.gmra.mxu3 %vm663_vm0, %v3877_v44  ;;  %16758 = vst [vmem:[#allocation40_spill] sm:$0xff] %v13723_v49  ;;  %v13738_v8 = vpop.f32.mrf.mxu1  ;;  %v4421_v49 = vld [vmem:[#allocation2 + $0x273] sm:$0xff] }
 0x48e   : > { %10115 = vmatmul.msk.f32.gmra.mxu2 %vm663_vm0, %v4687_v62  ;;  %v13734_v23 = vpop.permute.xlu0 %5424 }
 0x48f   : > { %7504 = vperm.xlu1 %10480, %v13201_v18   ;;  %16760 = vst [vmem:[#allocation42_spill] sm:$0xff] %v13734_v23  ;;  %v3830_v18 = vadd.f32 %v13393_v11, %v3516_v20  ;;  %v3879_v11 = vld [vmem:[#allocation2 + $0x3ea] sm:$0xff]  ;;  %v4689_v20 = vld [vmem:[#allocation2 + $0x17b] sm:$0xff] }
 0x490   : > { %v4034_v9 = vpop.f32.mrf.mxu3 }
 0x491   : > { %v13727_v44 = vadd.f32 %v4034_v9, %v3829_v1  ;;  %v13729_v62 = vpop.f32.mrf.mxu0  ;;  %v13742_v1 = vpop.f32.mrf.mxu2 }
 0x493   : > { %7494 = vperm.xlu0 %10479, %v13270_v38   ;;  %7529 = vperm.xlu2 %10481, %v13423_v2   ;;  %v5805_v38 = vld [vmem:[%s16657_s8] sm:$0x3f] }
 0x494   : > { %10050 = vmatmul.msk.f32.gmra.mxu0 %vm663_vm0, %v4132_v55  ;;  %v13753_v55 = vpop.permute.xlu1 %5964 }
 0x495   : > { %10093 = vmatmul.msk.f32.gmra.mxu1 %vm663_vm0, %v4420_v43  ;;  %10041 = vmatmul.msk.f32.gmra.mxu3 %vm663_vm0, %v3878_v16  ;;  %v13751_v43 = vpop.permute.xlu2 %5434  ;;  %16762 = vst [vmem:[#allocation44_spill] sm:$0xff] %v13753_v55  ;;  %v3519_v16 = vadd.f32 %v13238_v48, %v13462_v32  ;;  %v13767_v48 = vpop.f32.mrf.mxu1 }
 0x496   : > { %10116 = vmatmul.msk.f32.gmra.mxu2 %vm663_vm0, %v4688_v12  ;;  %16761 = vst [vmem:[#allocation43_spill] sm:$0xff] %v13751_v43  ;;  %v4133_v12 = vld [vmem:[#allocation2 + $0xe2] sm:$0xff] }
 0x497   : > { %7489 = vperm.xlu1 %10480, %v13245_v53   ;;  %v3831_v53 = vadd.f32 %v13435_v50, %v3519_v16  ;;  %v7365_v50 = vld [vmem:[%s16657_s8] sm:$0x3f] }
 0x498   : > { %v4037_v41 = vpop.f32.mrf.mxu3 }
 0x499   : > { %v13747_v40 = vadd.f32 %v4037_v41, %v3830_v18  ;;  %v13749_v9 = vpop.f32.mrf.mxu0  ;;  %v13765_v18 = vpop.permute.xlu0 %5959 }
 0x49a   : > { %16763 = vst [vmem:[#allocation45_spill] sm:$0xff] %v13765_v18  ;;  %v13771_v32 = vpop.f32.mrf.mxu2  ;;  %v4422_v18 = vld [vmem:[#allocation2 + $0x27b] sm:$0xff] }
 0x49b   : > { %5808 = vperm.xlu0 %10479, %v5805_v38   ;;  %7514 = vperm.xlu2 %10481, %v13482_v56   ;;  %v3522_v38 = vadd.f32 %v13262_v29, %v13497_v21 }
 0x49c   : > { %10051 = vmatmul.msk.f32.gmra.mxu0 %vm663_vm0, %v4133_v12  ;;  %v13789_v55 = vpop.permute.xlu1 %5414 }
 0x49d   : > { %10094 = vmatmul.msk.f32.gmra.mxu1 %vm663_vm0, %v4421_v49  ;;  %10042 = vmatmul.msk.f32.gmra.mxu3 %vm663_vm0, %v3879_v11  ;;  %v6325_v11 = vld [vmem:[%s16657_s8] sm:$0x3f]  ;;  %v13785_v16 = vpop.permute.xlu2 %5969  ;;  %16765 = vst [vmem:[#allocation47_spill] sm:$0xff] %v13789_v55  ;;  %v3832_v29 = vadd.f32 %v13458_v61, %v3522_v38  ;;  %v4691_v61 = vld [vmem:[#allocation2 + $0x18b] sm:$0xff] }
 0x49e   : > { %10117 = vmatmul.msk.f32.gmra.mxu2 %vm663_vm0, %v4689_v20  ;;  %v4134_v20 = vld [vmem:[#allocation2 + $0x152] sm:$0xff]  ;;  %16764 = vst [vmem:[#allocation46_spill] sm:$0xff] %v13785_v16  ;;  %v13797_v16 = vpop.f32.mrf.mxu1  ;;  %v4957_v38 = vld [vmem:[#allocation2 + $0x64] sm:$0xff]  ;;  %v4425_v55 = vld [vmem:[#allocation2 + $0x2fb] sm:$0xff] }
 0x49f   : > { %6328 = vperm.xlu1 %10480, %v6325_v11  }
 0x4a0   : > { %v4040_v41 = vpop.f32.mrf.mxu3 }
 0x4a1   : > { %v13773_v12 = vadd.f32 %v4040_v41, %v3831_v53  ;;  %v13775_v49 = vpop.f32.mrf.mxu0  ;;  %v3880_v53 = vld [vmem:[#allocation2 + $0x3f2] sm:$0xff]  ;;  %v4690_v41 = vld [vmem:[#allocation2 + $0x183] sm:$0xff]  ;;  %v13795_v21 = vpop.permute.xlu0 %5409 }
 0x4a2   : > { %16766 = vst [vmem:[#allocation48_spill] sm:$0xff] %v13795_v21  ;;  %v13803_v23 = vpop.f32.mrf.mxu2  ;;  %v4136_v21 = vld [vmem:[#allocation2 + $0x162] sm:$0xff] }
 0x4a3   : > { %7368 = vperm.xlu0 %10479, %v7365_v50   ;;  %7499 = vperm.xlu2 %10481, %v13544_v51   ;;  %v4423_v50 = vld [vmem:[#allocation2 + $0x2eb] sm:$0xff] }
 0x4a4   : > { %10052 = vmatmul.msk.f32.gmra.mxu0 %vm663_vm0, %v4134_v20 }
 0x4a5   : > { %10095 = vmatmul.msk.f32.gmra.mxu1 %vm663_vm0, %v4422_v18  ;;  %10043 = vmatmul.msk.f32.gmra.mxu3 %vm663_vm0, %v3880_v53  ;;  %v3525_v53 = vadd.f32 %v13288_v63, %v13520_v6 }
 0x4a6   : > { %10118 = vmatmul.msk.f32.gmra.mxu2 %vm663_vm0, %v4690_v41  ;;  %v4135_v41 = vld [vmem:[#allocation2 + $0x15a] sm:$0xff] }
 0x4a7   : > { %7564 = vperm.xlu1 %10480, %v13600_v10   ;;  %v3833_v63 = vadd.f32 %v13491_v13, %v3525_v53  ;;  %v4692_v13 = vld [vmem:[#allocation2 + $0x1fb] sm:$0xff]  ;;  %v4958_v53 = vld [vmem:[#allocation2 + $0x6c] sm:$0xff] }
 0x4a8   : > { %v4043_v11 = vpop.f32.mrf.mxu3 }
 0x4a9   : > { %v13799_v20 = vadd.f32 %v4043_v11, %v3832_v29  ;;  %v13801_v18 = vpop.f32.mrf.mxu0  ;;  %v13812_v29 = vpop.permute.xlu2 %5419 }
 0x4aa   : > { %16767 = vst [vmem:[#allocation49_spill] sm:$0xff] %v13812_v29  ;;  %v13815_v11 = vpop.permute.xlu1 %5949 }
 0x4ab   : > { %7639 = vperm.xlu0 %10479, %v13383_v35   ;;  %16768 = vst [vmem:[#allocation50_spill] sm:$0xff] %v13815_v11  ;;  %7484 = vperm.xlu2 %10481, %v13619_v45   ;;  %v4424_v35 = vld [vmem:[#allocation2 + $0x2f3] sm:$0xff]  ;;  %v13830_v11 = vpop.f32.mrf.mxu2 }
 0x4ac   : > { %10053 = vmatmul.msk.f32.gmra.mxu0 %vm663_vm0, %v4135_v41 }
 0x4ad   : > { %10096 = vmatmul.msk.f32.gmra.mxu1 %vm663_vm0, %v4423_v50  ;;  %10140 = vmatmul.msk.f32.vlgmr.msra.gmra.mxu3 %vm663_vm0, %v4957_v38  ;;  %v13823_v50 = vpop.permute.xlu0 %5944  ;;  %v13827_v38 = vpop.f32.mrf.mxu1 }
 0x4ae   : > { %10119 = vmatmul.msk.f32.gmra.mxu2 %vm663_vm0, %v4691_v61  ;;  %16769 = vst [vmem:[#allocation51_spill] sm:$0xff] %v13823_v50  ;;  %v3528_v61 = vadd.f32 %v13309_v46, %v13557_v22  ;;  %v3531_v50 = vadd.f32 %v13332_v39, %v13595_v15 }
 0x4af   : > { %7634 = vperm.xlu1 %10480, %v13344_v4  }
 0x4b0   : > { %v4046_v6 = vpop.f32.mrf.mxu3  ;;  %v3834_v46 = vadd.f32 %v13516_v0, %v3528_v61  ;;  %v4693_v0 = vld [vmem:[#allocation2 + $0x203] sm:$0xff]  ;;  %v4959_v61 = vld [vmem:[#allocation2 + $0x74] sm:$0xff]  ;;  %v3835_v39 = vadd.f32 %v13551_v26, %v3531_v50  ;;  %v4694_v26 = vld [vmem:[#allocation2 + $0x20b] sm:$0xff] }
 0x4b1   : > { %v13819_v10 = vadd.f32 %v4046_v6, %v3833_v63  ;;  %v13821_v41 = vpop.f32.mrf.mxu0  ;;  %v6845_v63 = vld [vmem:[%s16657_s8] sm:$0x3f]  ;;  %v13841_v4 = vpop.permute.xlu2 %5954 }
 0x4b2   : > { %16770 = vst [vmem:[#allocation52_spill] sm:$0xff] %v13841_v4 }
 0x4b3   : > { %7624 = vperm.xlu0 %10479, %v13449_v25   ;;  %6848 = vperm.xlu2 %10481, %v6845_v63  }
 0x4b4   : > { %10054 = vmatmul.msk.f32.gmra.mxu0 %vm663_vm0, %v4136_v21  ;;  %v13843_v21 = vpop.permute.xlu1 %5939 }
 0x4b5   : > { %10097 = vmatmul.msk.f32.gmra.mxu1 %vm663_vm0, %v4424_v35  ;;  %10141 = vmatmul.msk.f32.gmra.mxu3 %vm663_vm0, %v4958_v53  ;;  %16771 = vst [vmem:[#allocation53_spill] sm:$0xff] %v13843_v21  ;;  %v13852_v53 = vpop.permute.xlu0 %5929  ;;  %v13856_v63 = vpop.f32.mrf.mxu1  ;;  %v4140_v21 = vld [vmem:[#allocation2 + $0x1ea] sm:$0xff] }
 0x4b6   : > { %10120 = vmatmul.msk.f32.gmra.mxu2 %vm663_vm0, %v4692_v13  ;;  %v4137_v13 = vld [vmem:[#allocation2 + $0x16a] sm:$0xff]  ;;  %16773 = vst [vmem:[#allocation55_spill] sm:$0xff] %v13852_v53 }
 0x4b7   : > { %7619 = vperm.xlu1 %10480, %v13405_v58   ;;  %v4426_v53 = vld [vmem:[#allocation2 + $0x303] sm:$0xff] }
 0x4b8   : > { %v4049_v22 = vpop.f32.mrf.mxu3 }
 0x4b9   : > { %v13845_v6 = vadd.f32 %v4049_v22, %v3834_v46  ;;  %v13847_v35 = vpop.f32.mrf.mxu0  ;;  %v13860_v46 = vpop.f32.mrf.mxu2 }
 0x4ba   : > { %v13869_v22 = vpop.permute.xlu2 %5404 }
 0x4bb   : > { %16772 = vst [vmem:[#allocation54_spill] sm:$0xff] %v13845_v6  ;;  %7609 = vperm.xlu0 %10479, %v13507_v60   ;;  %7569 = vperm.xlu2 %10481, %v13570_v57   ;;  %v4960_v57 = vld [vmem:[#allocation2 + $0x7c] sm:$0xff] }
 0x4bc   : > { %10055 = vmatmul.msk.f32.gmra.mxu0 %vm663_vm0, %v4137_v13  ;;  %16775 = vst [vmem:[#allocation57_spill] sm:$0xff] %v13869_v22  ;;  %v13871_v13 = vpop.permute.xlu1 %5924  ;;  %v4155_v6 = vld [vmem:[#allocation2 + $0x402] sm:$0xff] }
 0x4bd   : > { %10098 = vmatmul.msk.f32.gmra.mxu1 %vm663_vm0, %v4425_v55  ;;  %10142 = vmatmul.msk.f32.gmra.mxu3 %vm663_vm0, %v4959_v61  ;;  %16776 = vst [vmem:[#allocation58_spill] sm:$0xff] %v13871_v13  ;;  %v4138_v61 = vld [vmem:[#allocation2 + $0x1da] sm:$0xff]  ;;  %v13880_v50 = vpop.permute.xlu0 %5554 }
 0x4be   : > { %10121 = vmatmul.msk.f32.gmra.mxu2 %vm663_vm0, %v4693_v0  ;;  %v3534_v0 = vadd.f32 %v13375_v42, %v13634_v47  ;;  %16777 = vst [vmem:[#allocation59_spill] sm:$0xff] %v13880_v50  ;;  %v16779_v50 = vld [vmem:[#allocation17_spill] sm:$0xff] }
 0x4bf   : > { %7604 = vperm.xlu1 %10480, %v13467_v30  }
 0x4c0   : > { %v4052_v58 = vpop.f32.mrf.mxu3  ;;  %v3836_v42 = vadd.f32 %v13591_v37, %v3534_v0  ;;  %v4961_v37 = vld [vmem:[#allocation2 + $0xec] sm:$0xff] }
 0x4c1   : > { %v13865_v15 = vadd.f32 %v4052_v58, %v3835_v39  ;;  %v13867_v55 = vpop.f32.mrf.mxu0  ;;  %v13883_v39 = vpop.f32.mrf.mxu1 }
 0x4c2   : > { %v13887_v30 = vpop.f32.mrf.mxu2  ;;  %v13896_v13 = vpop.permute.xlu2 %5934 }
 0x4c3   : > { %16774 = vst [vmem:[#allocation56_spill] sm:$0xff] %v13865_v15  ;;  %7594 = vperm.xlu0 %10479, %v13579_v17   ;;  %7629 = vperm.xlu2 %10481, %v13355_v27   ;;  %v4695_v27 = vld [vmem:[#allocation2 + $0x213] sm:$0xff] }
 0x4c4   : > { %10056 = vmatmul.msk.f32.gmra.mxu0 %vm663_vm0, %v4138_v61  ;;  %v3537_v61 = vadd.f32 %v13425_v24, %v13661_v14  ;;  %16780 = vst [vmem:[#allocation17_spill] sm:$0xff] %v13896_v13  ;;  %v13900_v0 = vpop.permute.xlu1 %5549  ;;  %v16783_v14 = vld [vmem:[#allocation6_spill] sm:$0xff] }
 0x4c5   : > { %10099 = vmatmul.msk.f32.gmra.mxu1 %vm663_vm0, %v4426_v53  ;;  %10143 = vmatmul.msk.f32.gmra.mxu3 %vm663_vm0, %v4960_v57  ;;  %v4427_v57 = vld [vmem:[#allocation2 + $0x373] sm:$0xff]  ;;  %16781 = vst [vmem:[#allocation61_spill] sm:$0xff] %v13900_v0 }
 0x4c6   : > { %10122 = vmatmul.msk.f32.gmra.mxu2 %vm663_vm0, %v4694_v26  ;;  %v4139_v26 = vld [vmem:[#allocation2 + $0x1e2] sm:$0xff]  ;;  %v3837_v24 = vadd.f32 %v13630_v36, %v3537_v61  ;;  %v4962_v61 = vld [vmem:[#allocation2 + $0xf4] sm:$0xff] }
 0x4c7   : > { %7589 = vperm.xlu1 %10480, %v16779_v50   ;;  %v13907_v50 = vpop.permute.xlu0 %5539  ;;  %v4696_v36 = vld [vmem:[#allocation2 + $0x283] sm:$0xff] }
 0x4c8   : > { %v4055_v47 = vpop.f32.mrf.mxu3 }
 0x4c9   : > { %v13889_v53 = vadd.f32 %v4055_v47, %v3836_v42  ;;  %v13891_v58 = vpop.f32.mrf.mxu0  ;;  %v16782_v42 = vld [vmem:[#allocation23_spill] sm:$0xff] }
 0x4ca   : > { %16784 = vst [vmem:[#allocation23_spill] sm:$0xff] %v13907_v50  ;;  %v13915_v0 = vpop.f32.mrf.mxu2 }
 0x4cb   : > { %16778 = vst [vmem:[#allocation60_spill] sm:$0xff] %v13889_v53  ;;  %7579 = vperm.xlu0 %10479, %v16782_v42   ;;  %7614 = vperm.xlu2 %10481, %v16783_v14   ;;  %v4428_v42 = vld [vmem:[#allocation2 + $0x37b] sm:$0xff]  ;;  %v16788_v14 = vld [vmem:[#allocation29_spill] sm:$0xff] }
 0x4cc   : > { %10057 = vmatmul.msk.f32.gmra.mxu0 %vm663_vm0, %v4139_v26  ;;  %v13909_v26 = vpop.f32.mrf.mxu1 }
 0x4cd   : > { %10100 = vmatmul.msk.f32.gmra.mxu1 %vm663_vm0, %v4427_v57  ;;  %10144 = vmatmul.msk.f32.gmra.mxu3 %vm663_vm0, %v4961_v37 }
 0x4ce   : > { %10123 = vmatmul.msk.f32.gmra.mxu2 %vm663_vm0, %v4695_v27  ;;  %v16786_v27 = vld [vmem:[#allocation8_spill] sm:$0xff] }
 0x4cf   : > { %v3540_v37 = vadd.f32 %v16786_v27, %v13691_v19  ;;  %8079 = vperm.xlu1 %10480, %v13678_v33   ;;  %v16790_v27 = vld [vmem:[#allocation11_spill] sm:$0xff] }
 0x4d0   : > { %v4058_v47 = vpop.f32.mrf.mxu3 }
 0x4d1   : > { %v13911_v57 = vadd.f32 %v4058_v47, %v3837_v24  ;;  %v13913_v13 = vpop.f32.mrf.mxu0  ;;  %v13924_v24 = vpop.permute.xlu2 %5559  ;;  %v3838_v19 = vadd.f32 %v13668_v54, %v3540_v37  ;;  %v4141_v54 = vld [vmem:[#allocation2 + $0x1f2] sm:$0xff]  ;;  %v4429_v37 = vld [vmem:[#allocation2 + $0x383] sm:$0xff] }
 0x4d2   : > { %16787 = vst [vmem:[#allocation8_spill] sm:$0xff] %v13924_v24  ;;  %v13927_v47 = vpop.permute.xlu1 %6079 }
 0x4d3   : > { %16785 = vst [vmem:[#allocation6_spill] sm:$0xff] %v13911_v57  ;;  %8074 = vperm.xlu0 %10479, %v16788_v14   ;;  %7599 = vperm.xlu2 %10481, %v16790_v27   ;;  %v16793_v14 = vld [vmem:[#allocation13_spill] sm:$0xff]  ;;  %v4963_v27 = vld [vmem:[#allocation2 + $0xfc] sm:$0xff] }
 0x4d4   : > { %10058 = vmatmul.msk.f32.gmra.mxu0 %vm663_vm0, %v4140_v21  ;;  %16789 = vst [vmem:[#allocation29_spill] sm:$0xff] %v13927_v47  ;;  %v3543_v24 = vadd.f32 %v16793_v14, %v13729_v62  ;;  %v13944_v47 = vpop.f32.mrf.mxu1  ;;  %v16794_v14 = vld [vmem:[#allocation20_spill] sm:$0xff] }
 0x4d5   : > { %10101 = vmatmul.msk.f32.gmra.mxu1 %vm663_vm0, %v4428_v42  ;;  %10145 = vmatmul.msk.f32.gmra.mxu3 %vm663_vm0, %v4962_v61  ;;  %v13940_v61 = vpop.permute.xlu0 %6074  ;;  %v4431_v57 = vld [vmem:[#allocation2 + $0x3fb] sm:$0xff] }
 0x4d6   : > { %10124 = vmatmul.msk.f32.gmra.mxu2 %vm663_vm0, %v4696_v36  ;;  %v13938_v36 = vld [vmem:[%s16655_s6 + $0x68] sm:$0xff]  ;;  %16792 = vst [vmem:[#allocation62_spill] sm:$0xff] %v13940_v61  ;;  %v13954_v61 = vld [vmem:[%s16655_s6 + $0x58] sm:$0xff]  ;;  %v3839_v62 = vadd.f32 %v13706_v5, %v3543_v24 }
 0x4d7   : > { %8069 = vperm.xlu1 %10480, %v13938_v36   ;;  %v4142_v5 = vld [vmem:[#allocation2 + $0x262] sm:$0xff]  ;;  %v4430_v24 = vld [vmem:[#allocation2 + $0x38b] sm:$0xff] }
 0x4d8   : > { %v4061_v50 = vpop.f32.mrf.mxu3 }
 0x4d9   : > { %v13931_v21 = vadd.f32 %v4061_v50, %v3838_v19  ;;  %v13933_v42 = vpop.f32.mrf.mxu0  ;;  %v13947_v50 = vpop.f32.mrf.mxu2  ;;  %v4697_v19 = vld [vmem:[#allocation2 + $0x28b] sm:$0xff] }
 0x4da   : > { %v13963_v4 = vpop.permute.xlu1 %5529 }
 0x4db   : > { %16791 = vst [vmem:[#allocation11_spill] sm:$0xff] %v13931_v21  ;;  %8059 = vperm.xlu0 %10479, %v13954_v61   ;;  %7584 = vperm.xlu2 %10481, %v16794_v14   ;;  %v4964_v14 = vld [vmem:[#allocation2 + $0x104] sm:$0xff] }
 0x4dc   : > { %10059 = vmatmul.msk.f32.gmra.mxu0 %vm663_vm0, %v4141_v54  ;;  %v13961_v54 = vpop.permute.xlu2 %5544  ;;  %16796 = vst [vmem:[#allocation20_spill] sm:$0xff] %v13963_v4  ;;  %v4143_v21 = vld [vmem:[#allocation2 + $0x26a] sm:$0xff] }
 0x4dd   : > { %10102 = vmatmul.msk.f32.gmra.mxu1 %vm663_vm0, %v4429_v37  ;;  %10146 = vmatmul.msk.f32.gmra.mxu3 %vm663_vm0, %v4963_v27  ;;  %16795 = vst [vmem:[#allocation13_spill] sm:$0xff] %v13961_v54  ;;  %v16798_v27 = vld [vmem:[#allocation19_spill] sm:$0xff]  ;;  %v13984_v4 = vpop.permute.xlu0 %5524  ;;  %v13986_v54 = vpop.f32.mrf.mxu1 }
 0x4de   : > { %10125 = vmatmul.msk.f32.gmra.mxu2 %vm663_vm0, %v4697_v19  ;;  %v13972_v19 = vld [vmem:[%s16655_s6 + $0xf8] sm:$0xff]  ;;  %v3546_v3 = vadd.f32 %v16798_v27, %v13749_v9  ;;  %16799 = vst [vmem:[#allocation19_spill] sm:$0xff] %v13984_v4 }
 0x4df   : > { %8159 = vperm.xlu1 %10480, %v13972_v19  }
 0x4e0   : > { %v4064_v37 = vpop.f32.mrf.mxu3  ;;  %v3840_v27 = vadd.f32 %v13742_v1, %v3546_v3  ;;  %v4965_v3 = vld [vmem:[#allocation2 + $0x174] sm:$0xff]  ;;  %v14011_v1 = vld [vmem:[%s16655_s6 + $0x40] sm:$0xff] }
 0x4e1   : > { %v13965_v22 = vadd.f32 %v4064_v37, %v3839_v62  ;;  %v13967_v29 = vpop.f32.mrf.mxu0  ;;  %v4698_v62 = vld [vmem:[#allocation2 + $0x293] sm:$0xff]  ;;  %v13990_v9 = vpop.f32.mrf.mxu2 }
 0x4e2   : > { %v13982_v37 = vld [vmem:[%s16655_s6 + $0xf0] sm:$0xff] }
 0x4e3   : > { %16797 = vst [vmem:[#allocation63_spill] sm:$0xff] %v13965_v22  ;;  %8154 = vperm.xlu0 %10479, %v13982_v37   ;;  %7574 = vperm.xlu2 %10481, %v13646_v7   ;;  %v14001_v22 = vpop.permute.xlu1 %6064  ;;  %v4699_v7 = vld [vmem:[#allocation2 + $0x29b] sm:$0xff] }
 0x4e4   : > { %10060 = vmatmul.msk.f32.gmra.mxu0 %vm663_vm0, %v4142_v5  ;;  %v13999_v4 = vpop.permute.xlu2 %5534  ;;  %16802 = vst [vmem:[#allocation66_spill] sm:$0xff] %v14001_v22  ;;  %v4144_v22 = vld [vmem:[#allocation2 + $0x272] sm:$0xff] }
 0x4e5   : > { %10103 = vmatmul.msk.f32.gmra.mxu1 %vm663_vm0, %v4430_v24  ;;  %10147 = vmatmul.msk.f32.gmra.mxu3 %vm663_vm0, %v4964_v14  ;;  %16801 = vst [vmem:[#allocation65_spill] sm:$0xff] %v13999_v4  ;;  %v4432_v4 = vld [vmem:[#allocation2 + $0x403] sm:$0xff] }
 0x4e6   : > { %10126 = vmatmul.msk.f32.gmra.mxu2 %vm663_vm0, %v4698_v62  ;;  %v16803_v62 = vld [vmem:[#allocation25_spill] sm:$0xff] }
 0x4e7   : > { %v3549_v14 = vadd.f32 %v16803_v62, %v13775_v49  ;;  %8049 = vperm.xlu1 %10480, %v13423_v2   ;;  %v14016_v49 = vpop.permute.xlu0 %6059  ;;  %v14018_v2 = vpop.f32.mrf.mxu1 }
 0x4e8   : > { %v4067_v5 = vpop.f32.mrf.mxu3  ;;  %16804 = vst [vmem:[#allocation25_spill] sm:$0xff] %v14016_v49 }
 0x4e9   : > { %v13995_v24 = vadd.f32 %v4067_v5, %v3840_v27  ;;  %v13997_v43 = vpop.f32.mrf.mxu0 }
 0x4eb   : > { %16800 = vst [vmem:[#allocation64_spill] sm:$0xff] %v13995_v24  ;;  %8044 = vperm.xlu0 %10479, %v14011_v1   ;;  %8064 = vperm.xlu2 %10481, %v13713_v28   ;;  %v4967_v24 = vld [vmem:[#allocation2 + $0x184] sm:$0xff] }
 0x4ec   : > { %10061 = vmatmul.msk.f32.gmra.mxu0 %vm663_vm0, %v4143_v21  ;;  %v3841_v21 = vadd.f32 %v13771_v32, %v3549_v14  ;;  %v14031_v49 = vpop.permute.xlu2 %6069  ;;  %v4700_v32 = vld [vmem:[#allocation2 + $0x30b] sm:$0xff]  ;;  %v4966_v14 = vld [vmem:[#allocation2 + $0x17c] sm:$0xff] }
 0x4ed   : > { %10104 = vmatmul.msk.f32.gmra.mxu1 %vm663_vm0, %v4431_v57  ;;  %10148 = vmatmul.msk.f32.gmra.mxu3 %vm663_vm0, %v4965_v3  ;;  %v14022_v57 = vpop.f32.mrf.mxu2 }
 0x4ee   : > { %10127 = vmatmul.msk.f32.gmra.mxu2 %vm663_vm0, %v4699_v7  ;;  %v16806_v7 = vld [vmem:[#allocation31_spill] sm:$0xff] }
 0x4ef   : > { %v3552_v3 = vadd.f32 %v16806_v7, %v13801_v18  ;;  %8144 = vperm.xlu1 %10480, %v13449_v25   ;;  %16807 = vst [vmem:[#allocation31_spill] sm:$0xff] %v14031_v49  ;;  %v14053_v49 = vpop.f32.mrf.mxu1 }
 0x4f0   : > { %v4070_v27 = vpop.f32.mrf.mxu3 }
 0x4f1   : > { %v14024_v5 = vadd.f32 %v4070_v27, %v3841_v21  ;;  %v14026_v62 = vpop.f32.mrf.mxu0  ;;  %v14038_v21 = vld [vmem:[%s16655_s6 + $0xd8] sm:$0xff]  ;;  %v14040_v27 = vpop.permute.xlu1 %5514  ;;  %v3842_v25 = vadd.f32 %v13803_v23, %v3552_v3  ;;  %v14065_v23 = vld [vmem:[%s16655_s6 + $0x28] sm:$0xff] }
 0x4f2   : > { %16808 = vst [vmem:[#allocation68_spill] sm:$0xff] %v14040_v27  ;;  %v14070_v3 = vld [vmem:[%s16655_s6 + $0xe8] sm:$0xff] }
 0x4f3   : > { %16805 = vst [vmem:[#allocation67_spill] sm:$0xff] %v14024_v5  ;;  %8139 = vperm.xlu0 %10479, %v14038_v21   ;;  %8054 = vperm.xlu2 %10481, %v13666_v34   ;;  %v4433_v5 = vld [vmem:[#allocation2 + $0x40b] sm:$0xff]  ;;  %v4701_v34 = vld [vmem:[#allocation2 + $0x313] sm:$0xff] }
 0x4f4   : > { %10062 = vmatmul.msk.f32.gmra.mxu0 %vm663_vm0, %v4144_v22 }
 0x4f5   : > { %10105 = vmatmul.msk.f32.gmra.mxu1 %vm663_vm0, %v4432_v4  ;;  %10149 = vmatmul.msk.f32.gmra.mxu3 %vm663_vm0, %v4966_v14  ;;  %v14047_v4 = vpop.permute.xlu0 %5509  ;;  %v14055_v27 = vpop.f32.mrf.mxu2  ;;  %v4145_v14 = vld [vmem:[#allocation2 + $0x27a] sm:$0xff] }
 0x4f6   : > { %10128 = vmatmul.msk.f32.gmra.mxu2 %vm663_vm0, %v4700_v32  ;;  %16809 = vst [vmem:[#allocation69_spill] sm:$0xff] %v14047_v4  ;;  %v3555_v32 = vadd.f32 %v13657_v52, %v13821_v41  ;;  %v4434_v4 = vld [vmem:[#allocation2 + $0x413] sm:$0xff] }
 0x4f7   : > { %8034 = vperm.xlu1 %10480, %v13482_v56   ;;  %v14074_v56 = vpop.permute.xlu2 %5519 }
 0x4f8   : > { %v4073_v18 = vpop.f32.mrf.mxu3  ;;  %16811 = vst [vmem:[#allocation71_spill] sm:$0xff] %v14074_v56  ;;  %v3843_v41 = vadd.f32 %v13830_v11, %v3555_v32  ;;  %v4968_v56 = vld [vmem:[#allocation2 + $0x18c] sm:$0xff]  ;;  %v4702_v32 = vld [vmem:[#allocation2 + $0x31b] sm:$0xff] }
 0x4f9   : > { %v14049_v22 = vadd.f32 %v4073_v18, %v3842_v25  ;;  %v14051_v7 = vpop.f32.mrf.mxu0  ;;  %v14077_v52 = vpop.permute.xlu1 %6049 }
 0x4fa   : > { %16812 = vst [vmem:[#allocation72_spill] sm:$0xff] %v14077_v52  ;;  %v14090_v52 = vpop.f32.mrf.mxu1 }
 0x4fb   : > { %16810 = vst [vmem:[#allocation70_spill] sm:$0xff] %v14049_v22  ;;  %8029 = vperm.xlu0 %10479, %v14065_v23   ;;  %8149 = vperm.xlu2 %10481, %v14070_v3  }
 0x4fc   : > { %10063 = vmatmul.msk.f32.gmra.mxu0 %vm663_vm0, %v4145_v14 }
 0x4fd   : > { %10106 = vmatmul.msk.f32.gmra.mxu1 %vm663_vm0, %v4433_v5  ;;  %10150 = vmatmul.msk.f32.gmra.mxu3 %vm663_vm0, %v4967_v24  ;;  %v14085_v14 = vpop.permute.xlu0 %6044  ;;  %v3558_v24 = vadd.f32 %v13700_v31, %v13847_v35  ;;  %v14092_v11 = vpop.f32.mrf.mxu2  ;;  %v14104_v31 = vld [vmem:[%s16655_s6 + $0x38] sm:$0xff] }
 0x4fe   : > { %10129 = vmatmul.msk.f32.gmra.mxu2 %vm663_vm0, %v4701_v34  ;;  %16814 = vst [vmem:[#allocation74_spill] sm:$0xff] %v14085_v14  ;;  %v4146_v34 = vld [vmem:[#allocation2 + $0x2ea] sm:$0xff] }
 0x4ff   : > { %8129 = vperm.xlu1 %10480, %v13507_v60   ;;  %v3844_v60 = vadd.f32 %v13860_v46, %v3558_v24  ;;  %v14111_v35 = vpop.permute.xlu2 %6054  ;;  %v4703_v46 = vld [vmem:[#allocation2 + $0x323] sm:$0xff]  ;;  %v14126_v24 = vld [vmem:[%s16655_s6 + $0x10] sm:$0xff] }
 0x500   : > { %v4076_v5 = vpop.f32.mrf.mxu3  ;;  %16815 = vst [vmem:[#allocation75_spill] sm:$0xff] %v14111_v35 }
 0x501   : > { %v14081_v25 = vadd.f32 %v4076_v5, %v3843_v41  ;;  %v14083_v18 = vpop.f32.mrf.mxu0  ;;  %v14099_v41 = vld [vmem:[%s16655_s6 + $0xc0] sm:$0xff]  ;;  %v14113_v5 = vpop.permute.xlu1 %5499 }
 0x502   : > { %16816 = vst [vmem:[#allocation76_spill] sm:$0xff] %v14113_v5 }
 0x503   : > { %16813 = vst [vmem:[#allocation73_spill] sm:$0xff] %v14081_v25  ;;  %8124 = vperm.xlu0 %10479, %v14099_v41   ;;  %8039 = vperm.xlu2 %10481, %v14104_v31   ;;  %v4147_v25 = vld [vmem:[#allocation2 + $0x2f2] sm:$0xff] }
 0x504   : > { %10064 = vmatmul.msk.f32.gmra.mxu0 %vm663_vm0, %v4146_v34 }
 0x505   : > { %10107 = vmatmul.msk.f32.gmra.mxu1 %vm663_vm0, %v4434_v4  ;;  %10151 = vmatmul.msk.f32.gmra.mxu3 %vm663_vm0, %v4968_v56  ;;  %v4969_v56 = vld [vmem:[#allocation2 + $0x1fc] sm:$0xff] }
 0x506   : > { %10130 = vmatmul.msk.f32.gmra.mxu2 %vm663_vm0, %v4702_v32  ;;  %v3561_v32 = vadd.f32 %v13738_v8, %v13867_v55 }
 0x507   : > { %8019 = vperm.xlu1 %10480, %v13544_v51   ;;  %v14137_v51 = vpop.f32.mrf.mxu2  ;;  %v14146_v5 = vpop.permute.xlu2 %5504 }
 0x508   : > { %v4079_v4 = vpop.f32.mrf.mxu3  ;;  %v3845_v8 = vadd.f32 %v13887_v30, %v3561_v32  ;;  %16820 = vst [vmem:[#allocation80_spill] sm:$0xff] %v14146_v5  ;;  %v4704_v30 = vld [vmem:[#allocation2 + $0x393] sm:$0xff]  ;;  %v4970_v32 = vld [vmem:[#allocation2 + $0x204] sm:$0xff] }
 0x509   : > { %v14115_v34 = vadd.f32 %v4079_v4, %v3844_v60  ;;  %v14117_v14 = vpop.f32.mrf.mxu0  ;;  %v14131_v60 = vld [vmem:[%s16655_s6 + $0xd0] sm:$0xff]  ;;  %v14133_v4 = vpop.permute.xlu0 %5494  ;;  %v4149_v5 = vld [vmem:[#allocation2 + $0x302] sm:$0xff] }
 0x50a   : > { %16818 = vst [vmem:[#allocation78_spill] sm:$0xff] %v14133_v4  ;;  %v14148_v4 = vpop.permute.xlu1 %6034 }
 0x50b   : > { %16817 = vst [vmem:[#allocation77_spill] sm:$0xff] %v14115_v34  ;;  %8014 = vperm.xlu0 %10479, %v14126_v24   ;;  %8134 = vperm.xlu2 %10481, %v14131_v60   ;;  %v4151_v34 = vld [vmem:[#allocation2 + $0x37a] sm:$0xff] }
 0x50c   : > { %10065 = vmatmul.msk.f32.gmra.mxu0 %vm663_vm0, %v4147_v25  ;;  %16821 = vst [vmem:[#allocation81_spill] sm:$0xff] %v14148_v4 }
 0x50d   : > { %10152 = vmatmul.msk.f32.gmra.mxu3 %vm663_vm0, %v4969_v56  ;;  %v3564_v56 = vadd.f32 %v13767_v48, %v13891_v58  ;;  %v14165_v48 = vld [vmem:[%s16655_s6 + $0x20] sm:$0xff] }
 0x50e   : > { %10131 = vmatmul.msk.f32.gmra.mxu2 %vm663_vm0, %v4703_v46  ;;  %v4148_v46 = vld [vmem:[#allocation2 + $0x2fa] sm:$0xff] }
 0x50f   : > { %8114 = vperm.xlu1 %10480, %v13579_v17   ;;  %v3846_v58 = vadd.f32 %v13915_v0, %v3564_v56  ;;  %v4705_v0 = vld [vmem:[#allocation2 + $0x39b] sm:$0xff]  ;;  %v4971_v56 = vld [vmem:[#allocation2 + $0x20c] sm:$0xff] }
 0x510   : > { %v4082_v55 = vpop.f32.mrf.mxu3 }
 0x511   : > { %v14142_v25 = vadd.f32 %v4082_v55, %v3845_v8  ;;  %v14144_v35 = vpop.f32.mrf.mxu0  ;;  %v14157_v8 = vld [vmem:[%s16655_s6 + $0xa8] sm:$0xff]  ;;  %v14167_v17 = vpop.permute.xlu0 %6029 }
 0x512   : > { %16822 = vst [vmem:[#allocation82_spill] sm:$0xff] %v14167_v17  ;;  %v14171_v55 = vpop.f32.mrf.mxu2  ;;  %v14186_v17 = vld [vmem:[%s16655_s6 + $0x98] sm:$0xff] }
 0x513   : > { %16819 = vst [vmem:[#allocation79_spill] sm:$0xff] %v14142_v25  ;;  %8109 = vperm.xlu0 %10479, %v14157_v8   ;;  %8024 = vperm.xlu2 %10481, %v14165_v48   ;;  %v14180_v25 = vpop.permute.xlu2 %6039 }
 0x514   : > { %10066 = vmatmul.msk.f32.gmra.mxu0 %vm663_vm0, %v4148_v46  ;;  %16824 = vst [vmem:[#allocation84_spill] sm:$0xff] %v14180_v25 }
 0x515   : > { %10153 = vmatmul.msk.f32.gmra.mxu3 %vm663_vm0, %v4970_v32  ;;  %v3567_v32 = vadd.f32 %v13797_v16, %v13913_v13 }
 0x516   : > { %10132 = vmatmul.msk.f32.gmra.mxu2 %vm663_vm0, %v4704_v30 }
 0x517   : > { %8004 = vperm.xlu1 %10480, %v13619_v45   ;;  %v14196_v45 = vld [vmem:[%s16655_s6 + $0xb8] sm:$0xff]  ;;  %v3847_v16 = vadd.f32 %v13947_v50, %v3567_v32  ;;  %v4706_v50 = vld [vmem:[#allocation2 + $0x3a3] sm:$0xff] }
 0x518   : > { %v4085_v46 = vpop.f32.mrf.mxu3  ;;  %v4972_v32 = vld [vmem:[#allocation2 + $0x214] sm:$0xff] }
 0x519   : > { %v14173_v4 = vadd.f32 %v4085_v46, %v3846_v58  ;;  %v14175_v30 = vpop.f32.mrf.mxu0  ;;  %v14188_v58 = vpop.permute.xlu1 %5484 }
 0x51a   : > { %16825 = vst [vmem:[#allocation85_spill] sm:$0xff] %v14188_v58  ;;  %v4150_v58 = vld [vmem:[#allocation2 + $0x372] sm:$0xff] }
 0x51b   : > { %16823 = vst [vmem:[#allocation83_spill] sm:$0xff] %v14173_v4  ;;  %8099 = vperm.xlu0 %10479, %v14186_v17   ;;  %8119 = vperm.xlu2 %10481, %v14196_v45  }
 0x51c   : > { %10067 = vmatmul.msk.f32.gmra.mxu0 %vm663_vm0, %v4149_v5  ;;  %v14200_v5 = vpop.permute.xlu0 %6019 }
 0x51d   : > { %10154 = vmatmul.msk.f32.gmra.mxu3 %vm663_vm0, %v4971_v56  ;;  %16826 = vst [vmem:[#allocation86_spill] sm:$0xff] %v14200_v5  ;;  %v3570_v56 = vadd.f32 %v13827_v38, %v13933_v42  ;;  %v14215_v5 = vld [vmem:[%s16655_s6 + $0x70] sm:$0xff]  ;;  %v16830_v42 = vld [vmem:[#allocation5_spill] sm:$0xff] }
 0x51e   : > { %10133 = vmatmul.msk.f32.gmra.mxu2 %vm663_vm0, %v4705_v0  ;;  %v14206_v0 = vpop.f32.mrf.mxu2 }
 0x51f   : > { %8599 = vperm.xlu1 %10480, %v13678_v33   ;;  %v14225_v33 = vld [vmem:[%s16655_s6 + $0x8] sm:$0xff] }
 0x520   : > { %v4088_v13 = vpop.f32.mrf.mxu3 }
 0x521   : > { %v14202_v46 = vadd.f32 %v4088_v13, %v3847_v16  ;;  %v14204_v25 = vpop.f32.mrf.mxu0  ;;  %v14219_v16 = vpop.permute.xlu2 %5489  ;;  %v3848_v13 = vadd.f32 %v13990_v9, %v3570_v56  ;;  %v4707_v9 = vld [vmem:[#allocation2 + $0x3ab] sm:$0xff] }
 0x522   : > { %16828 = vst [vmem:[#allocation88_spill] sm:$0xff] %v14219_v16  ;;  %v14227_v38 = vpop.permute.xlu1 %6519  ;;  %v4973_v56 = vld [vmem:[#allocation2 + $0x284] sm:$0xff] }
 0x523   : > { %16827 = vst [vmem:[#allocation87_spill] sm:$0xff] %v14202_v46  ;;  %8594 = vperm.xlu0 %10479, %v14215_v5   ;;  %8009 = vperm.xlu2 %10481, %v14225_v33   ;;  %v14240_v46 = vld [vmem:[%s16655_s6 + $0x88] sm:$0xff] }
 0x524   : > { %10068 = vmatmul.msk.f32.gmra.mxu0 %vm663_vm0, %v4150_v58  ;;  %16829 = vst [vmem:[#allocation89_spill] sm:$0xff] %v14227_v38  ;;  %v4371_v58 = vadd.f32 %v13967_v29, %v16830_v42  ;;  %v14242_v4 = vpop.permute.xlu0 %6514  ;;  %v14252_v42 = vld [vmem:[%s16655_s6 + $0x80] sm:$0xff] }
 0x525   : > { %10155 = vmatmul.msk.f32.gmra.mxu3 %vm663_vm0, %v4972_v32  ;;  %16832 = vst [vmem:[#allocation90_spill] sm:$0xff] %v14242_v4 }
 0x526   : > { %10134 = vmatmul.msk.f32.gmra.mxu2 %vm663_vm0, %v4706_v50  ;;  %v4648_v38 = vadd.f32 %v13856_v63, %v4371_v58  ;;  %v14246_v29 = vpop.f32.mrf.mxu2  ;;  %v14260_v63 = vld [vmem:[%s16655_s6 + $0xa0] sm:$0xff]  ;;  %v16833_v58 = vld [vmem:[#allocation9_spill] sm:$0xff] }
 0x527   : > { %8089 = vperm.xlu1 %10480, %v14240_v46  }
 0x528   : > { %v4091_v50 = vpop.f32.mrf.mxu3 }
 0x529   : > { %v14233_v32 = vadd.f32 %v4091_v50, %v3848_v13  ;;  %v14235_v16 = vpop.f32.mrf.mxu0  ;;  %v4925_v13 = vadd.f32 %v14022_v57, %v4648_v38  ;;  %v14268_v50 = vld [vmem:[%s16653_s4] ss:$0 sm:$0xff]  ;;  %v4152_v57 = vld [vmem:[#allocation2 + $0x382] sm:$0xff] }
 0x52a   : > { %v14273_v4 = vpop.permute.xlu1 %6009  ;;  %v4708_v38 = vld [vmem:[#allocation2 + $0x41b] sm:$0xff] }
 0x52b   : > { %16831 = vst [vmem:[#allocation5_spill] sm:$0xff] %v14233_v32  ;;  %8084 = vperm.xlu0 %10479, %v14252_v42   ;;  %8104 = vperm.xlu2 %10481, %v14260_v63  }
 0x52c   : > { %10069 = vmatmul.msk.f32.gmra.mxu0 %vm663_vm0, %v4151_v34  ;;  %v4372_v34 = vadd.f32 %v13997_v43, %v16833_v58  ;;  %16835 = vst [vmem:[#allocation91_spill] sm:$0xff] %v14273_v4  ;;  %v4974_v58 = vld [vmem:[#allocation2 + $0x28c] sm:$0xff]  ;;  %v14281_v15 = vpop.permute.xlu0 %6004 }
 0x52d   : > { %10156 = vmatmul.msk.f32.gmra.mxu3 %vm663_vm0, %v4973_v56  ;;  %16836 = vst [vmem:[#allocation92_spill] sm:$0xff] %v14281_v15 }
 0x52e   : > { %10135 = vmatmul.msk.f32.gmra.mxu2 %vm663_vm0, %v4707_v9  ;;  %v14271_v9 = vpop.permute.xlu2 %6024  ;;  %v4649_v53 = vadd.f32 %v13883_v39, %v4372_v34  ;;  %v14291_v39 = vld [vmem:[%s16655_s6 + $0x90] sm:$0xff] }
 0x52f   : > { %16834 = vst [vmem:[#allocation9_spill] sm:$0xff] %v14271_v9  ;;  %8584 = vperm.xlu1 %10480, %v13713_v28   ;;  %v16837_v28 = vld [vmem:[#allocation4_spill] sm:$0xff] }
 0x530   : > { %v5106_v56 = vpop.f32.mrf.mxu3  ;;  %v4926_v34 = vadd.f32 %v14055_v27, %v4649_v53  ;;  %v4153_v53 = vld [vmem:[#allocation2 + $0x38a] sm:$0xff]  ;;  %v14312_v27 = vpop.f32.mrf.mxu1 }
 0x531   : > { %v5202_v32 = vadd.f32 %v5106_v56, %v4925_v13  ;;  %v14275_v22 = vpop.f32.mrf.mxu0  ;;  %v14285_v13 = vpop.f32.mrf.mxu2 }
 0x533   : > { %v5238_v43 = vadd.f32 %v14268_v50, %v5202_v32  ;;  %8679 = vperm.xlu0 %10479, %v13972_v19   ;;  %v4373_v32 = vadd.f32 %v14026_v62, %v16837_v28  ;;  %8094 = vperm.xlu2 %10481, %v14291_v39   ;;  %v14305_v19 = vld [vmem:[%s16655_s6 + $0x50] sm:$0xff]  ;;  %v4709_v28 = vld [vmem:[#allocation2 + $0x423] sm:$0xff] }
 0x534   : > { %10070 = vmatmul.msk.f32.gmra.mxu0 %vm663_vm0, %v4152_v57 }
 0x535   : > { %v5270_v9 = vmax.f32 %v5238_v43, 0.0  ;;  %10157 = vmatmul.msk.f32.gmra.mxu3 %vm663_vm0, %v4974_v58  ;;  %v14307_v58 = vpop.permute.xlu1 %6504  ;;  %v4650_v62 = vadd.f32 %v13909_v26, %v4373_v32  ;;  %v14323_v26 = vpop.permute.xlu0 %6599  ;;  %v16841_v32 = vld [vmem:[#allocation7_spill] sm:$0xff] }
 0x536   : > { %10136 = vmatmul.msk.f32.gmra.mxu2 %vm663_vm0, %v4708_v38  ;;  %v14300_v38 = vpop.permute.xlu2 %6014  ;;  %16839 = vst [vmem:[#allocation93_spill] sm:$0xff] %v14307_v58 }
 0x537   : > { %5302 = vst.msk [vmem:[#allocation3] sm:$0xff] %vm663_vm0, %v5270_v9  ;;  %8574 = vperm.xlu1 %10480, %v14305_v19  }
 0x538   : > { %v5109_v56 = vpop.f32.mrf.mxu3  ;;  %16838 = vst [vmem:[#allocation4_spill] sm:$0xff] %v14300_v38 }
 0x539   : > { %v5203_v43 = vadd.f32 %v5109_v56, %v4926_v34  ;;  %v14298_v57 = vpop.f32.mrf.mxu0  ;;  %v4975_v34 = vld [vmem:[#allocation2 + $0x294] sm:$0xff]  ;;  %v14318_v56 = vld [vmem:[%s16655_s6 + $0x48] sm:$0xff]  ;;  %16840 = vst [vmem:[#allocation94_spill] sm:$0xff] %v14323_v26  ;;  %v14330_v58 = vpop.f32.mrf.mxu2 }
 0x53a   : > { %v4154_v26 = vld [vmem:[#allocation2 + $0x3fa] sm:$0xff] }
 0x53b   : > { %v5239_v9 = vadd.f32 %v14268_v50, %v5203_v43  ;;  %8569 = vperm.xlu0 %10479, %v14318_v56   ;;  %v4374_v43 = vadd.f32 %v14051_v7, %v16841_v32  ;;  %8589 = vperm.xlu2 %10481, %v13938_v36   ;;  %v14343_v36 = vld [vmem:[%s16655_s6 + $0xe0] sm:$0xff] }
 0x53c   : > { %10071 = vmatmul.msk.f32.gmra.mxu0 %vm663_vm0, %v4153_v53  ;;  %v4927_v53 = vadd.f32 %v14092_v11, %v4650_v62  ;;  %v4976_v11 = vld [vmem:[#allocation2 + $0x29c] sm:$0xff] }
 0x53d   : > { %v5271_v15 = vmax.f32 %v5239_v9, 0.0  ;;  %10158 = vmatmul.msk.f32.gmra.mxu3 %vm663_vm0, %v4975_v34  ;;  %v4651_v34 = vadd.f32 %v13944_v47, %v4374_v43  ;;  %v14345_v62 = vpop.permute.xlu1 %6494  ;;  %v14349_v47 = vpop.f32.mrf.mxu1 }
 0x53e   : > { %10137 = vmatmul.msk.f32.gmra.mxu2 %vm663_vm0, %v4709_v28  ;;  %v14337_v7 = vpop.permute.xlu2 %6509  ;;  %16843 = vst [vmem:[#allocation95_spill] sm:$0xff] %v14345_v62 }
 0x53f   : > { %5303 = vst.msk [vmem:[#allocation3 + $0x8] sm:$0xff] %vm663_vm0, %v5271_v15  ;;  %8669 = vperm.xlu1 %10480, %v14070_v3   ;;  %v4710_v15 = vld [vmem:[#allocation2 + $0x42b] sm:$0xff]  ;;  %v4928_v43 = vadd.f32 %v14137_v51, %v4651_v34 }
 0x540   : > { %v5112_v9 = vpop.f32.mrf.mxu3  ;;  %16842 = vst [vmem:[#allocation7_spill] sm:$0xff] %v14337_v7  ;;  %v4977_v51 = vld [vmem:[#allocation2 + $0x30c] sm:$0xff] }
 0x541   : > { %v5204_v4 = vadd.f32 %v5112_v9, %v4927_v53  ;;  %v14332_v28 = vpop.f32.mrf.mxu0  ;;  %v14357_v9 = vpop.permute.xlu0 %6489 }
 0x543   : > { %v5240_v38 = vadd.f32 %v14268_v50, %v5204_v4  ;;  %8664 = vperm.xlu0 %10479, %v14343_v36   ;;  %v16844_v4 = vld [vmem:[#allocation10_spill] sm:$0xff]  ;;  %8579 = vperm.xlu2 %10481, %v13954_v61  }
 0x544   : > { %10072 = vmatmul.msk.f32.gmra.mxu0 %vm663_vm0, %v4154_v26  ;;  %v4375_v26 = vadd.f32 %v14083_v18, %v16844_v4  ;;  %16845 = vst [vmem:[#allocation10_spill] sm:$0xff] %v14357_v9  ;;  %v4711_v18 = vld [vmem:[#allocation2 + $0x433] sm:$0xff]  ;;  %v4156_v9 = vld [vmem:[#allocation2 + $0x40a] sm:$0xff] }
 0x545   : > { %v5272_v32 = vmax.f32 %v5240_v38, 0.0  ;;  %10159 = vmatmul.msk.f32.gmra.mxu3 %vm663_vm0, %v4976_v11  ;;  %v14361_v11 = vpop.f32.mrf.mxu2  ;;  %v14370_v61 = vld [vmem:[%s16655_s6 + $0x30] sm:$0xff] }
 0x546   : > { %10138 = vmatmul.msk.f32.gmra.mxu2 %vm663_vm0, %v4710_v15  ;;  %v4652_v62 = vadd.f32 %v13986_v54, %v4375_v26  ;;  %v14374_v54 = vpop.permute.xlu2 %6499  ;;  %v16847_v4 = vld [vmem:[#allocation14_spill] sm:$0xff] }
 0x547   : > { %5304 = vst.msk [vmem:[#allocation3 + $0x10] sm:$0xff] %vm663_vm0, %v5272_v32  ;;  %8559 = vperm.xlu1 %10480, %v14104_v31   ;;  %v14377_v32 = vpop.permute.xlu1 %6589 }
 0x548   : > { %v5115_v53 = vpop.f32.mrf.mxu3  ;;  %16846 = vst [vmem:[#allocation96_spill] sm:$0xff] %v14377_v32  ;;  %v4929_v26 = vadd.f32 %v14171_v55, %v4652_v62  ;;  %v14399_v55 = vld [vmem:[%s16655_s6 + $0xc8] sm:$0xff] }
 0x549   : > { %v5205_v38 = vadd.f32 %v5115_v53, %v4928_v43  ;;  %v14359_v15 = vpop.f32.mrf.mxu0 }
 0x54b   : > { %v5241_v7 = vadd.f32 %v14268_v50, %v5205_v38  ;;  %8554 = vperm.xlu0 %10479, %v14370_v61   ;;  %8674 = vperm.xlu2 %10481, %v13982_v37   ;;  %v4978_v37 = vld [vmem:[#allocation2 + $0x314] sm:$0xff] }
 0x54c   : > { %10073 = vmatmul.msk.f32.gmra.mxu0 %vm663_vm0, %v4155_v6  ;;  %v4376_v6 = vadd.f32 %v14117_v14, %v16847_v4 }
 0x54d   : > { %v5273_v34 = vmax.f32 %v5241_v7, 0.0  ;;  %10160 = vmatmul.msk.f32.gmra.mxu3 %vm663_vm0, %v4977_v51  ;;  %v14384_v7 = vpop.f32.mrf.mxu1  ;;  %v14393_v14 = vpop.f32.mrf.mxu2 }
 0x54e   : > { %10139 = vmatmul.msk.f32.gmra.mxu2 %vm663_vm0, %v4711_v18  ;;  %v14388_v18 = vpop.permute.xlu0 %6584  ;;  %v4653_v51 = vadd.f32 %v14018_v2, %v4376_v6  ;;  %v16849_v2 = vld [vmem:[#allocation16_spill] sm:$0xff]  ;;  %v14408_v6 = vpop.permute.xlu2 %6594 }
 0x54f   : > { %5305 = vst.msk [vmem:[#allocation3 + $0x18] sm:$0xff] %vm663_vm0, %v5273_v34  ;;  %8654 = vperm.xlu1 %10480, %v14131_v60   ;;  %v4377_v4 = vadd.f32 %v14144_v35, %v16849_v2  ;;  %v5335_v35 = vld [vmem:[#allocation3 + $0x8] sm:$0xff]  ;;  %v14423_v2 = vld [vmem:[%s16655_s6 + $0x18] sm:$0xff] }
 0x550   : > { %v5118_v43 = vpop.f32.mrf.mxu3  ;;  %16848 = vst [vmem:[#allocation14_spill] sm:$0xff] %v14388_v18 }
 0x551   : > { %v5206_v53 = vadd.f32 %v5118_v43, %v4929_v26  ;;  %v14386_v38 = vpop.f32.mrf.mxu0  ;;  %16850 = vst [vmem:[#allocation16_spill] sm:$0xff] %v14408_v6  ;;  %v5336_v43 = vld [vmem:[#allocation3 + $0x10] sm:$0xff] }
 0x553   : > { %v5242_v32 = vadd.f32 %v14268_v50, %v5206_v53  ;;  %8649 = vperm.xlu0 %10479, %v14399_v55   ;;  %8564 = vperm.xlu2 %10481, %v14011_v1   ;;  %v4979_v1 = vld [vmem:[#allocation2 + $0x31c] sm:$0xff] }
 0x554   : > { %10074 = vmatmul.msk.f32.gmra.mxu0 %vm663_vm0, %v4156_v9  ;;  %v4930_v9 = vadd.f32 %v14206_v0, %v4653_v51  ;;  %v4157_v0 = vld [vmem:[#allocation2 + $0x412] sm:$0xff]  ;;  %v5334_v51 = vld [vmem:[#allocation3] sm:$0xff] }
 0x555   : > { %v5274_v62 = vmax.f32 %v5242_v32, 0.0  ;;  %10161 = vmatmul.msk.f32.gmra.mxu3 %vm663_vm0, %v4978_v37  ;;  %v14410_v32 = vpop.permute.xlu1 %6479  ;;  %v14414_v18 = vpop.f32.mrf.mxu1 }
 0x556   : > { %v5337_v34 = vld [vmem:[#allocation3 + $0x18] sm:$0xff]  ;;  %16851 = vst [vmem:[#allocation97_spill] sm:$0xff] %v14410_v32 }
 0x557   : > { %5306 = vst.msk [vmem:[#allocation3 + $0x20] sm:$0xff] %vm663_vm0, %v5274_v62  ;;  %5670 = vmatpush.msrb.mxu0 %v5337_v34  ;;  %v4654_v62 = vadd.f32 %v14053_v49, %v4377_v4  ;;  %8544 = vperm.xlu1 %10480, %v14165_v48   ;;  %v14428_v49 = vpop.f32.mrf.mxu2  ;;  %v16853_v4 = vld [vmem:[#allocation22_spill] sm:$0xff] }
 0x558   : > { %v5121_v26 = vpop.f32.mrf.mxu3 }
 0x559   : > { %v5207_v53 = vadd.f32 %v5121_v26, %v4930_v9  ;;  %5671 = vmatpush.msrb.mxu0 %v5336_v43  ;;  %v14412_v37 = vpop.f32.mrf.mxu0  ;;  %v14425_v9 = vpop.permute.xlu0 %6474  ;;  %v4378_v43 = vadd.f32 %v14175_v30, %v16853_v4 }
 0x55a   : > { %16852 = vst [vmem:[#allocation98_spill] sm:$0xff] %v14425_v9 }
 0x55b   : > { %v5243_v34 = vadd.f32 %v14268_v50, %v5207_v53  ;;  %5672 = vmatpush.msrb.mxu0 %v5335_v35  ;;  %8539 = vperm.xlu0 %10479, %v14423_v2   ;;  %v4931_v53 = vadd.f32 %v14246_v29, %v4654_v62  ;;  %v4655_v30 = vadd.f32 %v14090_v52, %v4378_v43  ;;  %v4980_v29 = vld [vmem:[#allocation2 + $0x324] sm:$0xff]  ;;  %v14457_v62 = vld [vmem:[%s16655_s6 + $0xb0] sm:$0xff] }
 0x55c   : > { %10075 = vmatmul.msk.f32.gmra.mxu0 %vm663_vm0, %v4157_v0  ;;  %8659 = vperm.xlu2 %10481, %v14038_v21   ;;  %v16856_v43 = vld [vmem:[#allocation26_spill] sm:$0xff] }
 0x55d   : > { %v5275_v26 = vmax.f32 %v5243_v34, 0.0  ;;  %10162 = vmatmul.msk.f32.gmra.mxu3 %vm663_vm0, %v4979_v1  ;;  %5673 = vmatpush.msrb.mxu0 %v5334_v51  ;;  %v14441_v34 = vld [vmem:[%s16654_s5] sm:$0xff]  ;;  %v14443_v1 = vpop.permute.xlu2 %6484  ;;  %v14445_v51 = vpop.permute.xlu1 %6574 }
 0x55e   : > { %16854 = vst [vmem:[#allocation22_spill] sm:$0xff] %v14445_v51  ;;  %v14450_v21 = vpop.f32.mrf.mxu1 }
 0x55f   : > { %5307 = vst.msk [vmem:[#allocation3 + $0x28] sm:$0xff] %vm663_vm0, %v5275_v26  ;;  %8639 = vperm.xlu1 %10480, %v14196_v45  }
 0x560   : > { %v5124_v35 = vpop.f32.mrf.mxu3 }
 0x561   : > { %v5208_v0 = vadd.f32 %v5124_v35, %v4931_v53  ;;  %v14436_v6 = vpop.f32.mrf.mxu0  ;;  %v14461_v52 = vpop.permute.xlu0 %6569  ;;  %v4379_v53 = vadd.f32 %v14204_v25, %v16856_v43  ;;  %v4932_v35 = vadd.f32 %v14285_v13, %v4655_v30 }
 0x562   : > { %16855 = vst [vmem:[#allocation99_spill] sm:$0xff] %v14461_v52 }
 0x563   : > { %v5244_v26 = vadd.f32 %v14268_v50, %v5208_v0  ;;  %8634 = vperm.xlu0 %10479, %v14457_v62   ;;  %v14468_v0 = vpop.f32.mrf.mxu2  ;;  %v4656_v52 = vadd.f32 %v14312_v27, %v4379_v53 }
 0x564   : > { %10172 = vmatmul.msk.f32.vlgmr.msrb.gmra.mxu0 %vm663_vm0, %v14441_v34  ;;  %8549 = vperm.xlu2 %10481, %v14065_v23   ;;  %v4981_v23 = vld [vmem:[#allocation2 + $0x394] sm:$0xff] }
 0x565   : > { %v5276_v4 = vmax.f32 %v5244_v26, 0.0  ;;  %10163 = vmatmul.msk.f32.gmra.mxu3 %vm663_vm0, %v4980_v29  ;;  %v14475_v29 = vld [vmem:[%s16654_s5 + $0x8] sm:$0xff]  ;;  %v14480_v13 = vpop.permute.xlu2 %6579  ;;  %v14489_v30 = vpop.permute.xlu1 %6464  ;;  %v4933_v43 = vadd.f32 %v14330_v58, %v4656_v52 }
 0x566   : > { %16857 = vst [vmem:[#allocation26_spill] sm:$0xff] %v14480_v13  ;;  %v14492_v27 = vpop.f32.mrf.mxu1 }
 0x567   : > { %5308 = vst.msk [vmem:[#allocation3 + $0x30] sm:$0xff] %vm663_vm0, %v5276_v4  ;;  %8529 = vperm.xlu1 %10480, %v14225_v33  }
 0x568   : > { %v5127_v51 = vpop.f32.mrf.mxu3  ;;  %16858 = vst [vmem:[#allocation100_spill] sm:$0xff] %v14489_v30 }
 0x569   : > { %v5209_v9 = vadd.f32 %v5127_v51, %v4932_v35  ;;  %v14470_v26 = vpop.f32.mrf.mxu0  ;;  %v14487_v51 = vld [vmem:[%s16655_s6] sm:$0xff]  ;;  %v14500_v35 = vpop.permute.xlu0 %6459 }
 0x56a   : > { %16859 = vst [vmem:[#allocation101_spill] sm:$0xff] %v14500_v35 }
 0x56b   : > { %v5245_v25 = vadd.f32 %v14268_v50, %v5209_v9  ;;  %8524 = vperm.xlu0 %10479, %v14487_v51   ;;  %v4380_v9 = vadd.f32 %v14235_v16, %v13632_v59  ;;  %v14509_v30 = vpop.f32.mrf.mxu2 }
 0x56c   : > { %10173 = vmatmul.msk.f32.gmra.mxu0 %vm663_vm0, %v14475_v29  ;;  %8644 = vperm.xlu2 %10481, %v14099_v41   ;;  %v4982_v41 = vld [vmem:[#allocation2 + $0x39c] sm:$0xff] }
 0x56d   : > { %v5277_v4 = vmax.f32 %v5245_v25, 0.0  ;;  %10164 = vmatmul.msk.f32.gmra.mxu3 %vm663_vm0, %v4981_v23  ;;  %v14507_v23 = vld [vmem:[%s16654_s5 + $0x10] sm:$0xff]  ;;  %v4657_v59 = vadd.f32 %v14349_v47, %v4380_v9  ;;  %v14517_v52 = vpop.permute.xlu2 %6469 }
 0x56e   : > { %16860 = vst [vmem:[#allocation102_spill] sm:$0xff] %v14517_v52  ;;  %v14527_v9 = vpop.f32.mrf.mxu1 }
 0x56f   : > { %5309 = vst.msk [vmem:[#allocation3 + $0x38] sm:$0xff] %vm663_vm0, %v5277_v4  ;;  %8624 = vperm.xlu1 %10480, %v14260_v63  }
 0x570   : > { %v5130_v53 = vpop.f32.mrf.mxu3 }
 0x571   : > { %v5210_v13 = vadd.f32 %v5130_v53, %v4933_v43  ;;  %v14502_v25 = vpop.f32.mrf.mxu0  ;;  %v14520_v43 = vpop.permute.xlu1 %6559  ;;  %v16862_v53 = vld [vmem:[#allocation35_spill] sm:$0xff] }
 0x572   : > { %16861 = vst [vmem:[#allocation103_spill] sm:$0xff] %v14520_v43  ;;  %v4381_v47 = vadd.f32 %v14275_v22, %v16862_v53  ;;  %v14534_v43 = vld [vmem:[%s16654_s5 + $0x18] sm:$0xff]  ;;  %v5855_v22 = vld [vmem:[#allocation3 + $0x28] sm:$0xff]  ;;  %v7885_v53 = vld [vmem:[%s16657_s8] sm:$0x3f] }
 0x573   : > { %v5246_v16 = vadd.f32 %v14268_v50, %v5210_v13  ;;  %8614 = vperm.xlu0 %10479, %v14291_v39   ;;  %v4934_v13 = vadd.f32 %v14361_v11, %v4657_v59  ;;  %v14541_v59 = vpop.f32.mrf.mxu2 }
 0x574   : > { %10174 = vmatmul.msk.f32.gmra.mxu0 %vm663_vm0, %v14507_v23  ;;  %8534 = vperm.xlu2 %10481, %v14126_v24   ;;  %v4658_v11 = vadd.f32 %v14384_v7, %v4381_v47  ;;  %v16864_v7 = vld [vmem:[#allocation38_spill] sm:$0xff] }
 0x575   : > { %v5278_v58 = vmax.f32 %v5246_v16, 0.0  ;;  %10165 = vmatmul.msk.f32.gmra.mxu3 %vm663_vm0, %v4982_v41  ;;  %v5856_v41 = vld [vmem:[#allocation3 + $0x30] sm:$0xff] }
 0x576   : > { %v5857_v4 = vld [vmem:[#allocation3 + $0x38] sm:$0xff]  ;;  %v4935_v47 = vadd.f32 %v14393_v14, %v4658_v11 }
 0x577   : > { %5310 = vst.msk [vmem:[#allocation3 + $0x40] sm:$0xff] %vm663_vm0, %v5278_v58  ;;  %6190 = vmatpush.msrb.mxu3 %v5857_v4  ;;  %v14536_v58 = vpop.permute.xlu0 %6554  ;;  %8609 = vperm.xlu1 %10480, %v14240_v46   ;;  %v4983_v4 = vld [vmem:[#allocation2 + $0x3a4] sm:$0xff]  ;;  %v9025_v14 = vld [vmem:[%s16655_s6 + $0x78] sm:$0xff] }
 0x578   : > { %v5133_v16 = vpop.f32.mrf.mxu3  ;;  %16863 = vst [vmem:[#allocation35_spill] sm:$0xff] %v14536_v58 }
 0x579   : > { %v5211_v35 = vadd.f32 %v5133_v16, %v4934_v13  ;;  %6191 = vmatpush.msrb.mxu3 %v5856_v41  ;;  %v14529_v52 = vpop.f32.mrf.mxu0  ;;  %v5854_v16 = vld [vmem:[#allocation3 + $0x20] sm:$0xff]  ;;  %v14554_v41 = vpop.permute.xlu2 %6564 }
 0x57a   : > { %16865 = vst [vmem:[#allocation38_spill] sm:$0xff] %v14554_v41  ;;  %v14556_v58 = vpop.permute.xlu1 %6449 }
 0x57b   : > { %v5247_v24 = vadd.f32 %v14268_v50, %v5211_v35  ;;  %6192 = vmatpush.msrb.mxu3 %v5855_v22  ;;  %7888 = vperm.xlu0 %10479, %v7885_v53   ;;  %v4382_v35 = vadd.f32 %v14298_v57, %v16864_v7  ;;  %v14565_v57 = vpop.f32.mrf.mxu1  ;;  %v4984_v53 = vld [vmem:[#allocation2 + $0x3ac] sm:$0xff] }
 0x57c   : > { %10175 = vmatmul.msk.f32.gmra.mxu0 %vm663_vm0, %v14534_v43  ;;  %8629 = vperm.xlu2 %10481, %v14157_v8  }
 0x57d   : > { %v5279_v13 = vmax.f32 %v5247_v24, 0.0  ;;  %10166 = vmatmul.msk.f32.gmra.mxu3 %vm663_vm0, %v4983_v4  ;;  %v14563_v4 = vld [vmem:[%s16654_s5 + $0x20] sm:$0xff]  ;;  %v4659_v8 = vadd.f32 %v14414_v18, %v4382_v35  ;;  %v4383_v18 = vadd.f32 %v14332_v28, %v13727_v44 }
 0x57e   : > { %6193 = vmatpush.msrb.mxu3 %v5854_v16  ;;  %v9022_v44 = vld [vmem:[%s16655_s6 + $0x60] sm:$0xff] }
 0x57f   : > { %5311 = vst.msk [vmem:[#allocation3 + $0x48] sm:$0xff] %vm663_vm0, %v5279_v13  ;;  %9119 = vperm.xlu1 %10480, %v9025_v14   ;;  %v9023_v13 = vld [vmem:[%s16655_s6 + $0x68] sm:$0xff]  ;;  %v14577_v16 = vpop.permute.xlu0 %6444  ;;  %v4936_v35 = vadd.f32 %v14428_v49, %v4659_v8  ;;  %v4660_v49 = vadd.f32 %v14450_v21, %v4383_v18  ;;  %v4384_v21 = vadd.f32 %v14359_v15, %v13747_v40 }
 0x580   : > { %v5136_v22 = vpop.f32.mrf.mxu3 }
 0x581   : > { %v5212_v24 = vadd.f32 %v5136_v22, %v4935_v47  ;;  %v14558_v32 = vpop.f32.mrf.mxu0  ;;  %v14580_v47 = vpop.f32.mrf.mxu2  ;;  %v4937_v18 = vadd.f32 %v14468_v0, %v4660_v49 }
 0x582   : > { %v14599_v28 = vpop.permute.xlu1 %6544 }
 0x583   : > { %v5248_v11 = vadd.f32 %v14268_v50, %v5212_v24  ;;  %9109 = vperm.xlu0 %10479, %v9023_v13   ;;  %16866 = vst [vmem:[#allocation104_spill] sm:$0xff] %v14599_v28  ;;  %v14603_v8 = vpop.f32.mrf.mxu1  ;;  %v4985_v13 = vld [vmem:[#allocation2 + $0x41c] sm:$0xff] }
 0x584   : > { %10176 = vmatmul.msk.f32.gmra.mxu0 %vm663_vm0, %v14563_v4  ;;  %8619 = vperm.xlu2 %10481, %v14186_v17  }
 0x585   : > { %v5280_v7 = vmax.f32 %v5248_v11, 0.0  ;;  %10167 = vmatmul.msk.f32.gmra.mxu3 %vm663_vm0, %v4984_v53  ;;  %v14592_v11 = vld [vmem:[%s16654_s5 + $0x28] sm:$0xff]  ;;  %v14594_v53 = vpop.permute.xlu2 %6454 }
 0x587   : > { %5312 = vst.msk [vmem:[#allocation3 + $0x50] sm:$0xff] %vm663_vm0, %v5280_v7  ;;  %9104 = vperm.xlu1 %10480, %v9022_v44   ;;  %v9041_v7 = vld [vmem:[%s16655_s6 + $0xf8] sm:$0xff] }
 0x588   : > { %v5139_v22 = vpop.f32.mrf.mxu3 }
 0x589   : > { %v5213_v24 = vadd.f32 %v5139_v22, %v4936_v35  ;;  %v14587_v14 = vpop.f32.mrf.mxu0  ;;  %v14611_v22 = vpop.permute.xlu0 %6534 }
 0x58a   : > { %16867 = vst [vmem:[#allocation105_spill] sm:$0xff] %v14611_v22  ;;  %v14634_v0 = vpop.permute.xlu1 %6529 }
 0x58b   : > { %v5249_v17 = vadd.f32 %v14268_v50, %v5213_v24  ;;  %9199 = vperm.xlu0 %10479, %v9041_v7   ;;  %v14618_v24 = vpop.f32.mrf.mxu2  ;;  %16868 = vst [vmem:[#allocation106_spill] sm:$0xff] %v14634_v0  ;;  %v14637_v7 = vpop.f32.mrf.mxu1  ;;  %v16927_v0 = vld [vmem:[#allocation39_spill] sm:$0xff] }
 0x58c   : > { %10177 = vmatmul.msk.f32.gmra.mxu0 %vm663_vm0, %v14592_v11  ;;  %8604 = vperm.xlu2 %10481, %v14252_v42   ;;  %v4986_v42 = vld [vmem:[#allocation2 + $0x424] sm:$0xff] }
 0x58d   : > { %v5281_v35 = vmax.f32 %v5249_v17, 0.0  ;;  %10168 = vmatmul.msk.f32.gmra.mxu3 %vm663_vm0, %v4985_v13  ;;  %v14625_v17 = vld [vmem:[%s16654_s5 + $0x30] sm:$0xff]  ;;  %v4661_v13 = vadd.f32 %v14492_v27, %v4384_v21  ;;  %v14630_v15 = vpop.permute.xlu2 %6549  ;;  %v4385_v27 = vadd.f32 %v14386_v38, %v13773_v12 }
 0x58f   : > { %5313 = vst.msk [vmem:[#allocation3 + $0x58] sm:$0xff] %vm663_vm0, %v5281_v35  ;;  %9094 = vperm.xlu1 %10480, %v14305_v19   ;;  %v4938_v19 = vadd.f32 %v14509_v30, %v4661_v13  ;;  %v4662_v12 = vadd.f32 %v14527_v9, %v4385_v27 }
 0x590   : > { %v5142_v44 = vpop.f32.mrf.mxu3 }
 0x591   : > { %v5214_v28 = vadd.f32 %v5142_v44, %v4937_v18  ;;  %v14620_v41 = vpop.f32.mrf.mxu0  ;;  %v14645_v35 = vpop.permute.xlu0 %7039  ;;  %v14652_v44 = vld [vmem:[%s16654_s5 + $0x38] sm:$0xff] }
 0x592   : > { %16869 = vst [vmem:[#allocation107_spill] sm:$0xff] %v14645_v35  ;;  %v14668_v9 = vpop.permute.xlu1 %7034 }
 0x593   : > { %v5250_v40 = vadd.f32 %v14268_v50, %v5214_v28  ;;  %9089 = vperm.xlu0 %10479, %v14318_v56   ;;  %v14654_v56 = vpop.f32.mrf.mxu2  ;;  %16870 = vst [vmem:[#allocation108_spill] sm:$0xff] %v14668_v9 }
 0x594   : > { %10178 = vmatmul.msk.f32.gmra.mxu0 %vm663_vm0, %v14625_v17  ;;  %9114 = vperm.xlu2 %10481, %v14215_v5   ;;  %v4987_v5 = vld [vmem:[#allocation2 + $0x42c] sm:$0xff] }
 0x595   : > { %v5282_v49 = vmax.f32 %v5250_v40, 0.0  ;;  %10169 = vmatmul.msk.f32.gmra.mxu3 %vm663_vm0, %v4986_v42  ;;  %v14662_v13 = vpop.permute.xlu2 %6539  ;;  %v9021_v40 = vld [vmem:[%s16655_s6 + $0x58] sm:$0xff]  ;;  %v4939_v42 = vadd.f32 %v14541_v59, %v4662_v12 }
 0x596   : > { %v4988_v12 = vld [vmem:[#allocation2 + $0x434] sm:$0xff] }
 0x597   : > { %5314 = vst.msk [vmem:[#allocation3 + $0x60] sm:$0xff] %vm663_vm0, %v5282_v49  ;;  %9189 = vperm.xlu1 %10480, %v14070_v3   ;;  %v4386_v3 = vadd.f32 %v14412_v37, %v13799_v20  ;;  %v14674_v49 = vpop.f32.mrf.mxu1 }
 0x598   : > { %v5145_v28 = vpop.f32.mrf.mxu3 }
 0x599   : > { %v5215_v21 = vadd.f32 %v5145_v28, %v4938_v19  ;;  %v14647_v18 = vpop.f32.mrf.mxu0  ;;  %v4663_v20 = vadd.f32 %v14565_v57, %v4386_v3  ;;  %v4387_v57 = vadd.f32 %v14436_v6, %v13819_v10 }
 0x59a   : > { %v14703_v3 = vpop.permute.xlu1 %7019 }
 0x59b   : > { %v5251_v38 = vadd.f32 %v14268_v50, %v5215_v21  ;;  %9184 = vperm.xlu0 %10479, %v14343_v36   ;;  %v14681_v36 = vld [vmem:[%s16654_s5 + $0x40] sm:$0xff]  ;;  %v14683_v21 = vpop.permute.xlu0 %7024  ;;  %v14688_v59 = vpop.f32.mrf.mxu2  ;;  %16873 = vst [vmem:[#allocation111_spill] sm:$0xff] %v14703_v3  ;;  %v4664_v10 = vadd.f32 %v14603_v8, %v4387_v57 }
 0x59c   : > { %10179 = vmatmul.msk.f32.gmra.mxu0 %vm663_vm0, %v14652_v44  ;;  %9099 = vperm.xlu2 %10481, %v9021_v40   ;;  %16871 = vst [vmem:[#allocation109_spill] sm:$0xff] %v14683_v21  ;;  %v9018_v8 = vld [vmem:[%s16655_s6 + $0x40] sm:$0xff] }
 0x59d   : > { %v5283_v30 = vmax.f32 %v5251_v38, 0.0  ;;  %10170 = vmatmul.msk.f32.gmra.mxu3 %vm663_vm0, %v4987_v5  ;;  %v9040_v5 = vld [vmem:[%s16655_s6 + $0xf0] sm:$0xff] }
 0x59f   : > { %5315 = vst.msk [vmem:[#allocation3 + $0x68] sm:$0xff] %vm663_vm0, %v5283_v30  ;;  %9079 = vperm.xlu1 %10480, %v14104_v31   ;;  %v4940_v31 = vadd.f32 %v14580_v47, %v4663_v20  ;;  %v14701_v30 = vpop.permute.xlu2 %6524 }
 0x5a0   : > { %v5148_v27 = vpop.f32.mrf.mxu3  ;;  %16872 = vst [vmem:[#allocation110_spill] sm:$0xff] %v14701_v30 }
 0x5a1   : > { %v5216_v19 = vadd.f32 %v5148_v27, %v4939_v42  ;;  %v14676_v28 = vpop.f32.mrf.mxu0 }
 0x5a3   : > { %v5252_v37 = vadd.f32 %v14268_v50, %v5216_v19  ;;  %9074 = vperm.xlu0 %10479, %v14370_v61   ;;  %v14710_v61 = vld [vmem:[%s16654_s5 + $0x48] sm:$0xff]  ;;  %v4609_v19 = vpop.f32.mrf.mxu1  ;;  %v14717_v47 = vpop.permute.xlu0 %7014 }
 0x5a4   : > { %10180 = vmatmul.msk.f32.gmra.mxu0 %vm663_vm0, %v14681_v36  ;;  %9194 = vperm.xlu2 %10481, %v9040_v5   ;;  %16874 = vst [vmem:[#allocation112_spill] sm:$0xff] %v14717_v47 }
 0x5a5   : > { %v5284_v38 = vmax.f32 %v5252_v37, 0.0  ;;  %10171 = vmatmul.msk.f32.gmra.mxu3 %vm663_vm0, %v4988_v12  ;;  %v14721_v37 = vpop.f32.mrf.mxu2  ;;  %v16875_v12 = vld [vmem:[#allocation54_spill] sm:$0xff] }
 0x5a7   : > { %5316 = vst.msk [vmem:[#allocation3 + $0x70] sm:$0xff] %vm663_vm0, %v5284_v38  ;;  %9174 = vperm.xlu1 %10480, %v14131_v60   ;;  %v4388_v60 = vadd.f32 %v14470_v26, %v16875_v12  ;;  %v4941_v38 = vadd.f32 %v14618_v24, %v4664_v10 }
 0x5a8   : > { %v5151_v40 = vpop.f32.mrf.mxu3 }
 0x5a9   : > { %v5217_v42 = vadd.f32 %v5151_v40, %v4940_v31  ;;  %v14705_v27 = vpop.f32.mrf.mxu0  ;;  %v14740_v40 = vpop.permute.xlu1 %7114  ;;  %v4665_v26 = vadd.f32 %v14637_v7, %v4388_v60  ;;  %v16879_v7 = vld [vmem:[#allocation56_spill] sm:$0xff] }
 0x5aa   : > { %16877 = vst [vmem:[#allocation113_spill] sm:$0xff] %v14740_v40 }
 0x5ab   : > { %v5253_v6 = vadd.f32 %v14268_v50, %v5217_v42  ;;  %9169 = vperm.xlu0 %10479, %v14399_v55   ;;  %v14736_v55 = vld [vmem:[%s16654_s5 + $0x50] sm:$0xff]  ;;  %v4612_v24 = vpop.f32.mrf.mxu1 }
 0x5ac   : > { %10181 = vmatmul.msk.f32.gmra.mxu0 %vm663_vm0, %v14710_v61  ;;  %9084 = vperm.xlu2 %10481, %v9018_v8   ;;  %v4389_v8 = vadd.f32 %v14502_v25, %v16879_v7 }
 0x5ad   : > { %v5285_v20 = vmax.f32 %v5253_v6, 0.0  ;;  %10204 = vmatmul.msk.f32.vlgmr.msrb.gmra.mxu3 %vm663_vm0, %v14441_v34  ;;  %v14738_v34 = vpop.permute.xlu2 %7029  ;;  %v9037_v6 = vld [vmem:[%s16655_s6 + $0xd8] sm:$0xff]  ;;  %v4889_v12 = vpop.f32.mrf.mxu2 }
 0x5ae   : > { %16876 = vst [vmem:[#allocation54_spill] sm:$0xff] %v14738_v34  ;;  %v16926_v34 = vld [vmem:[#allocation37_spill] sm:$0xff] }
 0x5af   : > { %5317 = vst.msk [vmem:[#allocation3 + $0x78] sm:$0xff] %vm663_vm0, %v5285_v20  ;;  %9064 = vperm.xlu1 %10480, %v14165_v48   ;;  %v14753_v20 = vpop.permute.xlu0 %7109  ;;  %v4942_v48 = vadd.f32 %v14654_v56, %v4665_v26 }
 0x5b0   : > { %v5154_v5 = vpop.f32.mrf.mxu3  ;;  %16878 = vst [vmem:[#allocation114_spill] sm:$0xff] %v14753_v20  ;;  %v15107_v20 = vld [vmem:[%s16654_s5 + $0xf8] sm:$0xff] }
 0x5b1   : > { %v5218_v57 = vadd.f32 %v5154_v5, %v4941_v38  ;;  %v14731_v31 = vpop.f32.mrf.mxu0  ;;  %v4666_v5 = vadd.f32 %v14674_v49, %v4389_v8  ;;  %v14773_v56 = vpop.permute.xlu1 %7004  ;;  %v9015_v49 = vld [vmem:[%s16655_s6 + $0x28] sm:$0xff] }
 0x5b2   : > { %16881 = vst [vmem:[#allocation115_spill] sm:$0xff] %v14773_v56 }
 0x5b3   : > { %v5254_v42 = vadd.f32 %v14268_v50, %v5218_v57  ;;  %9059 = vperm.xlu0 %10479, %v14423_v2   ;;  %v14764_v2 = vld [vmem:[%s16654_s5 + $0x58] sm:$0xff] }
 0x5b4   : > { %10182 = vmatmul.msk.f32.gmra.mxu0 %vm663_vm0, %v14736_v55  ;;  %9179 = vperm.xlu2 %10481, %v9037_v6   ;;  %v4943_v6 = vadd.f32 %v14688_v59, %v4666_v5 }
 0x5b5   : > { %v5286_v10 = vmax.f32 %v5254_v42, 0.0  ;;  %10205 = vmatmul.msk.f32.gmra.mxu3 %vm663_vm0, %v14475_v29  ;;  %v14769_v25 = vpop.permute.xlu2 %7119  ;;  %v4615_v42 = vpop.f32.mrf.mxu1 }
 0x5b6   : > { %16880 = vst [vmem:[#allocation56_spill] sm:$0xff] %v14769_v25  ;;  %v16907_v25 = vld [vmem:[#allocation15_spill] sm:$0xff] }
 0x5b7   : > { %5318 = vst.msk [vmem:[#allocation3 + $0x80] sm:$0xff] %vm663_vm0, %v5286_v10  ;;  %9159 = vperm.xlu1 %10480, %v14196_v45   ;;  %v16882_v10 = vld [vmem:[#allocation60_spill] sm:$0xff] }
 0x5b8   : > { %v5157_v60 = vpop.f32.mrf.mxu3  ;;  %v4390_v45 = vadd.f32 %v14529_v52, %v16882_v10 }
 0x5b9   : > { %v5219_v38 = vadd.f32 %v5157_v60, %v4942_v48  ;;  %v14759_v29 = vpop.f32.mrf.mxu0  ;;  %v4892_v60 = vpop.f32.mrf.mxu2 }
 0x5bb   : > { %v5255_v57 = vadd.f32 %v14268_v50, %v5219_v38  ;;  %9154 = vperm.xlu0 %10479, %v14457_v62   ;;  %v14790_v62 = vld [vmem:[%s16654_s5 + $0x60] sm:$0xff]  ;;  %v4667_v38 = vadd.f32 %v4609_v19, %v4390_v45  ;;  %v14806_v19 = vpop.permute.xlu1 %7099 }
 0x5bc   : > { %10183 = vmatmul.msk.f32.gmra.mxu0 %vm663_vm0, %v14764_v2  ;;  %9069 = vperm.xlu2 %10481, %v9015_v49   ;;  %16885 = vst [vmem:[#allocation117_spill] sm:$0xff] %v14806_v19 }
 0x5bd   : > { %v5287_v26 = vmax.f32 %v5255_v57, 0.0  ;;  %10206 = vmatmul.msk.f32.gmra.mxu3 %vm663_vm0, %v14507_v23  ;;  %v14792_v23 = vpop.permute.xlu0 %6999  ;;  %v14800_v5 = vpop.permute.xlu2 %7009  ;;  %v9034_v57 = vld [vmem:[%s16655_s6 + $0xc0] sm:$0xff]  ;;  %v4944_v49 = vadd.f32 %v14721_v37, %v4667_v38  ;;  %v16888_v38 = vld [vmem:[#allocation11_spill] sm:$0xff] }
 0x5be   : > { %16883 = vst [vmem:[#allocation60_spill] sm:$0xff] %v14792_v23  ;;  %v4618_v10 = vpop.f32.mrf.mxu1 }
 0x5bf   : > { %5319 = vst.msk [vmem:[#allocation3 + $0x88] sm:$0xff] %vm663_vm0, %v5287_v26  ;;  %9049 = vperm.xlu1 %10480, %v14225_v33   ;;  %v16886_v26 = vld [vmem:[#allocation6_spill] sm:$0xff] }
 0x5c0   : > { %v5160_v7 = vpop.f32.mrf.mxu3  ;;  %16884 = vst [vmem:[#allocation116_spill] sm:$0xff] %v14800_v5  ;;  %v4391_v33 = vadd.f32 %v14558_v32, %v16886_v26 }
 0x5c1   : > { %v5220_v8 = vadd.f32 %v5160_v7, %v4943_v6  ;;  %v14785_v48 = vpop.f32.mrf.mxu0 }
 0x5c2   : > { %v4668_v7 = vadd.f32 %v4612_v24, %v4391_v33  ;;  %v9012_v24 = vld [vmem:[%s16655_s6 + $0x10] sm:$0xff] }
 0x5c3   : > { %v5256_v52 = vadd.f32 %v14268_v50, %v5220_v8  ;;  %9044 = vperm.xlu0 %10479, %v14487_v51   ;;  %v14817_v51 = vld [vmem:[%s16654_s5 + $0x68] sm:$0xff]  ;;  %v14836_v33 = vpop.permute.xlu1 %6989 }
 0x5c4   : > { %10184 = vmatmul.msk.f32.gmra.mxu0 %vm663_vm0, %v14790_v62  ;;  %9164 = vperm.xlu2 %10481, %v9034_v57   ;;  %16890 = vst [vmem:[#allocation118_spill] sm:$0xff] %v14836_v33  ;;  %v16909_v33 = vld [vmem:[#allocation21_spill] sm:$0xff] }
 0x5c5   : > { %v5288_v59 = vmax.f32 %v5256_v52, 0.0  ;;  %10207 = vmatmul.msk.f32.gmra.mxu3 %vm663_vm0, %v14534_v43  ;;  %v14821_v32 = vpop.permute.xlu0 %7094  ;;  %v4895_v52 = vpop.f32.mrf.mxu2 }
 0x5c6   : > { %16887 = vst [vmem:[#allocation6_spill] sm:$0xff] %v14821_v32  ;;  %v14834_v57 = vpop.permute.xlu2 %7104 }
 0x5c7   : > { %5320 = vst.msk [vmem:[#allocation3 + $0x90] sm:$0xff] %vm663_vm0, %v5288_v59  ;;  %9144 = vperm.xlu1 %10480, %v14260_v63   ;;  %v4392_v59 = vadd.f32 %v14587_v14, %v16888_v38  ;;  %v4945_v63 = vadd.f32 %v4889_v12, %v4668_v7  ;;  %v8405_v12 = vld [vmem:[%s16657_s8] sm:$0x3f] }
 0x5c8   : > { %v5163_v43 = vpop.f32.mrf.mxu3  ;;  %16889 = vst [vmem:[#allocation11_spill] sm:$0xff] %v14834_v57 }
 0x5c9   : > { %v5221_v45 = vadd.f32 %v5163_v43, %v4944_v49  ;;  %v14812_v6 = vpop.f32.mrf.mxu0  ;;  %v4621_v43 = vpop.f32.mrf.mxu1 }
 0x5cb   : > { %v5257_v8 = vadd.f32 %v14268_v50, %v5221_v45  ;;  %9134 = vperm.xlu0 %10479, %v14291_v39   ;;  %v14843_v39 = vld [vmem:[%s16654_s5 + $0x70] sm:$0xff]  ;;  %v4669_v45 = vadd.f32 %v4615_v42, %v4392_v59  ;;  %v9031_v42 = vld [vmem:[%s16655_s6 + $0xa8] sm:$0xff] }
 0x5cc   : > { %10185 = vmatmul.msk.f32.gmra.mxu0 %vm663_vm0, %v14817_v51  ;;  %9054 = vperm.xlu2 %10481, %v9012_v24  }
 0x5cd   : > { %v5289_v37 = vmax.f32 %v5257_v8, 0.0  ;;  %10208 = vmatmul.msk.f32.gmra.mxu3 %vm663_vm0, %v14563_v4  ;;  %v14854_v8 = vpop.permute.xlu0 %6984  ;;  %v4946_v38 = vadd.f32 %v4892_v60, %v4669_v45 }
 0x5ce   : > { %16891 = vst [vmem:[#allocation119_spill] sm:$0xff] %v14854_v8 }
 0x5cf   : > { %5321 = vst.msk [vmem:[#allocation3 + $0x98] sm:$0xff] %vm663_vm0, %v5289_v37  ;;  %9129 = vperm.xlu1 %10480, %v14240_v46   ;;  %v4898_v37 = vpop.f32.mrf.mxu2  ;;  %v16892_v46 = vld [vmem:[#allocation63_spill] sm:$0xff] }
 0x5d0   : > { %v5166_v26 = vpop.f32.mrf.mxu3  ;;  %v4393_v24 = vadd.f32 %v14620_v41, %v16892_v46  ;;  %v14874_v41 = vpop.permute.xlu1 %7084  ;;  %v16895_v46 = vld [vmem:[#allocation64_spill] sm:$0xff] }
 0x5d1   : > { %v5222_v49 = vadd.f32 %v5166_v26, %v4945_v63  ;;  %v14838_v4 = vpop.f32.mrf.mxu0  ;;  %16894 = vst [vmem:[#allocation120_spill] sm:$0xff] %v14874_v41  ;;  %v4624_v45 = vpop.f32.mrf.mxu1 }
 0x5d3   : > { %v5258_v14 = vadd.f32 %v14268_v50, %v5222_v49  ;;  %8408 = vperm.xlu0 %10479, %v8405_v12   ;;  %v8925_v49 = vld [vmem:[%s16657_s8] sm:$0x3f]  ;;  %v4670_v12 = vadd.f32 %v4618_v10, %v4393_v24 }
 0x5d4   : > { %10186 = vmatmul.msk.f32.gmra.mxu0 %vm663_vm0, %v14843_v39  ;;  %9149 = vperm.xlu2 %10481, %v9031_v42   ;;  %v9029_v42 = vld [vmem:[%s16655_s6 + $0x98] sm:$0xff] }
 0x5d5   : > { %v5290_v7 = vmax.f32 %v5258_v14, 0.0  ;;  %10209 = vmatmul.msk.f32.gmra.mxu3 %vm663_vm0, %v14592_v11  ;;  %v14867_v11 = vld [vmem:[%s16654_s5 + $0x78] sm:$0xff]  ;;  %v14872_v14 = vpop.permute.xlu2 %6994  ;;  %v4947_v10 = vadd.f32 %v4895_v52, %v4670_v12 }
 0x5d6   : > { %16893 = vst [vmem:[#allocation63_spill] sm:$0xff] %v14872_v14 }
 0x5d7   : > { %5322 = vst.msk [vmem:[#allocation3 + $0xa0] sm:$0xff] %vm663_vm0, %v5290_v7  ;;  %8928 = vperm.xlu1 %10480, %v8925_v49   ;;  %v4901_v24 = vpop.f32.mrf.mxu2 }
 0x5d8   : > { %v5169_v59 = vpop.f32.mrf.mxu3 }
 0x5d9   : > { %v5223_v63 = vadd.f32 %v5169_v59, %v4946_v38  ;;  %v14862_v26 = vpop.f32.mrf.mxu0  ;;  %v4394_v38 = vadd.f32 %v14647_v18, %v16895_v46  ;;  %v4627_v12 = vpop.f32.mrf.mxu1 }
 0x5db   : > { %v5259_v60 = vadd.f32 %v14268_v50, %v5223_v63 }
 0x5dc   : > { %10187 = vmatmul.msk.f32.gmra.mxu0 %vm663_vm0, %v14867_v11  ;;  %9139 = vperm.xlu2 %10481, %v9029_v42   ;;  %v16897_v42 = vld [vmem:[#allocation67_spill] sm:$0xff] }
 0x5dd   : > { %v5291_v7 = vmax.f32 %v5259_v60, 0.0  ;;  %10210 = vmatmul.msk.f32.gmra.mxu3 %vm663_vm0, %v14625_v17  ;;  %v14892_v17 = vld [vmem:[%s16654_s5 + $0x80] sm:$0xff]  ;;  %v4671_v60 = vadd.f32 %v4621_v43, %v4394_v38  ;;  %v14897_v18 = vpop.permute.xlu2 %7089  ;;  %v4395_v46 = vadd.f32 %v14676_v28, %v16897_v42 }
 0x5de   : > { %16896 = vst [vmem:[#allocation64_spill] sm:$0xff] %v14897_v18 }
 0x5df   : > { %5323 = vst.msk [vmem:[#allocation3 + $0xa8] sm:$0xff] %vm663_vm0, %v5291_v7  ;;  %v9026_v7 = vld [vmem:[%s16655_s6 + $0x80] sm:$0xff]  ;;  %v4948_v43 = vadd.f32 %v4898_v37, %v4671_v60 }
 0x5e0   : > { %v5172_v59 = vpop.f32.mrf.mxu3  ;;  %v9445_v37 = vld [vmem:[%s16657_s8] sm:$0x3f] }
 0x5e1   : > { %v5224_v63 = vadd.f32 %v5172_v59, %v4947_v10  ;;  %v14887_v49 = vpop.f32.mrf.mxu0 }
 0x5e3   : > { %v5260_v41 = vadd.f32 %v14268_v50, %v5224_v63  ;;  %v4672_v63 = vadd.f32 %v4624_v45, %v4395_v46 }
 0x5e4   : > { %10188 = vmatmul.msk.f32.gmra.mxu0 %vm663_vm0, %v14892_v17  ;;  %9124 = vperm.xlu2 %10481, %v9026_v7  }
 0x5e5   : > { %v5292_v52 = vmax.f32 %v5260_v41, 0.0  ;;  %10211 = vmatmul.msk.f32.gmra.mxu3 %vm663_vm0, %v14652_v44  ;;  %v14912_v44 = vld [vmem:[%s16654_s5 + $0x88] sm:$0xff]  ;;  %v4904_v41 = vpop.f32.mrf.mxu2  ;;  %v14922_v60 = vpop.permute.xlu2 %6979  ;;  %v4949_v45 = vadd.f32 %v4901_v24, %v4672_v63 }
 0x5e6   : > { %16898 = vst [vmem:[#allocation67_spill] sm:$0xff] %v14922_v60  ;;  %v16900_v63 = vld [vmem:[#allocation73_spill] sm:$0xff]  ;;  %v16908_v60 = vld [vmem:[#allocation12_spill] sm:$0xff] }
 0x5e7   : > { %5324 = vst.msk [vmem:[#allocation3 + $0xb0] sm:$0xff] %vm663_vm0, %v5292_v52  ;;  %v16899_v52 = vld [vmem:[#allocation70_spill] sm:$0xff] }
 0x5e8   : > { %v5175_v38 = vpop.f32.mrf.mxu3  ;;  %v4396_v7 = vadd.f32 %v14705_v27, %v16899_v52 }
 0x5e9   : > { %v5225_v10 = vadd.f32 %v5175_v38, %v4948_v43  ;;  %v14907_v59 = vpop.f32.mrf.mxu0  ;;  %v14937_v38 = vld [vmem:[%s16653_s4] ss:$0 sm:$0xff] }
 0x5ea   : > { %v4673_v43 = vadd.f32 %v4627_v12, %v4396_v7 }
 0x5eb   : > { %v5261_v18 = vadd.f32 %v14268_v50, %v5225_v10  ;;  %v4630_v50 = vpop.f32.mrf.mxu1 }
 0x5ec   : > { %10189 = vmatmul.msk.f32.gmra.mxu0 %vm663_vm0, %v14912_v44  ;;  %9448 = vperm.xlu2 %10481, %v9445_v37   ;;  %v4950_v12 = vadd.f32 %v4904_v41, %v4673_v43  ;;  %v16901_v41 = vld [vmem:[#allocation77_spill] sm:$0xff] }
 0x5ed   : > { %v5293_v28 = vmax.f32 %v5261_v18, 0.0  ;;  %10212 = vmatmul.msk.f32.gmra.mxu3 %vm663_vm0, %v14681_v36  ;;  %v14932_v36 = vld [vmem:[%s16654_s5 + $0x90] sm:$0xff]  ;;  %v4907_v24 = vpop.f32.mrf.mxu2  ;;  %v4398_v43 = vadd.f32 %v14759_v29, %v16901_v41 }
 0x5ef   : > { %5325 = vst.msk [vmem:[#allocation3 + $0xb8] sm:$0xff] %vm663_vm0, %v5293_v28  ;;  %v4397_v28 = vadd.f32 %v14731_v31, %v16900_v63 }
 0x5f0   : > { %v5178_v42 = vpop.f32.mrf.mxu3 }
 0x5f1   : > { %v5226_v46 = vadd.f32 %v5178_v42, %v4949_v45  ;;  %v14927_v18 = vpop.f32.mrf.mxu0  ;;  %v14952_v45 = vld [vmem:[%s16654_s5 + $0x98] sm:$0xff] }
 0x5f3   : > { %v5262_v27 = vadd.f32 %v14937_v38, %v5226_v46  ;;  %v4633_v42 = vpop.f32.mrf.mxu1  ;;  %v4674_v46 = vadd.f32 %v4630_v50, %v4397_v28  ;;  %v14967_v50 = vld [vmem:[%s16654_s5 + $0xa0] sm:$0xff] }
 0x5f4   : > { %10190 = vmatmul.msk.f32.gmra.mxu0 %vm663_vm0, %v14932_v36  ;;  %v4675_v28 = vadd.f32 %v4633_v42, %v4398_v43  ;;  %v14982_v43 = vld [vmem:[%s16654_s5 + $0xa8] sm:$0xff] }
 0x5f5   : > { %v5294_v10 = vmax.f32 %v5262_v27, 0.0  ;;  %10213 = vmatmul.msk.f32.gmra.mxu3 %vm663_vm0, %v14710_v61  ;;  %v4910_v31 = vpop.f32.mrf.mxu2 }
 0x5f7   : > { %5326 = vst.msk [vmem:[#allocation3 + $0xc0] sm:$0xff] %vm663_vm0, %v5294_v10  ;;  %v4951_v10 = vadd.f32 %v4907_v24, %v4674_v46  ;;  %v16902_v24 = vld [vmem:[#allocation79_spill] sm:$0xff] }
 0x5f8   : > { %v5181_v37 = vpop.f32.mrf.mxu3  ;;  %v4399_v46 = vadd.f32 %v14785_v48, %v16902_v24 }
 0x5f9   : > { %v5227_v52 = vadd.f32 %v5181_v37, %v4950_v12  ;;  %v14947_v7 = vpop.f32.mrf.mxu0 }
 0x5fb   : > { %v5263_v27 = vadd.f32 %v14937_v38, %v5227_v52 }
 0x5fc   : > { %10191 = vmatmul.msk.f32.gmra.mxu0 %vm663_vm0, %v14952_v45 }
 0x5fd   : > { %v5295_v61 = vmax.f32 %v5263_v27, 0.0  ;;  %10214 = vmatmul.msk.f32.gmra.mxu3 %vm663_vm0, %v14736_v55  ;;  %v4636_v55 = vpop.f32.mrf.mxu1  ;;  %v4952_v27 = vadd.f32 %v4910_v31, %v4675_v28  ;;  %v16903_v31 = vld [vmem:[#allocation83_spill] sm:$0xff] }
 0x5fe   : > { %v4400_v28 = vadd.f32 %v14812_v6, %v16903_v31 }
 0x5ff   : > { %5327 = vst.msk [vmem:[#allocation3 + $0xc8] sm:$0xff] %vm663_vm0, %v5295_v61  ;;  %v4913_v61 = vpop.f32.mrf.mxu2 }
 0x600   : > { %v5184_v63 = vpop.f32.mrf.mxu3 }
 0x601   : > { %v5228_v12 = vadd.f32 %v5184_v63, %v4951_v10  ;;  %v14962_v37 = vpop.f32.mrf.mxu0  ;;  %v4676_v63 = vadd.f32 %v4636_v55, %v4399_v46  ;;  %v14997_v55 = vld [vmem:[%s16654_s5 + $0xb0] sm:$0xff] }
 0x603   : > { %v5264_v52 = vadd.f32 %v14937_v38, %v5228_v12 }
 0x604   : > { %10192 = vmatmul.msk.f32.gmra.mxu0 %vm663_vm0, %v14967_v50 }
 0x605   : > { %v5296_v29 = vmax.f32 %v5264_v52, 0.0  ;;  %10215 = vmatmul.msk.f32.gmra.mxu3 %vm663_vm0, %v14764_v2  ;;  %v4639_v48 = vpop.f32.mrf.mxu1  ;;  %v4953_v52 = vadd.f32 %v4913_v61, %v4676_v63  ;;  %v16904_v61 = vld [vmem:[#allocation87_spill] sm:$0xff] }
 0x607   : > { %5328 = vst.msk [vmem:[#allocation3 + $0xd0] sm:$0xff] %vm663_vm0, %v5296_v29  ;;  %v4916_v46 = vpop.f32.mrf.mxu2 }
 0x608   : > { %v5187_v41 = vpop.f32.mrf.mxu3 }
 0x609   : > { %v5229_v10 = vadd.f32 %v5187_v41, %v4952_v27  ;;  %v14977_v42 = vpop.f32.mrf.mxu0  ;;  %v4677_v41 = vadd.f32 %v4639_v48, %v4400_v28  ;;  %v15012_v48 = vld [vmem:[%s16654_s5 + $0xb8] sm:$0xff] }
 0x60b   : > { %v5265_v12 = vadd.f32 %v14937_v38, %v5229_v10  ;;  %v4401_v10 = vadd.f32 %v14838_v4, %v16904_v61  ;;  %v4954_v63 = vadd.f32 %v4916_v46, %v4677_v41 }
 0x60c   : > { %10193 = vmatmul.msk.f32.gmra.mxu0 %vm663_vm0, %v14982_v43 }
 0x60d   : > { %v5297_v2 = vmax.f32 %v5265_v12, 0.0  ;;  %10216 = vmatmul.msk.f32.gmra.mxu3 %vm663_vm0, %v14790_v62  ;;  %v4642_v12 = vpop.f32.mrf.mxu1 }
 0x60e   : > { %v4678_v28 = vadd.f32 %v4642_v12, %v4401_v10  ;;  %v15027_v10 = vld [vmem:[%s16654_s5 + $0xc0] sm:$0xff] }
 0x60f   : > { %5329 = vst.msk [vmem:[#allocation3 + $0xd8] sm:$0xff] %vm663_vm0, %v5297_v2 }
 0x610   : > { %v5190_v29 = vpop.f32.mrf.mxu3 }
 0x611   : > { %v5230_v24 = vadd.f32 %v5190_v29, %v4953_v52  ;;  %v14992_v27 = vpop.f32.mrf.mxu0 }
 0x613   : > { %v5266_v62 = vadd.f32 %v14937_v38, %v5230_v24  ;;  %v16905_v24 = vld [vmem:[#allocation5_spill] sm:$0xff] }
 0x614   : > { %10194 = vmatmul.msk.f32.gmra.mxu0 %vm663_vm0, %v14997_v55  ;;  %v4402_v46 = vadd.f32 %v14862_v26, %v16905_v24 }
 0x615   : > { %v5298_v6 = vmax.f32 %v5266_v62, 0.0  ;;  %10217 = vmatmul.msk.f32.gmra.mxu3 %vm663_vm0, %v14817_v51  ;;  %v4919_v51 = vpop.f32.mrf.mxu2 }
 0x616   : > { %v4955_v41 = vadd.f32 %v4919_v51, %v4678_v28 }
 0x617   : > { %5330 = vst.msk [vmem:[#allocation3 + $0xe0] sm:$0xff] %vm663_vm0, %v5298_v6 }
 0x618   : > { %v5193_v2 = vpop.f32.mrf.mxu3 }
 0x619   : > { %v5231_v31 = vadd.f32 %v5193_v2, %v4954_v63  ;;  %v15007_v52 = vpop.f32.mrf.mxu0  ;;  %v4645_v63 = vpop.f32.mrf.mxu1 }
 0x61a   : > { %v4679_v12 = vadd.f32 %v4645_v63, %v4402_v46 }
 0x61b   : > { %v5267_v29 = vadd.f32 %v14937_v38, %v5231_v31 }
 0x61c   : > { %10195 = vmatmul.msk.f32.gmra.mxu0 %vm663_vm0, %v15012_v48 }
 0x61d   : > { %v5299_v4 = vmax.f32 %v5267_v29, 0.0  ;;  %10218 = vmatmul.msk.f32.gmra.mxu3 %vm663_vm0, %v14843_v39  ;;  %v4922_v26 = vpop.f32.mrf.mxu2 }
 0x61e   : > { %v4956_v31 = vadd.f32 %v4922_v26, %v4679_v12 }
 0x61f   : > { %5331 = vst.msk [vmem:[#allocation3 + $0xe8] sm:$0xff] %vm663_vm0, %v5299_v4  ;;  %v15038_v4 = vld [vmem:[%s16654_s5 + $0xc8] sm:$0xff] }
 0x620   : > { %v5196_v62 = vpop.f32.mrf.mxu3 }
 0x621   : > { %v5232_v6 = vadd.f32 %v5196_v62, %v4955_v41  ;;  %v15022_v61 = vpop.f32.mrf.mxu0  ;;  %v15051_v62 = vld [vmem:[%s16654_s5 + $0xd0] sm:$0xff] }
 0x623   : > { %v5268_v2 = vadd.f32 %v14937_v38, %v5232_v6 }
 0x624   : > { %10196 = vmatmul.msk.f32.gmra.mxu0 %vm663_vm0, %v15027_v10 }
 0x625   : > { %v5300_v39 = vmax.f32 %v5268_v2, 0.0  ;;  %10219 = vmatmul.msk.f32.gmra.mxu3 %vm663_vm0, %v14867_v11  ;;  %v15073_v2 = vld [vmem:[%s16654_s5 + $0xe0] sm:$0xff] }
 0x627   : > { %5332 = vst.msk [vmem:[#allocation3 + $0xf0] sm:$0xff] %vm663_vm0, %v5300_v39 }
 0x628   : > { %v5199_v28 = vpop.f32.mrf.mxu3 }
 0x629   : > { %v5233_v29 = vadd.f32 %v5199_v28, %v4956_v31  ;;  %v5702_v51 = vpop.f32.mrf.mxu0  ;;  %v15084_v31 = vld [vmem:[%s16654_s5 + $0xe8] sm:$0xff] }
 0x62b   : > { %v5269_v24 = vadd.f32 %v14937_v38, %v5233_v29 }
 0x62c   : > { %10197 = vmatmul.msk.f32.gmra.mxu0 %vm663_vm0, %v15038_v4 }
 0x62d   : > { %v5301_v46 = vmax.f32 %v5269_v24, 0.0  ;;  %10220 = vmatmul.msk.f32.gmra.mxu3 %vm663_vm0, %v14892_v17  ;;  %v15062_v17 = vld [vmem:[%s16654_s5 + $0xd8] sm:$0xff]  ;;  %v15095_v24 = vld [vmem:[%s16654_s5 + $0xf0] sm:$0xff] }
 0x62f   : > { %5333 = vst.msk [vmem:[#allocation3 + $0xf8] sm:$0xff] %vm663_vm0, %v5301_v46  ;;  %v16906_v46 = vld [vmem:[#allocation18_spill] sm:$0xff] }
 0x630   : > { %v15046_v11 = vpop.f32.mrf.mxu3 }
 0x631   : > { %v5705_v41 = vpop.f32.mrf.mxu0 }
 0x634   : > { %10198 = vmatmul.msk.f32.gmra.mxu0 %vm663_vm0, %v15051_v62 }
 0x635   : > { %10221 = vmatmul.msk.f32.gmra.mxu3 %vm663_vm0, %v14912_v44 }
 0x638   : > { %v15057_v38 = vpop.f32.mrf.mxu3 }
 0x639   : > { %v5708_v6 = vpop.f32.mrf.mxu0 }
 0x63c   : > { %10199 = vmatmul.msk.f32.gmra.mxu0 %vm663_vm0, %v15062_v17 }
 0x63d   : > { %10222 = vmatmul.msk.f32.gmra.mxu3 %vm663_vm0, %v14932_v36 }
 0x640   : > { %v15068_v63 = vpop.f32.mrf.mxu3 }
 0x641   : > { %v5711_v12 = vpop.f32.mrf.mxu0 }
 0x642   : > { %v5712_v14 = vadd.f32 %v5711_v12, %v16909_v33  ;;  %v16913_v12 = vld [vmem:[#allocation33_spill] sm:$0xff] }
 0x644   : > { %10200 = vmatmul.msk.f32.gmra.mxu0 %vm663_vm0, %v15073_v2  ;;  %v5783_v47 = vmax.f32 %v5712_v14, 0.0  ;;  %v16914_v14 = vld [vmem:[#allocation34_spill] sm:$0xff] }
 0x645   : > { %10223 = vmatmul.msk.f32.gmra.mxu3 %vm663_vm0, %v14952_v45 }
 0x648   : > { %v15079_v39 = vpop.f32.mrf.mxu3 }
 0x649   : > { %v5714_v26 = vpop.f32.mrf.mxu0 }
 0x64a   : > { %v5715_v40 = vadd.f32 %v5714_v26, %v16907_v25 }
 0x64c   : > { %10201 = vmatmul.msk.f32.gmra.mxu0 %vm663_vm0, %v15084_v31  ;;  %v5784_v5 = vmax.f32 %v5715_v40, 0.0  ;;  %v5700_v40 = vadd.f32 %v15022_v61, %v16913_v12 }
 0x64d   : > { %10224 = vmatmul.msk.f32.gmra.mxu3 %vm663_vm0, %v14967_v50 }
 0x650   : > { %v15090_v28 = vpop.f32.mrf.mxu3 }
 0x651   : > { %v5717_v29 = vpop.f32.mrf.mxu0 }
 0x652   : > { %v5718_v32 = vadd.f32 %v5717_v29, %v16906_v46  ;;  %v16910_v29 = vld [vmem:[#allocation27_spill] sm:$0xff] }
 0x653   : > { %v5709_v46 = vadd.f32 %v5708_v6, %v16910_v29  ;;  %v16916_v29 = vld [vmem:[#allocation41_spill] sm:$0xff] }
 0x654   : > { %10202 = vmatmul.msk.f32.gmra.mxu0 %vm663_vm0, %v15095_v24  ;;  %v5785_v23 = vmax.f32 %v5718_v32, 0.0 }
 0x655   : > { %10225 = vmatmul.msk.f32.gmra.mxu3 %vm663_vm0, %v14982_v43  ;;  %v5782_v32 = vmax.f32 %v5709_v46, 0.0  ;;  %v5691_v46 = vadd.f32 %v14977_v42, %v16916_v29 }
 0x658   : > { %v15102_v19 = vpop.f32.mrf.mxu3 }
 0x659   : > { %v5720_v57 = vpop.f32.mrf.mxu0 }
 0x65a   : > { %v5721_v8 = vadd.f32 %v5720_v57, %v16908_v60  ;;  %v16911_v57 = vld [vmem:[#allocation24_spill] sm:$0xff] }
 0x65b   : > { %v5706_v33 = vadd.f32 %v5705_v41, %v16911_v57 }
 0x65c   : > { %v5786_v56 = vmax.f32 %v5721_v8, 0.0  ;;  %10203 = vmatmul.msk.f32.gmra.mxu0 %vm663_vm0, %v15107_v20  ;;  %v16912_v8 = vld [vmem:[#allocation36_spill] sm:$0xff] }
 0x65d   : > { %10226 = vmatmul.msk.f32.gmra.mxu3 %vm663_vm0, %v14997_v55  ;;  %v5703_v60 = vadd.f32 %v5702_v51, %v16912_v8  ;;  %v5779_v51 = vmax.f32 %v5700_v40, 0.0  ;;  %v16919_v40 = vld [vmem:[#allocation47_spill] sm:$0xff] }
 0x65e   : > { %5811 = vmatpush.msra.mxu1 %v5786_v56  ;;  %v5781_v56 = vmax.f32 %v5706_v33, 0.0  ;;  %v5682_v42 = vadd.f32 %v14927_v18, %v16919_v40 }
 0x65f   : > { %v5780_v6 = vmax.f32 %v5703_v60, 0.0  ;;  %v5776_v60 = vmax.f32 %v5691_v46, 0.0 }
 0x660   : > { %v15117_v3 = vpop.f32.mrf.mxu3  ;;  %5812 = vmatpush.msra.mxu1 %v5785_v23  ;;  %v5697_v23 = vadd.f32 %v15007_v52, %v16914_v14  ;;  %v16917_v52 = vld [vmem:[#allocation42_spill] sm:$0xff]  ;;  %v16920_v14 = vld [vmem:[#allocation48_spill] sm:$0xff] }
 0x661   : > { %v15119_v25 = vpop.f32.mrf.mxu0  ;;  %v5688_v57 = vadd.f32 %v14962_v37, %v16917_v52  ;;  %v16921_v37 = vld [vmem:[#allocation57_spill] sm:$0xff] }
 0x662   : > { %5813 = vmatpush.msra.mxu1 %v5784_v5  ;;  %v16915_v5 = vld [vmem:[#allocation43_spill] sm:$0xff]  ;;  %v5778_v61 = vmax.f32 %v5697_v23, 0.0  ;;  %v5679_v23 = vadd.f32 %v14907_v59, %v16920_v14  ;;  %v5803_v59 = vld [vmem:[%s16656_s7] sm:$0x3f] }
 0x664   : > { %5814 = vmatpush.msra.mxu1 %v5783_v47  ;;  %v5694_v47 = vadd.f32 %v14992_v27, %v16915_v5  ;;  %v5773_v5 = vmax.f32 %v5682_v42, 0.0 }
 0x665   : > { %10227 = vmatmul.msk.f32.gmra.mxu3 %vm663_vm0, %v15012_v48 }
 0x666   : > { %5815 = vmatpush.msra.mxu1 %v5782_v32  ;;  %v5777_v33 = vmax.f32 %v5694_v47, 0.0  ;;  %v16918_v32 = vld [vmem:[#allocation49_spill] sm:$0xff]  ;;  %v5772_v47 = vmax.f32 %v5679_v23, 0.0  ;;  %v16923_v23 = vld [vmem:[#allocation32_spill] sm:$0xff] }
 0x667   : > { %v5685_v8 = vadd.f32 %v14947_v7, %v16918_v32  ;;  %v5676_v7 = vadd.f32 %v14887_v49, %v16921_v37 }
 0x668   : > { %v15129_v26 = vpop.f32.mrf.mxu3  ;;  %5816 = vmatpush.msra.mxu1 %v5781_v56  ;;  %v5775_v56 = vmax.f32 %v5688_v57, 0.0 }
 0x669   : > { %v15131_v41 = vpop.f32.mrf.mxu0  ;;  %v5771_v18 = vmax.f32 %v5676_v7, 0.0  ;;  %v16924_v7 = vld [vmem:[#allocation30_spill] sm:$0xff] }
 0x66a   : > { %5817 = vmatpush.msra.mxu1 %v5780_v6  ;;  %v5774_v6 = vmax.f32 %v5685_v8, 0.0 }
 0x66c   : > { %5818 = vmatpush.msra.mxu1 %v5779_v51 }
 0x66d   : > { %10228 = vmatmul.msk.f32.gmra.mxu3 %vm663_vm0, %v15027_v10 }
 0x66e   : > { %5819 = vmatpush.msra.mxu1 %v5778_v61 }
 0x670   : > { %v6219_v27 = vpop.f32.mrf.mxu3  ;;  %5820 = vmatpush.msra.mxu1 %v5777_v33 }
 0x671   : > { %v15143_v12 = vpop.f32.mrf.mxu0 }
 0x672   : > { %5821 = vmatpush.msra.mxu1 %v5776_v60 }
 0x674   : > { %5822 = vmatpush.msra.mxu1 %v5775_v56  ;;  %v16922_v56 = vld [vmem:[#allocation28_spill] sm:$0xff] }
 0x675   : > { %10229 = vmatmul.msk.f32.gmra.mxu3 %vm663_vm0, %v15038_v4 }
 0x676   : > { %5823 = vmatpush.msra.mxu1 %v5774_v6 }
 0x678   : > { %v6222_v51 = vpop.f32.mrf.mxu3  ;;  %5824 = vmatpush.msra.mxu1 %v5773_v5 }
 0x679   : > { %v15153_v29 = vpop.f32.mrf.mxu0 }
 0x67a   : > { %5825 = vmatpush.msra.mxu1 %v5772_v47 }
 0x67c   : > { %5826 = vmatpush.msra.mxu1 %v5771_v18  ;;  %v16925_v18 = vld [vmem:[#allocation40_spill] sm:$0xff] }
 0x67d   : > { %10230 = vmatmul.msk.f32.gmra.mxu3 %vm663_vm0, %v15051_v62  ;;  %5827 = vmatmul.f32.vlgmr.msra.gmra.mxu1 %v5803_v59 }
 0x680   : > { %v6225_v46 = vpop.f32.mrf.mxu3 }
 0x681   : > { %v15160_v49 = vpop.f32.mrf.mxu0  ;;  %v6226_v22 = vadd.f32 %v6225_v46, %v16927_v0  ;;  %v16931_v0 = vld [vmem:[#allocation52_spill] sm:$0xff] }
 0x685   : > { %10231 = vmatmul.msk.f32.gmra.mxu3 %vm663_vm0, %v15062_v17 }
 0x688   : > { %v6228_v61 = vpop.f32.mrf.mxu3 }
 0x689   : > { %v15164_v52 = vpop.f32.mrf.mxu0  ;;  %v6229_v35 = vadd.f32 %v6228_v61, %v16926_v34 }
 0x68d   : > { %10232 = vmatmul.msk.f32.gmra.mxu3 %vm663_vm0, %v15073_v2 }
 0x690   : > { %v6231_v57 = vpop.f32.mrf.mxu3 }
 0x691   : > { %v15168_v33 = vpop.f32.mrf.mxu0  ;;  %v6232_v59 = vadd.f32 %v6231_v57, %v16925_v18 }
 0x695   : > { %10233 = vmatmul.msk.f32.gmra.mxu3 %vm663_vm0, %v15084_v31 }
 0x698   : > { %v6234_v32 = vpop.f32.mrf.mxu3 }
 0x699   : > { %v15172_v8 = vpop.f32.mrf.mxu0  ;;  %v6235_v5 = vadd.f32 %v6234_v32, %v16924_v7  ;;  %v6302_v32 = vmax.f32 %v6229_v35, 0.0  ;;  %v16930_v7 = vld [vmem:[#allocation45_spill] sm:$0xff] }
 0x69a   : > { %v6217_v34 = vadd.f32 %v15129_v26, %v16930_v7  ;;  %v16934_v26 = vld [vmem:[#allocation53_spill] sm:$0xff] }
 0x69b   : > { %v6304_v9 = vmax.f32 %v6235_v5, 0.0 }
 0x69d   : > { %10234 = vmatmul.msk.f32.gmra.mxu3 %vm663_vm0, %v15095_v24 }
 0x6a0   : > { %v6237_v60 = vpop.f32.mrf.mxu3 }
 0x6a1   : > { %v15176_v40 = vpop.f32.mrf.mxu0  ;;  %v6238_v14 = vadd.f32 %v6237_v60, %v16922_v56  ;;  %v6303_v60 = vmax.f32 %v6232_v59, 0.0  ;;  %v16928_v56 = vld [vmem:[#allocation46_spill] sm:$0xff]  ;;  %v6205_v59 = vadd.f32 %v15079_v39, %v16934_v26  ;;  %v15233_v26 = vld [vmem:[%s16654_s5 + $0x8] sm:$0xff] }
 0x6a3   : > { %v6305_v21 = vmax.f32 %v6238_v14, 0.0  ;;  %v6301_v14 = vmax.f32 %v6226_v22, 0.0  ;;  %v16933_v22 = vld [vmem:[#allocation51_spill] sm:$0xff] }
 0x6a5   : > { %10235 = vmatmul.msk.f32.gmra.mxu3 %vm663_vm0, %v15107_v20 }
 0x6a8   : > { %v6240_v42 = vpop.f32.mrf.mxu3 }
 0x6a9   : > { %v6241_v6 = vadd.f32 %v6240_v42, %v16923_v23  ;;  %v15182_v37 = vpop.f32.mrf.mxu0  ;;  %v6223_v23 = vadd.f32 %v6222_v51, %v16928_v56  ;;  %v16932_v51 = vld [vmem:[#allocation50_spill] sm:$0xff] }
 0x6aa   : > { %v6211_v35 = vadd.f32 %v15102_v19, %v16932_v51  ;;  %v6375_v51 = vld [vmem:[#allocation3 + $0x48] sm:$0xff] }
 0x6ab   : > { %v6306_v47 = vmax.f32 %v6241_v6, 0.0  ;;  %v16929_v6 = vld [vmem:[#allocation44_spill] sm:$0xff] }
 0x6ac   : > { %v6220_v57 = vadd.f32 %v6219_v27, %v16929_v6  ;;  %v6208_v27 = vadd.f32 %v15090_v28, %v16933_v22  ;;  %v16936_v6 = vld [vmem:[#allocation55_spill] sm:$0xff]  ;;  %v16937_v28 = vld [vmem:[#allocation58_spill] sm:$0xff]  ;;  %v6374_v22 = vld [vmem:[#allocation3 + $0x40] sm:$0xff] }
 0x6ad   : > { %6331 = vmatpush.msrb.mxu1 %v6306_v47  ;;  %v6298_v47 = vmax.f32 %v6217_v34, 0.0  ;;  %v6196_v7 = vadd.f32 %v15046_v11, %v16937_v28 }
 0x6ae   : > { %v6299_v46 = vmax.f32 %v6220_v57, 0.0  ;;  %v6199_v57 = vadd.f32 %v15057_v38, %v16936_v6  ;;  %v6377_v38 = vld [vmem:[#allocation3 + $0x58] sm:$0xff] }
 0x6af   : > { %6332 = vmatpush.msrb.mxu1 %v6305_v21  ;;  %v6300_v21 = vmax.f32 %v6223_v23, 0.0 }
 0x6b0   : > { %v15187_v30 = vpop.f32.mrf.mxu3  ;;  %v6292_v39 = vmax.f32 %v6199_v57, 0.0 }
 0x6b1   : > { %6333 = vmatpush.msrb.mxu1 %v6304_v9  ;;  %v15190_v42 = vpop.f32.mrf.mxu0  ;;  %v6214_v9 = vadd.f32 %v15117_v3, %v16931_v0  ;;  %v16935_v3 = vld [vmem:[#allocation17_spill] sm:$0xff]  ;;  %v6291_v0 = vmax.f32 %v6196_v7, 0.0 }
 0x6b2   : > { %v6202_v23 = vadd.f32 %v15068_v63, %v16935_v3  ;;  %v16939_v3 = vld [vmem:[#allocation8_spill] sm:$0xff] }
 0x6b3   : > { %6334 = vmatpush.msrb.mxu1 %v6303_v60  ;;  %v6297_v18 = vmax.f32 %v6214_v9, 0.0  ;;  %v6296_v60 = vmax.f32 %v6211_v35, 0.0  ;;  %v6323_v9 = vld [vmem:[%s16656_s7] sm:$0x3f] }
 0x6b4   : > { %v6293_v34 = vmax.f32 %v6202_v23, 0.0 }
 0x6b5   : > { %6335 = vmatpush.msrb.mxu1 %v6302_v32  ;;  %v6295_v32 = vmax.f32 %v6208_v27, 0.0 }
 0x6b7   : > { %6336 = vmatpush.msrb.mxu1 %v6301_v14  ;;  %v6294_v14 = vmax.f32 %v6205_v59, 0.0  ;;  %v16938_v59 = vld [vmem:[#allocation59_spill] sm:$0xff] }
 0x6b8   : > { %v15196_v61 = vpop.f32.mrf.mxu3 }
 0x6b9   : > { %6337 = vmatpush.msrb.mxu1 %v6300_v21  ;;  %v5756_v5 = vpop.f32.mrf.mxu0 }
 0x6bb   : > { %6338 = vmatpush.msrb.mxu1 %v6299_v46  ;;  %v6376_v46 = vld [vmem:[#allocation3 + $0x50] sm:$0xff] }
 0x6bd   : > { %6339 = vmatpush.msrb.mxu1 %v6298_v47  ;;  %v15224_v47 = vld [vmem:[%s16654_s5] sm:$0xff] }
 0x6bf   : > { %6340 = vmatpush.msrb.mxu1 %v6297_v18 }
 0x6c0   : > { %v15206_v56 = vpop.f32.mrf.mxu3 }
 0x6c1   : > { %6341 = vmatpush.msrb.mxu1 %v6296_v60  ;;  %v5759_v19 = vpop.f32.mrf.mxu0 }
 0x6c3   : > { %6342 = vmatpush.msrb.mxu1 %v6295_v32  ;;  %v16940_v32 = vld [vmem:[#allocation61_spill] sm:$0xff] }
 0x6c5   : > { %6343 = vmatpush.msrb.mxu1 %v6294_v14  ;;  %v16941_v14 = vld [vmem:[#allocation13_spill] sm:$0xff] }
 0x6c6   : > { %v5760_v28 = vadd.f32 %v5759_v19, %v16941_v14 }
 0x6c7   : > { %6344 = vmatpush.msrb.mxu1 %v6293_v34  ;;  %v16942_v34 = vld [vmem:[#allocation23_spill] sm:$0xff] }
 0x6c8   : > { %v15214_v21 = vpop.f32.mrf.mxu3 }
 0x6c9   : > { %6345 = vmatpush.msrb.mxu1 %v6292_v39  ;;  %v5762_v63 = vpop.f32.mrf.mxu0  ;;  %v5757_v39 = vadd.f32 %v5756_v5, %v16942_v34  ;;  %v16945_v5 = vld [vmem:[#allocation19_spill] sm:$0xff] }
 0x6ca   : > { %v5763_v6 = vadd.f32 %v5762_v63, %v16940_v32  ;;  %v16943_v63 = vld [vmem:[#allocation65_spill] sm:$0xff]  ;;  %v16947_v32 = vld [vmem:[#allocation68_spill] sm:$0xff] }
 0x6cb   : > { %6346 = vmatpush.msrb.mxu1 %v6291_v0 }
 0x6cc   : > { %6347 = vmatmul.f32.vlgmr.msrb.gmra.mxu1 %v6323_v9  ;;  %v5800_v0 = vmax.f32 %v5763_v6, 0.0  ;;  %v5742_v6 = vadd.f32 %v15168_v33, %v16947_v32 }
 0x6cd   : > { %6710 = vmatpush.msra.mxu1 %v6377_v38  ;;  %v15247_v38 = vld [vmem:[%s16654_s5 + $0x10] sm:$0xff] }
 0x6ce   : > { %v5793_v34 = vmax.f32 %v5742_v6, 0.0  ;;  %v15309_v6 = vld [vmem:[%s16654_s5 + $0x38] sm:$0xff] }
 0x6cf   : > { %6711 = vmatpush.msra.mxu1 %v6376_v46  ;;  %v5754_v46 = vadd.f32 %v15190_v42, %v16943_v63 }
 0x6d0   : > { %v15219_v11 = vpop.f32.mrf.mxu3 }
 0x6d1   : > { %6712 = vmatpush.msra.mxu1 %v6375_v51  ;;  %v5765_v35 = vpop.f32.mrf.mxu0  ;;  %v5799_v51 = vmax.f32 %v5760_v28, 0.0 }
 0x6d2   : > { %v5766_v60 = vadd.f32 %v5765_v35, %v16938_v59  ;;  %v16944_v35 = vld [vmem:[#allocation20_spill] sm:$0xff]  ;;  %v5797_v59 = vmax.f32 %v5754_v46, 0.0  ;;  %v16951_v46 = vld [vmem:[#allocation78_spill] sm:$0xff] }
 0x6d3   : > { %6713 = vmatpush.msra.mxu1 %v6374_v22  ;;  %v5751_v19 = vadd.f32 %v15182_v37, %v16944_v35  ;;  %v5798_v22 = vmax.f32 %v5757_v39, 0.0  ;;  %v15264_v37 = vld [vmem:[%s16654_s5 + $0x18] sm:$0xff]  ;;  %v16950_v39 = vld [vmem:[#allocation76_spill] sm:$0xff] }
 0x6d4   : > { %10237 = vmatmul.msk.f32.vlgmr.msra.gmra.mxu1 %vm663_vm0, %v15224_v47  ;;  %v5801_v7 = vmax.f32 %v5766_v60, 0.0  ;;  %v16946_v60 = vld [vmem:[#allocation71_spill] sm:$0xff] }
 0x6d8   : > { %v15228_v27 = vpop.f32.mrf.mxu3 }
 0x6d9   : > { %v5768_v18 = vpop.f32.mrf.mxu0 }
 0x6da   : > { %v5769_v23 = vadd.f32 %v5768_v18, %v16939_v3  ;;  %v5748_v18 = vadd.f32 %v15176_v40, %v16945_v5  ;;  %v5745_v3 = vadd.f32 %v15172_v8, %v16946_v60  ;;  %v16948_v40 = vld [vmem:[#allocation69_spill] sm:$0xff]  ;;  %v16949_v8 = vld [vmem:[#allocation80_spill] sm:$0xff] }
 0x6db   : > { %v5739_v14 = vadd.f32 %v15164_v52, %v16948_v40  ;;  %v15279_v52 = vld [vmem:[%s16654_s5 + $0x20] sm:$0xff] }
 0x6dc   : > { %v5802_v57 = vmax.f32 %v5769_v23, 0.0  ;;  %10238 = vmatmul.msk.f32.gmra.mxu1 %vm663_vm0, %v15233_v26  ;;  %v5796_v23 = vmax.f32 %v5751_v19, 0.0  ;;  %v5794_v28 = vmax.f32 %v5745_v3, 0.0  ;;  %v16952_v19 = vld [vmem:[#allocation88_spill] sm:$0xff] }
 0x6dd   : > { %v5792_v63 = vmax.f32 %v5739_v14, 0.0  ;;  %v15316_v40 = vld [vmem:[%s16654_s5 + $0x40] sm:$0xff] }
 0x6de   : > { %5831 = vmatpush.msra.mxu2 %v5802_v57  ;;  %v5795_v57 = vmax.f32 %v5748_v18, 0.0 }
 0x6e0   : > { %v15242_v9 = vpop.f32.mrf.mxu3  ;;  %5832 = vmatpush.msra.mxu2 %v5801_v7  ;;  %v5736_v7 = vadd.f32 %v15160_v49, %v16949_v8  ;;  %v5727_v49 = vadd.f32 %v15131_v41, %v16952_v19  ;;  %v5804_v41 = vld [vmem:[%s16656_s7 + $0x8] sm:$0x3f]  ;;  %v16956_v19 = vld [vmem:[#allocation31_spill] sm:$0xff] }
 0x6e2   : > { %5833 = vmatpush.msra.mxu2 %v5800_v0  ;;  %v5733_v0 = vadd.f32 %v15153_v29, %v16950_v39  ;;  %v5791_v35 = vmax.f32 %v5736_v7, 0.0  ;;  %v16953_v29 = vld [vmem:[#allocation85_spill] sm:$0xff]  ;;  %v15330_v7 = vld [vmem:[%s16654_s5 + $0x50] sm:$0xff] }
 0x6e3   : > { %v5724_v5 = vadd.f32 %v15119_v25, %v16953_v29  ;;  %v16957_v29 = vld [vmem:[#allocation66_spill] sm:$0xff] }
 0x6e4   : > { %10239 = vmatmul.msk.f32.gmra.mxu1 %vm663_vm0, %v15247_v38  ;;  %5834 = vmatpush.msra.mxu2 %v5799_v51  ;;  %v5730_v51 = vadd.f32 %v15143_v12, %v16951_v46  ;;  %v15292_v12 = vld [vmem:[%s16654_s5 + $0x28] sm:$0xff] }
 0x6e5   : > { %v5787_v3 = vmax.f32 %v5724_v5, 0.0  ;;  %v16955_v46 = vld [vmem:[#allocation29_spill] sm:$0xff] }
 0x6e6   : > { %5835 = vmatpush.msra.mxu2 %v5798_v22  ;;  %v5790_v22 = vmax.f32 %v5733_v0, 0.0  ;;  %v5789_v18 = vmax.f32 %v5730_v51, 0.0  ;;  %v16954_v0 = vld [vmem:[#allocation62_spill] sm:$0xff] }
 0x6e8   : > { %v15259_v42 = vpop.f32.mrf.mxu3  ;;  %5836 = vmatpush.msra.mxu2 %v5797_v59  ;;  %v5788_v59 = vmax.f32 %v5727_v49, 0.0 }
 0x6ea   : > { %5837 = vmatpush.msra.mxu2 %v5796_v23  ;;  %v15302_v23 = vld [vmem:[%s16654_s5 + $0x30] sm:$0xff] }
 0x6ec   : > { %10240 = vmatmul.msk.f32.gmra.mxu1 %vm663_vm0, %v15264_v37  ;;  %5838 = vmatpush.msra.mxu2 %v5795_v57 }
 0x6ee   : > { %5839 = vmatpush.msra.mxu2 %v5794_v28  ;;  %v15323_v28 = vld [vmem:[%s16654_s5 + $0x48] sm:$0xff] }
 0x6f0   : > { %v6267_v33 = vpop.f32.mrf.mxu3  ;;  %5840 = vmatpush.msra.mxu2 %v5793_v34  ;;  %v15332_v34 = vpop.permute.xlu0 %7079 }
 0x6f2   : > { %5841 = vmatpush.msra.mxu2 %v5792_v63 }
 0x6f4   : > { %10241 = vmatmul.msk.f32.gmra.mxu1 %vm663_vm0, %v15279_v52  ;;  %5842 = vmatpush.msra.mxu2 %v5791_v35  ;;  %v15341_v35 = vld [vmem:[%s16654_s5 + $0x58] sm:$0xff] }
 0x6f6   : > { %5843 = vmatpush.msra.mxu2 %v5790_v22 }
 0x6f8   : > { %v6270_v60 = vpop.f32.mrf.mxu3  ;;  %5844 = vmatpush.msra.mxu2 %v5789_v18 }
 0x6fa   : > { %5845 = vmatpush.msra.mxu2 %v5788_v59  ;;  %v15347_v59 = vpop.permute.xlu0 %6969 }
 0x6fc   : > { %10242 = vmatmul.msk.f32.gmra.mxu1 %vm663_vm0, %v15292_v12  ;;  %5846 = vmatpush.msra.mxu2 %v5787_v3  ;;  %v16958_v3 = vld [vmem:[#allocation25_spill] sm:$0xff] }
 0x6fd   : > { %5847 = vmatmul.f32.vlgmr.msra.gmra.mxu2 %v5804_v41 }
 0x700   : > { %v6273_v25 = vpop.f32.mrf.mxu3 }
 0x704   : > { %10243 = vmatmul.msk.f32.gmra.mxu1 %vm663_vm0, %v15302_v23 }
 0x708   : > { %v6276_v32 = vpop.f32.mrf.mxu3 }
 0x709   : > { %v6277_v41 = vadd.f32 %v6276_v32, %v16958_v3 }
 0x70c   : > { %10244 = vmatmul.msk.f32.gmra.mxu1 %vm663_vm0, %v15309_v6 }
 0x710   : > { %v6279_v57 = vpop.f32.mrf.mxu3 }
 0x711   : > { %v6280_v5 = vadd.f32 %v6279_v57, %v16957_v29  ;;  %v6318_v57 = vmax.f32 %v6277_v41, 0.0  ;;  %v15369_v41 = vld [vmem:[%s16654_s5 + $0x68] sm:$0xff] }
 0x714   : > { %10245 = vmatmul.msk.f32.gmra.mxu1 %vm663_vm0, %v15316_v40 }
 0x718   : > { %v6282_v14 = vpop.f32.mrf.mxu3 }
 0x719   : > { %v6283_v49 = vadd.f32 %v6282_v14, %v16956_v19  ;;  %v15354_v14 = vld [vmem:[%s16654_s5 + $0x60] sm:$0xff] }
 0x71c   : > { %10246 = vmatmul.msk.f32.gmra.mxu1 %vm663_vm0, %v15323_v28 }
 0x720   : > { %v6285_v8 = vpop.f32.mrf.mxu3 }
 0x721   : > { %v6286_v63 = vadd.f32 %v6285_v8, %v16954_v0  ;;  %v6320_v8 = vmax.f32 %v6283_v49, 0.0 }
 0x723   : > { %v6321_v18 = vmax.f32 %v6286_v63, 0.0  ;;  %v16961_v63 = vld [vmem:[#allocation74_spill] sm:$0xff] }
 0x724   : > { %10247 = vmatmul.msk.f32.gmra.mxu1 %vm663_vm0, %v15330_v7  ;;  %v6268_v32 = vadd.f32 %v6267_v33, %v16961_v63  ;;  %v16964_v33 = vld [vmem:[#allocation82_spill] sm:$0xff] }
 0x728   : > { %v6288_v39 = vpop.f32.mrf.mxu3 }
 0x729   : > { %v6289_v51 = vadd.f32 %v6288_v39, %v16955_v46  ;;  %v16959_v39 = vld [vmem:[#allocation75_spill] sm:$0xff]  ;;  %v6319_v46 = vmax.f32 %v6280_v5, 0.0  ;;  %v15362_v5 = vpop.permute.xlu0 %7064 }
 0x72a   : > { %v6274_v0 = vadd.f32 %v6273_v25, %v16959_v39 }
 0x72b   : > { %v6322_v22 = vmax.f32 %v6289_v51, 0.0  ;;  %v16960_v51 = vld [vmem:[#allocation72_spill] sm:$0xff] }
 0x72c   : > { %10248 = vmatmul.msk.f32.gmra.mxu1 %vm663_vm0, %v15341_v35  ;;  %v6271_v19 = vadd.f32 %v6270_v60, %v16960_v51  ;;  %v6317_v49 = vmax.f32 %v6274_v0, 0.0  ;;  %v6315_v60 = vmax.f32 %v6268_v32, 0.0 }
 0x72d   : > { %6351 = vmatpush.msrb.mxu2 %v6322_v22  ;;  %v16962_v22 = vld [vmem:[#allocation84_spill] sm:$0xff] }
 0x72e   : > { %v6265_v25 = vadd.f32 %v15259_v42, %v16962_v22  ;;  %v6316_v29 = vmax.f32 %v6271_v19, 0.0  ;;  %v16965_v42 = vld [vmem:[#allocation9_spill] sm:$0xff] }
 0x72f   : > { %6352 = vmatpush.msrb.mxu2 %v6321_v18  ;;  %v16963_v18 = vld [vmem:[#allocation81_spill] sm:$0xff]  ;;  %v6256_v0 = vadd.f32 %v15219_v11, %v16965_v42  ;;  %v16968_v11 = vld [vmem:[#allocation91_spill] sm:$0xff]  ;;  %v15413_v42 = vld [vmem:[%s16654_s5 + $0x80] sm:$0xff] }
 0x730   : > { %v6262_v3 = vadd.f32 %v15242_v9, %v16963_v18  ;;  %v6314_v39 = vmax.f32 %v6265_v25, 0.0  ;;  %v16966_v9 = vld [vmem:[#allocation86_spill] sm:$0xff]  ;;  %v6247_v25 = vadd.f32 %v15196_v61, %v16968_v11  ;;  %v6324_v61 = vld [vmem:[%s16656_s7 + $0x8] sm:$0x3f] }
 0x731   : > { %6353 = vmatpush.msrb.mxu2 %v6320_v8  ;;  %v6259_v8 = vadd.f32 %v15228_v27, %v16964_v33  ;;  %v6253_v51 = vadd.f32 %v15214_v21, %v16966_v9  ;;  %v6311_v32 = vmax.f32 %v6256_v0, 0.0  ;;  %v5828_v27 = vpop.f32.mrf.mxu1  ;;  %v15386_v22 = vpop.permute.xlu0 %7049  ;;  %v16969_v21 = vld [vmem:[#allocation92_spill] sm:$0xff] }
 0x733   : > { %6354 = vmatpush.msrb.mxu2 %v6319_v46  ;;  %v6313_v46 = vmax.f32 %v6262_v3, 0.0  ;;  %v6312_v19 = vmax.f32 %v6259_v8, 0.0  ;;  %v6308_v3 = vmax.f32 %v6247_v25, 0.0  ;;  %v15402_v8 = vld [vmem:[%s16654_s5 + $0x78] sm:$0xff] }
 0x734   : > { %10249 = vmatmul.msk.f32.gmra.mxu1 %vm663_vm0, %v15354_v14 }
 0x735   : > { %6355 = vmatpush.msrb.mxu2 %v6318_v57  ;;  %v16967_v57 = vld [vmem:[#allocation4_spill] sm:$0xff] }
 0x736   : > { %v6250_v63 = vadd.f32 %v15206_v56, %v16967_v57  ;;  %v6244_v56 = vadd.f32 %v15187_v30, %v16969_v21 }
 0x737   : > { %6356 = vmatpush.msrb.mxu2 %v6317_v49  ;;  %v15384_v49 = vld [vmem:[%s16654_s5 + $0x70] sm:$0xff] }
 0x738   : > { %v6309_v18 = vmax.f32 %v6250_v63, 0.0 }
 0x739   : > { %6357 = vmatpush.msrb.mxu2 %v6316_v29  ;;  %v6310_v29 = vmax.f32 %v6253_v51, 0.0 }
 0x73b   : > { %6358 = vmatpush.msrb.mxu2 %v6315_v60  ;;  %v6307_v60 = vmax.f32 %v6244_v56, 0.0 }
 0x73c   : > { %10250 = vmatmul.msk.f32.gmra.mxu1 %vm663_vm0, %v15369_v41 }
 0x73d   : > { %6359 = vmatpush.msrb.mxu2 %v6314_v39  ;;  %v15404_v39 = vpop.permute.xlu0 %7554 }
 0x73e   : > { %16970 = vst [vmem:[#allocation70_spill] sm:$0xff] %v15404_v39 }
 0x73f   : > { %6360 = vmatpush.msrb.mxu2 %v6313_v46 }
 0x741   : > { %6361 = vmatpush.msrb.mxu2 %v6312_v19 }
 0x743   : > { %6362 = vmatpush.msrb.mxu2 %v6311_v32  ;;  %v15437_v32 = vpop.permute.xlu1 %6974 }
 0x744   : > { %10251 = vmatmul.msk.f32.gmra.mxu1 %vm663_vm0, %v15384_v49 }
 0x745   : > { %6363 = vmatpush.msrb.mxu2 %v6310_v29  ;;  %v15417_v0 = vpop.permute.xlu0 %7539 }
 0x746   : > { %16971 = vst [vmem:[#allocation73_spill] sm:$0xff] %v15417_v0  ;;  %v16983_v0 = vld [vmem:[#allocation93_spill] sm:$0xff] }
 0x747   : > { %6364 = vmatpush.msrb.mxu2 %v6309_v18 }
 0x749   : > { %v15394_v33 = vpop.f32.mrf.mxu1  ;;  %6365 = vmatpush.msrb.mxu2 %v6308_v3 }
 0x74b   : > { %6366 = vmatpush.msrb.mxu2 %v6307_v60 }
 0x74c   : > { %6367 = vmatmul.f32.vlgmr.msrb.gmra.mxu2 %v6324_v61  ;;  %10252 = vmatmul.msk.f32.gmra.mxu1 %vm663_vm0, %v15402_v8 }
 0x74d   : > { %v15423_v9 = vpop.permute.xlu0 %7524 }
 0x74e   : > { %16972 = vst [vmem:[#allocation77_spill] sm:$0xff] %v15423_v9  ;;  %v16982_v9 = vld [vmem:[#allocation7_spill] sm:$0xff] }
 0x751   : > { %v15408_v30 = vpop.f32.mrf.mxu1 }
 0x754   : > { %10253 = vmatmul.msk.f32.gmra.mxu1 %vm663_vm0, %v15413_v42 }
 0x755   : > { %v15431_v57 = vpop.permute.xlu0 %7509 }
 0x756   : > { %16973 = vst [vmem:[#allocation79_spill] sm:$0xff] %v15431_v57  ;;  %v16981_v57 = vld [vmem:[#allocation89_spill] sm:$0xff] }
 0x759   : > { %v15419_v46 = vpop.f32.mrf.mxu1 }
 0x75c   : > { %10254 = vmatmul.msk.f32.gmra.mxu1 %vm663_vm0, %v14912_v44 }
 0x75d   : > { %v15439_v44 = vpop.permute.xlu0 %7494 }
 0x75e   : > { %16974 = vst [vmem:[#allocation83_spill] sm:$0xff] %v15439_v44 }
 0x761   : > { %v15425_v51 = vpop.f32.mrf.mxu1 }
 0x764   : > { %10255 = vmatmul.msk.f32.gmra.mxu1 %vm663_vm0, %v14932_v36  ;;  %v15447_v36 = vpop.permute.xlu1 %7069 }
 0x765   : > { %v5809_v25 = vpop.permute.xlu0 %5808 }
 0x766   : > { %v5829_v29 = vadd.f32 %v5828_v27, %v5809_v25 }
 0x769   : > { %v15429_v19 = vpop.f32.mrf.mxu1 }
 0x76c   : > { %10256 = vmatmul.msk.f32.gmra.mxu1 %vm663_vm0, %v14952_v45 }
 0x771   : > { %v15435_v63 = vpop.f32.mrf.mxu1 }
 0x774   : > { %10257 = vmatmul.msk.f32.gmra.mxu1 %vm663_vm0, %v14967_v50 }
 0x779   : > { %v15443_v11 = vpop.f32.mrf.mxu1 }
 0x77c   : > { %10258 = vmatmul.msk.f32.gmra.mxu1 %vm663_vm0, %v14982_v43  ;;  %v15459_v43 = vpop.permute.xlu1 %7059 }
 0x780   : > { %v5848_v45 = vpop.f32.mrf.mxu2 }
 0x781   : > { %v5849_v21 = vadd.f32 %v5848_v45, %v5829_v29  ;;  %v6733_v56 = vpop.f32.mrf.mxu1 }
 0x783   : > { %v5851_v50 = vmax.f32 %v5849_v21, 0.0 }
 0x784   : > { %10259 = vmatmul.msk.f32.gmra.mxu1 %vm663_vm0, %v14997_v55  ;;  %v15463_v18 = vpop.permute.xlu1 %7044 }
 0x785   : > { %5853 = vst.msk [vmem:[%s15453_s22] sm:$0x3f] %vm5852_vm1, %v5851_v50 }
 0x789   : > { %v6736_v27 = vpop.f32.mrf.mxu1 }
 0x78c   : > { %10260 = vmatmul.msk.f32.gmra.mxu1 %vm663_vm0, %v15012_v48  ;;  %v15467_v61 = vpop.permute.xlu1 %7549 }
 0x78d   : > { %16975 = vst [vmem:[#allocation87_spill] sm:$0xff] %v15467_v61 }
 0x791   : > { %v6739_v3 = vpop.f32.mrf.mxu1 }
 0x794   : > { %10261 = vmatmul.msk.f32.gmra.mxu1 %vm663_vm0, %v15027_v10  ;;  %v15473_v25 = vpop.permute.xlu1 %7534 }
 0x795   : > { %16976 = vst [vmem:[#allocation5_spill] sm:$0xff] %v15473_v25 }
 0x799   : > { %v6742_v60 = vpop.f32.mrf.mxu1 }
 0x79c   : > { %10262 = vmatmul.msk.f32.gmra.mxu1 %vm663_vm0, %v15038_v4  ;;  %v15477_v48 = vpop.permute.xlu1 %7519 }
 0x79d   : > { %16977 = vst [vmem:[#allocation18_spill] sm:$0xff] %v15477_v48 }
 0x7a1   : > { %v6745_v55 = vpop.f32.mrf.mxu1 }
 0x7a4   : > { %10263 = vmatmul.msk.f32.gmra.mxu1 %vm663_vm0, %v15051_v62  ;;  %v15481_v10 = vpop.permute.xlu1 %7504 }
 0x7a5   : > { %16978 = vst [vmem:[#allocation15_spill] sm:$0xff] %v15481_v10 }
 0x7a9   : > { %v6748_v29 = vpop.f32.mrf.mxu1 }
 0x7aa   : > { %v6749_v39 = vadd.f32 %v6748_v29, %v14374_v54  ;;  %v16986_v54 = vld [vmem:[#allocation97_spill] sm:$0xff] }
 0x7ac   : > { %10264 = vmatmul.msk.f32.gmra.mxu1 %vm663_vm0, %v15062_v17  ;;  %v15485_v62 = vpop.permute.xlu1 %7489  ;;  %v16980_v17 = vld [vmem:[#allocation90_spill] sm:$0xff] }
 0x7ad   : > { %16979 = vst [vmem:[#allocation12_spill] sm:$0xff] %v15485_v62 }
 0x7b1   : > { %v6751_v45 = vpop.f32.mrf.mxu1 }
 0x7b2   : > { %v6752_v62 = vadd.f32 %v6751_v45, %v16983_v0  ;;  %v6740_v0 = vadd.f32 %v6739_v3, %v14443_v1 }
 0x7b4   : > { %10265 = vmatmul.msk.f32.gmra.mxu1 %vm663_vm0, %v15073_v2  ;;  %v6329_v10 = vpop.permute.xlu1 %6328 }
 0x7b9   : > { %v6754_v21 = vpop.f32.mrf.mxu1 }
 0x7ba   : > { %v6755_v25 = vadd.f32 %v6754_v21, %v16982_v9  ;;  %v16984_v9 = vld [vmem:[#allocation95_spill] sm:$0xff]  ;;  %v6823_v21 = vmax.f32 %v6752_v62, 0.0  ;;  %v6819_v62 = vmax.f32 %v6740_v0, 0.0 }
 0x7bc   : > { %10266 = vmatmul.msk.f32.gmra.mxu1 %vm663_vm0, %v15084_v31  ;;  %v6349_v31 = vadd.f32 %v15394_v33, %v6329_v10  ;;  %v6822_v10 = vmax.f32 %v6749_v39, 0.0 }
 0x7c1   : > { %v6757_v4 = vpop.f32.mrf.mxu1 }
 0x7c2   : > { %v6758_v44 = vadd.f32 %v6757_v4, %v16980_v17  ;;  %v6824_v4 = vmax.f32 %v6755_v25, 0.0  ;;  %v6737_v25 = vadd.f32 %v6736_v27, %v16986_v54 }
 0x7c4   : > { %10267 = vmatmul.msk.f32.gmra.mxu1 %vm663_vm0, %v15095_v24  ;;  %v6825_v61 = vmax.f32 %v6758_v44, 0.0 }
 0x7c9   : > { %v6760_v50 = vpop.f32.mrf.mxu1 }
 0x7ca   : > { %v6761_v48 = vadd.f32 %v6760_v50, %v16981_v57  ;;  %v16985_v50 = vld [vmem:[#allocation10_spill] sm:$0xff] }
 0x7cb   : > { %v6743_v33 = vadd.f32 %v6742_v60, %v16985_v50  ;;  %v6818_v60 = vmax.f32 %v6737_v25, 0.0 }
 0x7cc   : > { %v6826_v2 = vmax.f32 %v6761_v48, 0.0  ;;  %10268 = vmatmul.msk.f32.gmra.mxu1 %vm663_vm0, %v15107_v20  ;;  %v6746_v48 = vadd.f32 %v6745_v55, %v16984_v9  ;;  %v16987_v55 = vld [vmem:[#allocation98_spill] sm:$0xff] }
 0x7cd   : > { %v6734_v45 = vadd.f32 %v6733_v56, %v16987_v55  ;;  %v6722_v56 = vadd.f32 %v15425_v51, %v14594_v53  ;;  %v6843_v53 = vld [vmem:[%s16656_s7] sm:$0x3f] }
 0x7ce   : > { %6851 = vmatpush.msra.mxu2 %v6826_v2  ;;  %v6821_v44 = vmax.f32 %v6746_v48, 0.0  ;;  %v16988_v2 = vld [vmem:[#allocation102_spill] sm:$0xff]  ;;  %v16991_v55 = vld [vmem:[#allocation16_spill] sm:$0xff] }
 0x7cf   : > { %v6368_v24 = vpop.f32.mrf.mxu2  ;;  %v6731_v39 = vadd.f32 %v15443_v11, %v16988_v2  ;;  %v6817_v3 = vmax.f32 %v6734_v45, 0.0  ;;  %v6719_v11 = vadd.f32 %v15419_v46, %v14556_v58 }
 0x7d0   : > { %v6369_v17 = vadd.f32 %v6368_v24, %v6349_v31  ;;  %6852 = vmatpush.msra.mxu2 %v6825_v61  ;;  %v6820_v61 = vmax.f32 %v6743_v33, 0.0  ;;  %v16989_v31 = vld [vmem:[#allocation100_spill] sm:$0xff]  ;;  %v16990_v24 = vld [vmem:[#allocation101_spill] sm:$0xff] }
 0x7d1   : > { %v15497_v57 = vpop.f32.mrf.mxu1  ;;  %v6728_v1 = vadd.f32 %v15435_v63, %v16989_v31  ;;  %v6725_v27 = vadd.f32 %v15429_v19, %v16990_v24  ;;  %v6716_v63 = vadd.f32 %v15408_v30, %v14577_v16  ;;  %v6812_v19 = vmax.f32 %v6719_v11, 0.0 }
 0x7d2   : > { %v6371_v20 = vmax.f32 %v6369_v17, 0.0  ;;  %6853 = vmatpush.msra.mxu2 %v6824_v4  ;;  %v6816_v4 = vmax.f32 %v6731_v39, 0.0  ;;  %v16993_v39 = vld [vmem:[#allocation96_spill] sm:$0xff] }
 0x7d3   : > { %v6815_v9 = vmax.f32 %v6728_v1, 0.0  ;;  %v6814_v48 = vmax.f32 %v6725_v27, 0.0  ;;  %v6811_v50 = vmax.f32 %v6716_v63, 0.0  ;;  %v16994_v1 = vld [vmem:[#allocation14_spill] sm:$0xff]  ;;  %v16997_v63 = vld [vmem:[#allocation99_spill] sm:$0xff] }
 0x7d4   : > { %10236 = vst.msk [vmem:[%s15453_s22 + $0x8] sm:$0x3f] %vm5852_vm1, %v6371_v20  ;;  %6854 = vmatpush.msra.mxu2 %v6823_v21  ;;  %v6813_v21 = vmax.f32 %v6722_v56, 0.0  ;;  %v16995_v27 = vld [vmem:[#allocation26_spill] sm:$0xff] }
 0x7d6   : > { %6855 = vmatpush.msra.mxu2 %v6822_v10 }
 0x7d8   : > { %6856 = vmatpush.msra.mxu2 %v6821_v44 }
 0x7d9   : > { %v15505_v29 = vpop.f32.mrf.mxu1 }
 0x7da   : > { %6857 = vmatpush.msra.mxu2 %v6820_v61 }
 0x7dc   : > { %6858 = vmatpush.msra.mxu2 %v6819_v62  ;;  %v16992_v62 = vld [vmem:[#allocation94_spill] sm:$0xff] }
 0x7de   : > { %6859 = vmatpush.msra.mxu2 %v6818_v60 }
 0x7e0   : > { %6860 = vmatpush.msra.mxu2 %v6817_v3 }
 0x7e1   : > { %v15514_v17 = vpop.f32.mrf.mxu1 }
 0x7e2   : > { %6861 = vmatpush.msra.mxu2 %v6816_v4 }
 0x7e4   : > { %6862 = vmatpush.msra.mxu2 %v6815_v9  ;;  %v16996_v9 = vld [vmem:[#allocation22_spill] sm:$0xff] }
 0x7e6   : > { %6863 = vmatpush.msra.mxu2 %v6814_v48 }
 0x7e8   : > { %6864 = vmatpush.msra.mxu2 %v6813_v21 }
 0x7e9   : > { %v6772_v20 = vpop.f32.mrf.mxu1 }
 0x7ea   : > { %6865 = vmatpush.msra.mxu2 %v6812_v19 }
 0x7ec   : > { %6866 = vmatpush.msra.mxu2 %v6811_v50  ;;  %v16998_v50 = vld [vmem:[#allocation38_spill] sm:$0xff] }
 0x7ed   : > { %6867 = vmatmul.f32.vlgmr.msra.gmra.mxu2 %v6843_v53 }
 0x7f1   : > { %v6775_v51 = vpop.f32.mrf.mxu1 }
 0x7f9   : > { %v6778_v58 = vpop.f32.mrf.mxu1 }
 0x801   : > { %v6781_v46 = vpop.f32.mrf.mxu1 }
 0x809   : > { %v6784_v33 = vpop.f32.mrf.mxu1 }
 0x811   : > { %v6787_v10 = vpop.f32.mrf.mxu1 }
 0x812   : > { %v6788_v53 = vadd.f32 %v6787_v10, %v16998_v50  ;;  %v6773_v10 = vadd.f32 %v6772_v20, %v14662_v13  ;;  %v6897_v20 = vld [vmem:[#allocation3 + $0x78] sm:$0xff] }
 0x819   : > { %v6790_v0 = vpop.f32.mrf.mxu1 }
 0x81a   : > { %v6791_v21 = vadd.f32 %v6790_v0, %v16997_v63  ;;  %v15555_v63 = vpop.permute.xlu2 %7074 }
 0x821   : > { %v6793_v16 = vpop.f32.mrf.mxu1 }
 0x822   : > { %v6794_v11 = vadd.f32 %v6793_v16, %v16996_v9  ;;  %v6779_v16 = vadd.f32 %v6778_v58, %v14630_v15  ;;  %v17004_v15 = vld [vmem:[#allocation110_spill] sm:$0xff] }
 0x823   : > { %v6764_v58 = vadd.f32 %v15497_v57, %v17004_v15  ;;  %v8457_v57 = vld [vmem:[#allocation3 + $0xd8] sm:$0xff]  ;;  %v8456_v9 = vld [vmem:[#allocation3 + $0xd0] sm:$0xff] }
 0x825   : > { %v6827_v13 = vmax.f32 %v6764_v58, 0.0  ;;  %v15649_v58 = vld [vmem:[%s16654_s5 + $0xb0] sm:$0xff] }
 0x826   : > { %17011 = vst [vmem:[#allocation43_spill] sm:$0xff] %v15649_v58 }
 0x829   : > { %v6796_v30 = vpop.f32.mrf.mxu1 }
 0x82a   : > { %v6797_v4 = vadd.f32 %v6796_v30, %v16995_v27 }
 0x82c   : > { %v6838_v19 = vmax.f32 %v6797_v4, 0.0  ;;  %v6895_v4 = vld [vmem:[#allocation3 + $0x68] sm:$0xff] }
 0x831   : > { %v6799_v44 = vpop.f32.mrf.mxu1 }
 0x832   : > { %v6800_v3 = vadd.f32 %v6799_v44, %v16994_v1 }
 0x834   : > { %v6839_v48 = vmax.f32 %v6800_v3, 0.0 }
 0x839   : > { %v6802_v54 = vpop.f32.mrf.mxu1 }
 0x83a   : > { %v6803_v60 = vadd.f32 %v6802_v54, %v16993_v39  ;;  %v6837_v54 = vmax.f32 %v6794_v11, 0.0  ;;  %v8455_v11 = vld [vmem:[#allocation3 + $0xc8] sm:$0xff] }
 0x83c   : > { %v6840_v56 = vmax.f32 %v6803_v60, 0.0  ;;  %v6832_v60 = vmax.f32 %v6779_v16, 0.0 }
 0x841   : > { %v6805_v25 = vpop.f32.mrf.mxu1 }
 0x842   : > { %v6806_v45 = vadd.f32 %v6805_v25, %v16991_v55  ;;  %v16999_v25 = vld [vmem:[#allocation103_spill] sm:$0xff] }
 0x843   : > { %v6785_v44 = vadd.f32 %v6784_v33, %v16999_v25  ;;  %v17000_v55 = vld [vmem:[#allocation35_spill] sm:$0xff] }
 0x844   : > { %v6841_v24 = vmax.f32 %v6806_v45, 0.0  ;;  %v6782_v30 = vadd.f32 %v6781_v46, %v17000_v55  ;;  %v6835_v45 = vmax.f32 %v6788_v53, 0.0  ;;  %v17003_v46 = vld [vmem:[#allocation106_spill] sm:$0xff] }
 0x845   : > { %v6767_v3 = vadd.f32 %v15505_v29, %v17003_v46  ;;  %v6896_v29 = vld [vmem:[#allocation3 + $0x70] sm:$0xff]  ;;  %v15633_v46 = vld [vmem:[%s16654_s5 + $0xa0] sm:$0xff] }
 0x846   : > { %v6833_v39 = vmax.f32 %v6782_v30, 0.0 }
 0x847   : > { %v6828_v27 = vmax.f32 %v6767_v3, 0.0 }
 0x849   : > { %v6808_v61 = vpop.f32.mrf.mxu1 }
 0x84a   : > { %v6809_v2 = vadd.f32 %v6808_v61, %v16992_v62  ;;  %v6836_v61 = vmax.f32 %v6791_v21, 0.0  ;;  %v6834_v62 = vmax.f32 %v6785_v44, 0.0  ;;  %v15559_v21 = vpop.permute.xlu2 %6964 }
 0x84c   : > { %v6842_v31 = vmax.f32 %v6809_v2, 0.0  ;;  %v17001_v2 = vld [vmem:[#allocation104_spill] sm:$0xff] }
 0x84d   : > { %v6776_v0 = vadd.f32 %v6775_v51, %v17001_v2 }
 0x84e   : > { %6871 = vmatpush.msrb.mxu2 %v6842_v31  ;;  %v17002_v31 = vld [vmem:[#allocation105_spill] sm:$0xff] }
 0x84f   : > { %v6770_v33 = vadd.f32 %v15514_v17, %v17002_v31  ;;  %v6831_v1 = vmax.f32 %v6776_v0, 0.0  ;;  %v6844_v17 = vld [vmem:[%s16656_s7 + $0x8] sm:$0x3f] }
 0x850   : > { %6872 = vmatpush.msrb.mxu2 %v6841_v24  ;;  %v6830_v24 = vmax.f32 %v6773_v10, 0.0 }
 0x851   : > { %v6829_v51 = vmax.f32 %v6770_v33, 0.0  ;;  %v15624_v33 = vld [vmem:[%s16654_s5 + $0x98] sm:$0xff] }
 0x852   : > { %6873 = vmatpush.msrb.mxu2 %v6840_v56  ;;  %v6894_v56 = vld [vmem:[#allocation3 + $0x60] sm:$0xff] }
 0x854   : > { %6874 = vmatpush.msrb.mxu2 %v6839_v48  ;;  %v8454_v48 = vld [vmem:[#allocation3 + $0xc0] sm:$0xff] }
 0x856   : > { %6875 = vmatpush.msrb.mxu2 %v6838_v19  ;;  %v15565_v19 = vpop.permute.xlu2 %7054 }
 0x858   : > { %6876 = vmatpush.msrb.mxu2 %v6837_v54 }
 0x85a   : > { %6877 = vmatpush.msrb.mxu2 %v6836_v61 }
 0x85c   : > { %6878 = vmatpush.msrb.mxu2 %v6835_v45 }
 0x85e   : > { %6879 = vmatpush.msrb.mxu2 %v6834_v62  ;;  %v15569_v50 = vpop.permute.xlu2 %7559 }
 0x85f   : > { %17005 = vst [vmem:[#allocation21_spill] sm:$0xff] %v15569_v50  ;;  %v17023_v50 = vld [vmem:[#allocation54_spill] sm:$0xff] }
 0x860   : > { %6880 = vmatpush.msrb.mxu2 %v6833_v39  ;;  %v15606_v39 = vld [vmem:[%s16654_s5 + $0x88] sm:$0xff] }
 0x862   : > { %6881 = vmatpush.msrb.mxu2 %v6832_v60  ;;  %v15615_v60 = vld [vmem:[%s16654_s5 + $0x90] sm:$0xff] }
 0x864   : > { %6882 = vmatpush.msrb.mxu2 %v6831_v1 }
 0x866   : > { %6883 = vmatpush.msrb.mxu2 %v6830_v24  ;;  %v15573_v53 = vpop.permute.xlu2 %7544  ;;  %v15642_v24 = vld [vmem:[%s16654_s5 + $0xa8] sm:$0xff] }
 0x867   : > { %17006 = vst [vmem:[#allocation27_spill] sm:$0xff] %v15573_v53 }
 0x868   : > { %6884 = vmatpush.msrb.mxu2 %v6829_v51 }
 0x86a   : > { %6885 = vmatpush.msrb.mxu2 %v6828_v27  ;;  %v15656_v27 = vld [vmem:[%s16654_s5 + $0xb8] sm:$0xff] }
 0x86b   : > { %17012 = vst [vmem:[#allocation41_spill] sm:$0xff] %v15656_v27 }
 0x86c   : > { %6886 = vmatpush.msrb.mxu2 %v6827_v13 }
 0x86d   : > { %6887 = vmatmul.f32.vlgmr.msrb.gmra.mxu2 %v6844_v17  ;;  %v15663_v17 = vld [vmem:[%s16654_s5 + $0xc0] sm:$0xff] }
 0x86e   : > { %7230 = vmatpush.msra.mxu2 %v6897_v20  ;;  %v15577_v54 = vpop.permute.xlu2 %7529  ;;  %17013 = vst [vmem:[#allocation42_spill] sm:$0xff] %v15663_v17 }
 0x86f   : > { %17007 = vst [vmem:[#allocation24_spill] sm:$0xff] %v15577_v54  ;;  %v17022_v54 = vld [vmem:[#allocation107_spill] sm:$0xff] }
 0x870   : > { %7231 = vmatpush.msra.mxu2 %v6896_v29  ;;  %v6868_v55 = vpop.f32.mrf.mxu2  ;;  %v15670_v29 = vld [vmem:[%s16654_s5 + $0xc8] sm:$0xff] }
 0x871   : > { %17014 = vst [vmem:[#allocation49_spill] sm:$0xff] %v15670_v29 }
 0x872   : > { %7232 = vmatpush.msra.mxu2 %v6895_v4 }
 0x874   : > { %7233 = vmatpush.msra.mxu2 %v6894_v56  ;;  %v15677_v56 = vld [vmem:[%s16654_s5 + $0xd0] sm:$0xff] }
 0x875   : > { %10270 = vmatmul.msk.f32.vlgmr.msra.gmra.mxu2 %vm663_vm0, %v15224_v47  ;;  %17015 = vst [vmem:[#allocation47_spill] sm:$0xff] %v15677_v56 }
 0x876   : > { %8790 = vmatpush.msrb.mxu2 %v8457_v57  ;;  %v15583_v25 = vpop.permute.xlu2 %7514 }
 0x877   : > { %17008 = vst [vmem:[#allocation36_spill] sm:$0xff] %v15583_v25 }
 0x878   : > { %8791 = vmatpush.msrb.mxu2 %v8456_v9  ;;  %v15684_v9 = vld [vmem:[%s16654_s5 + $0xd8] sm:$0xff] }
 0x879   : > { %17016 = vst [vmem:[#allocation48_spill] sm:$0xff] %v15684_v9 }
 0x87a   : > { %8792 = vmatpush.msrb.mxu2 %v8455_v11 }
 0x87c   : > { %8793 = vmatpush.msrb.mxu2 %v8454_v48  ;;  %v15691_v48 = vld [vmem:[%s16654_s5 + $0xe0] sm:$0xff] }
 0x87d   : > { %10271 = vmatmul.msk.f32.gmra.mxu2 %vm663_vm0, %v15233_v26  ;;  %17017 = vst [vmem:[#allocation57_spill] sm:$0xff] %v15691_v48 }
 0x87e   : > { %v15587_v44 = vpop.permute.xlu2 %7499 }
 0x87f   : > { %17009 = vst [vmem:[#allocation33_spill] sm:$0xff] %v15587_v44  ;;  %v17021_v44 = vld [vmem:[#allocation108_spill] sm:$0xff] }
 0x885   : > { %10272 = vmatmul.msk.f32.gmra.mxu2 %vm663_vm0, %v15247_v38 }
 0x886   : > { %v15591_v61 = vpop.permute.xlu2 %7484 }
 0x887   : > { %17010 = vst [vmem:[#allocation34_spill] sm:$0xff] %v15591_v61 }
 0x88d   : > { %10273 = vmatmul.msk.f32.gmra.mxu2 %vm663_vm0, %v15264_v37 }
 0x88e   : > { %v6849_v30 = vpop.permute.xlu2 %6848 }
 0x88f   : > { %v6869_v45 = vadd.f32 %v6868_v55, %v6849_v30  ;;  %v15698_v30 = vld [vmem:[%s16654_s5 + $0xe8] sm:$0xff] }
 0x890   : > { %17018 = vst [vmem:[#allocation28_spill] sm:$0xff] %v15698_v30 }
 0x895   : > { %10274 = vmatmul.msk.f32.gmra.mxu2 %vm663_vm0, %v15279_v52 }
 0x89d   : > { %10275 = vmatmul.msk.f32.gmra.mxu2 %vm663_vm0, %v15292_v12 }
 0x8a5   : > { %10276 = vmatmul.msk.f32.gmra.mxu2 %vm663_vm0, %v15302_v23 }
 0x8ad   : > { %10277 = vmatmul.msk.f32.gmra.mxu2 %vm663_vm0, %v15309_v6 }
 0x8b5   : > { %10278 = vmatmul.msk.f32.gmra.mxu2 %vm663_vm0, %v15316_v40 }
 0x8bd   : > { %10279 = vmatmul.msk.f32.gmra.mxu2 %vm663_vm0, %v15323_v28 }
 0x8c5   : > { %10280 = vmatmul.msk.f32.gmra.mxu2 %vm663_vm0, %v15330_v7 }
 0x8cd   : > { %10281 = vmatmul.msk.f32.gmra.mxu2 %vm663_vm0, %v15341_v35 }
 0x8d5   : > { %10282 = vmatmul.msk.f32.gmra.mxu2 %vm663_vm0, %v15354_v14 }
 0x8dd   : > { %10283 = vmatmul.msk.f32.gmra.mxu2 %vm663_vm0, %v15369_v41 }
 0x8e5   : > { %10284 = vmatmul.msk.f32.gmra.mxu2 %vm663_vm0, %v15384_v49 }
 0x8ed   : > { %10285 = vmatmul.msk.f32.gmra.mxu2 %vm663_vm0, %v15402_v8 }
 0x8f0   : > { %v6888_v16 = vpop.f32.mrf.mxu2 }
 0x8f1   : > { %v6889_v62 = vadd.f32 %v6888_v16, %v6869_v45  ;;  %v15705_v16 = vld [vmem:[%s16654_s5 + $0xf0] sm:$0xff] }
 0x8f2   : > { %17019 = vst [vmem:[#allocation32_spill] sm:$0xff] %v15705_v16 }
 0x8f3   : > { %v6891_v2 = vmax.f32 %v6889_v62, 0.0 }
 0x8f5   : > { %10269 = vst.msk [vmem:[%s15453_s22 + $0x10] sm:$0x3f] %vm5852_vm1, %v6891_v2  ;;  %10286 = vmatmul.msk.f32.gmra.mxu2 %vm663_vm0, %v15413_v42  ;;  %v15712_v2 = vld [vmem:[%s16654_s5 + $0xf8] sm:$0xff] }
 0x8f6   : > { %17020 = vst [vmem:[#allocation30_spill] sm:$0xff] %v15712_v2 }
 0x8f8   : > { %v15601_v0 = vpop.f32.mrf.mxu2 }
 0x8fd   : > { %10287 = vmatmul.msk.f32.gmra.mxu2 %vm663_vm0, %v15606_v39 }
 0x900   : > { %v15610_v10 = vpop.f32.mrf.mxu2 }
 0x905   : > { %10288 = vmatmul.msk.f32.gmra.mxu2 %vm663_vm0, %v15615_v60 }
 0x908   : > { %v15619_v31 = vpop.f32.mrf.mxu2 }
 0x90d   : > { %10289 = vmatmul.msk.f32.gmra.mxu2 %vm663_vm0, %v15624_v33 }
 0x910   : > { %v15628_v1 = vpop.f32.mrf.mxu2 }
 0x915   : > { %10290 = vmatmul.msk.f32.gmra.mxu2 %vm663_vm0, %v15633_v46 }
 0x918   : > { %v15637_v3 = vpop.f32.mrf.mxu2 }
 0x91d   : > { %10291 = vmatmul.msk.f32.gmra.mxu2 %vm663_vm0, %v15642_v24 }
 0x920   : > { %v7250_v15 = vpop.f32.mrf.mxu2 }
 0x925   : > { %10292 = vmatmul.msk.f32.gmra.mxu2 %vm663_vm0, %v15649_v58  ;;  %v17026_v58 = vld [vmem:[#allocation112_spill] sm:$0xff] }
 0x928   : > { %v7253_v51 = vpop.f32.mrf.mxu2 }
 0x92d   : > { %10293 = vmatmul.msk.f32.gmra.mxu2 %vm663_vm0, %v15656_v27 }
 0x930   : > { %v7256_v13 = vpop.f32.mrf.mxu2 }
 0x935   : > { %10294 = vmatmul.msk.f32.gmra.mxu2 %vm663_vm0, %v15663_v17 }
 0x938   : > { %v7259_v20 = vpop.f32.mrf.mxu2 }
 0x93d   : > { %10295 = vmatmul.msk.f32.gmra.mxu2 %vm663_vm0, %v15670_v29  ;;  %v17025_v29 = vld [vmem:[#allocation111_spill] sm:$0xff] }
 0x940   : > { %v7262_v4 = vpop.f32.mrf.mxu2 }
 0x945   : > { %10296 = vmatmul.msk.f32.gmra.mxu2 %vm663_vm0, %v15677_v56 }
 0x948   : > { %v7265_v57 = vpop.f32.mrf.mxu2 }
 0x94d   : > { %10297 = vmatmul.msk.f32.gmra.mxu2 %vm663_vm0, %v15684_v9  ;;  %v17024_v9 = vld [vmem:[#allocation109_spill] sm:$0xff] }
 0x950   : > { %v7268_v11 = vpop.f32.mrf.mxu2 }
 0x951   : > { %v7269_v17 = vadd.f32 %v7268_v11, %v17025_v29 }
 0x955   : > { %10298 = vmatmul.msk.f32.gmra.mxu2 %vm663_vm0, %v15691_v48 }
 0x958   : > { %v7271_v55 = vpop.f32.mrf.mxu2 }
 0x959   : > { %v7272_v56 = vadd.f32 %v7271_v55, %v17024_v9 }
 0x95d   : > { %10299 = vmatmul.msk.f32.gmra.mxu2 %vm663_vm0, %v15698_v30 }
 0x960   : > { %v7274_v45 = vpop.f32.mrf.mxu2 }
 0x961   : > { %v7275_v30 = vadd.f32 %v7274_v45, %v17023_v50 }
 0x963   : > { %v7344_v27 = vmax.f32 %v7275_v30, 0.0 }
 0x965   : > { %10300 = vmatmul.msk.f32.gmra.mxu2 %vm663_vm0, %v15705_v16 }
 0x968   : > { %v7277_v62 = vpop.f32.mrf.mxu2 }
 0x969   : > { %v7278_v25 = vadd.f32 %v7277_v62, %v17021_v44  ;;  %v7266_v44 = vadd.f32 %v7265_v57, %v17026_v58  ;;  %v7343_v62 = vmax.f32 %v7272_v56, 0.0  ;;  %v17030_v58 = vld [vmem:[#allocation63_spill] sm:$0xff] }
 0x96a   : > { %v7254_v56 = vadd.f32 %v7253_v51, %v17030_v58 }
 0x96b   : > { %v7345_v16 = vmax.f32 %v7278_v25, 0.0  ;;  %v7341_v9 = vmax.f32 %v7266_v44, 0.0 }
 0x96c   : > { %v7337_v30 = vmax.f32 %v7254_v56, 0.0 }
 0x96d   : > { %10301 = vmatmul.msk.f32.gmra.mxu2 %vm663_vm0, %v15712_v2 }
 0x970   : > { %v7280_v61 = vpop.f32.mrf.mxu2 }
 0x971   : > { %v7281_v53 = vadd.f32 %v7280_v61, %v17022_v54  ;;  %v17027_v54 = vld [vmem:[#allocation116_spill] sm:$0xff]  ;;  %v17028_v61 = vld [vmem:[#allocation115_spill] sm:$0xff] }
 0x972   : > { %v7263_v50 = vadd.f32 %v7262_v4, %v17027_v54  ;;  %v7260_v25 = vadd.f32 %v7259_v20, %v17028_v61  ;;  %v17031_v4 = vld [vmem:[#allocation118_spill] sm:$0xff]  ;;  %v17032_v20 = vld [vmem:[#allocation119_spill] sm:$0xff] }
 0x973   : > { %v7346_v48 = vmax.f32 %v7281_v53, 0.0  ;;  %v7342_v53 = vmax.f32 %v7269_v17, 0.0  ;;  %v7251_v17 = vadd.f32 %v7250_v15, %v17031_v4  ;;  %v7248_v55 = vadd.f32 %v15637_v3, %v17032_v20  ;;  %v17040_v4 = vld [vmem:[#allocation64_spill] sm:$0xff] }
 0x974   : > { %v7340_v11 = vmax.f32 %v7263_v50, 0.0  ;;  %v7242_v15 = vadd.f32 %v15619_v31, %v15437_v32  ;;  %v7239_v3 = vadd.f32 %v15610_v10, %v15347_v59  ;;  %v7363_v59 = vld [vmem:[%s16656_s7] sm:$0x3f]  ;;  %v17034_v50 = vld [vmem:[#allocation113_spill] sm:$0xff] }
 0x975   : > { %7371 = vmatpush.msra.mxu0 %v7346_v48  ;;  %10369 = vmatmul.msk.f32.vlgmr.msrb.gmra.mxu2 %vm663_vm0, %v15224_v47  ;;  %v17029_v47 = vld [vmem:[#allocation60_spill] sm:$0xff]  ;;  %v7336_v45 = vmax.f32 %v7251_v17, 0.0 }
 0x976   : > { %v7257_v29 = vadd.f32 %v7256_v13, %v17029_v47  ;;  %v17037_v47 = vld [vmem:[#allocation11_spill] sm:$0xff]  ;;  %v17041_v20 = vld [vmem:[#allocation120_spill] sm:$0xff] }
 0x977   : > { %7372 = vmatpush.msra.mxu0 %v7345_v16  ;;  %v7335_v16 = vmax.f32 %v7248_v55, 0.0 }
 0x978   : > { %v15723_v2 = vpop.f32.mrf.mxu2  ;;  %v7338_v57 = vmax.f32 %v7257_v29, 0.0 }
 0x979   : > { %7373 = vmatpush.msra.mxu0 %v7344_v27  ;;  %v7339_v27 = vmax.f32 %v7260_v25, 0.0  ;;  %v17036_v25 = vld [vmem:[#allocation114_spill] sm:$0xff] }
 0x97b   : > { %7374 = vmatpush.msra.mxu0 %v7343_v62  ;;  %v7333_v62 = vmax.f32 %v7242_v15, 0.0 }
 0x97d   : > { %7375 = vmatpush.msra.mxu0 %v7342_v53  ;;  %10370 = vmatmul.msk.f32.gmra.mxu2 %vm663_vm0, %v15233_v26  ;;  %v17033_v26 = vld [vmem:[#allocation67_spill] sm:$0xff] }
 0x97e   : > { %v7245_v13 = vadd.f32 %v15628_v1, %v17033_v26  ;;  %v7332_v1 = vmax.f32 %v7239_v3, 0.0 }
 0x97f   : > { %7376 = vmatpush.msra.mxu0 %v7341_v9 }
 0x980   : > { %v15731_v48 = vpop.f32.mrf.mxu2  ;;  %v7334_v44 = vmax.f32 %v7245_v13, 0.0 }
 0x981   : > { %7377 = vmatpush.msra.mxu0 %v7340_v11 }
 0x983   : > { %7378 = vmatpush.msra.mxu0 %v7339_v27 }
 0x985   : > { %7379 = vmatpush.msra.mxu0 %v7338_v57  ;;  %10371 = vmatmul.msk.f32.gmra.mxu2 %vm663_vm0, %v15247_v38  ;;  %v7236_v38 = vadd.f32 %v15601_v0, %v15559_v21 }
 0x987   : > { %7380 = vmatpush.msra.mxu0 %v7337_v30  ;;  %v7331_v32 = vmax.f32 %v7236_v38, 0.0 }
 0x988   : > { %v15741_v51 = vpop.f32.mrf.mxu2 }
 0x989   : > { %7381 = vmatpush.msra.mxu0 %v7336_v45 }
 0x98b   : > { %7382 = vmatpush.msra.mxu0 %v7335_v16 }
 0x98d   : > { %7383 = vmatpush.msra.mxu0 %v7334_v44  ;;  %10372 = vmatmul.msk.f32.gmra.mxu2 %vm663_vm0, %v15264_v37 }
 0x98f   : > { %7384 = vmatpush.msra.mxu0 %v7333_v62 }
 0x990   : > { %v15751_v54 = vpop.f32.mrf.mxu2 }
 0x991   : > { %7385 = vmatpush.msra.mxu0 %v7332_v1 }
 0x993   : > { %7386 = vmatpush.msra.mxu0 %v7331_v32 }
 0x994   : > { %7387 = vmatmul.f32.vlgmr.msra.gmra.mxu0 %v7363_v59  ;;  %v15825_v59 = vld [vmem:[%s16654_s5 + $0x8] sm:$0xff] }
 0x995   : > { %10373 = vmatmul.msk.f32.gmra.mxu2 %vm663_vm0, %v15279_v52 }
 0x998   : > { %v7295_v21 = vpop.f32.mrf.mxu2 }
 0x999   : > { %v7296_v3 = vadd.f32 %v7295_v21, %v15362_v5  ;;  %v7284_v5 = vadd.f32 %v15723_v2, %v15463_v18  ;;  %v7416_v18 = vld [vmem:[#allocation3 + $0x90] sm:$0xff]  ;;  %v7415_v2 = vld [vmem:[#allocation3 + $0x88] sm:$0xff]  ;;  %v17042_v21 = vld [vmem:[#allocation43_spill] sm:$0xff] }
 0x99b   : > { %v7351_v62 = vmax.f32 %v7296_v3, 0.0 }
 0x99d   : > { %10374 = vmatmul.msk.f32.gmra.mxu2 %vm663_vm0, %v15292_v12 }
 0x9a0   : > { %v7298_v37 = vpop.f32.mrf.mxu2 }
 0x9a1   : > { %v7299_v15 = vadd.f32 %v7298_v37, %v15447_v36  ;;  %v7287_v36 = vadd.f32 %v15731_v48, %v15386_v22  ;;  %v7417_v22 = vld [vmem:[#allocation3 + $0x98] sm:$0xff]  ;;  %v15816_v48 = vld [vmem:[%s16654_s5] sm:$0xff] }
 0x9a3   : > { %v7352_v38 = vmax.f32 %v7299_v15, 0.0 }
 0x9a5   : > { %10375 = vmatmul.msk.f32.gmra.mxu2 %vm663_vm0, %v15302_v23 }
 0x9a8   : > { %v7301_v0 = vpop.f32.mrf.mxu2 }
 0x9a9   : > { %v7302_v13 = vadd.f32 %v7301_v0, %v15555_v63  ;;  %v7290_v63 = vadd.f32 %v15741_v51, %v15565_v19  ;;  %v7364_v19 = vld [vmem:[%s16656_s7 + $0x8] sm:$0x3f]  ;;  %v7414_v51 = vld [vmem:[#allocation3 + $0x80] sm:$0xff]  ;;  %v15836_v0 = vld [vmem:[%s16654_s5 + $0x10] sm:$0xff] }
 0x9ab   : > { %v7353_v44 = vmax.f32 %v7302_v13, 0.0  ;;  %v7349_v32 = vmax.f32 %v7290_v63, 0.0 }
 0x9ad   : > { %10376 = vmatmul.msk.f32.gmra.mxu2 %vm663_vm0, %v15309_v6 }
 0x9b0   : > { %v7304_v10 = vpop.f32.mrf.mxu2 }
 0x9b5   : > { %10377 = vmatmul.msk.f32.gmra.mxu2 %vm663_vm0, %v15316_v40 }
 0x9b8   : > { %v7307_v31 = vpop.f32.mrf.mxu2 }
 0x9b9   : > { %v7308_v55 = vadd.f32 %v7307_v31, %v17041_v20  ;;  %v15952_v20 = vld [vmem:[%s16654_s5 + $0x70] sm:$0xff] }
 0x9bb   : > { %v7355_v45 = vmax.f32 %v7308_v55, 0.0  ;;  %v7369_v55 = vpop.permute.xlu0 %7368 }
 0x9bd   : > { %10378 = vmatmul.msk.f32.gmra.mxu2 %vm663_vm0, %v15323_v28 }
 0x9c0   : > { %v7310_v52 = vpop.f32.mrf.mxu2 }
 0x9c1   : > { %v7311_v17 = vadd.f32 %v7310_v52, %v17040_v4  ;;  %v15847_v52 = vld [vmem:[%s16654_s5 + $0x18] sm:$0xff]  ;;  %v15938_v4 = vld [vmem:[%s16654_s5 + $0x60] sm:$0xff] }
 0x9c3   : > { %v7356_v26 = vmax.f32 %v7311_v17, 0.0  ;;  %v15945_v17 = vld [vmem:[%s16654_s5 + $0x68] sm:$0xff] }
 0x9c5   : > { %10379 = vmatmul.msk.f32.gmra.mxu2 %vm663_vm0, %v15330_v7 }
 0x9c8   : > { %v7313_v12 = vpop.f32.mrf.mxu2 }
 0x9cd   : > { %10380 = vmatmul.msk.f32.gmra.mxu2 %vm663_vm0, %v15341_v35  ;;  %v17035_v35 = vld [vmem:[#allocation56_spill] sm:$0xff] }
 0x9d0   : > { %v7316_v23 = vpop.f32.mrf.mxu2 }
 0x9d5   : > { %10381 = vmatmul.msk.f32.gmra.mxu2 %vm663_vm0, %v15354_v14 }
 0x9d8   : > { %v7319_v6 = vpop.f32.mrf.mxu2 }
 0x9d9   : > { %v7320_v29 = vadd.f32 %v7319_v6, %v17037_v47  ;;  %v15900_v47 = vld [vmem:[%s16654_s5 + $0x40] sm:$0xff] }
 0x9db   : > { %v7359_v27 = vmax.f32 %v7320_v29, 0.0  ;;  %v17054_v29 = vld [vmem:[#allocation28_spill] sm:$0xff] }
 0x9dd   : > { %10382 = vmatmul.msk.f32.gmra.mxu2 %vm663_vm0, %v15369_v41  ;;  %v17038_v41 = vld [vmem:[#allocation117_spill] sm:$0xff] }
 0x9e0   : > { %v7322_v40 = vpop.f32.mrf.mxu2 }
 0x9e1   : > { %v7323_v9 = vadd.f32 %v7322_v40, %v17036_v25  ;;  %v17048_v40 = vld [vmem:[#allocation49_spill] sm:$0xff]  ;;  %v15889_v25 = vld [vmem:[%s16654_s5 + $0x38] sm:$0xff] }
 0x9e3   : > { %v7360_v58 = vmax.f32 %v7323_v9, 0.0  ;;  %v17053_v9 = vld [vmem:[#allocation57_spill] sm:$0xff] }
 0x9e5   : > { %10383 = vmatmul.msk.f32.gmra.mxu2 %vm663_vm0, %v15384_v49  ;;  %v7317_v49 = vadd.f32 %v7316_v23, %v17038_v41  ;;  %v15856_v23 = vld [vmem:[%s16654_s5 + $0x20] sm:$0xff] }
 0x9e7   : > { %v7358_v57 = vmax.f32 %v7317_v49, 0.0  ;;  %v17055_v49 = vld [vmem:[#allocation32_spill] sm:$0xff] }
 0x9e8   : > { %v7325_v28 = vpop.f32.mrf.mxu2 }
 0x9e9   : > { %v7326_v53 = vadd.f32 %v7325_v28, %v17034_v50  ;;  %v15867_v28 = vld [vmem:[%s16654_s5 + $0x28] sm:$0xff]  ;;  %v17050_v50 = vld [vmem:[#allocation47_spill] sm:$0xff] }
 0x9eb   : > { %v7361_v11 = vmax.f32 %v7326_v53, 0.0  ;;  %v15878_v53 = vld [vmem:[%s16654_s5 + $0x30] sm:$0xff] }
 0x9ed   : > { %10384 = vmatmul.msk.f32.gmra.mxu2 %vm663_vm0, %v15402_v8  ;;  %v17039_v8 = vld [vmem:[#allocation6_spill] sm:$0xff] }
 0x9ee   : > { %v7314_v56 = vadd.f32 %v7313_v12, %v17039_v8  ;;  %v17046_v12 = vld [vmem:[#allocation42_spill] sm:$0xff] }
 0x9f0   : > { %v7328_v7 = vpop.f32.mrf.mxu2  ;;  %v7357_v30 = vmax.f32 %v7314_v56, 0.0  ;;  %v17056_v56 = vld [vmem:[#allocation30_spill] sm:$0xff] }
 0x9f1   : > { %v7329_v61 = vadd.f32 %v7328_v7, %v17035_v35  ;;  %v17051_v35 = vld [vmem:[#allocation48_spill] sm:$0xff] }
 0x9f3   : > { %v7362_v14 = vmax.f32 %v7329_v61, 0.0 }
 0x9f5   : > { %7391 = vmatpush.msrb.mxu0 %v7362_v14  ;;  %10385 = vmatmul.msk.f32.gmra.mxu2 %vm663_vm0, %v15413_v42  ;;  %v7305_v42 = vadd.f32 %v7304_v10, %v15332_v34  ;;  %v7293_v34 = vadd.f32 %v15751_v54, %v15459_v43  ;;  %v7348_v43 = vmax.f32 %v7287_v36, 0.0  ;;  %v7347_v54 = vmax.f32 %v7284_v5, 0.0  ;;  %v17044_v10 = vld [vmem:[#allocation41_spill] sm:$0xff] }
 0x9f7   : > { %7392 = vmatpush.msrb.mxu0 %v7361_v11  ;;  %v7354_v16 = vmax.f32 %v7305_v42, 0.0  ;;  %v7350_v1 = vmax.f32 %v7293_v34, 0.0  ;;  %v15909_v11 = vld [vmem:[%s16654_s5 + $0x48] sm:$0xff] }
 0x9f8   : > { %v15831_v37 = vpop.f32.mrf.mxu2 }
 0x9f9   : > { %7393 = vmatpush.msrb.mxu0 %v7360_v58  ;;  %17043 = vst [vmem:[#allocation40_spill] sm:$0xff] %v15831_v37  ;;  %v15920_v58 = vld [vmem:[%s16654_s5 + $0x50] sm:$0xff] }
 0x9fb   : > { %7394 = vmatpush.msrb.mxu0 %v7359_v27  ;;  %v15931_v27 = vld [vmem:[%s16654_s5 + $0x58] sm:$0xff] }
 0x9fd   : > { %7395 = vmatpush.msrb.mxu0 %v7358_v57  ;;  %10386 = vmatmul.msk.f32.gmra.mxu2 %vm663_vm0, %v15606_v39 }
 0x9ff   : > { %7396 = vmatpush.msrb.mxu0 %v7357_v30 }
 0xa00   : > { %v15842_v31 = vpop.f32.mrf.mxu2 }
 0xa01   : > { %7397 = vmatpush.msrb.mxu0 %v7356_v26  ;;  %17045 = vst [vmem:[#allocation37_spill] sm:$0xff] %v15842_v31  ;;  %v15959_v26 = vld [vmem:[%s16654_s5 + $0x78] sm:$0xff] }
 0xa03   : > { %7398 = vmatpush.msrb.mxu0 %v7355_v45 }
 0xa05   : > { %7399 = vmatpush.msrb.mxu0 %v7354_v16  ;;  %10387 = vmatmul.msk.f32.gmra.mxu2 %vm663_vm0, %v15615_v60  ;;  %v15970_v16 = vld [vmem:[%s16654_s5 + $0x80] sm:$0xff] }
 0xa07   : > { %7400 = vmatpush.msrb.mxu0 %v7353_v44 }
 0xa08   : > { %v15858_v6 = vpop.f32.mrf.mxu2 }
 0xa09   : > { %7401 = vmatpush.msrb.mxu0 %v7352_v38  ;;  %17047 = vst [vmem:[#allocation39_spill] sm:$0xff] %v15858_v6 }
 0xa0b   : > { %7402 = vmatpush.msrb.mxu0 %v7351_v62 }
 0xa0d   : > { %7403 = vmatpush.msrb.mxu0 %v7350_v1  ;;  %10388 = vmatmul.msk.f32.gmra.mxu2 %vm663_vm0, %v15624_v33 }
 0xa0f   : > { %7404 = vmatpush.msrb.mxu0 %v7349_v32 }
 0xa10   : > { %v15871_v7 = vpop.f32.mrf.mxu2 }
 0xa11   : > { %7405 = vmatpush.msrb.mxu0 %v7348_v43  ;;  %17049 = vst [vmem:[#allocation46_spill] sm:$0xff] %v15871_v7  ;;  %v7388_v57 = vpop.f32.mrf.mxu0  ;;  %v17057_v43 = vld [vmem:[#allocation70_spill] sm:$0xff] }
 0xa12   : > { %v7389_v30 = vadd.f32 %v7388_v57, %v7369_v55  ;;  %v17063_v55 = vld [vmem:[#allocation24_spill] sm:$0xff] }
 0xa13   : > { %7406 = vmatpush.msrb.mxu0 %v7347_v54 }
 0xa14   : > { %7407 = vmatmul.f32.vlgmr.msrb.gmra.mxu0 %v7364_v19  ;;  %v17058_v19 = vld [vmem:[#allocation21_spill] sm:$0xff] }
 0xa15   : > { %7750 = vmatpush.msra.mxu0 %v7417_v22  ;;  %10389 = vmatmul.msk.f32.gmra.mxu2 %vm663_vm0, %v15633_v46 }
 0xa17   : > { %7751 = vmatpush.msra.mxu0 %v7416_v18  ;;  %v17059_v18 = vld [vmem:[#allocation87_spill] sm:$0xff] }
 0xa18   : > { %v15884_v61 = vpop.f32.mrf.mxu2 }
 0xa19   : > { %7752 = vmatpush.msra.mxu0 %v7415_v2  ;;  %17052 = vst [vmem:[#allocation44_spill] sm:$0xff] %v15884_v61 }
 0xa1b   : > { %7753 = vmatpush.msra.mxu0 %v7414_v51 }
 0xa1c   : > { %10303 = vmatmul.msk.f32.vlgmr.msra.gmra.mxu0 %vm663_vm0, %v15816_v48 }
 0xa1d   : > { %10390 = vmatmul.msk.f32.gmra.mxu2 %vm663_vm0, %v15642_v24 }
 0xa20   : > { %v15895_v14 = vpop.f32.mrf.mxu2 }
 0xa24   : > { %10304 = vmatmul.msk.f32.gmra.mxu0 %vm663_vm0, %v15825_v59 }
 0xa25   : > { %10391 = vmatmul.msk.f32.gmra.mxu2 %vm663_vm0, %v17042_v21 }
 0xa28   : > { %v15911_v41 = vpop.f32.mrf.mxu2 }
 0xa2c   : > { %10305 = vmatmul.msk.f32.gmra.mxu0 %vm663_vm0, %v15836_v0 }
 0xa2d   : > { %10392 = vmatmul.msk.f32.gmra.mxu2 %vm663_vm0, %v17044_v10 }
 0xa30   : > { %v15924_v8 = vpop.f32.mrf.mxu2 }
 0xa34   : > { %10306 = vmatmul.msk.f32.gmra.mxu0 %vm663_vm0, %v15847_v52 }
 0xa35   : > { %10393 = vmatmul.msk.f32.gmra.mxu2 %vm663_vm0, %v17046_v12 }
 0xa3c   : > { %10307 = vmatmul.msk.f32.gmra.mxu0 %vm663_vm0, %v15856_v23 }
 0xa3d   : > { %10394 = vmatmul.msk.f32.gmra.mxu2 %vm663_vm0, %v17048_v40 }
 0xa44   : > { %10308 = vmatmul.msk.f32.gmra.mxu0 %vm663_vm0, %v15867_v28 }
 0xa45   : > { %10395 = vmatmul.msk.f32.gmra.mxu2 %vm663_vm0, %v17050_v50 }
 0xa4c   : > { %10309 = vmatmul.msk.f32.gmra.mxu0 %vm663_vm0, %v15878_v53 }
 0xa4d   : > { %10396 = vmatmul.msk.f32.gmra.mxu2 %vm663_vm0, %v17051_v35 }
 0xa54   : > { %10310 = vmatmul.msk.f32.gmra.mxu0 %vm663_vm0, %v15889_v25 }
 0xa55   : > { %10397 = vmatmul.msk.f32.gmra.mxu2 %vm663_vm0, %v17053_v9 }
 0xa5c   : > { %10311 = vmatmul.msk.f32.gmra.mxu0 %vm663_vm0, %v15900_v47 }
 0xa5d   : > { %10398 = vmatmul.msk.f32.gmra.mxu2 %vm663_vm0, %v17054_v29 }
 0xa64   : > { %10312 = vmatmul.msk.f32.gmra.mxu0 %vm663_vm0, %v15909_v11 }
 0xa65   : > { %10399 = vmatmul.msk.f32.gmra.mxu2 %vm663_vm0, %v17055_v49 }
 0xa6c   : > { %10313 = vmatmul.msk.f32.gmra.mxu0 %vm663_vm0, %v15920_v58 }
 0xa6d   : > { %10400 = vmatmul.msk.f32.gmra.mxu2 %vm663_vm0, %v17056_v56 }
 0xa74   : > { %10314 = vmatmul.msk.f32.gmra.mxu0 %vm663_vm0, %v15931_v27 }
 0xa7c   : > { %10315 = vmatmul.msk.f32.gmra.mxu0 %vm663_vm0, %v15938_v4 }
 0xa84   : > { %10316 = vmatmul.msk.f32.gmra.mxu0 %vm663_vm0, %v15945_v17 }
 0xa8c   : > { %10317 = vmatmul.msk.f32.gmra.mxu0 %vm663_vm0, %v15952_v20 }
 0xa91   : > { %v7408_v42 = vpop.f32.mrf.mxu0 }
 0xa92   : > { %v7409_v13 = vadd.f32 %v7408_v42, %v7389_v30 }
 0xa94   : > { %v7411_v45 = vmax.f32 %v7409_v13, 0.0  ;;  %10318 = vmatmul.msk.f32.gmra.mxu0 %vm663_vm0, %v15959_v26  ;;  %v17064_v13 = vld [vmem:[#allocation77_spill] sm:$0xff] }
 0xa96   : > { %10302 = vst.msk [vmem:[%s15453_s22 + $0x18] sm:$0x3f] %vm5852_vm1, %v7411_v45 }
 0xa99   : > { %v15965_v15 = vpop.f32.mrf.mxu0 }
 0xa9c   : > { %10319 = vmatmul.msk.f32.gmra.mxu0 %vm663_vm0, %v15970_v16 }
 0xaa1   : > { %v15974_v3 = vpop.f32.mrf.mxu0 }
 0xaa4   : > { %10320 = vmatmul.msk.f32.gmra.mxu0 %vm663_vm0, %v15606_v39 }
 0xaa9   : > { %v15978_v44 = vpop.f32.mrf.mxu0 }
 0xaac   : > { %10321 = vmatmul.msk.f32.gmra.mxu0 %vm663_vm0, %v15615_v60 }
 0xab1   : > { %v7764_v34 = vpop.f32.mrf.mxu0 }
 0xab4   : > { %10322 = vmatmul.msk.f32.gmra.mxu0 %vm663_vm0, %v15624_v33 }
 0xab9   : > { %v7767_v38 = vpop.f32.mrf.mxu0 }
 0xabc   : > { %10323 = vmatmul.msk.f32.gmra.mxu0 %vm663_vm0, %v15633_v46 }
 0xac1   : > { %v7770_v63 = vpop.f32.mrf.mxu0 }
 0xac4   : > { %10324 = vmatmul.msk.f32.gmra.mxu0 %vm663_vm0, %v15642_v24 }
 0xac9   : > { %v7773_v62 = vpop.f32.mrf.mxu0 }
 0xacc   : > { %10325 = vmatmul.msk.f32.gmra.mxu0 %vm663_vm0, %v17042_v21  ;;  %v17060_v21 = vld [vmem:[#allocation27_spill] sm:$0xff] }
 0xad1   : > { %v7776_v39 = vpop.f32.mrf.mxu0 }
 0xad4   : > { %10326 = vmatmul.msk.f32.gmra.mxu0 %vm663_vm0, %v17044_v10 }
 0xad9   : > { %v7779_v60 = vpop.f32.mrf.mxu0 }
 0xadc   : > { %10327 = vmatmul.msk.f32.gmra.mxu0 %vm663_vm0, %v17046_v12 }
 0xae1   : > { %v7782_v33 = vpop.f32.mrf.mxu0 }
 0xae2   : > { %v7783_v30 = vadd.f32 %v7782_v33, %v17063_v55  ;;  %v17068_v33 = vld [vmem:[#allocation15_spill] sm:$0xff] }
 0xae4   : > { %10328 = vmatmul.msk.f32.gmra.mxu0 %vm663_vm0, %v17048_v40  ;;  %v17061_v40 = vld [vmem:[#allocation73_spill] sm:$0xff] }
 0xae9   : > { %v7785_v46 = vpop.f32.mrf.mxu0 }
 0xaec   : > { %10329 = vmatmul.msk.f32.gmra.mxu0 %vm663_vm0, %v17050_v50 }
 0xaf1   : > { %v7788_v24 = vpop.f32.mrf.mxu0 }
 0xaf2   : > { %v7789_v50 = vadd.f32 %v7788_v24, %v17061_v40  ;;  %v16029_v40 = vpop.permute.xlu0 %7639 }
 0xaf4   : > { %10330 = vmatmul.msk.f32.gmra.mxu0 %vm663_vm0, %v17051_v35  ;;  %v7862_v42 = vmax.f32 %v7789_v50, 0.0 }
 0xaf9   : > { %v7791_v36 = vpop.f32.mrf.mxu0 }
 0xafa   : > { %v7792_v10 = vadd.f32 %v7791_v36, %v17060_v21  ;;  %v17065_v36 = vld [vmem:[#allocation18_spill] sm:$0xff] }
 0xafc   : > { %10331 = vmatmul.msk.f32.gmra.mxu0 %vm663_vm0, %v17053_v9  ;;  %v7863_v57 = vmax.f32 %v7792_v10, 0.0  ;;  %v17070_v10 = vld [vmem:[#allocation83_spill] sm:$0xff] }
 0xb01   : > { %v7794_v1 = vpop.f32.mrf.mxu0 }
 0xb02   : > { %v7795_v2 = vadd.f32 %v7794_v1, %v17059_v18  ;;  %v7777_v1 = vadd.f32 %v7776_v39, %v17065_v36  ;;  %v7768_v18 = vadd.f32 %v7767_v38, %v17068_v33  ;;  %v17072_v38 = vld [vmem:[#allocation34_spill] sm:$0xff]  ;;  %v16070_v33 = vpop.permute.xlu1 %7564 }
 0xb04   : > { %10332 = vmatmul.msk.f32.gmra.mxu0 %vm663_vm0, %v17054_v29  ;;  %v7864_v35 = vmax.f32 %v7795_v2, 0.0  ;;  %v17062_v29 = vld [vmem:[#allocation5_spill] sm:$0xff] }
 0xb09   : > { %v7797_v5 = vpop.f32.mrf.mxu0 }
 0xb0a   : > { %v7798_v54 = vadd.f32 %v7797_v5, %v17057_v43  ;;  %v7860_v5 = vmax.f32 %v7783_v30, 0.0  ;;  %v7625_v30 = vpop.permute.xlu0 %7624 }
 0xb0c   : > { %10333 = vmatmul.msk.f32.gmra.mxu0 %vm663_vm0, %v17055_v49  ;;  %v7865_v12 = vmax.f32 %v7798_v54, 0.0  ;;  %v7786_v49 = vadd.f32 %v7785_v46, %v17062_v29  ;;  %v17067_v46 = vld [vmem:[#allocation79_spill] sm:$0xff]  ;;  %v7756_v29 = vadd.f32 %v15965_v15, %v17072_v38 }
 0xb0e   : > { %v7861_v45 = vmax.f32 %v7786_v49, 0.0  ;;  %v7851_v55 = vmax.f32 %v7756_v29, 0.0 }
 0xb11   : > { %v7800_v32 = vpop.f32.mrf.mxu0 }
 0xb12   : > { %v7801_v22 = vadd.f32 %v7800_v32, %v17058_v19  ;;  %v17066_v32 = vld [vmem:[#allocation36_spill] sm:$0xff]  ;;  %v7771_v19 = vadd.f32 %v7770_v63, %v17067_v46 }
 0xb13   : > { %v7774_v43 = vadd.f32 %v7773_v62, %v17066_v32  ;;  %v7855_v62 = vmax.f32 %v7768_v18, 0.0  ;;  %v17071_v63 = vld [vmem:[#allocation12_spill] sm:$0xff] }
 0xb14   : > { %v7866_v51 = vmax.f32 %v7801_v22, 0.0  ;;  %10334 = vmatmul.msk.f32.gmra.mxu0 %vm663_vm0, %v17056_v56  ;;  %v7780_v56 = vadd.f32 %v7779_v60, %v17064_v13  ;;  %v7858_v22 = vmax.f32 %v7777_v1, 0.0  ;;  %v17069_v60 = vld [vmem:[#allocation33_spill] sm:$0xff]  ;;  %v7856_v21 = vmax.f32 %v7771_v19, 0.0 }
 0xb15   : > { %v7857_v2 = vmax.f32 %v7774_v43, 0.0  ;;  %v7759_v50 = vadd.f32 %v15974_v3, %v17071_v63  ;;  %v7937_v3 = vld [vmem:[#allocation3 + $0xb8] sm:$0xff]  ;;  %v7935_v13 = vld [vmem:[#allocation3 + $0xa8] sm:$0xff] }
 0xb16   : > { %7891 = vmatpush.msra.mxu3 %v7866_v51  ;;  %v7859_v54 = vmax.f32 %v7780_v56, 0.0  ;;  %v7765_v51 = vadd.f32 %v7764_v34, %v17069_v60  ;;  %v7934_v56 = vld [vmem:[#allocation3 + $0xa0] sm:$0xff]  ;;  %v7635_v60 = vpop.permute.xlu1 %7634 }
 0xb17   : > { %v7852_v49 = vmax.f32 %v7759_v50, 0.0 }
 0xb18   : > { %7892 = vmatpush.msra.mxu3 %v7865_v12  ;;  %v7762_v12 = vadd.f32 %v15978_v44, %v17070_v10  ;;  %v7883_v44 = vld [vmem:[%s16656_s7] sm:$0x3f] }
 0xb19   : > { %v16013_v9 = vpop.f32.mrf.mxu0 }
 0xb1a   : > { %7893 = vmatpush.msra.mxu3 %v7864_v35  ;;  %v7854_v35 = vmax.f32 %v7765_v51, 0.0  ;;  %v7853_v34 = vmax.f32 %v7762_v12, 0.0 }
 0xb1c   : > { %7894 = vmatpush.msra.mxu3 %v7863_v57 }
 0xb1e   : > { %7895 = vmatpush.msra.mxu3 %v7862_v42  ;;  %v7936_v42 = vld [vmem:[#allocation3 + $0xb0] sm:$0xff] }
 0xb20   : > { %7896 = vmatpush.msra.mxu3 %v7861_v45  ;;  %v7610_v45 = vpop.permute.xlu0 %7609 }
 0xb21   : > { %v16019_v24 = vpop.f32.mrf.mxu0 }
 0xb22   : > { %7897 = vmatpush.msra.mxu3 %v7860_v5 }
 0xb24   : > { %7898 = vmatpush.msra.mxu3 %v7859_v54 }
 0xb26   : > { %7899 = vmatpush.msra.mxu3 %v7858_v22 }
 0xb28   : > { %7900 = vmatpush.msra.mxu3 %v7857_v2  ;;  %v7595_v5 = vpop.permute.xlu0 %7594 }
 0xb29   : > { %v16025_v39 = vpop.f32.mrf.mxu0 }
 0xb2a   : > { %7901 = vmatpush.msra.mxu3 %v7856_v21  ;;  %v7620_v21 = vpop.permute.xlu1 %7619 }
 0xb2c   : > { %7902 = vmatpush.msra.mxu3 %v7855_v62 }
 0xb2e   : > { %7903 = vmatpush.msra.mxu3 %v7854_v35 }
 0xb30   : > { %7904 = vmatpush.msra.mxu3 %v7853_v34  ;;  %v16050_v43 = vpop.permute.xlu0 %7579 }
 0xb31   : > { %v16035_v57 = vpop.f32.mrf.mxu0 }
 0xb32   : > { %7905 = vmatpush.msra.mxu3 %v7852_v49 }
 0xb34   : > { %7906 = vmatpush.msra.mxu3 %v7851_v55 }
 0xb35   : > { %7907 = vmatmul.f32.vlgmr.msra.gmra.mxu3 %v7883_v44 }
 0xb36   : > { %8270 = vmatpush.msrb.mxu3 %v7937_v3 }
 0xb38   : > { %8271 = vmatpush.msrb.mxu3 %v7936_v42 }
 0xb39   : > { %v16040_v15 = vpop.f32.mrf.mxu0 }
 0xb3a   : > { %8272 = vmatpush.msrb.mxu3 %v7935_v13 }
 0xb3c   : > { %8273 = vmatpush.msrb.mxu3 %v7934_v56 }
 0xb3d   : > { %10336 = vmatmul.msk.f32.vlgmr.msrb.gmra.mxu3 %vm663_vm0, %v15816_v48  ;;  %v16056_v48 = vpop.permute.xlu0 %8074 }
 0xb41   : > { %v16044_v36 = vpop.f32.mrf.mxu0 }
 0xb45   : > { %10337 = vmatmul.msk.f32.gmra.mxu3 %vm663_vm0, %v15825_v59  ;;  %v16060_v59 = vpop.permute.xlu0 %8059 }
 0xb49   : > { %v7821_v1 = vpop.f32.mrf.mxu0 }
 0xb4d   : > { %10338 = vmatmul.msk.f32.gmra.mxu3 %vm663_vm0, %v15836_v0  ;;  %v16064_v22 = vpop.permute.xlu0 %8154 }
 0xb51   : > { %v7824_v32 = vpop.f32.mrf.mxu0 }
 0xb55   : > { %10339 = vmatmul.msk.f32.gmra.mxu3 %vm663_vm0, %v15847_v52  ;;  %v16068_v52 = vpop.permute.xlu2 %7569  ;;  %v16072_v18 = vpop.permute.xlu0 %8044 }
 0xb59   : > { %v7827_v54 = vpop.f32.mrf.mxu0 }
 0xb5d   : > { %10340 = vmatmul.msk.f32.gmra.mxu3 %vm663_vm0, %v15856_v23 }
 0xb61   : > { %v7830_v46 = vpop.f32.mrf.mxu0 }
 0xb62   : > { %v7831_v3 = vadd.f32 %v7830_v46, %v7610_v45 }
 0xb64   : > { %v7876_v56 = vmax.f32 %v7831_v3, 0.0 }
 0xb65   : > { %10341 = vmatmul.msk.f32.gmra.mxu3 %vm663_vm0, %v15867_v28  ;;  %v7630_v28 = vpop.permute.xlu2 %7629 }
 0xb69   : > { %v7833_v19 = vpop.f32.mrf.mxu0 }
 0xb6d   : > { %10342 = vmatmul.msk.f32.gmra.mxu3 %vm663_vm0, %v15878_v53  ;;  %v16078_v53 = vpop.permute.xlu0 %8139 }
 0xb71   : > { %v7836_v0 = vpop.f32.mrf.mxu0 }
 0xb72   : > { %v7837_v29 = vadd.f32 %v7836_v0, %v7620_v21  ;;  %v7822_v0 = vadd.f32 %v7821_v1, %v7595_v5  ;;  %v16135_v21 = vld [vmem:[%s16654_s5 + $0x90] sm:$0xff] }
 0xb73   : > { %17074 = vst [vmem:[#allocation52_spill] sm:$0xff] %v16135_v21 }
 0xb75   : > { %10343 = vmatmul.msk.f32.gmra.mxu3 %vm663_vm0, %v15889_v25  ;;  %v7615_v25 = vpop.permute.xlu2 %7614  ;;  %v16082_v10 = vpop.permute.xlu0 %8029 }
 0xb76   : > { %v7834_v55 = vadd.f32 %v7833_v19, %v7615_v25  ;;  %v16126_v25 = vld [vmem:[%s16654_s5 + $0x88] sm:$0xff] }
 0xb77   : > { %17073 = vst [vmem:[#allocation45_spill] sm:$0xff] %v16126_v25 }
 0xb79   : > { %v7839_v23 = vpop.f32.mrf.mxu0 }
 0xb7d   : > { %10344 = vmatmul.msk.f32.gmra.mxu3 %vm663_vm0, %v15900_v47  ;;  %v7600_v35 = vpop.permute.xlu2 %7599  ;;  %v16087_v49 = vpop.permute.xlu0 %8124 }
 0xb7e   : > { %v7825_v13 = vadd.f32 %v7824_v32, %v7600_v35  ;;  %v7813_v32 = vadd.f32 %v16035_v57, %v16050_v43  ;;  %v7804_v57 = vadd.f32 %v16013_v9, %v16070_v33 }
 0xb80   : > { %v7874_v46 = vmax.f32 %v7825_v13, 0.0 }
 0xb81   : > { %v7842_v2 = vpop.f32.mrf.mxu0 }
 0xb82   : > { %v7843_v63 = vadd.f32 %v7842_v2, %v7630_v28 }
 0xb84   : > { %v7880_v34 = vmax.f32 %v7843_v63, 0.0 }
 0xb85   : > { %10345 = vmatmul.msk.f32.gmra.mxu3 %vm663_vm0, %v15909_v11  ;;  %v7840_v11 = vadd.f32 %v7839_v23, %v7625_v30  ;;  %v7585_v30 = vpop.permute.xlu2 %7584  ;;  %v16091_v19 = vpop.permute.xlu0 %8014 }
 0xb87   : > { %v7879_v44 = vmax.f32 %v7840_v11, 0.0 }
 0xb89   : > { %v7845_v51 = vpop.f32.mrf.mxu0 }
 0xb8a   : > { %v7846_v62 = vadd.f32 %v7845_v51, %v7635_v60  ;;  %v7870_v51 = vmax.f32 %v7813_v32, 0.0 }
 0xb8c   : > { %v7881_v38 = vmax.f32 %v7846_v62, 0.0  ;;  %v16146_v62 = vld [vmem:[%s16654_s5 + $0x98] sm:$0xff] }
 0xb8d   : > { %10346 = vmatmul.msk.f32.gmra.mxu3 %vm663_vm0, %v15920_v58  ;;  %v7605_v58 = vpop.permute.xlu1 %7604  ;;  %v7575_v5 = vpop.permute.xlu2 %7574  ;;  %17075 = vst [vmem:[#allocation50_spill] sm:$0xff] %v16146_v62 }
 0xb8e   : > { %v7828_v42 = vadd.f32 %v7827_v54, %v7605_v58  ;;  %v7873_v54 = vmax.f32 %v7822_v0, 0.0  ;;  %v7810_v2 = vadd.f32 %v16025_v39, %v7575_v5  ;;  %v7867_v39 = vmax.f32 %v7804_v57, 0.0  ;;  %v16179_v58 = vld [vmem:[%s16654_s5 + $0xb0] sm:$0xff]  ;;  %v16232_v5 = vld [vmem:[%s16654_s5 + $0xd8] sm:$0xff]  ;;  %v16241_v57 = vld [vmem:[%s16654_s5 + $0xe0] sm:$0xff] }
 0xb8f   : > { %17080 = vst [vmem:[#allocation58_spill] sm:$0xff] %v16179_v58 }
 0xb90   : > { %v7875_v23 = vmax.f32 %v7828_v42, 0.0  ;;  %17088 = vst [vmem:[#allocation19_spill] sm:$0xff] %v16232_v5 }
 0xb91   : > { %v7848_v12 = vpop.f32.mrf.mxu0  ;;  %17089 = vst [vmem:[#allocation71_spill] sm:$0xff] %v16241_v57 }
 0xb92   : > { %v7849_v47 = vadd.f32 %v7848_v12, %v16029_v40  ;;  %v7878_v40 = vmax.f32 %v7837_v29, 0.0 }
 0xb94   : > { %v7882_v50 = vmax.f32 %v7849_v47, 0.0 }
 0xb95   : > { %10347 = vmatmul.msk.f32.gmra.mxu3 %vm663_vm0, %v15931_v27  ;;  %v7877_v27 = vmax.f32 %v7834_v55, 0.0  ;;  %v7590_v28 = vpop.permute.xlu1 %7589 }
 0xb96   : > { %7911 = vmatpush.msrb.mxu1 %v7882_v50  ;;  %v7819_v45 = vadd.f32 %v16044_v36, %v7590_v28  ;;  %v7807_v36 = vadd.f32 %v16019_v24, %v16068_v52  ;;  %v7884_v24 = vld [vmem:[%s16656_s7 + $0x8] sm:$0x3f]  ;;  %v16157_v50 = vld [vmem:[%s16654_s5 + $0xa0] sm:$0xff] }
 0xb97   : > { %17077 = vst [vmem:[#allocation53_spill] sm:$0xff] %v16157_v50 }
 0xb98   : > { %7912 = vmatpush.msrb.mxu1 %v7881_v38  ;;  %v7872_v1 = vmax.f32 %v7819_v45, 0.0  ;;  %v7868_v43 = vmax.f32 %v7807_v36, 0.0  ;;  %v16168_v38 = vld [vmem:[%s16654_s5 + $0xa8] sm:$0xff]  ;;  %v16219_v45 = vld [vmem:[%s16654_s5 + $0xd0] sm:$0xff] }
 0xb99   : > { %17078 = vst [vmem:[#allocation17_spill] sm:$0xff] %v16168_v38 }
 0xb9a   : > { %7913 = vmatpush.msrb.mxu1 %v7880_v34  ;;  %17086 = vst [vmem:[#allocation65_spill] sm:$0xff] %v16219_v45 }
 0xb9c   : > { %7914 = vmatpush.msrb.mxu1 %v7879_v44  ;;  %v16188_v44 = vld [vmem:[%s16654_s5 + $0xb8] sm:$0xff] }
 0xb9d   : > { %10348 = vmatmul.msk.f32.gmra.mxu3 %vm663_vm0, %v15938_v4  ;;  %v7816_v4 = vadd.f32 %v16040_v15, %v7585_v30  ;;  %v7869_v15 = vmax.f32 %v7810_v2, 0.0  ;;  %17081 = vst [vmem:[#allocation59_spill] sm:$0xff] %v16188_v44  ;;  %v8080_v42 = vpop.permute.xlu1 %8079 }
 0xb9e   : > { %7915 = vmatpush.msrb.mxu1 %v7878_v40 }
 0xb9f   : > { %v7871_v60 = vmax.f32 %v7816_v4, 0.0 }
 0xba0   : > { %7916 = vmatpush.msrb.mxu1 %v7877_v27  ;;  %v16199_v27 = vld [vmem:[%s16654_s5 + $0xc0] sm:$0xff] }
 0xba1   : > { %17082 = vst [vmem:[#allocation8_spill] sm:$0xff] %v16199_v27 }
 0xba2   : > { %7917 = vmatpush.msrb.mxu1 %v7876_v56  ;;  %v16210_v56 = vld [vmem:[%s16654_s5 + $0xc8] sm:$0xff] }
 0xba3   : > { %17084 = vst [vmem:[#allocation13_spill] sm:$0xff] %v16210_v56 }
 0xba4   : > { %7918 = vmatpush.msrb.mxu1 %v7875_v23 }
 0xba5   : > { %10349 = vmatmul.msk.f32.gmra.mxu3 %vm663_vm0, %v15945_v17  ;;  %v16104_v17 = vpop.permute.xlu0 %8109  ;;  %v8070_v0 = vpop.permute.xlu1 %8069 }
 0xba6   : > { %7919 = vmatpush.msrb.mxu1 %v7874_v46  ;;  %v8065_v46 = vpop.permute.xlu2 %8064 }
 0xba8   : > { %7920 = vmatpush.msrb.mxu1 %v7873_v54  ;;  %v16225_v54 = vpop.f32.mrf.mxu2 }
 0xbaa   : > { %7921 = vmatpush.msrb.mxu1 %v7872_v1 }
 0xbac   : > { %7922 = vmatpush.msrb.mxu1 %v7871_v60 }
 0xbad   : > { %10350 = vmatmul.msk.f32.gmra.mxu3 %vm663_vm0, %v15952_v20  ;;  %v16113_v20 = vpop.permute.xlu0 %8099  ;;  %v16221_v4 = vpop.permute.xlu1 %8159 }
 0xbae   : > { %7923 = vmatpush.msrb.mxu1 %v7870_v51  ;;  %v8055_v2 = vpop.permute.xlu2 %8054 }
 0xbb0   : > { %7924 = vmatpush.msrb.mxu1 %v7869_v15  ;;  %v16236_v36 = vpop.f32.mrf.mxu2 }
 0xbb2   : > { %7925 = vmatpush.msrb.mxu1 %v7868_v43 }
 0xbb4   : > { %7926 = vmatpush.msrb.mxu1 %v7867_v39 }
 0xbb5   : > { %7927 = vmatmul.f32.vlgmr.msrb.gmra.mxu1 %v7884_v24  ;;  %10351 = vmatmul.msk.f32.gmra.mxu3 %vm663_vm0, %v15959_v26  ;;  %v16121_v33 = vpop.permute.xlu0 %8594  ;;  %v8050_v60 = vpop.permute.xlu1 %8049 }
 0xbb6   : > { %v16247_v43 = vpop.permute.xlu2 %8149 }
 0xbb8   : > { %v16115_v52 = vpop.f32.mrf.mxu3 }
 0xbbd   : > { %10352 = vmatmul.msk.f32.gmra.mxu3 %vm663_vm0, %v15970_v16  ;;  %v16137_v16 = vpop.permute.xlu0 %8084  ;;  %v16249_v24 = vpop.permute.xlu1 %8144 }
 0xbc0   : > { %v16119_v9 = vpop.f32.mrf.mxu3 }
 0xbc5   : > { %10353 = vmatmul.msk.f32.gmra.mxu3 %vm663_vm0, %v16126_v25  ;;  %v16150_v47 = vpop.permute.xlu0 %8679  ;;  %v16275_v25 = vld [vmem:[%s16654_s5 + $0xf8] sm:$0xff] }
 0xbc6   : > { %17076 = vst [vmem:[#allocation51_spill] sm:$0xff] %v16150_v47 }
 0xbc7   : > { %17094 = vst [vmem:[#allocation78_spill] sm:$0xff] %v16275_v25 }
 0xbc8   : > { %v16130_v26 = vpop.f32.mrf.mxu3 }
 0xbcd   : > { %10354 = vmatmul.msk.f32.gmra.mxu3 %vm663_vm0, %v16135_v21  ;;  %v16161_v35 = vpop.permute.xlu0 %8569 }
 0xbd0   : > { %v16141_v12 = vpop.f32.mrf.mxu3 }
 0xbd5   : > { %10355 = vmatmul.msk.f32.gmra.mxu3 %vm663_vm0, %v16146_v62  ;;  %v16174_v34 = vpop.permute.xlu0 %8664 }
 0xbd6   : > { %17079 = vst [vmem:[#allocation55_spill] sm:$0xff] %v16174_v34 }
 0xbd8   : > { %v16152_v63 = vpop.f32.mrf.mxu3 }
 0xbdd   : > { %10356 = vmatmul.msk.f32.gmra.mxu3 %vm663_vm0, %v16157_v50  ;;  %v16190_v3 = vpop.permute.xlu0 %8554 }
 0xbe0   : > { %v16163_v11 = vpop.f32.mrf.mxu3 }
 0xbe5   : > { %10357 = vmatmul.msk.f32.gmra.mxu3 %vm663_vm0, %v16168_v38  ;;  %v16203_v30 = vpop.permute.xlu0 %8649 }
 0xbe6   : > { %17083 = vst [vmem:[#allocation61_spill] sm:$0xff] %v16203_v30 }
 0xbe8   : > { %v16172_v29 = vpop.f32.mrf.mxu3 }
 0xbed   : > { %10358 = vmatmul.msk.f32.gmra.mxu3 %vm663_vm0, %v16179_v58  ;;  %v16214_v23 = vpop.permute.xlu0 %8539  ;;  %v8035_v58 = vpop.permute.xlu1 %8034 }
 0xbee   : > { %17085 = vst [vmem:[#allocation23_spill] sm:$0xff] %v16214_v23 }
 0xbf0   : > { %v16183_v55 = vpop.f32.mrf.mxu3 }
 0xbf5   : > { %10359 = vmatmul.msk.f32.gmra.mxu3 %vm663_vm0, %v16188_v44  ;;  %v16227_v1 = vpop.permute.xlu0 %8634  ;;  %v8040_v44 = vpop.permute.xlu2 %8039 }
 0xbf6   : > { %17087 = vst [vmem:[#allocation20_spill] sm:$0xff] %v16227_v1  ;;  %v16279_v30 = vpop.permute.xlu1 %8129 }
 0xbf8   : > { %v16194_v40 = vpop.f32.mrf.mxu3 }
 0xbfd   : > { %10360 = vmatmul.msk.f32.gmra.mxu3 %vm663_vm0, %v16199_v27  ;;  %v16243_v15 = vpop.permute.xlu0 %8524  ;;  %v16277_v1 = vpop.permute.xlu2 %8134 }
 0xbfe   : > { %17090 = vst [vmem:[#allocation68_spill] sm:$0xff] %v16243_v15  ;;  %v8020_v6 = vpop.permute.xlu1 %8019 }
 0xc00   : > { %v16205_v13 = vpop.f32.mrf.mxu3 }
 0xc05   : > { %10361 = vmatmul.msk.f32.gmra.mxu3 %vm663_vm0, %v16210_v56  ;;  %v16260_v56 = vpop.permute.xlu0 %8614 }
 0xc06   : > { %17092 = vst [vmem:[#allocation80_spill] sm:$0xff] %v16260_v56 }
 0xc08   : > { %v8302_v28 = vpop.f32.mrf.mxu3 }
 0xc0d   : > { %10362 = vmatmul.msk.f32.gmra.mxu3 %vm663_vm0, %v16219_v45  ;;  %v16256_v45 = vld [vmem:[%s16654_s5 + $0xe8] sm:$0xff]  ;;  %v7889_v50 = vpop.permute.xlu0 %7888 }
 0xc0e   : > { %17091 = vst [vmem:[#allocation69_spill] sm:$0xff] %v16256_v45 }
 0xc10   : > { %v8305_v32 = vpop.f32.mrf.mxu3 }
 0xc15   : > { %10363 = vmatmul.msk.f32.gmra.mxu3 %vm663_vm0, %v16232_v5  ;;  %v16251_v5 = vpop.f32.mrf.mxu2 }
 0xc18   : > { %v8308_v51 = vpop.f32.mrf.mxu3 }
 0xc1d   : > { %10364 = vmatmul.msk.f32.gmra.mxu3 %vm663_vm0, %v16241_v57  ;;  %v16265_v57 = vld [vmem:[%s16654_s5 + $0xf0] sm:$0xff]  ;;  %v16267_v38 = vpop.f32.mrf.mxu2 }
 0xc1e   : > { %17093 = vst [vmem:[#allocation76_spill] sm:$0xff] %v16265_v57 }
 0xc20   : > { %v8311_v39 = vpop.f32.mrf.mxu3 }
 0xc21   : > { %v8312_v31 = vadd.f32 %v8311_v39, %v8065_v46  ;;  %v8294_v46 = vadd.f32 %v16183_v55, %v8035_v58  ;;  %v8282_v55 = vadd.f32 %v16141_v12, %v16091_v19  ;;  %v8403_v19 = vld [vmem:[%s16656_s7] sm:$0x3f] }
 0xc23   : > { %v8383_v61 = vmax.f32 %v8312_v31, 0.0 }
 0xc25   : > { %10365 = vmatmul.msk.f32.gmra.mxu3 %vm663_vm0, %v16256_v45  ;;  %v7909_v45 = vadd.f32 %v16115_v52, %v7889_v50 }
 0xc28   : > { %v8314_v27 = vpop.f32.mrf.mxu3 }
 0xc29   : > { %v8315_v37 = vadd.f32 %v8314_v27, %v8070_v0  ;;  %v8297_v27 = vadd.f32 %v16194_v40, %v8040_v44  ;;  %v8377_v40 = vmax.f32 %v8294_v46, 0.0 }
 0xc2b   : > { %v8384_v7 = vmax.f32 %v8315_v37, 0.0 }
 0xc2d   : > { %10366 = vmatmul.msk.f32.gmra.mxu3 %vm663_vm0, %v16265_v57  ;;  %v16283_v57 = vpop.f32.mrf.mxu2 }
 0xc30   : > { %v8317_v62 = vpop.f32.mrf.mxu3 }
 0xc31   : > { %v8318_v50 = vadd.f32 %v8317_v62, %v16056_v48  ;;  %v8303_v48 = vadd.f32 %v8302_v28, %v8050_v60  ;;  %v8285_v28 = vadd.f32 %v16152_v63, %v8020_v6  ;;  %v8373_v6 = vmax.f32 %v8282_v55, 0.0 }
 0xc32   : > { %v7928_v21 = vpop.f32.mrf.mxu1 }
 0xc33   : > { %v7929_v56 = vadd.f32 %v7928_v21, %v7909_v45  ;;  %v8385_v21 = vmax.f32 %v8318_v50, 0.0  ;;  %v8025_v45 = vpop.permute.xlu2 %8024 }
 0xc34   : > { %v8288_v44 = vadd.f32 %v16163_v11, %v8025_v45 }
 0xc35   : > { %v7931_v34 = vmax.f32 %v7929_v56, 0.0  ;;  %10367 = vmatmul.msk.f32.gmra.mxu3 %vm663_vm0, %v16275_v25  ;;  %v8309_v56 = vadd.f32 %v8308_v51, %v16060_v59  ;;  %v16289_v25 = vpop.f32.mrf.mxu2  ;;  %v8380_v59 = vmax.f32 %v8303_v48, 0.0 }
 0xc37   : > { %10335 = vst.msk [vmem:[%s15453_s22 + $0x20] sm:$0x3f] %vm5852_vm1, %v7931_v34  ;;  %v8306_v34 = vadd.f32 %v8305_v32, %v8055_v2  ;;  %v8382_v62 = vmax.f32 %v8309_v56, 0.0  ;;  %v8375_v2 = vmax.f32 %v8288_v44, 0.0 }
 0xc38   : > { %v8320_v52 = vpop.f32.mrf.mxu3 }
 0xc39   : > { %v8321_v47 = vadd.f32 %v8320_v52, %v8080_v42  ;;  %v8381_v42 = vmax.f32 %v8306_v34, 0.0 }
 0xc3b   : > { %v8386_v15 = vmax.f32 %v8321_v47, 0.0  ;;  %v8300_v47 = vadd.f32 %v16205_v13, %v16072_v18  ;;  %v16296_v37 = vpop.permute.xlu2 %8119  ;;  %v8291_v18 = vadd.f32 %v16172_v29, %v16082_v10  ;;  %v8378_v13 = vmax.f32 %v8297_v27, 0.0 }
 0xc3c   : > { %v8374_v29 = vmax.f32 %v8285_v28, 0.0 }
 0xc3d   : > { %8411 = vmatpush.msra.mxu1 %v8386_v15  ;;  %v8379_v31 = vmax.f32 %v8300_v47, 0.0  ;;  %v8376_v32 = vmax.f32 %v8291_v18, 0.0 }
 0xc3f   : > { %8412 = vmatpush.msra.mxu1 %v8385_v21 }
 0xc40   : > { %v16291_v23 = vpop.f32.mrf.mxu3 }
 0xc41   : > { %8413 = vmatpush.msra.mxu1 %v8384_v7  ;;  %v16301_v7 = vpop.permute.xlu1 %8114 }
 0xc43   : > { %8414 = vmatpush.msra.mxu1 %v8383_v61  ;;  %v16303_v61 = vpop.f32.mrf.mxu2  ;;  %v8010_v60 = vpop.permute.xlu2 %8009 }
 0xc44   : > { %v8279_v10 = vadd.f32 %v16130_v26, %v8010_v60 }
 0xc45   : > { %8415 = vmatpush.msra.mxu1 %v8382_v62 }
 0xc46   : > { %v8372_v63 = vmax.f32 %v8279_v10, 0.0 }
 0xc47   : > { %8416 = vmatpush.msra.mxu1 %v8381_v42 }
 0xc48   : > { %v16298_v0 = vpop.f32.mrf.mxu3 }
 0xc49   : > { %8417 = vmatpush.msra.mxu1 %v8380_v59  ;;  %v8005_v51 = vpop.permute.xlu1 %8004 }
 0xc4a   : > { %v8276_v15 = vadd.f32 %v16119_v9, %v8005_v51 }
 0xc4b   : > { %8418 = vmatpush.msra.mxu1 %v8379_v31  ;;  %v16314_v11 = vpop.f32.mrf.mxu2  ;;  %v8105_v59 = vpop.permute.xlu2 %8104 }
 0xc4c   : > { %v8371_v52 = vmax.f32 %v8276_v15, 0.0 }
 0xc4d   : > { %8419 = vmatpush.msra.mxu1 %v8378_v13 }
 0xc4f   : > { %8420 = vmatpush.msra.mxu1 %v8377_v40 }
 0xc50   : > { %v16309_v58 = vpop.f32.mrf.mxu3 }
 0xc51   : > { %8421 = vmatpush.msra.mxu1 %v8376_v32  ;;  %v16336_v46 = vpop.permute.xlu1 %8599 }
 0xc53   : > { %8422 = vmatpush.msra.mxu1 %v8375_v2  ;;  %v16322_v26 = vpop.f32.mrf.mxu2  ;;  %v8095_v13 = vpop.permute.xlu2 %8094 }
 0xc54   : > { %17095 = vst [vmem:[#allocation88_spill] sm:$0xff] %v16322_v26 }
 0xc55   : > { %8423 = vmatpush.msra.mxu1 %v8374_v29 }
 0xc57   : > { %8424 = vmatpush.msra.mxu1 %v8373_v6 }
 0xc58   : > { %v16317_v39 = vpop.f32.mrf.mxu3 }
 0xc59   : > { %8425 = vmatpush.msra.mxu1 %v8372_v63  ;;  %v8090_v40 = vpop.permute.xlu1 %8089 }
 0xc5b   : > { %8426 = vmatpush.msra.mxu1 %v8371_v52  ;;  %v16326_v50 = vpop.f32.mrf.mxu2  ;;  %v16342_v55 = vpop.permute.xlu2 %8589 }
 0xc5c   : > { %8427 = vmatmul.f32.vlgmr.msra.gmra.mxu1 %v8403_v19  ;;  %17096 = vst [vmem:[#allocation85_spill] sm:$0xff] %v16326_v50 }
 0xc60   : > { %v16324_v12 = vpop.f32.mrf.mxu3 }
 0xc61   : > { %v16344_v2 = vpop.permute.xlu1 %8584 }
 0xc63   : > { %v16328_v45 = vpop.f32.mrf.mxu2  ;;  %v16348_v29 = vpop.permute.xlu2 %8579 }
 0xc64   : > { %17097 = vst [vmem:[#allocation62_spill] sm:$0xff] %v16328_v45 }
 0xc68   : > { %v8338_v9 = vpop.f32.mrf.mxu3 }
 0xc69   : > { %v16350_v51 = vpop.permute.xlu1 %8574 }
 0xc6b   : > { %v16330_v34 = vpop.f32.mrf.mxu2 }
 0xc6c   : > { %17098 = vst [vmem:[#allocation29_spill] sm:$0xff] %v16330_v34  ;;  %v16358_v34 = vpop.permute.xlu2 %8674 }
 0xc70   : > { %v8341_v21 = vpop.f32.mrf.mxu3 }
 0xc73   : > { %v16332_v62 = vpop.f32.mrf.mxu2 }
 0xc74   : > { %17099 = vst [vmem:[#allocation31_spill] sm:$0xff] %v16332_v62 }
 0xc78   : > { %v8344_v56 = vpop.f32.mrf.mxu3 }
 0xc7b   : > { %v16334_v42 = vpop.f32.mrf.mxu2 }
 0xc7c   : > { %17100 = vst [vmem:[#allocation66_spill] sm:$0xff] %v16334_v42 }
 0xc80   : > { %v8347_v48 = vpop.f32.mrf.mxu3 }
 0xc83   : > { %v16338_v18 = vpop.f32.mrf.mxu2 }
 0xc84   : > { %17101 = vst [vmem:[#allocation25_spill] sm:$0xff] %v16338_v18  ;;  %v16361_v18 = vpop.permute.xlu1 %8669 }
 0xc88   : > { %v8350_v47 = vpop.f32.mrf.mxu3 }
 0xc8b   : > { %v16340_v28 = vpop.f32.mrf.mxu2 }
 0xc8c   : > { %17102 = vst [vmem:[#allocation75_spill] sm:$0xff] %v16340_v28 }
 0xc90   : > { %v8353_v27 = vpop.f32.mrf.mxu3 }
 0xc91   : > { %v8354_v28 = vadd.f32 %v8353_v27, %v16277_v1 }
 0xc93   : > { %v16346_v60 = vpop.f32.mrf.mxu2 }
 0xc98   : > { %v8356_v31 = vpop.f32.mrf.mxu3 }
 0xc99   : > { %v8357_v62 = vadd.f32 %v8356_v31, %v16078_v53  ;;  %v8345_v53 = vadd.f32 %v8344_v56, %v16296_v37  ;;  %v8333_v37 = vadd.f32 %v16317_v39, %v16113_v20 }
 0xc9b   : > { %v16352_v15 = vpop.f32.mrf.mxu2  ;;  %v8394_v27 = vmax.f32 %v8345_v53, 0.0  ;;  %v17105_v53 = vld [vmem:[#allocation46_spill] sm:$0xff] }
 0xca0   : > { %v8359_v44 = vpop.f32.mrf.mxu3 }
 0xca1   : > { %v8360_v50 = vadd.f32 %v8359_v44, %v16249_v24  ;;  %v8348_v24 = vadd.f32 %v8347_v48, %v16087_v49  ;;  %v8342_v44 = vadd.f32 %v8341_v21, %v16301_v7  ;;  %v8336_v49 = vadd.f32 %v16324_v12, %v8105_v59 }
 0xca2   : > { %v8330_v7 = vadd.f32 %v16309_v58, %v8095_v13  ;;  %v8324_v12 = vadd.f32 %v16291_v23, %v16137_v16  ;;  %v8841_v58 = vadd.f32 %v16314_v11, %v16336_v46  ;;  %v8838_v13 = vadd.f32 %v16303_v61, %v16121_v33 }
 0xca3   : > { %v8395_v1 = vmax.f32 %v8348_v24, 0.0  ;;  %v8393_v48 = vmax.f32 %v8342_v44, 0.0  ;;  %v8391_v21 = vmax.f32 %v8336_v49, 0.0  ;;  %v8835_v16 = vadd.f32 %v16289_v25, %v16342_v55  ;;  %v17106_v44 = vld [vmem:[#allocation39_spill] sm:$0xff] }
 0xca4   : > { %v8389_v59 = vmax.f32 %v8330_v7, 0.0  ;;  %v8906_v23 = vmax.f32 %v8841_v58, 0.0  ;;  %v8832_v11 = vadd.f32 %v16283_v57, %v16344_v2  ;;  %v8905_v46 = vmax.f32 %v8838_v13, 0.0  ;;  %v8923_v58 = vld [vmem:[%s16656_s7] sm:$0x3f] }
 0xca5   : > { %v8829_v33 = vadd.f32 %v16267_v38, %v16348_v29  ;;  %v8904_v61 = vmax.f32 %v8835_v16, 0.0  ;;  %v8823_v55 = vadd.f32 %v16236_v36, %v16161_v35 }
 0xca6   : > { %v8903_v25 = vmax.f32 %v8832_v11, 0.0 }
 0xca7   : > { %v8900_v29 = vmax.f32 %v8823_v55, 0.0 }
 0xca8   : > { %v8362_v32 = vpop.f32.mrf.mxu3 }
 0xca9   : > { %v8363_v19 = vadd.f32 %v8362_v32, %v16247_v43  ;;  %v8351_v43 = vadd.f32 %v8350_v47, %v16279_v30  ;;  %v8398_v32 = vmax.f32 %v8357_v62, 0.0 }
 0xcab   : > { %v8400_v42 = vmax.f32 %v8363_v19, 0.0  ;;  %v8396_v31 = vmax.f32 %v8351_v43, 0.0 }
 0xcb0   : > { %v8365_v10 = vpop.f32.mrf.mxu3 }
 0xcb1   : > { %v8366_v63 = vadd.f32 %v8365_v10, %v16064_v22  ;;  %v8399_v22 = vmax.f32 %v8360_v50, 0.0  ;;  %v8560_v50 = vpop.permute.xlu1 %8559 }
 0xcb2   : > { %v8817_v38 = vadd.f32 %v15924_v8, %v8560_v50  ;;  %v16412_v50 = vpop.permute.xlu0 %9109 }
 0xcb3   : > { %v8401_v45 = vmax.f32 %v8366_v63, 0.0  ;;  %v8826_v63 = vadd.f32 %v16251_v5, %v16350_v51  ;;  %v8814_v5 = vadd.f32 %v15911_v41, %v16190_v3 }
 0xcb4   : > { %v8898_v36 = vmax.f32 %v8817_v38, 0.0 }
 0xcb5   : > { %v8901_v2 = vmax.f32 %v8826_v63, 0.0  ;;  %v8897_v24 = vmax.f32 %v8814_v5, 0.0 }
 0xcb8   : > { %v8368_v6 = vpop.f32.mrf.mxu3 }
 0xcb9   : > { %v8369_v52 = vadd.f32 %v8368_v6, %v16221_v4  ;;  %v16364_v4 = vpop.f32.mrf.mxu2  ;;  %v16380_v47 = vpop.permute.xlu1 %8654 }
 0xcbb   : > { %v8402_v26 = vmax.f32 %v8369_v52, 0.0  ;;  %v8902_v52 = vmax.f32 %v8829_v33, 0.0 }
 0xcbd   : > { %8431 = vmatpush.msrb.mxu1 %v8402_v26  ;;  %v8397_v26 = vmax.f32 %v8354_v28, 0.0 }
 0xcbf   : > { %8432 = vmatpush.msrb.mxu1 %v8401_v45  ;;  %v8565_v45 = vpop.permute.xlu2 %8564 }
 0xcc0   : > { %v8820_v57 = vadd.f32 %v16225_v54, %v8565_v45 }
 0xcc1   : > { %8433 = vmatpush.msrb.mxu1 %v8400_v42  ;;  %v8339_v42 = vadd.f32 %v8338_v9, %v16104_v17  ;;  %v16371_v30 = vpop.f32.mrf.mxu2  ;;  %v8327_v17 = vadd.f32 %v16298_v0, %v8090_v40  ;;  %v8390_v9 = vmax.f32 %v8333_v37, 0.0  ;;  %v8387_v0 = vmax.f32 %v8324_v12, 0.0  ;;  %v8404_v40 = vld [vmem:[%s16656_s7 + $0x8] sm:$0x3f]  ;;  %v8545_v10 = vpop.permute.xlu1 %8544  ;;  %v17109_v37 = vld [vmem:[#allocation40_spill] sm:$0xff] }
 0xcc2   : > { %v8899_v51 = vmax.f32 %v8820_v57, 0.0 }
 0xcc3   : > { %8434 = vmatpush.msrb.mxu1 %v8399_v22  ;;  %v8392_v56 = vmax.f32 %v8339_v42, 0.0  ;;  %v8388_v39 = vmax.f32 %v8327_v17, 0.0  ;;  %v17110_v17 = vld [vmem:[#allocation51_spill] sm:$0xff] }
 0xcc5   : > { %8435 = vmatpush.msrb.mxu1 %v8398_v32  ;;  %v17103_v32 = vld [vmem:[#allocation44_spill] sm:$0xff] }
 0xcc6   : > { %v8808_v54 = vadd.f32 %v17103_v32, %v8545_v10  ;;  %v17112_v10 = vld [vmem:[#allocation61_spill] sm:$0xff]  ;;  %v17120_v32 = vld [vmem:[#allocation62_spill] sm:$0xff] }
 0xcc7   : > { %8436 = vmatpush.msrb.mxu1 %v8397_v26  ;;  %v16377_v62 = vpop.permute.xlu2 %8659  ;;  %v17104_v26 = vld [vmem:[#allocation23_spill] sm:$0xff]  ;;  %v8871_v33 = vadd.f32 %v16352_v15, %v17112_v10  ;;  %v17116_v15 = vld [vmem:[#allocation66_spill] sm:$0xff] }
 0xcc8   : > { %v8805_v8 = vadd.f32 %v17105_v53, %v17104_v26  ;;  %v8895_v41 = vmax.f32 %v8808_v54, 0.0  ;;  %v17121_v53 = vld [vmem:[#allocation85_spill] sm:$0xff]  ;;  %v8984_v10 = vld [vmem:[%s16654_s5 + $0x30] sm:$0xff] }
 0xcc9   : > { %8437 = vmatpush.msrb.mxu1 %v8396_v31  ;;  %v16384_v20 = vpop.f32.mrf.mxu2  ;;  %v8640_v22 = vpop.permute.xlu1 %8639 }
 0xccb   : > { %8438 = vmatpush.msrb.mxu1 %v8395_v1 }
 0xccd   : > { %8439 = vmatpush.msrb.mxu1 %v8394_v27  ;;  %v8894_v27 = vmax.f32 %v8805_v8, 0.0 }
 0xccf   : > { %8440 = vmatpush.msrb.mxu1 %v8393_v48  ;;  %v8550_v28 = vpop.permute.xlu2 %8549  ;;  %v17108_v48 = vld [vmem:[#allocation68_spill] sm:$0xff] }
 0xcd0   : > { %v8811_v35 = vadd.f32 %v15895_v14, %v8550_v28  ;;  %v17107_v14 = vld [vmem:[#allocation37_spill] sm:$0xff] }
 0xcd1   : > { %8441 = vmatpush.msrb.mxu1 %v8392_v56  ;;  %v8882_v6 = vpop.f32.mrf.mxu2  ;;  %v8530_v3 = vpop.permute.xlu1 %8529  ;;  %v8796_v56 = vadd.f32 %v17109_v37, %v17108_v48  ;;  %v8976_v48 = vld [vmem:[#allocation3 + $0xf0] sm:$0xff]  ;;  %v8975_v37 = vld [vmem:[#allocation3 + $0xe8] sm:$0xff] }
 0xcd2   : > { %v8896_v31 = vmax.f32 %v8811_v35, 0.0  ;;  %v8799_v42 = vadd.f32 %v17107_v14, %v8530_v3 }
 0xcd3   : > { %8442 = vmatpush.msrb.mxu1 %v8391_v21  ;;  %v8891_v12 = vmax.f32 %v8796_v56, 0.0  ;;  %v8978_v56 = vld [vmem:[%s16654_s5] sm:$0xff] }
 0xcd4   : > { %v8892_v21 = vmax.f32 %v8799_v42, 0.0  ;;  %v8924_v42 = vld [vmem:[%s16656_s7 + $0x8] sm:$0x3f] }
 0xcd5   : > { %8443 = vmatpush.msrb.mxu1 %v8390_v9 }
 0xcd7   : > { %8444 = vmatpush.msrb.mxu1 %v8389_v59  ;;  %v8645_v19 = vpop.permute.xlu2 %8644 }
 0xcd9   : > { %8445 = vmatpush.msrb.mxu1 %v8388_v39  ;;  %v8885_v43 = vpop.f32.mrf.mxu2  ;;  %v8883_v39 = vadd.f32 %v8882_v6, %v16361_v18  ;;  %v8625_v55 = vpop.permute.xlu1 %8624 }
 0xcda   : > { %v8886_v59 = vadd.f32 %v8885_v43, %v16358_v34  ;;  %v8877_v34 = vadd.f32 %v16371_v30, %v16377_v62  ;;  %v17113_v30 = vld [vmem:[#allocation75_spill] sm:$0xff] }
 0xcdb   : > { %8446 = vmatpush.msrb.mxu1 %v8387_v0  ;;  %v16423_v0 = vpop.permute.xlu0 %9199  ;;  %v8920_v28 = vmax.f32 %v8883_v39, 0.0  ;;  %v8865_v62 = vadd.f32 %v17113_v30, %v8640_v22 }
 0xcdc   : > { %8447 = vmatmul.f32.vlgmr.msrb.gmra.mxu1 %v8404_v40  ;;  %v17111_v40 = vld [vmem:[#allocation55_spill] sm:$0xff] }
 0xcdd   : > { %8931 = vmatpush.msra.mxu1 %v8906_v23  ;;  %v8880_v16 = vadd.f32 %v16384_v20, %v17111_v40  ;;  %v8921_v23 = vmax.f32 %v8886_v59, 0.0  ;;  %v8868_v20 = vadd.f32 %v16346_v60, %v8645_v19  ;;  %v17117_v60 = vld [vmem:[#allocation31_spill] sm:$0xff]  ;;  %v8980_v59 = vld [vmem:[%s16654_s5 + $0x10] sm:$0xff] }
 0xcde   : > { %v8856_v19 = vadd.f32 %v17117_v60, %v8625_v55  ;;  %v8986_v55 = vld [vmem:[%s16654_s5 + $0x40] sm:$0xff]  ;;  %v10510_v60 = vld [vmem:[%s16654_s5 + $0x68] sm:$0xff] }
 0xcdf   : > { %8932 = vmatpush.msra.mxu1 %v8905_v46  ;;  %v8535_v45 = vpop.permute.xlu2 %8534  ;;  %v8874_v46 = vadd.f32 %v16364_v4, %v16380_v47  ;;  %v8919_v18 = vmax.f32 %v8880_v16, 0.0  ;;  %v17115_v4 = vld [vmem:[#allocation25_spill] sm:$0xff]  ;;  %v8915_v57 = vmax.f32 %v8868_v20, 0.0  ;;  %v8982_v16 = vld [vmem:[%s16654_s5 + $0x20] sm:$0xff] }
 0xce0   : > { %v8802_v1 = vadd.f32 %v17106_v44, %v8535_v45  ;;  %v17122_v44 = vld [vmem:[#allocation88_spill] sm:$0xff] }
 0xce1   : > { %8933 = vmatpush.msra.mxu1 %v8904_v61  ;;  %v8888_v49 = vpop.f32.mrf.mxu2  ;;  %v8918_v61 = vmax.f32 %v8877_v34, 0.0  ;;  %v8917_v6 = vmax.f32 %v8874_v46, 0.0  ;;  %v8610_v26 = vpop.permute.xlu1 %8609 }
 0xce2   : > { %v8893_v7 = vmax.f32 %v8802_v1, 0.0  ;;  %v8889_v9 = vadd.f32 %v8888_v49, %v17110_v17  ;;  %v8847_v8 = vadd.f32 %v17121_v53, %v8610_v26  ;;  %v8977_v49 = vld [vmem:[#allocation3 + $0xf8] sm:$0xff]  ;;  %v10513_v53 = vld [vmem:[%s16654_s5 + $0x80] sm:$0xff] }
 0xce3   : > { %8934 = vmatpush.msra.mxu1 %v8903_v25  ;;  %v16434_v63 = vpop.permute.xlu0 %9089  ;;  %v8916_v25 = vmax.f32 %v8871_v33, 0.0 }
 0xce4   : > { %v8922_v13 = vmax.f32 %v8889_v9, 0.0  ;;  %v8908_v3 = vmax.f32 %v8847_v8, 0.0  ;;  %v8979_v9 = vld [vmem:[%s16654_s5 + $0x8] sm:$0xff] }
 0xce5   : > { %8935 = vmatpush.msra.mxu1 %v8902_v52  ;;  %v17114_v52 = vld [vmem:[#allocation20_spill] sm:$0xff] }
 0xce6   : > { %v8862_v47 = vadd.f32 %v17115_v4, %v17114_v52  ;;  %v8987_v4 = vld [vmem:[%s16654_s5 + $0x48] sm:$0xff] }
 0xce7   : > { %8936 = vmatpush.msra.mxu1 %v8901_v2  ;;  %v8630_v11 = vpop.permute.xlu2 %8629 }
 0xce8   : > { %v8859_v38 = vadd.f32 %v17116_v15, %v8630_v11  ;;  %v8913_v5 = vmax.f32 %v8862_v47, 0.0  ;;  %v10508_v15 = vld [vmem:[%s16654_s5 + $0x58] sm:$0xff] }
 0xce9   : > { %8937 = vmatpush.msra.mxu1 %v8900_v29  ;;  %v8914_v29 = vmax.f32 %v8865_v62, 0.0  ;;  %v16459_v17 = vpop.permute.xlu1 %9119 }
 0xcea   : > { %v8912_v22 = vmax.f32 %v8859_v38, 0.0 }
 0xceb   : > { %8938 = vmatpush.msra.mxu1 %v8899_v51  ;;  %v17118_v51 = vld [vmem:[#allocation29_spill] sm:$0xff]  ;;  %v16442_v35 = vpop.permute.xlu0 %9184 }
 0xced   : > { %8939 = vmatpush.msra.mxu1 %v8898_v36  ;;  %v17119_v36 = vld [vmem:[#allocation80_spill] sm:$0xff] }
 0xcee   : > { %v8850_v54 = vadd.f32 %v17120_v32, %v17119_v36 }
 0xcef   : > { %8940 = vmatpush.msra.mxu1 %v8897_v24  ;;  %v8620_v2 = vpop.permute.xlu2 %8619  ;;  %v8911_v24 = vmax.f32 %v8856_v19, 0.0 }
 0xcf0   : > { %v8853_v43 = vadd.f32 %v17118_v51, %v8620_v2  ;;  %v10511_v51 = vld [vmem:[%s16654_s5 + $0x70] sm:$0xff] }
 0xcf1   : > { %8941 = vmatpush.msra.mxu1 %v8896_v31 }
 0xcf2   : > { %v8910_v31 = vmax.f32 %v8853_v43, 0.0 }
 0xcf3   : > { %8942 = vmatpush.msra.mxu1 %v8895_v41  ;;  %v8909_v41 = vmax.f32 %v8850_v54, 0.0 }
 0xcf5   : > { %8943 = vmatpush.msra.mxu1 %v8894_v27  ;;  %v16451_v27 = vpop.permute.xlu0 %9074 }
 0xcf7   : > { %8944 = vmatpush.msra.mxu1 %v8893_v7  ;;  %v8605_v45 = vpop.permute.xlu2 %8604  ;;  %v8974_v7 = vld [vmem:[#allocation3 + $0xe0] sm:$0xff] }
 0xcf8   : > { %v8844_v1 = vadd.f32 %v17122_v44, %v8605_v45  ;;  %v17124_v44 = vld [vmem:[#allocation52_spill] sm:$0xff] }
 0xcf9   : > { %8945 = vmatpush.msra.mxu1 %v8892_v21 }
 0xcfa   : > { %v8907_v14 = vmax.f32 %v8844_v1, 0.0 }
 0xcfb   : > { %8946 = vmatpush.msra.mxu1 %v8891_v12 }
 0xcfc   : > { %8947 = vmatmul.f32.vlgmr.msra.gmra.mxu1 %v8923_v58  ;;  %v16470_v58 = vpop.permute.xlu1 %9104 }
 0xcfd   : > { %8951 = vmatpush.msrb.mxu1 %v8922_v13  ;;  %v16457_v21 = vpop.permute.xlu0 %9169  ;;  %v8981_v13 = vld [vmem:[%s16654_s5 + $0x18] sm:$0xff] }
 0xcff   : > { %8952 = vmatpush.msrb.mxu1 %v8921_v23 }
 0xd01   : > { %8953 = vmatpush.msrb.mxu1 %v8920_v28  ;;  %v8983_v28 = vld [vmem:[%s16654_s5 + $0x28] sm:$0xff] }
 0xd03   : > { %8954 = vmatpush.msrb.mxu1 %v8919_v18  ;;  %v8428_v18 = vpop.f32.mrf.mxu1 }
 0xd04   : > { %v16479_v40 = vpop.permute.xlu1 %9094 }
 0xd05   : > { %8955 = vmatpush.msrb.mxu1 %v8918_v61  ;;  %v16465_v12 = vpop.permute.xlu0 %9059 }
 0xd07   : > { %8956 = vmatpush.msrb.mxu1 %v8917_v6  ;;  %v8985_v6 = vld [vmem:[%s16654_s5 + $0x38] sm:$0xff] }
 0xd09   : > { %8957 = vmatpush.msrb.mxu1 %v8916_v25 }
 0xd0b   : > { %8958 = vmatpush.msrb.mxu1 %v8915_v57  ;;  %v8988_v57 = vld [vmem:[%s16654_s5 + $0x50] sm:$0xff] }
 0xd0c   : > { %v16487_v34 = vpop.permute.xlu1 %9189 }
 0xd0d   : > { %8959 = vmatpush.msrb.mxu1 %v8914_v29  ;;  %v16473_v39 = vpop.permute.xlu0 %9154  ;;  %v10509_v29 = vld [vmem:[%s16654_s5 + $0x60] sm:$0xff] }
 0xd0f   : > { %8960 = vmatpush.msrb.mxu1 %v8913_v5 }
 0xd11   : > { %8961 = vmatpush.msrb.mxu1 %v8912_v22 }
 0xd13   : > { %8962 = vmatpush.msrb.mxu1 %v8911_v24  ;;  %v10512_v24 = vld [vmem:[%s16654_s5 + $0x78] sm:$0xff] }
 0xd14   : > { %v16495_v46 = vpop.permute.xlu1 %9079 }
 0xd15   : > { %8963 = vmatpush.msrb.mxu1 %v8910_v31  ;;  %v16484_v23 = vpop.permute.xlu0 %9044  ;;  %v17123_v31 = vld [vmem:[#allocation45_spill] sm:$0xff] }
 0xd17   : > { %8964 = vmatpush.msrb.mxu1 %v8909_v41  ;;  %v17125_v41 = vld [vmem:[#allocation50_spill] sm:$0xff] }
 0xd19   : > { %8965 = vmatpush.msrb.mxu1 %v8908_v3 }
 0xd1b   : > { %8966 = vmatpush.msrb.mxu1 %v8907_v14  ;;  %v17126_v14 = vld [vmem:[#allocation53_spill] sm:$0xff] }
 0xd1c   : > { %8967 = vmatmul.f32.vlgmr.msrb.gmra.mxu1 %v8924_v42  ;;  %v16504_v62 = vpop.permute.xlu1 %9174 }
 0xd1d   : > { %9310 = vmatpush.msra.mxu1 %v8977_v49  ;;  %v16493_v11 = vpop.permute.xlu0 %9134  ;;  %v17127_v49 = vld [vmem:[#allocation17_spill] sm:$0xff] }
 0xd1f   : > { %9311 = vmatpush.msra.mxu1 %v8976_v48 }
 0xd21   : > { %9312 = vmatpush.msra.mxu1 %v8975_v37  ;;  %v17128_v37 = vld [vmem:[#allocation58_spill] sm:$0xff] }
 0xd23   : > { %9313 = vmatpush.msra.mxu1 %v8974_v7  ;;  %v17129_v7 = vld [vmem:[#allocation59_spill] sm:$0xff] }
 0xd24   : > { %10402 = vmatmul.msk.f32.vlgmr.msra.gmra.mxu1 %vm663_vm0, %v8978_v56  ;;  %v16513_v52 = vpop.permute.xlu1 %9064 }
 0xd25   : > { %v8409_v33 = vpop.permute.xlu0 %8408 }
 0xd26   : > { %v8429_v61 = vadd.f32 %v8428_v18, %v8409_v33 }
 0xd2c   : > { %10403 = vmatmul.msk.f32.gmra.mxu1 %vm663_vm0, %v8979_v9  ;;  %v16519_v47 = vpop.permute.xlu1 %9159 }
 0xd34   : > { %10404 = vmatmul.msk.f32.gmra.mxu1 %vm663_vm0, %v8980_v59  ;;  %v16525_v2 = vpop.permute.xlu1 %9049  ;;  %v17130_v59 = vld [vmem:[#allocation8_spill] sm:$0xff] }
 0xd3c   : > { %10405 = vmatmul.msk.f32.gmra.mxu1 %vm663_vm0, %v8981_v13  ;;  %v16531_v38 = vpop.permute.xlu1 %9144 }
 0xd44   : > { %10406 = vmatmul.msk.f32.gmra.mxu1 %vm663_vm0, %v8982_v16  ;;  %v16541_v19 = vpop.permute.xlu1 %9129  ;;  %v9115_v16 = vpop.permute.xlu2 %9114 }
 0xd4c   : > { %10407 = vmatmul.msk.f32.gmra.mxu1 %vm663_vm0, %v8983_v28  ;;  %v8929_v43 = vpop.permute.xlu1 %8928  ;;  %v17131_v28 = vld [vmem:[#allocation13_spill] sm:$0xff]  ;;  %v9100_v33 = vpop.permute.xlu2 %9099 }
 0xd54   : > { %10408 = vmatmul.msk.f32.gmra.mxu1 %vm663_vm0, %v8984_v10  ;;  %v17132_v10 = vld [vmem:[#allocation65_spill] sm:$0xff] }
 0xd59   : > { %v8448_v20 = vpop.f32.mrf.mxu1 }
 0xd5a   : > { %v8449_v30 = vadd.f32 %v8448_v20, %v8429_v61  ;;  %v17133_v20 = vld [vmem:[#allocation19_spill] sm:$0xff] }
 0xd5c   : > { %v8451_v25 = vmax.f32 %v8449_v30, 0.0  ;;  %10409 = vmatmul.msk.f32.gmra.mxu1 %vm663_vm0, %v8985_v6  ;;  %v16587_v6 = vpop.permute.xlu2 %9194 }
 0xd5e   : > { %10368 = vst.msk [vmem:[%s15453_s22 + $0x28] sm:$0x3f] %vm5852_vm1, %v8451_v25  ;;  %v17134_v25 = vld [vmem:[#allocation71_spill] sm:$0xff] }
 0xd64   : > { %10410 = vmatmul.msk.f32.gmra.mxu1 %vm663_vm0, %v8986_v55  ;;  %v9085_v55 = vpop.permute.xlu2 %9084 }
 0xd6c   : > { %10411 = vmatmul.msk.f32.gmra.mxu1 %vm663_vm0, %v8987_v4 }
 0xd74   : > { %10412 = vmatmul.msk.f32.gmra.mxu1 %vm663_vm0, %v8988_v57  ;;  %v17135_v57 = vld [vmem:[#allocation69_spill] sm:$0xff] }
 0xd79   : > { %v8948_v5 = vpop.f32.mrf.mxu1 }
 0xd7a   : > { %v8949_v22 = vadd.f32 %v8948_v5, %v8929_v43 }
 0xd7c   : > { %10413 = vmatmul.msk.f32.gmra.mxu1 %vm663_vm0, %v10508_v15 }
 0xd84   : > { %10414 = vmatmul.msk.f32.gmra.mxu1 %vm663_vm0, %v10509_v29  ;;  %v16593_v29 = vpop.permute.xlu2 %9179 }
 0xd8c   : > { %10415 = vmatmul.msk.f32.gmra.mxu1 %vm663_vm0, %v10510_v60  ;;  %v17136_v60 = vld [vmem:[#allocation76_spill] sm:$0xff] }
 0xd94   : > { %10416 = vmatmul.msk.f32.gmra.mxu1 %vm663_vm0, %v10511_v51 }
 0xd99   : > { %v8968_v36 = vpop.f32.mrf.mxu1 }
 0xd9a   : > { %v8969_v32 = vadd.f32 %v8968_v36, %v8949_v22 }
 0xd9c   : > { %v8971_v54 = vmax.f32 %v8969_v32, 0.0  ;;  %10417 = vmatmul.msk.f32.gmra.mxu1 %vm663_vm0, %v10512_v24  ;;  %v17137_v32 = vld [vmem:[#allocation78_spill] sm:$0xff] }
 0xd9e   : > { %10401 = vst.msk [vmem:[%s15453_s22 + $0x30] sm:$0x3f] %vm5852_vm1, %v8971_v54  ;;  %v9070_v54 = vpop.permute.xlu2 %9069 }
 0xda1   : > { %v16553_v26 = vpop.f32.mrf.mxu1 }
 0xda4   : > { %10418 = vmatmul.msk.f32.gmra.mxu1 %vm663_vm0, %v10513_v53 }
 0xda9   : > { %v16559_v8 = vpop.f32.mrf.mxu1 }
 0xdac   : > { %10419 = vmatmul.msk.f32.gmra.mxu1 %vm663_vm0, %v17123_v31 }
 0xdb1   : > { %v16563_v45 = vpop.f32.mrf.mxu1 }
 0xdb4   : > { %10420 = vmatmul.msk.f32.gmra.mxu1 %vm663_vm0, %v17124_v44 }
 0xdb9   : > { %v16567_v1 = vpop.f32.mrf.mxu1 }
 0xdbc   : > { %10421 = vmatmul.msk.f32.gmra.mxu1 %vm663_vm0, %v17125_v41 }
 0xdc1   : > { %v9327_v3 = vpop.f32.mrf.mxu1 }
 0xdc4   : > { %10422 = vmatmul.msk.f32.gmra.mxu1 %vm663_vm0, %v17126_v14 }
 0xdc9   : > { %v9330_v42 = vpop.f32.mrf.mxu1 }
 0xdcc   : > { %10423 = vmatmul.msk.f32.gmra.mxu1 %vm663_vm0, %v17127_v49 }
 0xdd1   : > { %v9333_v48 = vpop.f32.mrf.mxu1 }
 0xdd4   : > { %10424 = vmatmul.msk.f32.gmra.mxu1 %vm663_vm0, %v17128_v37 }
 0xdd9   : > { %v9336_v56 = vpop.f32.mrf.mxu1 }
 0xddc   : > { %10425 = vmatmul.msk.f32.gmra.mxu1 %vm663_vm0, %v17129_v7 }
 0xde1   : > { %v9339_v9 = vpop.f32.mrf.mxu1 }
 0xde2   : > { %v9340_v37 = vadd.f32 %v9339_v9, %v9085_v55 }
 0xde4   : > { %10426 = vmatmul.msk.f32.gmra.mxu1 %vm663_vm0, %v17130_v59  ;;  %v16606_v59 = vpop.permute.xlu2 %9164 }
 0xde9   : > { %v9342_v13 = vpop.f32.mrf.mxu1 }
 0xdec   : > { %10427 = vmatmul.msk.f32.gmra.mxu1 %vm663_vm0, %v17131_v28 }
 0xdf1   : > { %v9345_v18 = vpop.f32.mrf.mxu1 }
 0xdf2   : > { %v9346_v14 = vadd.f32 %v9345_v18, %v16479_v40  ;;  %v9419_v40 = vmax.f32 %v9340_v37, 0.0  ;;  %v9331_v18 = vadd.f32 %v9330_v42, %v9070_v54  ;;  %v9319_v42 = vadd.f32 %v16559_v8, %v16525_v2 }
 0xdf4   : > { %10428 = vmatmul.msk.f32.gmra.mxu1 %vm663_vm0, %v17132_v10  ;;  %v9421_v7 = vmax.f32 %v9346_v14, 0.0  ;;  %v9334_v10 = vadd.f32 %v9333_v48, %v16451_v27 }
 0xdf6   : > { %v9417_v9 = vmax.f32 %v9334_v10, 0.0 }
 0xdf9   : > { %v9348_v61 = vpop.f32.mrf.mxu1 }
 0xdfa   : > { %v9349_v31 = vadd.f32 %v9348_v61, %v9100_v33  ;;  %v9416_v61 = vmax.f32 %v9331_v18, 0.0 }
 0xdfc   : > { %10429 = vmatmul.msk.f32.gmra.mxu1 %vm663_vm0, %v17133_v20 }
 0xe01   : > { %v9351_v30 = vpop.f32.mrf.mxu1 }
 0xe02   : > { %v9352_v24 = vadd.f32 %v9351_v30, %v16470_v58  ;;  %v9337_v58 = vadd.f32 %v9336_v56, %v16495_v46  ;;  %v9055_v46 = vpop.permute.xlu2 %9054 }
 0xe03   : > { %v9322_v20 = vadd.f32 %v16563_v45, %v9055_v46  ;;  %v9443_v45 = vld [vmem:[%s16656_s7] sm:$0x3f] }
 0xe04   : > { %10430 = vmatmul.msk.f32.gmra.mxu1 %vm663_vm0, %v17134_v25  ;;  %v9423_v49 = vmax.f32 %v9352_v24, 0.0  ;;  %v9418_v33 = vmax.f32 %v9337_v58, 0.0 }
 0xe09   : > { %v9354_v4 = vpop.f32.mrf.mxu1 }
 0xe0a   : > { %v9355_v22 = vadd.f32 %v9354_v4, %v16412_v50  ;;  %v9343_v50 = vadd.f32 %v9342_v13, %v16434_v63  ;;  %v9328_v63 = vadd.f32 %v9327_v3, %v16513_v52  ;;  %v9325_v13 = vadd.f32 %v16567_v1, %v16465_v12 }
 0xe0b   : > { %v9316_v52 = vadd.f32 %v16553_v26, %v16484_v23  ;;  %v9413_v3 = vmax.f32 %v9322_v20, 0.0  ;;  %v9412_v12 = vmax.f32 %v9319_v42, 0.0 }
 0xe0c   : > { %10431 = vmatmul.msk.f32.gmra.mxu1 %vm663_vm0, %v17135_v57  ;;  %v9424_v44 = vmax.f32 %v9355_v22, 0.0  ;;  %v9415_v27 = vmax.f32 %v9328_v63, 0.0  ;;  %v9414_v48 = vmax.f32 %v9325_v13, 0.0 }
 0xe0d   : > { %v9411_v30 = vmax.f32 %v9316_v52, 0.0 }
 0xe11   : > { %v9357_v15 = vpop.f32.mrf.mxu1 }
 0xe12   : > { %v9358_v51 = vadd.f32 %v9357_v15, %v9115_v16  ;;  %v9420_v16 = vmax.f32 %v9343_v50, 0.0 }
 0xe14   : > { %10432 = vmatmul.msk.f32.gmra.mxu1 %vm663_vm0, %v17136_v60  ;;  %v9425_v53 = vmax.f32 %v9358_v51, 0.0 }
 0xe19   : > { %v9360_v5 = vpop.f32.mrf.mxu1 }
 0xe1a   : > { %v9361_v43 = vadd.f32 %v9360_v5, %v16459_v17  ;;  %v9422_v17 = vmax.f32 %v9349_v31, 0.0 }
 0xe1c   : > { %v9426_v36 = vmax.f32 %v9361_v43, 0.0  ;;  %10433 = vmatmul.msk.f32.gmra.mxu1 %vm663_vm0, %v17137_v32 }
 0xe1e   : > { %9451 = vmatpush.msrb.mxu0 %v9426_v36 }
 0xe20   : > { %9452 = vmatpush.msrb.mxu0 %v9425_v53 }
 0xe21   : > { %v16602_v41 = vpop.f32.mrf.mxu1 }
 0xe22   : > { %9453 = vmatpush.msrb.mxu0 %v9424_v44  ;;  %v9150_v44 = vpop.permute.xlu2 %9149 }
 0xe24   : > { %9454 = vmatpush.msrb.mxu0 %v9423_v49 }
 0xe26   : > { %9455 = vmatpush.msrb.mxu0 %v9422_v17 }
 0xe28   : > { %9456 = vmatpush.msrb.mxu0 %v9421_v7 }
 0xe29   : > { %v16609_v28 = vpop.f32.mrf.mxu1 }
 0xe2a   : > { %9457 = vmatpush.msrb.mxu0 %v9420_v16  ;;  %v9140_v7 = vpop.permute.xlu2 %9139 }
 0xe2c   : > { %9458 = vmatpush.msrb.mxu0 %v9419_v40 }
 0xe2e   : > { %9459 = vmatpush.msrb.mxu0 %v9418_v33 }
 0xe30   : > { %9460 = vmatpush.msrb.mxu0 %v9417_v9 }
 0xe31   : > { %v16615_v56 = vpop.f32.mrf.mxu1 }
 0xe32   : > { %9461 = vmatpush.msrb.mxu0 %v9416_v61  ;;  %v9125_v33 = vpop.permute.xlu2 %9124 }
 0xe33   : > { %v9364_v63 = vadd.f32 %v16602_v41, %v9125_v33 }
 0xe34   : > { %9462 = vmatpush.msrb.mxu0 %v9415_v27 }
 0xe35   : > { %v9427_v13 = vmax.f32 %v9364_v63, 0.0 }
 0xe36   : > { %9463 = vmatpush.msrb.mxu0 %v9414_v48 }
 0xe38   : > { %9464 = vmatpush.msrb.mxu0 %v9413_v3 }
 0xe39   : > { %v9372_v1 = vpop.f32.mrf.mxu1 }
 0xe3a   : > { %9465 = vmatpush.msrb.mxu0 %v9412_v12  ;;  %v9373_v10 = vadd.f32 %v9372_v1, %v9140_v7 }
 0xe3c   : > { %9466 = vmatpush.msrb.mxu0 %v9411_v30  ;;  %v9430_v18 = vmax.f32 %v9373_v10, 0.0 }
 0xe3d   : > { %9467 = vmatmul.f32.vlgmr.msrb.gmra.mxu0 %v9443_v45 }
 0xe41   : > { %v9375_v25 = vpop.f32.mrf.mxu1 }
 0xe49   : > { %v9378_v2 = vpop.f32.mrf.mxu1 }
 0xe51   : > { %v9381_v8 = vpop.f32.mrf.mxu1 }
 0xe59   : > { %v9384_v55 = vpop.f32.mrf.mxu1 }
 0xe61   : > { %v9387_v4 = vpop.f32.mrf.mxu1 }
 0xe69   : > { %v9390_v57 = vpop.f32.mrf.mxu1 }
 0xe71   : > { %v9393_v23 = vpop.f32.mrf.mxu1 }
 0xe72   : > { %v9394_v14 = vadd.f32 %v9393_v23, %v16504_v62  ;;  %v9379_v62 = vadd.f32 %v9378_v2, %v9150_v44 }
 0xe79   : > { %v9396_v26 = vpop.f32.mrf.mxu1 }
 0xe7a   : > { %v9397_v53 = vadd.f32 %v9396_v26, %v16593_v29  ;;  %v9382_v29 = vadd.f32 %v9381_v8, %v16473_v39  ;;  %v9367_v39 = vadd.f32 %v16609_v28, %v16541_v19  ;;  %v9449_v19 = vpop.permute.xlu2 %9448 }
 0xe7c   : > { %v9438_v50 = vmax.f32 %v9397_v53, 0.0  ;;  %v9433_v16 = vmax.f32 %v9382_v29, 0.0  ;;  %v9428_v9 = vmax.f32 %v9367_v39, 0.0 }
 0xe81   : > { %v9399_v15 = vpop.f32.mrf.mxu1 }
 0xe82   : > { %v9400_v54 = vadd.f32 %v9399_v15, %v16442_v35  ;;  %v9385_v35 = vadd.f32 %v9384_v55, %v16519_v47  ;;  %v9370_v47 = vadd.f32 %v16615_v56, %v16493_v11  ;;  %v9444_v11 = vld [vmem:[%s16656_s7 + $0x8] sm:$0x3f] }
 0xe84   : > { %v9439_v49 = vmax.f32 %v9400_v54, 0.0  ;;  %v9434_v58 = vmax.f32 %v9385_v35, 0.0 }
 0xe89   : > { %v9402_v60 = vpop.f32.mrf.mxu1 }
 0xe8a   : > { %v9403_v36 = vadd.f32 %v9402_v60, %v16487_v34  ;;  %v9437_v34 = vmax.f32 %v9394_v14, 0.0 }
 0xe8c   : > { %v9440_v31 = vmax.f32 %v9403_v36, 0.0 }
 0xe91   : > { %v9405_v5 = vpop.f32.mrf.mxu1 }
 0xe92   : > { %v9406_v43 = vadd.f32 %v9405_v5, %v16587_v6  ;;  %v9391_v6 = vadd.f32 %v9390_v57, %v16457_v21  ;;  %v9376_v21 = vadd.f32 %v9375_v25, %v16531_v38  ;;  %v9429_v38 = vmax.f32 %v9370_v47, 0.0 }
 0xe94   : > { %v9441_v24 = vmax.f32 %v9406_v43, 0.0  ;;  %v9436_v17 = vmax.f32 %v9391_v6, 0.0  ;;  %v9431_v40 = vmax.f32 %v9376_v21, 0.0 }
 0xe99   : > { %v9408_v51 = vpop.f32.mrf.mxu1 }
 0xe9a   : > { %v9409_v22 = vadd.f32 %v9408_v51, %v16423_v0  ;;  %v9388_v0 = vadd.f32 %v9387_v4, %v16606_v59  ;;  %v9432_v59 = vmax.f32 %v9379_v62, 0.0 }
 0xe9c   : > { %v9442_v32 = vmax.f32 %v9409_v22, 0.0  ;;  %v9435_v37 = vmax.f32 %v9388_v0, 0.0 }
 0xe9e   : > { %9471 = vmatpush.msra.mxu0 %v9442_v32 }
 0xea0   : > { %9472 = vmatpush.msra.mxu0 %v9441_v24 }
 0xea2   : > { %9473 = vmatpush.msra.mxu0 %v9440_v31 }
 0xea4   : > { %9474 = vmatpush.msra.mxu0 %v9439_v49 }
 0xea6   : > { %9475 = vmatpush.msra.mxu0 %v9438_v50 }
 0xea8   : > { %9476 = vmatpush.msra.mxu0 %v9437_v34 }
 0xeaa   : > { %9477 = vmatpush.msra.mxu0 %v9436_v17 }
 0xeac   : > { %9478 = vmatpush.msra.mxu0 %v9435_v37 }
 0xeae   : > { %9479 = vmatpush.msra.mxu0 %v9434_v58 }
 0xeb0   : > { %9480 = vmatpush.msra.mxu0 %v9433_v16 }
 0xeb2   : > { %9481 = vmatpush.msra.mxu0 %v9432_v59 }
 0xeb4   : > { %9482 = vmatpush.msra.mxu0 %v9431_v40 }
 0xeb6   : > { %9483 = vmatpush.msra.mxu0 %v9430_v18 }
 0xeb8   : > { %9484 = vmatpush.msra.mxu0 %v9429_v38 }
 0xeba   : > { %9485 = vmatpush.msra.mxu0 %v9428_v9  ;;  %v9468_v61 = vpop.f32.mrf.mxu0 }
 0xebb   : > { %v9469_v28 = vadd.f32 %v9468_v61, %v9449_v19 }
 0xebc   : > { %9486 = vmatpush.msra.mxu0 %v9427_v13 }
 0xebd   : > { %9487 = vmatmul.f32.vlgmr.msra.gmra.mxu0 %v9444_v11 }
 0xf3a   : > { %v9488_v46 = vpop.f32.mrf.mxu0 }
 0xf3b   : > { %v9489_v56 = vadd.f32 %v9488_v46, %v9469_v28 }
 0xf3d   : > { %v9491_v20 = vmax.f32 %v9489_v56, 0.0 }
 0xf3f   : > { %10434 = vst.msk [vmem:[%s15453_s22 + $0x38] sm:$0x3f] %vm5852_vm1, %v9491_v20 }
 0xf40 PF: > { %s19_s30 = sadd.s32 1, %s10520_s30  }
 0xf41   : > { %p16_p4 = scmp.ge.s32.totalorder %s19_s30, 4  }
 0xf43   :  { %18 = sbr.rel (!%p16_p4) target bundleno = 1 (0x1), region = 107 }

</bundles_post_ra>
